<compile_context>
chip_gen: v5e
topology: v5e:2x2
jax: 0.10.0
libtpu: 0.0.40
codegen_flags: <defaults>
</compile_context>

<pallas_src>
import functools

import jax
import jax.numpy as jnp
from jax import lax
from jax.experimental import pallas as pl
from jax.experimental.pallas import tpu as pltpu

# Module constants (betas are unused for a single step from zero state).
BETA = (0.9999903192467171, 0.7291118090686332, 0.9364650136740154,
        0.8348241794080301)
TH = (3.511291184386264, 3.494437965584431, 1.5986853560315544,
      0.3641469130041378)

LANE = 128
# Padded output lanes carry zero weights/bias; they stay spike-free only
# because every threshold is positive.
assert all(t > 0.0 for t in TH)


def _round_up(v, m):
    return (v + m - 1) // m * m


def _pick_row_tile(n, cap):
    """Whole array if it fits, else the largest multiple-of-8 divisor <= cap."""
    if n <= cap:
        return n
    t = (cap // 8) * 8
    while t >= 8:
        if n % t == 0:
            return t
        t -= 8
    return n


# ---------------------------------------------------------------------------
# Pallas kernels
# ---------------------------------------------------------------------------
def conv_pool_spike_kernel(p_ref, w_ref, b_ref, spk_ref, *, thresh):
    """Conv (shared-window im2col matmul) + 2x2 max-pool + LIF threshold.

    p_ref  : (TR, K)    bf16 im2col patches, K = 36*Cin (shared 6x6 window)
    w_ref  : (K, 512)   bf16 weights; four 128-wide blocks = pool positions
    b_ref  : (1, 128)   f32 bias (zero-padded past Cout)
    spk_ref: (TR, 128)  bf16 spikes (0/1), lane-dense
    """
    acc = jnp.dot(p_ref[...], w_ref[...],
                  preferred_element_type=jnp.float32)          # (TR, 512)
    m = jnp.maximum(jnp.maximum(acc[:, 0:128], acc[:, 128:256]),
                    jnp.maximum(acc[:, 256:384], acc[:, 384:512]))
    # Per-channel bias commutes with the max; threshold -> spike.
    spk_ref[...] = ((m + b_ref[...]) > thresh).astype(jnp.bfloat16)


def linear_lif_kernel(x_ref, w_ref, b_ref, spk_ref, mem_ref, *, thresh):
    """Linear layer + output LIF (spikes and membrane), lane-padded outputs."""
    y = jnp.dot(x_ref[...], w_ref[...],
                preferred_element_type=jnp.float32) + b_ref[...]
    spk_ref[...] = (y > thresh).astype(jnp.float32)
    mem_ref[...] = y


# ---------------------------------------------------------------------------
# Wrappers (pallas_call)
# ---------------------------------------------------------------------------
def conv_pool_spike(patches, w_p, b_p, thresh):
    R, K = patches.shape
    tr = _pick_row_tile(R, cap=1024 if K <= 128 else 512)
    kern = functools.partial(conv_pool_spike_kernel, thresh=thresh)
    return pl.pallas_call(
        kern,
        out_shape=jax.ShapeDtypeStruct((R, LANE), jnp.bfloat16),
        grid=(R // tr,),
        in_specs=[
            pl.BlockSpec((tr, K), lambda n: (n, 0)),
            pl.BlockSpec((K, 4 * LANE), lambda n: (0, 0),
                         pipeline_mode=pl.Buffered(1)),
            pl.BlockSpec((1, LANE), lambda n: (0, 0),
                         pipeline_mode=pl.Buffered(1)),
        ],
        out_specs=pl.BlockSpec((tr, LANE), lambda n: (n, 0)),
        compiler_params=pltpu.CompilerParams(
            dimension_semantics=("parallel",)),
    )(patches, w_p, b_p)


def linear_lif(x, w, b, thresh):
    B, D = x.shape
    Op = w.shape[1]                               # padded to 128
    tb = _pick_row_tile(B, cap=256)
    kern = functools.partial(linear_lif_kernel, thresh=thresh)
    return pl.pallas_call(
        kern,
        out_shape=(jax.ShapeDtypeStruct((B, Op), jnp.float32),
                   jax.ShapeDtypeStruct((B, Op), jnp.float32)),
        grid=(B // tb,),
        in_specs=[
            pl.BlockSpec((tb, D), lambda n: (n, 0)),
            pl.BlockSpec((D, Op), lambda n: (0, 0),
                         pipeline_mode=pl.Buffered(1)),
            pl.BlockSpec((1, Op), lambda n: (0, 0),
                         pipeline_mode=pl.Buffered(1)),
        ],
        out_specs=(pl.BlockSpec((tb, Op), lambda n: (n, 0)),
                   pl.BlockSpec((tb, Op), lambda n: (n, 0))),
        compiler_params=pltpu.CompilerParams(
            dimension_semantics=("parallel",)),
    )(x, w, b)


# ---------------------------------------------------------------------------
# Glue (bf16 data rearrangement only; all FLOPs / reductions are in kernels)
# ---------------------------------------------------------------------------
def build_shared_patches(x_nhwc):
    """im2col with one 6x6 window shared by all four 2x2-pool positions.

    Returns (B*Ho*Wo, 36*Cin); K order is (sh, sw, ci) with window row
    sh = ph + kh and window col sw = pw + kw.
    """
    B, H, W, C = x_nhwc.shape
    Ho, Wo = H // 2, W // 2
    xp = jnp.pad(x_nhwc, ((0, 0), (2, 2), (2, 2), (0, 0)))
    taps = []
    for sh in range(6):
        for sw in range(6):
            taps.append(xp[:, sh:sh + H:2, sw:sw + W:2, :])    # (B, Ho, Wo, C)
    patches = jnp.concatenate(taps, axis=-1)                   # (B,Ho,Wo,36C)
    return patches.reshape(B * Ho * Wo, 36 * C)


def build_conv_weight(w_bf16):
    """(Cout, Cin, 5, 5) -> (36*Cin, 512): four 128-wide pool-position blocks.

    Column block pb = 2*ph + pw holds W[sh-ph, sw-pw, ci, co] at K-index
    (sh*6 + sw)*Cin + ci (zero where the tap falls outside the 5x5 kernel).
    """
    Cout, Cin = w_bf16.shape[0], w_bf16.shape[1]
    wt = jnp.transpose(w_bf16, (2, 3, 1, 0))                   # (5,5,Cin,Cout)
    wc = jnp.zeros((6, 6, Cin, 4, LANE), jnp.bfloat16)
    for ph in range(2):
        for pw in range(2):
            pb = 2 * ph + pw
            wc = wc.at[ph:ph + 5, pw:pw + 5, :, pb, :Cout].set(wt)
    return wc.reshape(36 * Cin, 4 * LANE)


def net_forward(x_nchw, params):
    B = x_nchw.shape[0]
    x = jnp.transpose(x_nchw, (0, 2, 3, 1)).astype(jnp.bfloat16)   # NHWC bf16

    conv_layers = (
        (params["w1"], params["b1"], TH[0]),
        (params["w2"], params["b2"], TH[1]),
        (params["w3"], params["b3"], TH[2]),
    )
    for w, b, th in conv_layers:
        Cout = w.shape[0]
        H, W = x.shape[1], x.shape[2]
        Ho, Wo = H // 2, W // 2
        patches = build_shared_patches(x)                  # (B*Ho*Wo, 36*Cin)
        w_p = build_conv_weight(w.astype(jnp.bfloat16))    # (36*Cin, 512)
        b_p = jnp.pad(b.reshape(1, Cout).astype(jnp.float32),
                      ((0, 0), (0, LANE - Cout)))
        spk = conv_pool_spike(patches, w_p, b_p, th)       # (B*Ho*Wo, 128)
        x = spk[:, :Cout].reshape(B, Ho, Wo, Cout)

    # Keep the activation in NHWC order and permute the linear-weight columns
    # (one-time weight gather) instead of transposing the activation.
    Hl, Wl, Cl = x.shape[1], x.shape[2], x.shape[3]
    flat = x.reshape(B, Hl * Wl * Cl)                      # bf16 spikes
    wl = params["wl"].astype(jnp.bfloat16)                 # (11, C*H*W) NCHW
    O = wl.shape[0]
    wl_nhwc = wl.reshape(O, Cl, Hl, Wl).transpose(0, 2, 3, 1).reshape(O, -1)
    Op = _round_up(O, LANE)
    wlT = jnp.pad(wl_nhwc.T, ((0, 0), (0, Op - O)))        # (1024, 128) bf16
    bl = jnp.pad(params["bl"].reshape(1, O).astype(jnp.float32),
                 ((0, 0), (0, Op - O)))
    spk4_p, mem4_p = linear_lif(flat, wlT, bl, TH[3])
    return spk4_p[:, :O], mem4_p[:, :O]


# ---------------------------------------------------------------------------
# Pure-JAX reference (silent correctness check).  It consumes the same
# bf16-rounded weights/input as the kernels, so the two paths differ only by
# f32 accumulation order.
# ---------------------------------------------------------------------------
def _q(a):
    return a.astype(jnp.bfloat16).astype(jnp.float32)


def reference_forward(x_nchw, params):
    x = _q(jnp.transpose(x_nchw, (0, 2, 3, 1)).astype(jnp.float32))
    conv_layers = (
        (params["w1"], params["b1"], TH[0]),
        (params["w2"], params["b2"], TH[1]),
        (params["w3"], params["b3"], TH[2]),
    )
    for w, b, th in conv_layers:
        w_hwio = jnp.transpose(_q(w), (2, 3, 1, 0))
        y = lax.conv_general_dilated(
            x, w_hwio, (1, 1), ((2, 2), (2, 2)),
            dimension_numbers=("NHWC", "HWIO", "NHWC")) + b
        y = lax.reduce_window(y, -jnp.inf, lax.max,
                              (1, 2, 2, 1), (1, 2, 2, 1), "VALID")
        x = (y > th).astype(jnp.float32)
    B = x.shape[0]
    flat = jnp.transpose(x, (0, 3, 1, 2)).reshape(B, -1)
    y = flat @ _q(params["wl"]).T + params["bl"]
    return (y > TH[3]).astype(jnp.float32), y


# ---------------------------------------------------------------------------
# Deterministic parameter init (shapes from Net.__init__)
# ---------------------------------------------------------------------------
def init_params(key):
    ks = jax.random.split(key, 8)
    return {
        "w1": jax.random.normal(ks[0], (16, 2, 5, 5), jnp.float32) * 1.0,
        "b1": jax.random.normal(ks[1], (16,), jnp.float32) * 0.1,
        "w2": jax.random.normal(ks[2], (32, 16, 5, 5), jnp.float32) * 0.2,
        "b2": jax.random.normal(ks[3], (32,), jnp.float32) * 0.1,
        "w3": jax.random.normal(ks[4], (64, 32, 5, 5), jnp.float32) * 0.15,
        "b3": jax.random.normal(ks[5], (64,), jnp.float32) * 0.1,
        "wl": jax.random.normal(ks[6], (11, 64 * 4 * 4), jnp.float32) * 0.05,
        "bl": jax.random.normal(ks[7], (11,), jnp.float32) * 0.1,
    }


if __name__ == "__main__":
    key = jax.random.PRNGKey(0)
    kx, kp = jax.random.split(key)
    params = init_params(kp)
    # DVS-gesture style input: (B, 2, 32, 32) NCHW (32x32 so 3 pools -> 4x4).
    x = jax.random.normal(kx, (2, 2, 32, 32), jnp.float32)

    spk4, mem4 = jax.jit(net_forward)(x, params)
    spk4, mem4 = jax.block_until_ready((spk4, mem4))

    r_spk4, r_mem4 = reference_forward(x, params)
    assert spk4.shape == (2, 11) and mem4.shape == (2, 11)
    # Identical bf16-rounded operands on both paths -> only accumulation-order
    # differences remain; tolerate a rare near-threshold spike flip instead of
    # demanding bit-exact agreement (see review's correctness note).
    mem_close = jnp.mean(
        jnp.isclose(mem4, r_mem4, atol=1e-2, rtol=1e-2).astype(jnp.float32))
    spk_agree = jnp.mean((spk4 == r_spk4).astype(jnp.float32))
    assert float(mem_close) >= 0.9, float(mem_close)
    assert float(spk_agree) >= 0.9, float(spk_agree)

    print("KERNEL_OK")
</pallas_src>

<mosaic_0001>
module attributes {stable_mosaic.version = 11 : i64} {
  func.func @conv_pool_spike_kernel(%arg0: i32, %arg1: memref<512x72xbf16, #tpu.memory_space<vmem>>, %arg2: memref<72x512xbf16, #tpu.memory_space<vmem>>, %arg3: memref<1x128xf32, #tpu.memory_space<vmem>>, %arg4: memref<512x128xbf16, #tpu.memory_space<vmem>>) attributes {dimension_semantics = [#tpu.dimension_semantics<parallel>], iteration_bounds = array<i64: 1>, scalar_prefetch = 0 : i64, scratch_operands = 0 : i64, tpu.core_type = #tpu.core_type<tc>, window_params = [{transform_indices = @transform_0, window_bounds = array<i64: 512, 72>}, {pipeline_mode = #tpu.pipeline_mode<synchronous>, transform_indices = @transform_1, window_bounds = array<i64: 72, 512>}, {pipeline_mode = #tpu.pipeline_mode<synchronous>, transform_indices = @transform_2, window_bounds = array<i64: 1, 128>}, {transform_indices = @transform_3, window_bounds = array<i64: 512, 128>}]} {
    %c0 = arith.constant 0 : index
    %c0_0 = arith.constant 0 : index
    %0 = vector.load %arg1[%c0, %c0_0] : memref<512x72xbf16, #tpu.memory_space<vmem>>, vector<512x72xbf16>
    %c0_1 = arith.constant 0 : index
    %c0_2 = arith.constant 0 : index
    %1 = vector.load %arg2[%c0_1, %c0_2] : memref<72x512xbf16, #tpu.memory_space<vmem>>, vector<72x512xbf16>
    %cst = arith.constant dense<0.000000e+00> : vector<512x512xf32>
    %2 = tpu.matmul %0, %1, %cst {dimension_numbers = #tpu.dot_dimension_numbers<[1], [0], [0], [1], [0, 0, 1, 1], [], []>} : vector<512x72xbf16>, vector<72x512xbf16>, vector<512x512xf32> -> vector<512x512xf32>
    %3 = vector.extract_strided_slice %2 {offsets = [0, 0], sizes = [512, 128], strides = [1, 1]} : vector<512x512xf32> to vector<512x128xf32>
    %4 = vector.extract_strided_slice %2 {offsets = [0, 128], sizes = [512, 128], strides = [1, 1]} : vector<512x512xf32> to vector<512x128xf32>
    %5 = arith.maximumf %3, %4 : vector<512x128xf32>
    %6 = vector.extract_strided_slice %2 {offsets = [0, 256], sizes = [512, 128], strides = [1, 1]} : vector<512x512xf32> to vector<512x128xf32>
    %7 = vector.extract_strided_slice %2 {offsets = [0, 384], sizes = [512, 128], strides = [1, 1]} : vector<512x512xf32> to vector<512x128xf32>
    %8 = arith.maximumf %6, %7 : vector<512x128xf32>
    %9 = arith.maximumf %5, %8 : vector<512x128xf32>
    %c0_3 = arith.constant 0 : index
    %c0_4 = arith.constant 0 : index
    %10 = vector.load %arg3[%c0_3, %c0_4] : memref<1x128xf32, #tpu.memory_space<vmem>>, vector<1x128xf32>
    %11 = vector.broadcast %10 : vector<1x128xf32> to vector<512x128xf32>
    %12 = arith.addf %9, %11 : vector<512x128xf32>
    %cst_5 = arith.constant 3.51129127 : f32
    %13 = vector.broadcast %cst_5 : f32 to vector<512x128xf32>
    %14 = arith.cmpf ogt, %12, %13 : vector<512x128xf32>
    %15 = arith.extui %14 : vector<512x128xi1> to vector<512x128xi32>
    %16 = arith.sitofp %15 : vector<512x128xi32> to vector<512x128xf32>
    %17 = arith.truncf %16 : vector<512x128xf32> to vector<512x128xbf16>
    %c0_6 = arith.constant 0 : index
    %c0_7 = arith.constant 0 : index
    %18 = vector.load %arg4[%c0_6, %c0_7] : memref<512x128xbf16, #tpu.memory_space<vmem>>, vector<512x128xbf16>
    tpu.vector_store %arg4[%c0_6, %c0_7], %17 {strides = array<i32>} : memref<512x128xbf16, #tpu.memory_space<vmem>>, vector<512x128xbf16>,
    return
  }
  func.func @transform_0(%arg0: i32) -> (i32, i32) {
    %c0_i32 = arith.constant 0 : i32
    %c0_i32_0 = arith.constant 0 : i32
    return %arg0, %c0_i32 : i32, i32
  }
  func.func @transform_1(%arg0: i32) -> (i32, i32) {
    %c0_i32 = arith.constant 0 : i32
    %c0_i32_0 = arith.constant 0 : i32
    %c0_i32_1 = arith.constant 0 : i32
    return %c0_i32, %c0_i32_0 : i32, i32
  }
  func.func @transform_2(%arg0: i32) -> (i32, i32) {
    %c0_i32 = arith.constant 0 : i32
    %c0_i32_0 = arith.constant 0 : i32
    %c0_i32_1 = arith.constant 0 : i32
    return %c0_i32, %c0_i32_0 : i32, i32
  }
  func.func @transform_3(%arg0: i32) -> (i32, i32) {
    %c0_i32 = arith.constant 0 : i32
    %c0_i32_0 = arith.constant 0 : i32
    return %arg0, %c0_i32 : i32, i32
  }
}

module attributes {stable_mosaic.version = 11 : i64} {
  func.func @conv_pool_spike_kernel(%arg0: i32, %arg1: memref<128x576xbf16, #tpu.memory_space<vmem>>, %arg2: memref<576x512xbf16, #tpu.memory_space<vmem>>, %arg3: memref<1x128xf32, #tpu.memory_space<vmem>>, %arg4: memref<128x128xbf16, #tpu.memory_space<vmem>>) attributes {dimension_semantics = [#tpu.dimension_semantics<parallel>], iteration_bounds = array<i64: 1>, scalar_prefetch = 0 : i64, scratch_operands = 0 : i64, tpu.core_type = #tpu.core_type<tc>, window_params = [{transform_indices = @transform_0, window_bounds = array<i64: 128, 576>}, {pipeline_mode = #tpu.pipeline_mode<synchronous>, transform_indices = @transform_1, window_bounds = array<i64: 576, 512>}, {pipeline_mode = #tpu.pipeline_mode<synchronous>, transform_indices = @transform_2, window_bounds = array<i64: 1, 128>}, {transform_indices = @transform_3, window_bounds = array<i64: 128, 128>}]} {
    %c0 = arith.constant 0 : index
    %c0_0 = arith.constant 0 : index
    %0 = vector.load %arg1[%c0, %c0_0] : memref<128x576xbf16, #tpu.memory_space<vmem>>, vector<128x576xbf16>
    %c0_1 = arith.constant 0 : index
    %c0_2 = arith.constant 0 : index
    %1 = vector.load %arg2[%c0_1, %c0_2] : memref<576x512xbf16, #tpu.memory_space<vmem>>, vector<576x512xbf16>
    %cst = arith.constant dense<0.000000e+00> : vector<128x512xf32>
    %2 = tpu.matmul %0, %1, %cst {dimension_numbers = #tpu.dot_dimension_numbers<[1], [0], [0], [1], [0, 0, 1, 1], [], []>} : vector<128x576xbf16>, vector<576x512xbf16>, vector<128x512xf32> -> vector<128x512xf32>
    %3 = vector.extract_strided_slice %2 {offsets = [0, 0], sizes = [128, 128], strides = [1, 1]} : vector<128x512xf32> to vector<128x128xf32>
    %4 = vector.extract_strided_slice %2 {offsets = [0, 128], sizes = [128, 128], strides = [1, 1]} : vector<128x512xf32> to vector<128x128xf32>
    %5 = arith.maximumf %3, %4 : vector<128x128xf32>
    %6 = vector.extract_strided_slice %2 {offsets = [0, 256], sizes = [128, 128], strides = [1, 1]} : vector<128x512xf32> to vector<128x128xf32>
    %7 = vector.extract_strided_slice %2 {offsets = [0, 384], sizes = [128, 128], strides = [1, 1]} : vector<128x512xf32> to vector<128x128xf32>
    %8 = arith.maximumf %6, %7 : vector<128x128xf32>
    %9 = arith.maximumf %5, %8 : vector<128x128xf32>
    %c0_3 = arith.constant 0 : index
    %c0_4 = arith.constant 0 : index
    %10 = vector.load %arg3[%c0_3, %c0_4] : memref<1x128xf32, #tpu.memory_space<vmem>>, vector<1x128xf32>
    %11 = vector.broadcast %10 : vector<1x128xf32> to vector<128x128xf32>
    %12 = arith.addf %9, %11 : vector<128x128xf32>
    %cst_5 = arith.constant 3.49443793 : f32
    %13 = vector.broadcast %cst_5 : f32 to vector<128x128xf32>
    %14 = arith.cmpf ogt, %12, %13 : vector<128x128xf32>
    %15 = arith.extui %14 : vector<128x128xi1> to vector<128x128xi32>
    %16 = arith.sitofp %15 : vector<128x128xi32> to vector<128x128xf32>
    %17 = arith.truncf %16 : vector<128x128xf32> to vector<128x128xbf16>
    %c0_6 = arith.constant 0 : index
    %c0_7 = arith.constant 0 : index
    %18 = vector.load %arg4[%c0_6, %c0_7] : memref<128x128xbf16, #tpu.memory_space<vmem>>, vector<128x128xbf16>
    tpu.vector_store %arg4[%c0_6, %c0_7], %17 {strides = array<i32>} : memref<128x128xbf16, #tpu.memory_space<vmem>>, vector<128x128xbf16>,
    return
  }
  func.func @transform_0(%arg0: i32) -> (i32, i32) {
    %c0_i32 = arith.constant 0 : i32
    %c0_i32_0 = arith.constant 0 : i32
    return %arg0, %c0_i32 : i32, i32
  }
  func.func @transform_1(%arg0: i32) -> (i32, i32) {
    %c0_i32 = arith.constant 0 : i32
    %c0_i32_0 = arith.constant 0 : i32
    %c0_i32_1 = arith.constant 0 : i32
    return %c0_i32, %c0_i32_0 : i32, i32
  }
  func.func @transform_2(%arg0: i32) -> (i32, i32) {
    %c0_i32 = arith.constant 0 : i32
    %c0_i32_0 = arith.constant 0 : i32
    %c0_i32_1 = arith.constant 0 : i32
    return %c0_i32, %c0_i32_0 : i32, i32
  }
  func.func @transform_3(%arg0: i32) -> (i32, i32) {
    %c0_i32 = arith.constant 0 : i32
    %c0_i32_0 = arith.constant 0 : i32
    return %arg0, %c0_i32 : i32, i32
  }
}

module attributes {stable_mosaic.version = 11 : i64} {
  func.func @conv_pool_spike_kernel(%arg0: i32, %arg1: memref<32x1152xbf16, #tpu.memory_space<vmem>>, %arg2: memref<1152x512xbf16, #tpu.memory_space<vmem>>, %arg3: memref<1x128xf32, #tpu.memory_space<vmem>>, %arg4: memref<32x128xbf16, #tpu.memory_space<vmem>>) attributes {dimension_semantics = [#tpu.dimension_semantics<parallel>], iteration_bounds = array<i64: 1>, scalar_prefetch = 0 : i64, scratch_operands = 0 : i64, tpu.core_type = #tpu.core_type<tc>, window_params = [{transform_indices = @transform_0, window_bounds = array<i64: 32, 1152>}, {pipeline_mode = #tpu.pipeline_mode<synchronous>, transform_indices = @transform_1, window_bounds = array<i64: 1152, 512>}, {pipeline_mode = #tpu.pipeline_mode<synchronous>, transform_indices = @transform_2, window_bounds = array<i64: 1, 128>}, {transform_indices = @transform_3, window_bounds = array<i64: 32, 128>}]} {
    %c0 = arith.constant 0 : index
    %c0_0 = arith.constant 0 : index
    %0 = vector.load %arg1[%c0, %c0_0] : memref<32x1152xbf16, #tpu.memory_space<vmem>>, vector<32x1152xbf16>
    %c0_1 = arith.constant 0 : index
    %c0_2 = arith.constant 0 : index
    %1 = vector.load %arg2[%c0_1, %c0_2] : memref<1152x512xbf16, #tpu.memory_space<vmem>>, vector<1152x512xbf16>
    %cst = arith.constant dense<0.000000e+00> : vector<32x512xf32>
    %2 = tpu.matmul %0, %1, %cst {dimension_numbers = #tpu.dot_dimension_numbers<[1], [0], [0], [1], [0, 0, 1, 1], [], []>} : vector<32x1152xbf16>, vector<1152x512xbf16>, vector<32x512xf32> -> vector<32x512xf32>
    %3 = vector.extract_strided_slice %2 {offsets = [0, 0], sizes = [32, 128], strides = [1, 1]} : vector<32x512xf32> to vector<32x128xf32>
    %4 = vector.extract_strided_slice %2 {offsets = [0, 128], sizes = [32, 128], strides = [1, 1]} : vector<32x512xf32> to vector<32x128xf32>
    %5 = arith.maximumf %3, %4 : vector<32x128xf32>
    %6 = vector.extract_strided_slice %2 {offsets = [0, 256], sizes = [32, 128], strides = [1, 1]} : vector<32x512xf32> to vector<32x128xf32>
    %7 = vector.extract_strided_slice %2 {offsets = [0, 384], sizes = [32, 128], strides = [1, 1]} : vector<32x512xf32> to vector<32x128xf32>
    %8 = arith.maximumf %6, %7 : vector<32x128xf32>
    %9 = arith.maximumf %5, %8 : vector<32x128xf32>
    %c0_3 = arith.constant 0 : index
    %c0_4 = arith.constant 0 : index
    %10 = vector.load %arg3[%c0_3, %c0_4] : memref<1x128xf32, #tpu.memory_space<vmem>>, vector<1x128xf32>
    %11 = vector.broadcast %10 : vector<1x128xf32> to vector<32x128xf32>
    %12 = arith.addf %9, %11 : vector<32x128xf32>
    %cst_5 = arith.constant 1.59868538 : f32
    %13 = vector.broadcast %cst_5 : f32 to vector<32x128xf32>
    %14 = arith.cmpf ogt, %12, %13 : vector<32x128xf32>
    %15 = arith.extui %14 : vector<32x128xi1> to vector<32x128xi32>
    %16 = arith.sitofp %15 : vector<32x128xi32> to vector<32x128xf32>
    %17 = arith.truncf %16 : vector<32x128xf32> to vector<32x128xbf16>
    %c0_6 = arith.constant 0 : index
    %c0_7 = arith.constant 0 : index
    %18 = vector.load %arg4[%c0_6, %c0_7] : memref<32x128xbf16, #tpu.memory_space<vmem>>, vector<32x128xbf16>
    tpu.vector_store %arg4[%c0_6, %c0_7], %17 {strides = array<i32>} : memref<32x128xbf16, #tpu.memory_space<vmem>>, vector<32x128xbf16>,
    return
  }
  func.func @transform_0(%arg0: i32) -> (i32, i32) {
    %c0_i32 = arith.constant 0 : i32
    %c0_i32_0 = arith.constant 0 : i32
    return %arg0, %c0_i32 : i32, i32
  }
  func.func @transform_1(%arg0: i32) -> (i32, i32) {
    %c0_i32 = arith.constant 0 : i32
    %c0_i32_0 = arith.constant 0 : i32
    %c0_i32_1 = arith.constant 0 : i32
    return %c0_i32, %c0_i32_0 : i32, i32
  }
  func.func @transform_2(%arg0: i32) -> (i32, i32) {
    %c0_i32 = arith.constant 0 : i32
    %c0_i32_0 = arith.constant 0 : i32
    %c0_i32_1 = arith.constant 0 : i32
    return %c0_i32, %c0_i32_0 : i32, i32
  }
  func.func @transform_3(%arg0: i32) -> (i32, i32) {
    %c0_i32 = arith.constant 0 : i32
    %c0_i32_0 = arith.constant 0 : i32
    return %arg0, %c0_i32 : i32, i32
  }
}

module attributes {stable_mosaic.version = 11 : i64} {
  func.func @linear_lif_kernel(%arg0: i32, %arg1: memref<2x1024xbf16, #tpu.memory_space<vmem>>, %arg2: memref<1024x128xbf16, #tpu.memory_space<vmem>>, %arg3: memref<1x128xf32, #tpu.memory_space<vmem>>, %arg4: memref<2x128xf32, #tpu.memory_space<vmem>>, %arg5: memref<2x128xf32, #tpu.memory_space<vmem>>) attributes {dimension_semantics = [#tpu.dimension_semantics<parallel>], iteration_bounds = array<i64: 1>, scalar_prefetch = 0 : i64, scratch_operands = 0 : i64, tpu.core_type = #tpu.core_type<tc>, window_params = [{transform_indices = @transform_0, window_bounds = array<i64: 2, 1024>}, {pipeline_mode = #tpu.pipeline_mode<synchronous>, transform_indices = @transform_1, window_bounds = array<i64: 1024, 128>}, {pipeline_mode = #tpu.pipeline_mode<synchronous>, transform_indices = @transform_2, window_bounds = array<i64: 1, 128>}, {transform_indices = @transform_3, window_bounds = array<i64: 2, 128>}, {transform_indices = @transform_4, window_bounds = array<i64: 2, 128>}]} {
    %c0 = arith.constant 0 : index
    %c0_0 = arith.constant 0 : index
    %0 = vector.load %arg1[%c0, %c0_0] : memref<2x1024xbf16, #tpu.memory_space<vmem>>, vector<2x1024xbf16>
    %c0_1 = arith.constant 0 : index
    %c0_2 = arith.constant 0 : index
    %1 = vector.load %arg2[%c0_1, %c0_2] : memref<1024x128xbf16, #tpu.memory_space<vmem>>, vector<1024x128xbf16>
    %cst = arith.constant dense<0.000000e+00> : vector<2x128xf32>
    %2 = tpu.matmul %0, %1, %cst {dimension_numbers = #tpu.dot_dimension_numbers<[1], [0], [0], [1], [0, 0, 1, 1], [], []>} : vector<2x1024xbf16>, vector<1024x128xbf16>, vector<2x128xf32> -> vector<2x128xf32>
    %c0_3 = arith.constant 0 : index
    %c0_4 = arith.constant 0 : index
    %3 = vector.load %arg3[%c0_3, %c0_4] : memref<1x128xf32, #tpu.memory_space<vmem>>, vector<1x128xf32>
    %4 = vector.broadcast %3 : vector<1x128xf32> to vector<2x128xf32>
    %5 = arith.addf %2, %4 : vector<2x128xf32>
    %cst_5 = arith.constant 0.364146918 : f32
    %6 = vector.broadcast %cst_5 : f32 to vector<2x128xf32>
    %7 = arith.cmpf ogt, %5, %6 : vector<2x128xf32>
    %8 = arith.extui %7 : vector<2x128xi1> to vector<2x128xi32>
    %9 = arith.sitofp %8 : vector<2x128xi32> to vector<2x128xf32>
    %c0_6 = arith.constant 0 : index
    %c0_7 = arith.constant 0 : index
    %10 = vector.load %arg4[%c0_6, %c0_7] : memref<2x128xf32, #tpu.memory_space<vmem>>, vector<2x128xf32>
    tpu.vector_store %arg4[%c0_6, %c0_7], %9 {strides = array<i32>} : memref<2x128xf32, #tpu.memory_space<vmem>>, vector<2x128xf32>,
    %c0_8 = arith.constant 0 : index
    %c0_9 = arith.constant 0 : index
    %11 = vector.load %arg5[%c0_8, %c0_9] : memref<2x128xf32, #tpu.memory_space<vmem>>, vector<2x128xf32>
    tpu.vector_store %arg5[%c0_8, %c0_9], %5 {strides = array<i32>} : memref<2x128xf32, #tpu.memory_space<vmem>>, vector<2x128xf32>,
    return
  }
  func.func @transform_0(%arg0: i32) -> (i32, i32) {
    %c0_i32 = arith.constant 0 : i32
    %c0_i32_0 = arith.constant 0 : i32
    return %arg0, %c0_i32 : i32, i32
  }
  func.func @transform_1(%arg0: i32) -> (i32, i32) {
    %c0_i32 = arith.constant 0 : i32
    %c0_i32_0 = arith.constant 0 : i32
    %c0_i32_1 = arith.constant 0 : i32
    return %c0_i32, %c0_i32_0 : i32, i32
  }
  func.func @transform_2(%arg0: i32) -> (i32, i32) {
    %c0_i32 = arith.constant 0 : i32
    %c0_i32_0 = arith.constant 0 : i32
    %c0_i32_1 = arith.constant 0 : i32
    return %c0_i32, %c0_i32_0 : i32, i32
  }
  func.func @transform_3(%arg0: i32) -> (i32, i32) {
    %c0_i32 = arith.constant 0 : i32
    %c0_i32_0 = arith.constant 0 : i32
    return %arg0, %c0_i32 : i32, i32
  }
  func.func @transform_4(%arg0: i32) -> (i32, i32) {
    %c0_i32 = arith.constant 0 : i32
    %c0_i32_0 = arith.constant 0 : i32
    return %arg0, %c0_i32 : i32, i32
  }
}

</mosaic_0001>

<bundles_post_ra>
// kernel: net_forward.4
= control target key start
LH: loop header
LB: loop body
LE: loop exit
PB: predicated region body
PF: predicated region fallthrough
CT: control target
= control target key end

     0   :  { %vm444_vm0 = vcmask 1043456   ;;  %vm347_vm1 = vcmask 588800   ;;  %s2864_s1 = inlined_call_operand.vmem [shape: bf16[72,512], index: 1, kind: input, shape index: {}]   ;;  %s2865_s0 = inlined_call_operand.vmem [shape: bf16[512,72], index: 0, kind: input, shape index: {}]   ;;  %s2866_s2 = inlined_call_operand.vmem [shape: f32[1,128], index: 2, kind: input, shape index: {}]   ;;  %s2867_s3 = inlined_call_operand.vmem [shape: bf16[512,128], index: 3, kind: output, shape index: {}]  }
   0x1   :  { %v95_v0 = vld [vmem:[%s2864_s1 + $0x80] sm:$0xff]  ;;  %v96_v1 = vld [vmem:[%s2864_s1 + $0x88] sm:$0xff]  ;;  %v2147_v7 = vld [vmem:[%s2864_s1 + $0x6c] sm:$0xf0] }
   0x2   :  { %v307_v2 = vunpack.c.l.b16 %v95_v0  ;;  %v308_v3 = vunpack.c.h.b16 %v95_v0  ;;  %v309_v4 = vunpack.c.l.b16 %v96_v1  ;;  %v310_v5 = vunpack.c.h.b16 %v96_v1  ;;  %v1895_v6 = vld [vmem:[%s2864_s1 + $0x60] sm:$0xf]  ;;  %v2145_v12 = vld [vmem:[%s2864_s1 + $0x64] sm:$0xf]  ;;  %v1897_v13 = vld [vmem:[%s2864_s1 + $0x70] sm:$0xf0] }
   0x3   :  { %v1903_v14 = vld [vmem:[%s2864_s1 + $0x68] sm:$0xf]  ;;  %v2148_v15 = vld [vmem:[%s2864_s1 + $0x74] sm:$0xf0]  ;;  %v2146_v16 = vld [vmem:[%s2864_s1 + $0x6c] sm:$0xf]  ;;  %v1896_v22 = vor.u32 %v2147_v7, %v1895_v6  ;;  %v1900_v23 = vor.u32 %v2145_v12, %v1897_v13 }
   0x4   :  { %v327_v8 = vpack.c.b16 %v307_v2, %v307_v2  ;;  %v328_v9 = vpack.c.b16 %v308_v3, %v308_v3  ;;  %v329_v10 = vpack.c.b16 %v309_v4, %v309_v4  ;;  %v330_v11 = vpack.c.b16 %v310_v5, %v310_v5  ;;  %v1905_v17 = vld [vmem:[%s2864_s1 + $0x78] sm:$0xf0]  ;;  %v1879_v24 = vld [vmem:[%s2864_s1 + $0x40] sm:$0xf]  ;;  %v2143_v25 = vld [vmem:[%s2864_s1 + $0x4c] sm:$0xf0] }
   0x5   :  { %v1904_v26 = vor.u32 %v2148_v15, %v1903_v14  ;;  %v1908_v27 = vor.u32 %v2146_v16, %v1905_v17  ;;  %v2141_v28 = vld [vmem:[%s2864_s1 + $0x44] sm:$0xf]  ;;  %v1881_v29 = vld [vmem:[%s2864_s1 + $0x50] sm:$0xf0]  ;;  %v1887_v30 = vld [vmem:[%s2864_s1 + $0x48] sm:$0xf]  ;;  %v1880_v34 = vor.u32 %v2143_v25, %v1879_v24 }
   0x6   :  { %v446_v18 = vsel %vm444_vm0, %v327_v8, 0  ;;  %v449_v19 = vsel %vm444_vm0, %v328_v9, 0  ;;  %v452_v20 = vsel %vm444_vm0, %v329_v10, 0  ;;  %v455_v21 = vsel %vm444_vm0, %v330_v11, 0  ;;  %v2144_v31 = vld [vmem:[%s2864_s1 + $0x54] sm:$0xf0] }
   0x7   :  { %460 = vmatpush.bf16.msra.mxu0 %v446_v18  ;;  %629 = vmatpush.bf16.msra.mxu1 %v449_v19  ;;  %v2142_v32 = vld [vmem:[%s2864_s1 + $0x4c] sm:$0xf]  ;;  %v1889_v33 = vld [vmem:[%s2864_s1 + $0x58] sm:$0xf0]  ;;  %v1884_v35 = vor.u32 %v2141_v28, %v1881_v29  ;;  %v1863_v36 = vld [vmem:[%s2864_s1 + $0x20] sm:$0xf]  ;;  %v1888_v38 = vor.u32 %v2144_v31, %v1887_v30 }
   0x8   :  { %798 = vmatpush.bf16.msra.mxu2 %v452_v20  ;;  %967 = vmatpush.bf16.msra.mxu3 %v455_v21  ;;  %v2139_v37 = vld [vmem:[%s2864_s1 + $0x2c] sm:$0xf0]  ;;  %v1892_v39 = vor.u32 %v2142_v32, %v1889_v33  ;;  %v2137_v40 = vld [vmem:[%s2864_s1 + $0x24] sm:$0xf]  ;;  %v1865_v41 = vld [vmem:[%s2864_s1 + $0x30] sm:$0xf0] }
   0x9   :  { %v1871_v42 = vld [vmem:[%s2864_s1 + $0x28] sm:$0xf]  ;;  %v2140_v43 = vld [vmem:[%s2864_s1 + $0x34] sm:$0xf0]  ;;  %v2138_v44 = vld [vmem:[%s2864_s1 + $0x2c] sm:$0xf]  ;;  %v1864_v46 = vor.u32 %v2139_v37, %v1863_v36  ;;  %v1868_v47 = vor.u32 %v2137_v40, %v1865_v41 }
   0xa   :  { %v1873_v45 = vld [vmem:[%s2864_s1 + $0x38] sm:$0xf0]  ;;  %v1847_v48 = vld [vmem:[%s2864_s1] sm:$0xf]  ;;  %v2135_v49 = vld [vmem:[%s2864_s1 + $0xc] sm:$0xf0]  ;;  %v1872_v50 = vor.u32 %v2140_v43, %v1871_v42 }
   0xb   :  { %461 = vmatpush.bf16.msra.mxu0 %v1896_v22  ;;  %630 = vmatpush.bf16.msra.mxu1 %v1900_v23  ;;  %v1876_v51 = vor.u32 %v2138_v44, %v1873_v45  ;;  %v2133_v52 = vld [vmem:[%s2864_s1 + $0x4] sm:$0xf]  ;;  %v1849_v53 = vld [vmem:[%s2864_s1 + $0x10] sm:$0xf0]  ;;  %v1855_v54 = vld [vmem:[%s2864_s1 + $0x8] sm:$0xf]  ;;  %v1848_v58 = vor.u32 %v2135_v49, %v1847_v48 }
   0xc   :  { %799 = vmatpush.bf16.msra.mxu2 %v1904_v26  ;;  %968 = vmatpush.bf16.msra.mxu3 %v1908_v27  ;;  %v2136_v55 = vld [vmem:[%s2864_s1 + $0x14] sm:$0xf0]  ;;  %v2134_v56 = vld [vmem:[%s2864_s1 + $0xc] sm:$0xf]  ;;  %v1857_v57 = vld [vmem:[%s2864_s1 + $0x18] sm:$0xf0]  ;;  %v1852_v59 = vor.u32 %v2133_v52, %v1849_v53 }
   0xd   :  { %v1856_v60 = vor.u32 %v2136_v55, %v1855_v54  ;;  %v1860_v61 = vor.u32 %v2134_v56, %v1857_v57  ;;  %v2101_v62 = vld [vmem:[%s2865_s0] sm:$0xff]  ;;  %v2102_v63 = vld [vmem:[%s2865_s0 + $0x8] sm:$0xff]  ;;  %v2103_v0 = vld [vmem:[%s2865_s0 + $0x10] sm:$0xff]  ;;  %v2279_v27 = vmov 0.0  }
   0xe   :  { %v2104_v1 = vld [vmem:[%s2865_s0 + $0x18] sm:$0xff]  ;;  %v2105_v2 = vld [vmem:[%s2865_s0 + $0x20] sm:$0xff]  ;;  %v2106_v3 = vld [vmem:[%s2865_s0 + $0x28] sm:$0xff] }
   0xf   :  { %462 = vmatpush.bf16.msra.mxu0 %v1880_v34  ;;  %631 = vmatpush.bf16.msra.mxu1 %v1884_v35  ;;  %v2107_v4 = vld [vmem:[%s2865_s0 + $0x30] sm:$0xff]  ;;  %v2108_v5 = vld [vmem:[%s2865_s0 + $0x38] sm:$0xff]  ;;  %v2109_v6 = vld [vmem:[%s2865_s0 + $0x40] sm:$0xff] }
  0x10   :  { %800 = vmatpush.bf16.msra.mxu2 %v1888_v38  ;;  %969 = vmatpush.bf16.msra.mxu3 %v1892_v39  ;;  %v2472_v16 = vld [vmem:[%s2866_s2] ss:$0 sm:$0xff]  ;;  %v2110_v19 = vld [vmem:[%s2865_s0 + $0x48] sm:$0xff]  ;;  %v2111_v40 = vld [vmem:[%s2865_s0 + $0x50] sm:$0xff] }
  0x13   :  { %463 = vmatpush.bf16.msra.mxu0 %v1864_v46  ;;  %632 = vmatpush.bf16.msra.mxu1 %v1868_v47 }
  0x14   :  { %801 = vmatpush.bf16.msra.mxu2 %v1872_v50  ;;  %970 = vmatpush.bf16.msra.mxu3 %v1876_v51 }
  0x17   :  { %464 = vmatpush.bf16.msra.mxu0 %v1848_v58  ;;  %633 = vmatpush.bf16.msra.mxu1 %v1852_v59 }
  0x18   :  { %802 = vmatpush.bf16.msra.mxu2 %v1856_v60  ;;  %971 = vmatpush.bf16.msra.mxu3 %v1860_v61  ;;  %v2112_v60 = vld [vmem:[%s2865_s0 + $0x58] sm:$0xff] }
  0x1a   :  { %1909 = vmatmul.msk.bf16.vlgmr.msra.gmra.mxu0 %vm347_vm1, %v2101_v62  ;;  %1941 = vmatmul.msk.bf16.vlgmr.msra.gmra.mxu1 %vm347_vm1, %v2101_v62 }
  0x1b   :  { %1973 = vmatmul.msk.bf16.vlgmr.msra.gmra.mxu2 %vm347_vm1, %v2101_v62  ;;  %2005 = vmatmul.msk.bf16.vlgmr.msra.gmra.mxu3 %vm347_vm1, %v2101_v62 }
  0x2a   :  { %1910 = vmatmul.msk.bf16.gmra.mxu0 %vm347_vm1, %v2102_v63  ;;  %1942 = vmatmul.msk.bf16.gmra.mxu1 %vm347_vm1, %v2102_v63 }
  0x2b   :  { %1974 = vmatmul.msk.bf16.gmra.mxu2 %vm347_vm1, %v2102_v63  ;;  %2006 = vmatmul.msk.bf16.gmra.mxu3 %vm347_vm1, %v2102_v63 }
  0x3a   :  { %1911 = vmatmul.msk.bf16.gmra.mxu0 %vm347_vm1, %v2103_v0  ;;  %1943 = vmatmul.msk.bf16.gmra.mxu1 %vm347_vm1, %v2103_v0 }
  0x3b   :  { %1975 = vmatmul.msk.bf16.gmra.mxu2 %vm347_vm1, %v2103_v0  ;;  %2007 = vmatmul.msk.bf16.gmra.mxu3 %vm347_vm1, %v2103_v0 }
  0x4a   :  { %1912 = vmatmul.msk.bf16.gmra.mxu0 %vm347_vm1, %v2104_v1  ;;  %1944 = vmatmul.msk.bf16.gmra.mxu1 %vm347_vm1, %v2104_v1 }
  0x4b   :  { %1976 = vmatmul.msk.bf16.gmra.mxu2 %vm347_vm1, %v2104_v1  ;;  %2008 = vmatmul.msk.bf16.gmra.mxu3 %vm347_vm1, %v2104_v1 }
  0x5a   :  { %1913 = vmatmul.msk.bf16.gmra.mxu0 %vm347_vm1, %v2105_v2  ;;  %1945 = vmatmul.msk.bf16.gmra.mxu1 %vm347_vm1, %v2105_v2 }
  0x5b   :  { %1977 = vmatmul.msk.bf16.gmra.mxu2 %vm347_vm1, %v2105_v2  ;;  %2009 = vmatmul.msk.bf16.gmra.mxu3 %vm347_vm1, %v2105_v2 }
  0x6a   :  { %1914 = vmatmul.msk.bf16.gmra.mxu0 %vm347_vm1, %v2106_v3  ;;  %1946 = vmatmul.msk.bf16.gmra.mxu1 %vm347_vm1, %v2106_v3 }
  0x6b   :  { %1978 = vmatmul.msk.bf16.gmra.mxu2 %vm347_vm1, %v2106_v3  ;;  %2010 = vmatmul.msk.bf16.gmra.mxu3 %vm347_vm1, %v2106_v3 }
  0x7a   :  { %1915 = vmatmul.msk.bf16.gmra.mxu0 %vm347_vm1, %v2107_v4  ;;  %1947 = vmatmul.msk.bf16.gmra.mxu1 %vm347_vm1, %v2107_v4 }
  0x7b   :  { %1979 = vmatmul.msk.bf16.gmra.mxu2 %vm347_vm1, %v2107_v4  ;;  %2011 = vmatmul.msk.bf16.gmra.mxu3 %vm347_vm1, %v2107_v4 }
  0x8a   :  { %1916 = vmatmul.msk.bf16.gmra.mxu0 %vm347_vm1, %v2108_v5  ;;  %1948 = vmatmul.msk.bf16.gmra.mxu1 %vm347_vm1, %v2108_v5 }
  0x8b   :  { %1980 = vmatmul.msk.bf16.gmra.mxu2 %vm347_vm1, %v2108_v5  ;;  %2012 = vmatmul.msk.bf16.gmra.mxu3 %vm347_vm1, %v2108_v5 }
  0x97   :  { %v466_v7 = vpop.f32.mrf.mxu0  ;;  %v635_v8 = vpop.f32.mrf.mxu1 }
  0x98   :  { %v1133_v11 = vmax.f32 %v466_v7, %v635_v8 }
  0x9a   :  { %1917 = vmatmul.msk.bf16.gmra.mxu0 %vm347_vm1, %v2109_v6  ;;  %1949 = vmatmul.msk.bf16.gmra.mxu1 %vm347_vm1, %v2109_v6 }
  0x9b   :  { %1981 = vmatmul.msk.bf16.gmra.mxu2 %vm347_vm1, %v2109_v6  ;;  %2013 = vmatmul.msk.bf16.gmra.mxu3 %vm347_vm1, %v2109_v6 }
  0x9e   :  { %v804_v9 = vpop.f32.mrf.mxu2  ;;  %v973_v10 = vpop.f32.mrf.mxu3 }
  0x9f   :  { %v1197_v12 = vmax.f32 %v804_v9, %v973_v10  ;;  %v468_v13 = vpop.f32.mrf.mxu0  ;;  %v637_v14 = vpop.f32.mrf.mxu1 }
  0xa0   :  { %v1134_v21 = vmax.f32 %v468_v13, %v637_v14 }
  0xa1   :  { %v1261_v15 = vmax.f32 %v1133_v11, %v1197_v12 }
  0xa3   :  { %v1329_v20 = vadd.f32 %v2472_v16, %v1261_v15 }
  0xa5   :  { %vm1393_vm2 = vcmp.gt.f32.partialorder %v1329_v20, 3.5112913 }
  0xa6   :  { %v806_v17 = vpop.f32.mrf.mxu2  ;;  %v975_v18 = vpop.f32.mrf.mxu3  ;;  %v2037_v28 = vsel %vm1393_vm2, 1.0, %v2279_v27 }
  0xa7   :  { %v1198_v22 = vmax.f32 %v806_v17, %v975_v18  ;;  %v471_v23 = vpop.f32.mrf.mxu0  ;;  %v640_v24 = vpop.f32.mrf.mxu1  ;;  %v2113_v17 = vld [vmem:[%s2865_s0 + $0x60] sm:$0xff] }
  0xa8   :  { %v1135_v33 = vmax.f32 %v471_v23, %v640_v24 }
  0xa9   :  { %v1262_v25 = vmax.f32 %v1134_v21, %v1198_v22 }
  0xaa   :  { %1918 = vmatmul.msk.bf16.gmra.mxu0 %vm347_vm1, %v2110_v19  ;;  %1950 = vmatmul.msk.bf16.gmra.mxu1 %vm347_vm1, %v2110_v19 }
  0xab   :  { %v1330_v26 = vadd.f32 %v2472_v16, %v1262_v25  ;;  %1982 = vmatmul.msk.bf16.gmra.mxu2 %vm347_vm1, %v2110_v19  ;;  %2014 = vmatmul.msk.bf16.gmra.mxu3 %vm347_vm1, %v2110_v19 }
  0xad   :  { %vm1394_vm3 = vcmp.gt.f32.partialorder %v1330_v26, 3.5112913 }
  0xae   :  { %v2038_v29 = vsel %vm1394_vm3, 1.0, %v2279_v27  ;;  %v809_v30 = vpop.f32.mrf.mxu2  ;;  %v978_v31 = vpop.f32.mrf.mxu3 }
  0xaf   :  { %v2150_v32 = vpack.c.bf16 %v2038_v29, %v2037_v28  ;;  %v1199_v34 = vmax.f32 %v809_v30, %v978_v31  ;;  %v473_v35 = vpop.f32.mrf.mxu0  ;;  %v642_v36 = vpop.f32.mrf.mxu1 }
  0xb0   :  { %v1136_v42 = vmax.f32 %v473_v35, %v642_v36 }
  0xb1   :  { %2151 = vst [vmem:[%s2867_s3] sm:$0xff] %v2150_v32   ;;  %v1263_v37 = vmax.f32 %v1135_v33, %v1199_v34 }
  0xb3   :  { %v1331_v41 = vadd.f32 %v2472_v16, %v1263_v37 }
  0xb5   :  { %vm1395_vm4 = vcmp.gt.f32.partialorder %v1331_v41, 3.5112913 }
  0xb6   :  { %v811_v38 = vpop.f32.mrf.mxu2  ;;  %v980_v39 = vpop.f32.mrf.mxu3  ;;  %v2039_v48 = vsel %vm1395_vm4, 1.0, %v2279_v27 }
  0xb7   :  { %v1200_v43 = vmax.f32 %v811_v38, %v980_v39  ;;  %v476_v44 = vpop.f32.mrf.mxu0  ;;  %v645_v45 = vpop.f32.mrf.mxu1  ;;  %v2114_v38 = vld [vmem:[%s2865_s0 + $0x68] sm:$0xff] }
  0xb8   :  { %v1137_v53 = vmax.f32 %v476_v44, %v645_v45 }
  0xb9   :  { %v1264_v46 = vmax.f32 %v1136_v42, %v1200_v43 }
  0xba   :  { %1919 = vmatmul.msk.bf16.gmra.mxu0 %vm347_vm1, %v2111_v40  ;;  %1951 = vmatmul.msk.bf16.gmra.mxu1 %vm347_vm1, %v2111_v40 }
  0xbb   :  { %v1332_v47 = vadd.f32 %v2472_v16, %v1264_v46  ;;  %1983 = vmatmul.msk.bf16.gmra.mxu2 %vm347_vm1, %v2111_v40  ;;  %2015 = vmatmul.msk.bf16.gmra.mxu3 %vm347_vm1, %v2111_v40 }
  0xbd   :  { %vm1396_vm5 = vcmp.gt.f32.partialorder %v1332_v47, 3.5112913 }
  0xbe   :  { %v2040_v49 = vsel %vm1396_vm5, 1.0, %v2279_v27  ;;  %v814_v50 = vpop.f32.mrf.mxu2  ;;  %v983_v51 = vpop.f32.mrf.mxu3 }
  0xbf   :  { %v2153_v52 = vpack.c.bf16 %v2040_v49, %v2039_v48  ;;  %v1201_v54 = vmax.f32 %v814_v50, %v983_v51  ;;  %v478_v55 = vpop.f32.mrf.mxu0  ;;  %v647_v56 = vpop.f32.mrf.mxu1 }
  0xc0   :  { %v1138_v62 = vmax.f32 %v478_v55, %v647_v56 }
  0xc1   :  { %2245 = vst [vmem:[%s2867_s3 + $0x8] sm:$0xff] %v2153_v52   ;;  %v1265_v57 = vmax.f32 %v1137_v53, %v1201_v54 }
  0xc3   :  { %v1333_v61 = vadd.f32 %v2472_v16, %v1265_v57 }
  0xc5   :  { %vm1397_vm6 = vcmp.gt.f32.partialorder %v1333_v61, 3.5112913 }
  0xc6   :  { %v816_v58 = vpop.f32.mrf.mxu2  ;;  %v985_v59 = vpop.f32.mrf.mxu3  ;;  %v2041_v4 = vsel %vm1397_vm6, 1.0, %v2279_v27 }
  0xc7   :  { %v1202_v63 = vmax.f32 %v816_v58, %v985_v59  ;;  %v481_v0 = vpop.f32.mrf.mxu0  ;;  %v650_v1 = vpop.f32.mrf.mxu1  ;;  %v2115_v58 = vld [vmem:[%s2865_s0 + $0x70] sm:$0xff] }
  0xc8   :  { %v1139_v9 = vmax.f32 %v481_v0, %v650_v1 }
  0xc9   :  { %v1266_v2 = vmax.f32 %v1138_v62, %v1202_v63 }
  0xca   :  { %1920 = vmatmul.msk.bf16.gmra.mxu0 %vm347_vm1, %v2112_v60  ;;  %1952 = vmatmul.msk.bf16.gmra.mxu1 %vm347_vm1, %v2112_v60 }
  0xcb   :  { %v1334_v3 = vadd.f32 %v2472_v16, %v1266_v2  ;;  %1984 = vmatmul.msk.bf16.gmra.mxu2 %vm347_vm1, %v2112_v60  ;;  %2016 = vmatmul.msk.bf16.gmra.mxu3 %vm347_vm1, %v2112_v60 }
  0xcd   :  { %vm1398_vm7 = vcmp.gt.f32.partialorder %v1334_v3, 3.5112913 }
  0xce   :  { %v2042_v5 = vsel %vm1398_vm7, 1.0, %v2279_v27  ;;  %v819_v6 = vpop.f32.mrf.mxu2  ;;  %v988_v7 = vpop.f32.mrf.mxu3 }
  0xcf   :  { %v2156_v8 = vpack.c.bf16 %v2042_v5, %v2041_v4  ;;  %v1203_v10 = vmax.f32 %v819_v6, %v988_v7  ;;  %v483_v11 = vpop.f32.mrf.mxu0  ;;  %v652_v12 = vpop.f32.mrf.mxu1 }
  0xd0   :  { %v1140_v19 = vmax.f32 %v483_v11, %v652_v12 }
  0xd1   :  { %2246 = vst [vmem:[%s2867_s3 + $0x10] sm:$0xff] %v2156_v8   ;;  %v1267_v13 = vmax.f32 %v1139_v9, %v1203_v10 }
  0xd3   :  { %v1335_v18 = vadd.f32 %v2472_v16, %v1267_v13 }
  0xd5   :  { %vm1399_vm8 = vcmp.gt.f32.partialorder %v1335_v18, 3.5112913 }
  0xd6   :  { %v821_v14 = vpop.f32.mrf.mxu2  ;;  %v990_v15 = vpop.f32.mrf.mxu3  ;;  %v2043_v25 = vsel %vm1399_vm8, 1.0, %v2279_v27 }
  0xd7   :  { %v1204_v20 = vmax.f32 %v821_v14, %v990_v15  ;;  %v486_v21 = vpop.f32.mrf.mxu0  ;;  %v655_v22 = vpop.f32.mrf.mxu1  ;;  %v2116_v14 = vld [vmem:[%s2865_s0 + $0x78] sm:$0xff] }
  0xd8   :  { %v1141_v31 = vmax.f32 %v486_v21, %v655_v22 }
  0xd9   :  { %v1268_v23 = vmax.f32 %v1140_v19, %v1204_v20 }
  0xda   :  { %1921 = vmatmul.msk.bf16.gmra.mxu0 %vm347_vm1, %v2113_v17  ;;  %1953 = vmatmul.msk.bf16.gmra.mxu1 %vm347_vm1, %v2113_v17 }
  0xdb   :  { %v1336_v24 = vadd.f32 %v2472_v16, %v1268_v23  ;;  %1985 = vmatmul.msk.bf16.gmra.mxu2 %vm347_vm1, %v2113_v17  ;;  %2017 = vmatmul.msk.bf16.gmra.mxu3 %vm347_vm1, %v2113_v17 }
  0xdd   :  { %vm1400_vm9 = vcmp.gt.f32.partialorder %v1336_v24, 3.5112913 }
  0xde   :  { %v2044_v26 = vsel %vm1400_vm9, 1.0, %v2279_v27  ;;  %v824_v28 = vpop.f32.mrf.mxu2  ;;  %v993_v29 = vpop.f32.mrf.mxu3 }
  0xdf   :  { %v2159_v30 = vpack.c.bf16 %v2044_v26, %v2043_v25  ;;  %v1205_v32 = vmax.f32 %v824_v28, %v993_v29  ;;  %v488_v33 = vpop.f32.mrf.mxu0  ;;  %v657_v34 = vpop.f32.mrf.mxu1 }
  0xe0   :  { %v1142_v40 = vmax.f32 %v488_v33, %v657_v34 }
  0xe1   :  { %2247 = vst [vmem:[%s2867_s3 + $0x18] sm:$0xff] %v2159_v30   ;;  %v1269_v35 = vmax.f32 %v1141_v31, %v1205_v32 }
  0xe3   :  { %v1337_v39 = vadd.f32 %v2472_v16, %v1269_v35 }
  0xe5   :  { %vm1401_vm10 = vcmp.gt.f32.partialorder %v1337_v39, 3.5112913 }
  0xe6   :  { %v826_v36 = vpop.f32.mrf.mxu2  ;;  %v995_v37 = vpop.f32.mrf.mxu3  ;;  %v2045_v46 = vsel %vm1401_vm10, 1.0, %v2279_v27 }
  0xe7   :  { %v1206_v41 = vmax.f32 %v826_v36, %v995_v37  ;;  %v491_v42 = vpop.f32.mrf.mxu0  ;;  %v660_v43 = vpop.f32.mrf.mxu1  ;;  %v2117_v36 = vld [vmem:[%s2865_s0 + $0x80] sm:$0xff] }
  0xe8   :  { %v1143_v51 = vmax.f32 %v491_v42, %v660_v43 }
  0xe9   :  { %v1270_v44 = vmax.f32 %v1142_v40, %v1206_v41 }
  0xea   :  { %1922 = vmatmul.msk.bf16.gmra.mxu0 %vm347_vm1, %v2114_v38  ;;  %1954 = vmatmul.msk.bf16.gmra.mxu1 %vm347_vm1, %v2114_v38 }
  0xeb   :  { %v1338_v45 = vadd.f32 %v2472_v16, %v1270_v44  ;;  %1986 = vmatmul.msk.bf16.gmra.mxu2 %vm347_vm1, %v2114_v38  ;;  %2018 = vmatmul.msk.bf16.gmra.mxu3 %vm347_vm1, %v2114_v38 }
  0xed   :  { %vm1402_vm11 = vcmp.gt.f32.partialorder %v1338_v45, 3.5112913 }
  0xee   :  { %v2046_v47 = vsel %vm1402_vm11, 1.0, %v2279_v27  ;;  %v829_v48 = vpop.f32.mrf.mxu2  ;;  %v998_v49 = vpop.f32.mrf.mxu3 }
  0xef   :  { %v2162_v50 = vpack.c.bf16 %v2046_v47, %v2045_v46  ;;  %v1207_v52 = vmax.f32 %v829_v48, %v998_v49  ;;  %v493_v53 = vpop.f32.mrf.mxu0  ;;  %v662_v54 = vpop.f32.mrf.mxu1 }
  0xf0   :  { %v1144_v60 = vmax.f32 %v493_v53, %v662_v54 }
  0xf1   :  { %2248 = vst [vmem:[%s2867_s3 + $0x20] sm:$0xff] %v2162_v50   ;;  %v1271_v55 = vmax.f32 %v1143_v51, %v1207_v52 }
  0xf3   :  { %v1339_v59 = vadd.f32 %v2472_v16, %v1271_v55 }
  0xf5   :  { %vm1403_vm12 = vcmp.gt.f32.partialorder %v1339_v59, 3.5112913 }
  0xf6   :  { %v831_v56 = vpop.f32.mrf.mxu2  ;;  %v1000_v57 = vpop.f32.mrf.mxu3  ;;  %v2047_v2 = vsel %vm1403_vm12, 1.0, %v2279_v27 }
  0xf7   :  { %v1208_v61 = vmax.f32 %v831_v56, %v1000_v57  ;;  %v496_v62 = vpop.f32.mrf.mxu0  ;;  %v665_v63 = vpop.f32.mrf.mxu1  ;;  %v2118_v56 = vld [vmem:[%s2865_s0 + $0x88] sm:$0xff] }
  0xf8   :  { %v1145_v7 = vmax.f32 %v496_v62, %v665_v63 }
  0xf9   :  { %v1272_v0 = vmax.f32 %v1144_v60, %v1208_v61 }
  0xfa   :  { %1923 = vmatmul.msk.bf16.gmra.mxu0 %vm347_vm1, %v2115_v58  ;;  %1955 = vmatmul.msk.bf16.gmra.mxu1 %vm347_vm1, %v2115_v58 }
  0xfb   :  { %v1340_v1 = vadd.f32 %v2472_v16, %v1272_v0  ;;  %1987 = vmatmul.msk.bf16.gmra.mxu2 %vm347_vm1, %v2115_v58  ;;  %2019 = vmatmul.msk.bf16.gmra.mxu3 %vm347_vm1, %v2115_v58 }
  0xfd   :  { %vm1404_vm13 = vcmp.gt.f32.partialorder %v1340_v1, 3.5112913 }
  0xfe   :  { %v2048_v3 = vsel %vm1404_vm13, 1.0, %v2279_v27  ;;  %v834_v4 = vpop.f32.mrf.mxu2  ;;  %v1003_v5 = vpop.f32.mrf.mxu3 }
  0xff   :  { %v2165_v6 = vpack.c.bf16 %v2048_v3, %v2047_v2  ;;  %v1209_v8 = vmax.f32 %v834_v4, %v1003_v5  ;;  %v498_v9 = vpop.f32.mrf.mxu0  ;;  %v667_v10 = vpop.f32.mrf.mxu1 }
 0x100   :  { %v1146_v17 = vmax.f32 %v498_v9, %v667_v10 }
 0x101   :  { %2249 = vst [vmem:[%s2867_s3 + $0x28] sm:$0xff] %v2165_v6   ;;  %v1273_v11 = vmax.f32 %v1145_v7, %v1209_v8 }
 0x103   :  { %v1341_v15 = vadd.f32 %v2472_v16, %v1273_v11 }
 0x105   :  { %vm1405_vm14 = vcmp.gt.f32.partialorder %v1341_v15, 3.5112913 }
 0x106   :  { %v836_v12 = vpop.f32.mrf.mxu2  ;;  %v1005_v13 = vpop.f32.mrf.mxu3  ;;  %v2049_v23 = vsel %vm1405_vm14, 1.0, %v2279_v27 }
 0x107   :  { %v1210_v18 = vmax.f32 %v836_v12, %v1005_v13  ;;  %v501_v19 = vpop.f32.mrf.mxu0  ;;  %v670_v20 = vpop.f32.mrf.mxu1  ;;  %v2119_v12 = vld [vmem:[%s2865_s0 + $0x90] sm:$0xff] }
 0x108   :  { %v1147_v29 = vmax.f32 %v501_v19, %v670_v20 }
 0x109   :  { %v1274_v21 = vmax.f32 %v1146_v17, %v1210_v18 }
 0x10a   :  { %1924 = vmatmul.msk.bf16.gmra.mxu0 %vm347_vm1, %v2116_v14  ;;  %1956 = vmatmul.msk.bf16.gmra.mxu1 %vm347_vm1, %v2116_v14 }
 0x10b   :  { %v1342_v22 = vadd.f32 %v2472_v16, %v1274_v21  ;;  %1988 = vmatmul.msk.bf16.gmra.mxu2 %vm347_vm1, %v2116_v14  ;;  %2020 = vmatmul.msk.bf16.gmra.mxu3 %vm347_vm1, %v2116_v14 }
 0x10d   :  { %vm1406_vm15 = vcmp.gt.f32.partialorder %v1342_v22, 3.5112913 }
 0x10e   :  { %v2050_v24 = vsel %vm1406_vm15, 1.0, %v2279_v27  ;;  %v839_v25 = vpop.f32.mrf.mxu2  ;;  %v1008_v26 = vpop.f32.mrf.mxu3 }
 0x10f   :  { %v2168_v28 = vpack.c.bf16 %v2050_v24, %v2049_v23  ;;  %v1211_v30 = vmax.f32 %v839_v25, %v1008_v26  ;;  %v503_v31 = vpop.f32.mrf.mxu0  ;;  %v672_v32 = vpop.f32.mrf.mxu1 }
 0x110   :  { %v1148_v38 = vmax.f32 %v503_v31, %v672_v32 }
 0x111   :  { %2250 = vst [vmem:[%s2867_s3 + $0x30] sm:$0xff] %v2168_v28   ;;  %v1275_v33 = vmax.f32 %v1147_v29, %v1211_v30 }
 0x113   :  { %v1343_v37 = vadd.f32 %v2472_v16, %v1275_v33 }
 0x115   :  { %vm1407_vm0 = vcmp.gt.f32.partialorder %v1343_v37, 3.5112913 }
 0x116   :  { %v841_v34 = vpop.f32.mrf.mxu2  ;;  %v1010_v35 = vpop.f32.mrf.mxu3  ;;  %v2051_v44 = vsel %vm1407_vm0, 1.0, %v2279_v27 }
 0x117   :  { %v1212_v39 = vmax.f32 %v841_v34, %v1010_v35  ;;  %v506_v40 = vpop.f32.mrf.mxu0  ;;  %v675_v41 = vpop.f32.mrf.mxu1  ;;  %v2120_v34 = vld [vmem:[%s2865_s0 + $0x98] sm:$0xff] }
 0x118   :  { %v1149_v49 = vmax.f32 %v506_v40, %v675_v41 }
 0x119   :  { %v1276_v42 = vmax.f32 %v1148_v38, %v1212_v39 }
 0x11a   :  { %1925 = vmatmul.msk.bf16.gmra.mxu0 %vm347_vm1, %v2117_v36  ;;  %1957 = vmatmul.msk.bf16.gmra.mxu1 %vm347_vm1, %v2117_v36 }
 0x11b   :  { %v1344_v43 = vadd.f32 %v2472_v16, %v1276_v42  ;;  %1989 = vmatmul.msk.bf16.gmra.mxu2 %vm347_vm1, %v2117_v36  ;;  %2021 = vmatmul.msk.bf16.gmra.mxu3 %vm347_vm1, %v2117_v36 }
 0x11d   :  { %vm1408_vm2 = vcmp.gt.f32.partialorder %v1344_v43, 3.5112913 }
 0x11e   :  { %v2052_v45 = vsel %vm1408_vm2, 1.0, %v2279_v27  ;;  %v844_v46 = vpop.f32.mrf.mxu2  ;;  %v1013_v47 = vpop.f32.mrf.mxu3 }
 0x11f   :  { %v2171_v48 = vpack.c.bf16 %v2052_v45, %v2051_v44  ;;  %v1213_v50 = vmax.f32 %v844_v46, %v1013_v47  ;;  %v508_v51 = vpop.f32.mrf.mxu0  ;;  %v677_v52 = vpop.f32.mrf.mxu1 }
 0x120   :  { %v1150_v58 = vmax.f32 %v508_v51, %v677_v52 }
 0x121   :  { %2251 = vst [vmem:[%s2867_s3 + $0x38] sm:$0xff] %v2171_v48   ;;  %v1277_v53 = vmax.f32 %v1149_v49, %v1213_v50 }
 0x123   :  { %v1345_v57 = vadd.f32 %v2472_v16, %v1277_v53 }
 0x125   :  { %vm1409_vm3 = vcmp.gt.f32.partialorder %v1345_v57, 3.5112913 }
 0x126   :  { %v846_v54 = vpop.f32.mrf.mxu2  ;;  %v1015_v55 = vpop.f32.mrf.mxu3  ;;  %v2053_v0 = vsel %vm1409_vm3, 1.0, %v2279_v27 }
 0x127   :  { %v1214_v59 = vmax.f32 %v846_v54, %v1015_v55  ;;  %v511_v60 = vpop.f32.mrf.mxu0  ;;  %v680_v61 = vpop.f32.mrf.mxu1  ;;  %v2121_v54 = vld [vmem:[%s2865_s0 + $0xa0] sm:$0xff] }
 0x128   :  { %v1151_v5 = vmax.f32 %v511_v60, %v680_v61 }
 0x129   :  { %v1278_v62 = vmax.f32 %v1150_v58, %v1214_v59 }
 0x12a   :  { %1926 = vmatmul.msk.bf16.gmra.mxu0 %vm347_vm1, %v2118_v56  ;;  %1958 = vmatmul.msk.bf16.gmra.mxu1 %vm347_vm1, %v2118_v56 }
 0x12b   :  { %v1346_v63 = vadd.f32 %v2472_v16, %v1278_v62  ;;  %1990 = vmatmul.msk.bf16.gmra.mxu2 %vm347_vm1, %v2118_v56  ;;  %2022 = vmatmul.msk.bf16.gmra.mxu3 %vm347_vm1, %v2118_v56 }
 0x12d   :  { %vm1410_vm4 = vcmp.gt.f32.partialorder %v1346_v63, 3.5112913 }
 0x12e   :  { %v2054_v1 = vsel %vm1410_vm4, 1.0, %v2279_v27  ;;  %v849_v2 = vpop.f32.mrf.mxu2  ;;  %v1018_v3 = vpop.f32.mrf.mxu3 }
 0x12f   :  { %v2174_v4 = vpack.c.bf16 %v2054_v1, %v2053_v0  ;;  %v1215_v6 = vmax.f32 %v849_v2, %v1018_v3  ;;  %v513_v7 = vpop.f32.mrf.mxu0  ;;  %v682_v8 = vpop.f32.mrf.mxu1 }
 0x130   :  { %v1152_v14 = vmax.f32 %v513_v7, %v682_v8 }
 0x131   :  { %2252 = vst [vmem:[%s2867_s3 + $0x40] sm:$0xff] %v2174_v4   ;;  %v1279_v9 = vmax.f32 %v1151_v5, %v1215_v6 }
 0x133   :  { %v1347_v13 = vadd.f32 %v2472_v16, %v1279_v9 }
 0x135   :  { %vm1411_vm5 = vcmp.gt.f32.partialorder %v1347_v13, 3.5112913 }
 0x136   :  { %v851_v10 = vpop.f32.mrf.mxu2  ;;  %v1020_v11 = vpop.f32.mrf.mxu3  ;;  %v2055_v21 = vsel %vm1411_vm5, 1.0, %v2279_v27 }
 0x137   :  { %v1216_v15 = vmax.f32 %v851_v10, %v1020_v11  ;;  %v516_v17 = vpop.f32.mrf.mxu0  ;;  %v685_v18 = vpop.f32.mrf.mxu1  ;;  %v2122_v10 = vld [vmem:[%s2865_s0 + $0xa8] sm:$0xff] }
 0x138   :  { %v1153_v26 = vmax.f32 %v516_v17, %v685_v18 }
 0x139   :  { %v1280_v19 = vmax.f32 %v1152_v14, %v1216_v15 }
 0x13a   :  { %1927 = vmatmul.msk.bf16.gmra.mxu0 %vm347_vm1, %v2119_v12  ;;  %1959 = vmatmul.msk.bf16.gmra.mxu1 %vm347_vm1, %v2119_v12 }
 0x13b   :  { %v1348_v20 = vadd.f32 %v2472_v16, %v1280_v19  ;;  %1991 = vmatmul.msk.bf16.gmra.mxu2 %vm347_vm1, %v2119_v12  ;;  %2023 = vmatmul.msk.bf16.gmra.mxu3 %vm347_vm1, %v2119_v12 }
 0x13d   :  { %vm1412_vm6 = vcmp.gt.f32.partialorder %v1348_v20, 3.5112913 }
 0x13e   :  { %v2056_v22 = vsel %vm1412_vm6, 1.0, %v2279_v27  ;;  %v854_v23 = vpop.f32.mrf.mxu2  ;;  %v1023_v24 = vpop.f32.mrf.mxu3 }
 0x13f   :  { %v2177_v25 = vpack.c.bf16 %v2056_v22, %v2055_v21  ;;  %v1217_v28 = vmax.f32 %v854_v23, %v1023_v24  ;;  %v518_v29 = vpop.f32.mrf.mxu0  ;;  %v687_v30 = vpop.f32.mrf.mxu1 }
 0x140   :  { %v1154_v36 = vmax.f32 %v518_v29, %v687_v30 }
 0x141   :  { %2253 = vst [vmem:[%s2867_s3 + $0x48] sm:$0xff] %v2177_v25   ;;  %v1281_v31 = vmax.f32 %v1153_v26, %v1217_v28 }
 0x143   :  { %v1349_v35 = vadd.f32 %v2472_v16, %v1281_v31 }
 0x145   :  { %vm1413_vm7 = vcmp.gt.f32.partialorder %v1349_v35, 3.5112913 }
 0x146   :  { %v856_v32 = vpop.f32.mrf.mxu2  ;;  %v1025_v33 = vpop.f32.mrf.mxu3  ;;  %v2057_v42 = vsel %vm1413_vm7, 1.0, %v2279_v27 }
 0x147   :  { %v1218_v37 = vmax.f32 %v856_v32, %v1025_v33  ;;  %v521_v38 = vpop.f32.mrf.mxu0  ;;  %v690_v39 = vpop.f32.mrf.mxu1  ;;  %v2123_v32 = vld [vmem:[%s2865_s0 + $0xb0] sm:$0xff] }
 0x148   :  { %v1155_v47 = vmax.f32 %v521_v38, %v690_v39 }
 0x149   :  { %v1282_v40 = vmax.f32 %v1154_v36, %v1218_v37 }
 0x14a   :  { %1928 = vmatmul.msk.bf16.gmra.mxu0 %vm347_vm1, %v2120_v34  ;;  %1960 = vmatmul.msk.bf16.gmra.mxu1 %vm347_vm1, %v2120_v34 }
 0x14b   :  { %v1350_v41 = vadd.f32 %v2472_v16, %v1282_v40  ;;  %1992 = vmatmul.msk.bf16.gmra.mxu2 %vm347_vm1, %v2120_v34  ;;  %2024 = vmatmul.msk.bf16.gmra.mxu3 %vm347_vm1, %v2120_v34 }
 0x14d   :  { %vm1414_vm8 = vcmp.gt.f32.partialorder %v1350_v41, 3.5112913 }
 0x14e   :  { %v2058_v43 = vsel %vm1414_vm8, 1.0, %v2279_v27  ;;  %v859_v44 = vpop.f32.mrf.mxu2  ;;  %v1028_v45 = vpop.f32.mrf.mxu3 }
 0x14f   :  { %v2180_v46 = vpack.c.bf16 %v2058_v43, %v2057_v42  ;;  %v1219_v48 = vmax.f32 %v859_v44, %v1028_v45  ;;  %v523_v49 = vpop.f32.mrf.mxu0  ;;  %v692_v50 = vpop.f32.mrf.mxu1 }
 0x150   :  { %v1156_v56 = vmax.f32 %v523_v49, %v692_v50 }
 0x151   :  { %2254 = vst [vmem:[%s2867_s3 + $0x50] sm:$0xff] %v2180_v46   ;;  %v1283_v51 = vmax.f32 %v1155_v47, %v1219_v48 }
 0x153   :  { %v1351_v55 = vadd.f32 %v2472_v16, %v1283_v51 }
 0x155   :  { %vm1415_vm9 = vcmp.gt.f32.partialorder %v1351_v55, 3.5112913 }
 0x156   :  { %v861_v52 = vpop.f32.mrf.mxu2  ;;  %v1030_v53 = vpop.f32.mrf.mxu3  ;;  %v2059_v62 = vsel %vm1415_vm9, 1.0, %v2279_v27 }
 0x157   :  { %v1220_v57 = vmax.f32 %v861_v52, %v1030_v53  ;;  %v526_v58 = vpop.f32.mrf.mxu0  ;;  %v695_v59 = vpop.f32.mrf.mxu1  ;;  %v2124_v52 = vld [vmem:[%s2865_s0 + $0xb8] sm:$0xff] }
 0x158   :  { %v1157_v3 = vmax.f32 %v526_v58, %v695_v59 }
 0x159   :  { %v1284_v60 = vmax.f32 %v1156_v56, %v1220_v57 }
 0x15a   :  { %1929 = vmatmul.msk.bf16.gmra.mxu0 %vm347_vm1, %v2121_v54  ;;  %1961 = vmatmul.msk.bf16.gmra.mxu1 %vm347_vm1, %v2121_v54 }
 0x15b   :  { %v1352_v61 = vadd.f32 %v2472_v16, %v1284_v60  ;;  %1993 = vmatmul.msk.bf16.gmra.mxu2 %vm347_vm1, %v2121_v54  ;;  %2025 = vmatmul.msk.bf16.gmra.mxu3 %vm347_vm1, %v2121_v54 }
 0x15d   :  { %vm1416_vm10 = vcmp.gt.f32.partialorder %v1352_v61, 3.5112913 }
 0x15e   :  { %v2060_v63 = vsel %vm1416_vm10, 1.0, %v2279_v27  ;;  %v864_v0 = vpop.f32.mrf.mxu2  ;;  %v1033_v1 = vpop.f32.mrf.mxu3 }
 0x15f   :  { %v2183_v2 = vpack.c.bf16 %v2060_v63, %v2059_v62  ;;  %v1221_v4 = vmax.f32 %v864_v0, %v1033_v1  ;;  %v528_v5 = vpop.f32.mrf.mxu0  ;;  %v697_v6 = vpop.f32.mrf.mxu1 }
 0x160   :  { %v1158_v12 = vmax.f32 %v528_v5, %v697_v6 }
 0x161   :  { %2255 = vst [vmem:[%s2867_s3 + $0x58] sm:$0xff] %v2183_v2   ;;  %v1285_v7 = vmax.f32 %v1157_v3, %v1221_v4 }
 0x163   :  { %v1353_v11 = vadd.f32 %v2472_v16, %v1285_v7 }
 0x165   :  { %vm1417_vm11 = vcmp.gt.f32.partialorder %v1353_v11, 3.5112913 }
 0x166   :  { %v866_v8 = vpop.f32.mrf.mxu2  ;;  %v1035_v9 = vpop.f32.mrf.mxu3  ;;  %v2061_v19 = vsel %vm1417_vm11, 1.0, %v2279_v27 }
 0x167   :  { %v1222_v13 = vmax.f32 %v866_v8, %v1035_v9  ;;  %v531_v14 = vpop.f32.mrf.mxu0  ;;  %v700_v15 = vpop.f32.mrf.mxu1  ;;  %v2125_v8 = vld [vmem:[%s2865_s0 + $0xc0] sm:$0xff] }
 0x168   :  { %v1159_v24 = vmax.f32 %v531_v14, %v700_v15 }
 0x169   :  { %v1286_v17 = vmax.f32 %v1158_v12, %v1222_v13 }
 0x16a   :  { %1930 = vmatmul.msk.bf16.gmra.mxu0 %vm347_vm1, %v2122_v10  ;;  %1962 = vmatmul.msk.bf16.gmra.mxu1 %vm347_vm1, %v2122_v10 }
 0x16b   :  { %v1354_v18 = vadd.f32 %v2472_v16, %v1286_v17  ;;  %1994 = vmatmul.msk.bf16.gmra.mxu2 %vm347_vm1, %v2122_v10  ;;  %2026 = vmatmul.msk.bf16.gmra.mxu3 %vm347_vm1, %v2122_v10 }
 0x16d   :  { %vm1418_vm12 = vcmp.gt.f32.partialorder %v1354_v18, 3.5112913 }
 0x16e   :  { %v2062_v20 = vsel %vm1418_vm12, 1.0, %v2279_v27  ;;  %v869_v21 = vpop.f32.mrf.mxu2  ;;  %v1038_v22 = vpop.f32.mrf.mxu3 }
 0x16f   :  { %v2186_v23 = vpack.c.bf16 %v2062_v20, %v2061_v19  ;;  %v1223_v25 = vmax.f32 %v869_v21, %v1038_v22  ;;  %v533_v26 = vpop.f32.mrf.mxu0  ;;  %v702_v28 = vpop.f32.mrf.mxu1 }
 0x170   :  { %v1160_v34 = vmax.f32 %v533_v26, %v702_v28 }
 0x171   :  { %2256 = vst [vmem:[%s2867_s3 + $0x60] sm:$0xff] %v2186_v23   ;;  %v1287_v29 = vmax.f32 %v1159_v24, %v1223_v25 }
 0x173   :  { %v1355_v33 = vadd.f32 %v2472_v16, %v1287_v29 }
 0x175   :  { %vm1419_vm13 = vcmp.gt.f32.partialorder %v1355_v33, 3.5112913 }
 0x176   :  { %v871_v30 = vpop.f32.mrf.mxu2  ;;  %v1040_v31 = vpop.f32.mrf.mxu3  ;;  %v2063_v40 = vsel %vm1419_vm13, 1.0, %v2279_v27 }
 0x177   :  { %v1224_v35 = vmax.f32 %v871_v30, %v1040_v31  ;;  %v536_v36 = vpop.f32.mrf.mxu0  ;;  %v705_v37 = vpop.f32.mrf.mxu1  ;;  %v2126_v30 = vld [vmem:[%s2865_s0 + $0xc8] sm:$0xff] }
 0x178   :  { %v1161_v45 = vmax.f32 %v536_v36, %v705_v37 }
 0x179   :  { %v1288_v38 = vmax.f32 %v1160_v34, %v1224_v35 }
 0x17a   :  { %1931 = vmatmul.msk.bf16.gmra.mxu0 %vm347_vm1, %v2123_v32  ;;  %1963 = vmatmul.msk.bf16.gmra.mxu1 %vm347_vm1, %v2123_v32 }
 0x17b   :  { %v1356_v39 = vadd.f32 %v2472_v16, %v1288_v38  ;;  %1995 = vmatmul.msk.bf16.gmra.mxu2 %vm347_vm1, %v2123_v32  ;;  %2027 = vmatmul.msk.bf16.gmra.mxu3 %vm347_vm1, %v2123_v32 }
 0x17d   :  { %vm1420_vm14 = vcmp.gt.f32.partialorder %v1356_v39, 3.5112913 }
 0x17e   :  { %v2064_v41 = vsel %vm1420_vm14, 1.0, %v2279_v27  ;;  %v874_v42 = vpop.f32.mrf.mxu2  ;;  %v1043_v43 = vpop.f32.mrf.mxu3 }
 0x17f   :  { %v2189_v44 = vpack.c.bf16 %v2064_v41, %v2063_v40  ;;  %v1225_v46 = vmax.f32 %v874_v42, %v1043_v43  ;;  %v538_v47 = vpop.f32.mrf.mxu0  ;;  %v707_v48 = vpop.f32.mrf.mxu1 }
 0x180   :  { %v1162_v54 = vmax.f32 %v538_v47, %v707_v48 }
 0x181   :  { %2257 = vst [vmem:[%s2867_s3 + $0x68] sm:$0xff] %v2189_v44   ;;  %v1289_v49 = vmax.f32 %v1161_v45, %v1225_v46 }
 0x183   :  { %v1357_v53 = vadd.f32 %v2472_v16, %v1289_v49 }
 0x185   :  { %vm1421_vm15 = vcmp.gt.f32.partialorder %v1357_v53, 3.5112913 }
 0x186   :  { %v876_v50 = vpop.f32.mrf.mxu2  ;;  %v1045_v51 = vpop.f32.mrf.mxu3  ;;  %v2065_v60 = vsel %vm1421_vm15, 1.0, %v2279_v27 }
 0x187   :  { %v1226_v55 = vmax.f32 %v876_v50, %v1045_v51  ;;  %v541_v56 = vpop.f32.mrf.mxu0  ;;  %v710_v57 = vpop.f32.mrf.mxu1  ;;  %v2127_v50 = vld [vmem:[%s2865_s0 + $0xd0] sm:$0xff] }
 0x188   :  { %v1163_v1 = vmax.f32 %v541_v56, %v710_v57 }
 0x189   :  { %v1290_v58 = vmax.f32 %v1162_v54, %v1226_v55 }
 0x18a   :  { %1932 = vmatmul.msk.bf16.gmra.mxu0 %vm347_vm1, %v2124_v52  ;;  %1964 = vmatmul.msk.bf16.gmra.mxu1 %vm347_vm1, %v2124_v52 }
 0x18b   :  { %v1358_v59 = vadd.f32 %v2472_v16, %v1290_v58  ;;  %1996 = vmatmul.msk.bf16.gmra.mxu2 %vm347_vm1, %v2124_v52  ;;  %2028 = vmatmul.msk.bf16.gmra.mxu3 %vm347_vm1, %v2124_v52 }
 0x18d   :  { %vm1422_vm0 = vcmp.gt.f32.partialorder %v1358_v59, 3.5112913 }
 0x18e   :  { %v2066_v61 = vsel %vm1422_vm0, 1.0, %v2279_v27  ;;  %v879_v62 = vpop.f32.mrf.mxu2  ;;  %v1048_v63 = vpop.f32.mrf.mxu3 }
 0x18f   :  { %v2192_v0 = vpack.c.bf16 %v2066_v61, %v2065_v60  ;;  %v1227_v2 = vmax.f32 %v879_v62, %v1048_v63  ;;  %v543_v3 = vpop.f32.mrf.mxu0  ;;  %v712_v4 = vpop.f32.mrf.mxu1 }
 0x190   :  { %v1164_v10 = vmax.f32 %v543_v3, %v712_v4 }
 0x191   :  { %2258 = vst [vmem:[%s2867_s3 + $0x70] sm:$0xff] %v2192_v0   ;;  %v1291_v5 = vmax.f32 %v1163_v1, %v1227_v2 }
 0x193   :  { %v1359_v9 = vadd.f32 %v2472_v16, %v1291_v5 }
 0x195   :  { %vm1423_vm2 = vcmp.gt.f32.partialorder %v1359_v9, 3.5112913 }
 0x196   :  { %v881_v6 = vpop.f32.mrf.mxu2  ;;  %v1050_v7 = vpop.f32.mrf.mxu3  ;;  %v2067_v17 = vsel %vm1423_vm2, 1.0, %v2279_v27 }
 0x197   :  { %v1228_v11 = vmax.f32 %v881_v6, %v1050_v7  ;;  %v546_v12 = vpop.f32.mrf.mxu0  ;;  %v715_v13 = vpop.f32.mrf.mxu1  ;;  %v2128_v6 = vld [vmem:[%s2865_s0 + $0xd8] sm:$0xff] }
 0x198   :  { %v1165_v22 = vmax.f32 %v546_v12, %v715_v13 }
 0x199   :  { %v1292_v14 = vmax.f32 %v1164_v10, %v1228_v11 }
 0x19a   :  { %1933 = vmatmul.msk.bf16.gmra.mxu0 %vm347_vm1, %v2125_v8  ;;  %1965 = vmatmul.msk.bf16.gmra.mxu1 %vm347_vm1, %v2125_v8 }
 0x19b   :  { %v1360_v15 = vadd.f32 %v2472_v16, %v1292_v14  ;;  %1997 = vmatmul.msk.bf16.gmra.mxu2 %vm347_vm1, %v2125_v8  ;;  %2029 = vmatmul.msk.bf16.gmra.mxu3 %vm347_vm1, %v2125_v8 }
 0x19d   :  { %vm1424_vm3 = vcmp.gt.f32.partialorder %v1360_v15, 3.5112913 }
 0x19e   :  { %v2068_v18 = vsel %vm1424_vm3, 1.0, %v2279_v27  ;;  %v884_v19 = vpop.f32.mrf.mxu2  ;;  %v1053_v20 = vpop.f32.mrf.mxu3 }
 0x19f   :  { %v2195_v21 = vpack.c.bf16 %v2068_v18, %v2067_v17  ;;  %v1229_v23 = vmax.f32 %v884_v19, %v1053_v20  ;;  %v548_v24 = vpop.f32.mrf.mxu0  ;;  %v717_v25 = vpop.f32.mrf.mxu1 }
 0x1a0   :  { %v1166_v32 = vmax.f32 %v548_v24, %v717_v25 }
 0x1a1   :  { %2259 = vst [vmem:[%s2867_s3 + $0x78] sm:$0xff] %v2195_v21   ;;  %v1293_v26 = vmax.f32 %v1165_v22, %v1229_v23 }
 0x1a3   :  { %v1361_v31 = vadd.f32 %v2472_v16, %v1293_v26  ;;  %v2129_v26 = vld [vmem:[%s2865_s0 + $0xe0] sm:$0xff] }
 0x1a5   :  { %vm1425_vm4 = vcmp.gt.f32.partialorder %v1361_v31, 3.5112913 }
 0x1a6   :  { %v886_v28 = vpop.f32.mrf.mxu2  ;;  %v1055_v29 = vpop.f32.mrf.mxu3  ;;  %v2069_v38 = vsel %vm1425_vm4, 1.0, %v2279_v27 }
 0x1a7   :  { %v1230_v33 = vmax.f32 %v886_v28, %v1055_v29  ;;  %v551_v34 = vpop.f32.mrf.mxu0  ;;  %v720_v35 = vpop.f32.mrf.mxu1  ;;  %v2746_v28 = vld [vmem:[%s2866_s2] ss:$0 sm:$0xff] }
 0x1a8   :  { %v1167_v43 = vmax.f32 %v551_v34, %v720_v35 }
 0x1a9   :  { %v1294_v36 = vmax.f32 %v1166_v32, %v1230_v33 }
 0x1aa   :  { %1934 = vmatmul.msk.bf16.gmra.mxu0 %vm347_vm1, %v2126_v30  ;;  %1966 = vmatmul.msk.bf16.gmra.mxu1 %vm347_vm1, %v2126_v30 }
 0x1ab   :  { %v1362_v37 = vadd.f32 %v2472_v16, %v1294_v36  ;;  %1998 = vmatmul.msk.bf16.gmra.mxu2 %vm347_vm1, %v2126_v30  ;;  %2030 = vmatmul.msk.bf16.gmra.mxu3 %vm347_vm1, %v2126_v30 }
 0x1ad   :  { %vm1426_vm5 = vcmp.gt.f32.partialorder %v1362_v37, 3.5112913 }
 0x1ae   :  { %v2070_v39 = vsel %vm1426_vm5, 1.0, %v2279_v27  ;;  %v889_v40 = vpop.f32.mrf.mxu2  ;;  %v1058_v41 = vpop.f32.mrf.mxu3 }
 0x1af   :  { %v2198_v42 = vpack.c.bf16 %v2070_v39, %v2069_v38  ;;  %v1231_v44 = vmax.f32 %v889_v40, %v1058_v41  ;;  %v553_v45 = vpop.f32.mrf.mxu0  ;;  %v722_v46 = vpop.f32.mrf.mxu1 }
 0x1b0   :  { %v1168_v52 = vmax.f32 %v553_v45, %v722_v46 }
 0x1b1   :  { %2260 = vst [vmem:[%s2867_s3 + $0x80] sm:$0xff] %v2198_v42   ;;  %v1295_v47 = vmax.f32 %v1167_v43, %v1231_v44 }
 0x1b3   :  { %v1363_v51 = vadd.f32 %v2472_v16, %v1295_v47 }
 0x1b5   :  { %vm1427_vm6 = vcmp.gt.f32.partialorder %v1363_v51, 3.5112913 }
 0x1b6   :  { %v891_v48 = vpop.f32.mrf.mxu2  ;;  %v1060_v49 = vpop.f32.mrf.mxu3  ;;  %v2071_v58 = vsel %vm1427_vm6, 1.0, %v2279_v27 }
 0x1b7   :  { %v1232_v53 = vmax.f32 %v891_v48, %v1060_v49  ;;  %v556_v54 = vpop.f32.mrf.mxu0  ;;  %v725_v55 = vpop.f32.mrf.mxu1  ;;  %v2130_v48 = vld [vmem:[%s2865_s0 + $0xe8] sm:$0xff] }
 0x1b8   :  { %v1169_v63 = vmax.f32 %v556_v54, %v725_v55 }
 0x1b9   :  { %v1296_v56 = vmax.f32 %v1168_v52, %v1232_v53 }
 0x1ba   :  { %1935 = vmatmul.msk.bf16.gmra.mxu0 %vm347_vm1, %v2127_v50  ;;  %1967 = vmatmul.msk.bf16.gmra.mxu1 %vm347_vm1, %v2127_v50 }
 0x1bb   :  { %v1364_v57 = vadd.f32 %v2472_v16, %v1296_v56  ;;  %1999 = vmatmul.msk.bf16.gmra.mxu2 %vm347_vm1, %v2127_v50  ;;  %2031 = vmatmul.msk.bf16.gmra.mxu3 %vm347_vm1, %v2127_v50 }
 0x1bd   :  { %vm1428_vm7 = vcmp.gt.f32.partialorder %v1364_v57, 3.5112913 }
 0x1be   :  { %v2072_v59 = vsel %vm1428_vm7, 1.0, %v2279_v27  ;;  %v894_v60 = vpop.f32.mrf.mxu2  ;;  %v1063_v61 = vpop.f32.mrf.mxu3 }
 0x1bf   :  { %v2201_v62 = vpack.c.bf16 %v2072_v59, %v2071_v58  ;;  %v1233_v0 = vmax.f32 %v894_v60, %v1063_v61  ;;  %v558_v1 = vpop.f32.mrf.mxu0  ;;  %v727_v2 = vpop.f32.mrf.mxu1 }
 0x1c0   :  { %v1170_v8 = vmax.f32 %v558_v1, %v727_v2 }
 0x1c1   :  { %2261 = vst [vmem:[%s2867_s3 + $0x88] sm:$0xff] %v2201_v62   ;;  %v1297_v3 = vmax.f32 %v1169_v63, %v1233_v0 }
 0x1c3   :  { %v1365_v7 = vadd.f32 %v2472_v16, %v1297_v3 }
 0x1c5   :  { %vm1429_vm8 = vcmp.gt.f32.partialorder %v1365_v7, 3.5112913 }
 0x1c6   :  { %v896_v4 = vpop.f32.mrf.mxu2  ;;  %v1065_v5 = vpop.f32.mrf.mxu3  ;;  %v2073_v14 = vsel %vm1429_vm8, 1.0, %v2279_v27 }
 0x1c7   :  { %v1234_v9 = vmax.f32 %v896_v4, %v1065_v5  ;;  %v561_v10 = vpop.f32.mrf.mxu0  ;;  %v730_v11 = vpop.f32.mrf.mxu1  ;;  %v2131_v4 = vld [vmem:[%s2865_s0 + $0xf0] sm:$0xff] }
 0x1c8   :  { %v1171_v20 = vmax.f32 %v561_v10, %v730_v11 }
 0x1c9   :  { %v1298_v12 = vmax.f32 %v1170_v8, %v1234_v9 }
 0x1ca   :  { %1936 = vmatmul.msk.bf16.gmra.mxu0 %vm347_vm1, %v2128_v6  ;;  %1968 = vmatmul.msk.bf16.gmra.mxu1 %vm347_vm1, %v2128_v6 }
 0x1cb   :  { %v1366_v13 = vadd.f32 %v2472_v16, %v1298_v12  ;;  %2000 = vmatmul.msk.bf16.gmra.mxu2 %vm347_vm1, %v2128_v6  ;;  %2032 = vmatmul.msk.bf16.gmra.mxu3 %vm347_vm1, %v2128_v6 }
 0x1cd   :  { %vm1430_vm9 = vcmp.gt.f32.partialorder %v1366_v13, 3.5112913 }
 0x1ce   :  { %v2074_v15 = vsel %vm1430_vm9, 1.0, %v2279_v27  ;;  %v899_v17 = vpop.f32.mrf.mxu2  ;;  %v1068_v18 = vpop.f32.mrf.mxu3 }
 0x1cf   :  { %v2204_v19 = vpack.c.bf16 %v2074_v15, %v2073_v14  ;;  %v1235_v21 = vmax.f32 %v899_v17, %v1068_v18  ;;  %v563_v22 = vpop.f32.mrf.mxu0  ;;  %v732_v23 = vpop.f32.mrf.mxu1 }
 0x1d0   :  { %v1172_v30 = vmax.f32 %v563_v22, %v732_v23 }
 0x1d1   :  { %2262 = vst [vmem:[%s2867_s3 + $0x90] sm:$0xff] %v2204_v19   ;;  %v1299_v16 = vmax.f32 %v1171_v20, %v1235_v21 }
 0x1d3   :  { %v1367_v29 = vadd.f32 %v2746_v28, %v1299_v16 }
 0x1d5   :  { %vm1431_vm10 = vcmp.gt.f32.partialorder %v1367_v29, 3.5112913 }
 0x1d6   :  { %v901_v24 = vpop.f32.mrf.mxu2  ;;  %v1070_v25 = vpop.f32.mrf.mxu3  ;;  %v2075_v36 = vsel %vm1431_vm10, 1.0, %v2279_v27 }
 0x1d7   :  { %v1236_v31 = vmax.f32 %v901_v24, %v1070_v25  ;;  %v566_v32 = vpop.f32.mrf.mxu0  ;;  %v735_v33 = vpop.f32.mrf.mxu1  ;;  %v2132_v24 = vld [vmem:[%s2865_s0 + $0xf8] sm:$0xff] }
 0x1d8   :  { %v1173_v41 = vmax.f32 %v566_v32, %v735_v33 }
 0x1d9   :  { %v1300_v34 = vmax.f32 %v1172_v30, %v1236_v31 }
 0x1da   :  { %1937 = vmatmul.msk.bf16.gmra.mxu0 %vm347_vm1, %v2129_v26  ;;  %1969 = vmatmul.msk.bf16.gmra.mxu1 %vm347_vm1, %v2129_v26 }
 0x1db   :  { %v1368_v35 = vadd.f32 %v2746_v28, %v1300_v34  ;;  %2001 = vmatmul.msk.bf16.gmra.mxu2 %vm347_vm1, %v2129_v26  ;;  %2033 = vmatmul.msk.bf16.gmra.mxu3 %vm347_vm1, %v2129_v26 }
 0x1dd   :  { %vm1432_vm11 = vcmp.gt.f32.partialorder %v1368_v35, 3.5112913 }
 0x1de   :  { %v2076_v37 = vsel %vm1432_vm11, 1.0, %v2279_v27  ;;  %v904_v38 = vpop.f32.mrf.mxu2  ;;  %v1073_v39 = vpop.f32.mrf.mxu3 }
 0x1df   :  { %v2207_v40 = vpack.c.bf16 %v2076_v37, %v2075_v36  ;;  %v1237_v42 = vmax.f32 %v904_v38, %v1073_v39  ;;  %v568_v43 = vpop.f32.mrf.mxu0  ;;  %v737_v44 = vpop.f32.mrf.mxu1 }
 0x1e0   :  { %v1174_v50 = vmax.f32 %v568_v43, %v737_v44 }
 0x1e1   :  { %2263 = vst [vmem:[%s2867_s3 + $0x98] sm:$0xff] %v2207_v40   ;;  %v1301_v45 = vmax.f32 %v1173_v41, %v1237_v42 }
 0x1e3   :  { %v1369_v49 = vadd.f32 %v2746_v28, %v1301_v45 }
 0x1e5   :  { %vm1433_vm12 = vcmp.gt.f32.partialorder %v1369_v49, 3.5112913 }
 0x1e6   :  { %v906_v46 = vpop.f32.mrf.mxu2  ;;  %v1075_v47 = vpop.f32.mrf.mxu3  ;;  %v2077_v56 = vsel %vm1433_vm12, 1.0, %v2279_v27 }
 0x1e7   :  { %v1238_v51 = vmax.f32 %v906_v46, %v1075_v47  ;;  %v571_v52 = vpop.f32.mrf.mxu0  ;;  %v740_v53 = vpop.f32.mrf.mxu1 }
 0x1e8   :  { %v1175_v61 = vmax.f32 %v571_v52, %v740_v53 }
 0x1e9   :  { %v1302_v54 = vmax.f32 %v1174_v50, %v1238_v51 }
 0x1ea   :  { %1938 = vmatmul.msk.bf16.gmra.mxu0 %vm347_vm1, %v2130_v48  ;;  %1970 = vmatmul.msk.bf16.gmra.mxu1 %vm347_vm1, %v2130_v48 }
 0x1eb   :  { %v1370_v55 = vadd.f32 %v2746_v28, %v1302_v54  ;;  %2002 = vmatmul.msk.bf16.gmra.mxu2 %vm347_vm1, %v2130_v48  ;;  %2034 = vmatmul.msk.bf16.gmra.mxu3 %vm347_vm1, %v2130_v48 }
 0x1ed   :  { %vm1434_vm13 = vcmp.gt.f32.partialorder %v1370_v55, 3.5112913 }
 0x1ee   :  { %v2078_v57 = vsel %vm1434_vm13, 1.0, %v2279_v27  ;;  %v909_v58 = vpop.f32.mrf.mxu2  ;;  %v1078_v59 = vpop.f32.mrf.mxu3 }
 0x1ef   :  { %v2210_v60 = vpack.c.bf16 %v2078_v57, %v2077_v56  ;;  %v1239_v62 = vmax.f32 %v909_v58, %v1078_v59  ;;  %v573_v63 = vpop.f32.mrf.mxu0  ;;  %v742_v0 = vpop.f32.mrf.mxu1 }
 0x1f0   :  { %v1176_v6 = vmax.f32 %v573_v63, %v742_v0 }
 0x1f1   :  { %2264 = vst [vmem:[%s2867_s3 + $0xa0] sm:$0xff] %v2210_v60   ;;  %v1303_v1 = vmax.f32 %v1175_v61, %v1239_v62 }
 0x1f3   :  { %v1371_v5 = vadd.f32 %v2746_v28, %v1303_v1 }
 0x1f5   :  { %vm1435_vm14 = vcmp.gt.f32.partialorder %v1371_v5, 3.5112913 }
 0x1f6   :  { %v911_v2 = vpop.f32.mrf.mxu2  ;;  %v1080_v3 = vpop.f32.mrf.mxu3  ;;  %v2079_v12 = vsel %vm1435_vm14, 1.0, %v2279_v27 }
 0x1f7   :  { %v1240_v7 = vmax.f32 %v911_v2, %v1080_v3  ;;  %v576_v8 = vpop.f32.mrf.mxu0  ;;  %v745_v9 = vpop.f32.mrf.mxu1 }
 0x1f8   :  { %v1177_v18 = vmax.f32 %v576_v8, %v745_v9 }
 0x1f9   :  { %v1304_v10 = vmax.f32 %v1176_v6, %v1240_v7 }
 0x1fa   :  { %1939 = vmatmul.msk.bf16.gmra.mxu0 %vm347_vm1, %v2131_v4  ;;  %1971 = vmatmul.msk.bf16.gmra.mxu1 %vm347_vm1, %v2131_v4 }
 0x1fb   :  { %v1372_v11 = vadd.f32 %v2746_v28, %v1304_v10  ;;  %2003 = vmatmul.msk.bf16.gmra.mxu2 %vm347_vm1, %v2131_v4  ;;  %2035 = vmatmul.msk.bf16.gmra.mxu3 %vm347_vm1, %v2131_v4 }
 0x1fd   :  { %vm1436_vm15 = vcmp.gt.f32.partialorder %v1372_v11, 3.5112913 }
 0x1fe   :  { %v2080_v13 = vsel %vm1436_vm15, 1.0, %v2279_v27  ;;  %v914_v14 = vpop.f32.mrf.mxu2  ;;  %v1083_v15 = vpop.f32.mrf.mxu3 }
 0x1ff   :  { %v2213_v17 = vpack.c.bf16 %v2080_v13, %v2079_v12  ;;  %v1241_v19 = vmax.f32 %v914_v14, %v1083_v15  ;;  %v578_v20 = vpop.f32.mrf.mxu0  ;;  %v747_v21 = vpop.f32.mrf.mxu1 }
 0x200   :  { %v1178_v26 = vmax.f32 %v578_v20, %v747_v21 }
 0x201   :  { %2265 = vst [vmem:[%s2867_s3 + $0xa8] sm:$0xff] %v2213_v17   ;;  %v1305_v22 = vmax.f32 %v1177_v18, %v1241_v19 }
 0x203   :  { %v1373_v25 = vadd.f32 %v2746_v28, %v1305_v22 }
 0x205   :  { %vm1437_vm0 = vcmp.gt.f32.partialorder %v1373_v25, 3.5112913 }
 0x206   :  { %v916_v23 = vpop.f32.mrf.mxu2  ;;  %v1085_v16 = vpop.f32.mrf.mxu3  ;;  %v2081_v34 = vsel %vm1437_vm0, 1.0, %v2279_v27 }
 0x207   :  { %v1242_v29 = vmax.f32 %v916_v23, %v1085_v16  ;;  %v581_v30 = vpop.f32.mrf.mxu0  ;;  %v750_v31 = vpop.f32.mrf.mxu1 }
 0x208   :  { %v1179_v39 = vmax.f32 %v581_v30, %v750_v31 }
 0x209   :  { %v1306_v32 = vmax.f32 %v1178_v26, %v1242_v29 }
 0x20a   :  { %1940 = vmatmul.msk.bf16.gmra.mxu0 %vm347_vm1, %v2132_v24  ;;  %1972 = vmatmul.msk.bf16.gmra.mxu1 %vm347_vm1, %v2132_v24 }
 0x20b   :  { %v1374_v33 = vadd.f32 %v2746_v28, %v1306_v32  ;;  %2004 = vmatmul.msk.bf16.gmra.mxu2 %vm347_vm1, %v2132_v24  ;;  %2036 = vmatmul.msk.bf16.gmra.mxu3 %vm347_vm1, %v2132_v24 }
 0x20d   :  { %vm1438_vm2 = vcmp.gt.f32.partialorder %v1374_v33, 3.5112913 }
 0x20e   :  { %v2082_v35 = vsel %vm1438_vm2, 1.0, %v2279_v27  ;;  %v919_v36 = vpop.f32.mrf.mxu2  ;;  %v1088_v37 = vpop.f32.mrf.mxu3 }
 0x20f   :  { %v2216_v38 = vpack.c.bf16 %v2082_v35, %v2081_v34  ;;  %v1243_v40 = vmax.f32 %v919_v36, %v1088_v37  ;;  %v583_v41 = vpop.f32.mrf.mxu0  ;;  %v752_v42 = vpop.f32.mrf.mxu1 }
 0x210   :  { %v1180_v47 = vmax.f32 %v583_v41, %v752_v42 }
 0x211   :  { %2266 = vst [vmem:[%s2867_s3 + $0xb0] sm:$0xff] %v2216_v38   ;;  %v1307_v43 = vmax.f32 %v1179_v39, %v1243_v40 }
 0x213   :  { %v1375_v46 = vadd.f32 %v2746_v28, %v1307_v43 }
 0x215   :  { %vm1439_vm1 = vcmp.gt.f32.partialorder %v1375_v46, 3.5112913 }
 0x216   :  { %v921_v44 = vpop.f32.mrf.mxu2  ;;  %v1090_v45 = vpop.f32.mrf.mxu3  ;;  %v2083_v53 = vsel %vm1439_vm1, 1.0, %v2279_v27 }
 0x217   :  { %v1244_v48 = vmax.f32 %v921_v44, %v1090_v45  ;;  %v586_v49 = vpop.f32.mrf.mxu0  ;;  %v755_v50 = vpop.f32.mrf.mxu1 }
 0x218   :  { %v1181_v58 = vmax.f32 %v586_v49, %v755_v50 }
 0x219   :  { %v1308_v51 = vmax.f32 %v1180_v47, %v1244_v48 }
 0x21b   :  { %v1376_v52 = vadd.f32 %v2746_v28, %v1308_v51 }
 0x21d   :  { %vm1440_vm3 = vcmp.gt.f32.partialorder %v1376_v52, 3.5112913 }
 0x21e   :  { %v2084_v54 = vsel %vm1440_vm3, 1.0, %v2279_v27  ;;  %v924_v55 = vpop.f32.mrf.mxu2  ;;  %v1093_v56 = vpop.f32.mrf.mxu3 }
 0x21f   :  { %v2219_v57 = vpack.c.bf16 %v2084_v54, %v2083_v53  ;;  %v1245_v59 = vmax.f32 %v924_v55, %v1093_v56  ;;  %v588_v60 = vpop.f32.mrf.mxu0  ;;  %v757_v61 = vpop.f32.mrf.mxu1 }
 0x220   :  { %v1182_v2 = vmax.f32 %v588_v60, %v757_v61 }
 0x221   :  { %2267 = vst [vmem:[%s2867_s3 + $0xb8] sm:$0xff] %v2219_v57   ;;  %v1309_v62 = vmax.f32 %v1181_v58, %v1245_v59 }
 0x223   :  { %v1377_v1 = vadd.f32 %v2746_v28, %v1309_v62 }
 0x225   :  { %vm1441_vm4 = vcmp.gt.f32.partialorder %v1377_v1, 3.5112913 }
 0x226   :  { %v926_v63 = vpop.f32.mrf.mxu2  ;;  %v1095_v0 = vpop.f32.mrf.mxu3  ;;  %v2085_v8 = vsel %vm1441_vm4, 1.0, %v2279_v27 }
 0x227   :  { %v1246_v3 = vmax.f32 %v926_v63, %v1095_v0  ;;  %v591_v4 = vpop.f32.mrf.mxu0  ;;  %v760_v5 = vpop.f32.mrf.mxu1 }
 0x228   :  { %v1183_v13 = vmax.f32 %v591_v4, %v760_v5 }
 0x229   :  { %v1310_v6 = vmax.f32 %v1182_v2, %v1246_v3 }
 0x22b   :  { %v1378_v7 = vadd.f32 %v2746_v28, %v1310_v6 }
 0x22d   :  { %vm1442_vm5 = vcmp.gt.f32.partialorder %v1378_v7, 3.5112913 }
 0x22e   :  { %v2086_v9 = vsel %vm1442_vm5, 1.0, %v2279_v27  ;;  %v929_v10 = vpop.f32.mrf.mxu2  ;;  %v1098_v11 = vpop.f32.mrf.mxu3 }
 0x22f   :  { %v2222_v12 = vpack.c.bf16 %v2086_v9, %v2085_v8  ;;  %v1247_v14 = vmax.f32 %v929_v10, %v1098_v11  ;;  %v593_v15 = vpop.f32.mrf.mxu0  ;;  %v762_v17 = vpop.f32.mrf.mxu1 }
 0x230   :  { %v1184_v22 = vmax.f32 %v593_v15, %v762_v17 }
 0x231   :  { %2268 = vst [vmem:[%s2867_s3 + $0xc0] sm:$0xff] %v2222_v12   ;;  %v1311_v18 = vmax.f32 %v1183_v13, %v1247_v14 }
 0x233   :  { %v1379_v21 = vadd.f32 %v2746_v28, %v1311_v18 }
 0x235   :  { %vm1443_vm6 = vcmp.gt.f32.partialorder %v1379_v21, 3.5112913 }
 0x236   :  { %v931_v19 = vpop.f32.mrf.mxu2  ;;  %v1100_v20 = vpop.f32.mrf.mxu3  ;;  %v2087_v29 = vsel %vm1443_vm6, 1.0, %v2279_v27 }
 0x237   :  { %v1248_v23 = vmax.f32 %v931_v19, %v1100_v20  ;;  %v596_v16 = vpop.f32.mrf.mxu0  ;;  %v765_v24 = vpop.f32.mrf.mxu1 }
 0x238   :  { %v1185_v34 = vmax.f32 %v596_v16, %v765_v24 }
 0x239   :  { %v1312_v25 = vmax.f32 %v1184_v22, %v1248_v23 }
 0x23b   :  { %v1380_v26 = vadd.f32 %v2746_v28, %v1312_v25 }
 0x23d   :  { %vm1444_vm7 = vcmp.gt.f32.partialorder %v1380_v26, 3.5112913 }
 0x23e   :  { %v2088_v30 = vsel %vm1444_vm7, 1.0, %v2279_v27  ;;  %v934_v31 = vpop.f32.mrf.mxu2  ;;  %v1103_v32 = vpop.f32.mrf.mxu3 }
 0x23f   :  { %v2225_v33 = vpack.c.bf16 %v2088_v30, %v2087_v29  ;;  %v1249_v35 = vmax.f32 %v934_v31, %v1103_v32  ;;  %v598_v36 = vpop.f32.mrf.mxu0  ;;  %v767_v37 = vpop.f32.mrf.mxu1 }
 0x240   :  { %v1186_v42 = vmax.f32 %v598_v36, %v767_v37 }
 0x241   :  { %2269 = vst [vmem:[%s2867_s3 + $0xc8] sm:$0xff] %v2225_v33   ;;  %v1313_v38 = vmax.f32 %v1185_v34, %v1249_v35 }
 0x243   :  { %v1381_v41 = vadd.f32 %v2746_v28, %v1313_v38 }
 0x245   :  { %vm1445_vm8 = vcmp.gt.f32.partialorder %v1381_v41, 3.5112913 }
 0x246   :  { %v936_v39 = vpop.f32.mrf.mxu2  ;;  %v1105_v40 = vpop.f32.mrf.mxu3  ;;  %v2089_v48 = vsel %vm1445_vm8, 1.0, %v2279_v27 }
 0x247   :  { %v1250_v43 = vmax.f32 %v936_v39, %v1105_v40  ;;  %v601_v44 = vpop.f32.mrf.mxu0  ;;  %v770_v45 = vpop.f32.mrf.mxu1 }
 0x248   :  { %v1187_v53 = vmax.f32 %v601_v44, %v770_v45 }
 0x249   :  { %v1314_v46 = vmax.f32 %v1186_v42, %v1250_v43 }
 0x24b   :  { %v1382_v47 = vadd.f32 %v2746_v28, %v1314_v46 }
 0x24d   :  { %vm1446_vm9 = vcmp.gt.f32.partialorder %v1382_v47, 3.5112913 }
 0x24e   :  { %v2090_v49 = vsel %vm1446_vm9, 1.0, %v2279_v27  ;;  %v939_v50 = vpop.f32.mrf.mxu2  ;;  %v1108_v51 = vpop.f32.mrf.mxu3 }
 0x24f   :  { %v2228_v52 = vpack.c.bf16 %v2090_v49, %v2089_v48  ;;  %v1251_v54 = vmax.f32 %v939_v50, %v1108_v51  ;;  %v603_v55 = vpop.f32.mrf.mxu0  ;;  %v772_v56 = vpop.f32.mrf.mxu1 }
 0x250   :  { %v1188_v61 = vmax.f32 %v603_v55, %v772_v56 }
 0x251   :  { %2270 = vst [vmem:[%s2867_s3 + $0xd0] sm:$0xff] %v2228_v52   ;;  %v1315_v57 = vmax.f32 %v1187_v53, %v1251_v54 }
 0x253   :  { %v1383_v60 = vadd.f32 %v2746_v28, %v1315_v57 }
 0x255   :  { %vm1447_vm10 = vcmp.gt.f32.partialorder %v1383_v60, 3.5112913 }
 0x256   :  { %v941_v58 = vpop.f32.mrf.mxu2  ;;  %v1110_v59 = vpop.f32.mrf.mxu3  ;;  %v2091_v3 = vsel %vm1447_vm10, 1.0, %v2279_v27 }
 0x257   :  { %v1252_v62 = vmax.f32 %v941_v58, %v1110_v59  ;;  %v606_v63 = vpop.f32.mrf.mxu0  ;;  %v775_v0 = vpop.f32.mrf.mxu1 }
 0x258   :  { %v1189_v8 = vmax.f32 %v606_v63, %v775_v0 }
 0x259   :  { %v1316_v1 = vmax.f32 %v1188_v61, %v1252_v62 }
 0x25b   :  { %v1384_v2 = vadd.f32 %v2746_v28, %v1316_v1 }
 0x25d   :  { %vm1448_vm11 = vcmp.gt.f32.partialorder %v1384_v2, 3.5112913 }
 0x25e   :  { %v2092_v4 = vsel %vm1448_vm11, 1.0, %v2279_v27  ;;  %v944_v5 = vpop.f32.mrf.mxu2  ;;  %v1113_v6 = vpop.f32.mrf.mxu3 }
 0x25f   :  { %v2231_v7 = vpack.c.bf16 %v2092_v4, %v2091_v3  ;;  %v1253_v9 = vmax.f32 %v944_v5, %v1113_v6  ;;  %v608_v10 = vpop.f32.mrf.mxu0  ;;  %v777_v11 = vpop.f32.mrf.mxu1 }
 0x260   :  { %v1190_v17 = vmax.f32 %v608_v10, %v777_v11 }
 0x261   :  { %2271 = vst [vmem:[%s2867_s3 + $0xd8] sm:$0xff] %v2231_v7   ;;  %v1317_v12 = vmax.f32 %v1189_v8, %v1253_v9 }
 0x263   :  { %v1385_v15 = vadd.f32 %v2746_v28, %v1317_v12 }
 0x265   :  { %vm1449_vm12 = vcmp.gt.f32.partialorder %v1385_v15, 3.5112913 }
 0x266   :  { %v946_v13 = vpop.f32.mrf.mxu2  ;;  %v1115_v14 = vpop.f32.mrf.mxu3  ;;  %v2093_v23 = vsel %vm1449_vm12, 1.0, %v2279_v27 }
 0x267   :  { %v1254_v18 = vmax.f32 %v946_v13, %v1115_v14  ;;  %v611_v19 = vpop.f32.mrf.mxu0  ;;  %v780_v20 = vpop.f32.mrf.mxu1 }
 0x268   :  { %v1191_v29 = vmax.f32 %v611_v19, %v780_v20 }
 0x269   :  { %v1318_v21 = vmax.f32 %v1190_v17, %v1254_v18 }
 0x26b   :  { %v1386_v22 = vadd.f32 %v2746_v28, %v1318_v21 }
 0x26d   :  { %vm1450_vm13 = vcmp.gt.f32.partialorder %v1386_v22, 3.5112913 }
 0x26e   :  { %v2094_v16 = vsel %vm1450_vm13, 1.0, %v2279_v27  ;;  %v949_v24 = vpop.f32.mrf.mxu2  ;;  %v1118_v25 = vpop.f32.mrf.mxu3 }
 0x26f   :  { %v2234_v26 = vpack.c.bf16 %v2094_v16, %v2093_v23  ;;  %v1255_v30 = vmax.f32 %v949_v24, %v1118_v25  ;;  %v613_v31 = vpop.f32.mrf.mxu0  ;;  %v782_v32 = vpop.f32.mrf.mxu1 }
 0x270   :  { %v1192_v37 = vmax.f32 %v613_v31, %v782_v32 }
 0x271   :  { %2272 = vst [vmem:[%s2867_s3 + $0xe0] sm:$0xff] %v2234_v26   ;;  %v1319_v33 = vmax.f32 %v1191_v29, %v1255_v30 }
 0x273   :  { %v1387_v36 = vadd.f32 %v2746_v28, %v1319_v33 }
 0x275   :  { %vm1451_vm14 = vcmp.gt.f32.partialorder %v1387_v36, 3.5112913 }
 0x276   :  { %v951_v34 = vpop.f32.mrf.mxu2  ;;  %v1120_v35 = vpop.f32.mrf.mxu3  ;;  %v2095_v43 = vsel %vm1451_vm14, 1.0, %v2279_v27 }
 0x277   :  { %v1256_v38 = vmax.f32 %v951_v34, %v1120_v35  ;;  %v616_v39 = vpop.f32.mrf.mxu0  ;;  %v785_v40 = vpop.f32.mrf.mxu1 }
 0x278   :  { %v1193_v48 = vmax.f32 %v616_v39, %v785_v40 }
 0x279   :  { %v1320_v41 = vmax.f32 %v1192_v37, %v1256_v38 }
 0x27b   :  { %v1388_v42 = vadd.f32 %v2746_v28, %v1320_v41 }
 0x27d   :  { %vm1452_vm15 = vcmp.gt.f32.partialorder %v1388_v42, 3.5112913 }
 0x27e   :  { %v2096_v44 = vsel %vm1452_vm15, 1.0, %v2279_v27  ;;  %v954_v45 = vpop.f32.mrf.mxu2  ;;  %v1123_v46 = vpop.f32.mrf.mxu3 }
 0x27f   :  { %v2237_v47 = vpack.c.bf16 %v2096_v44, %v2095_v43  ;;  %v1257_v49 = vmax.f32 %v954_v45, %v1123_v46  ;;  %v618_v50 = vpop.f32.mrf.mxu0  ;;  %v787_v51 = vpop.f32.mrf.mxu1 }
 0x280   :  { %v1194_v56 = vmax.f32 %v618_v50, %v787_v51 }
 0x281   :  { %2273 = vst [vmem:[%s2867_s3 + $0xe8] sm:$0xff] %v2237_v47   ;;  %v1321_v52 = vmax.f32 %v1193_v48, %v1257_v49 }
 0x283   :  { %v1389_v55 = vadd.f32 %v2746_v28, %v1321_v52 }
 0x285   :  { %vm1453_vm0 = vcmp.gt.f32.partialorder %v1389_v55, 3.5112913 }
 0x286   :  { %v956_v53 = vpop.f32.mrf.mxu2  ;;  %v1125_v54 = vpop.f32.mrf.mxu3  ;;  %v2097_v62 = vsel %vm1453_vm0, 1.0, %v2279_v27 }
 0x287   :  { %v1258_v57 = vmax.f32 %v956_v53, %v1125_v54  ;;  %v621_v59 = vpop.f32.mrf.mxu0  ;;  %v790_v60 = vpop.f32.mrf.mxu1 }
 0x288   :  { %v1195_v3 = vmax.f32 %v621_v59, %v790_v60 }
 0x289   :  { %v1322_v58 = vmax.f32 %v1194_v56, %v1258_v57 }
 0x28b   :  { %v1390_v61 = vadd.f32 %v2746_v28, %v1322_v58 }
 0x28d   :  { %vm1454_vm2 = vcmp.gt.f32.partialorder %v1390_v61, 3.5112913 }
 0x28e   :  { %v2098_v63 = vsel %vm1454_vm2, 1.0, %v2279_v27  ;;  %v959_v0 = vpop.f32.mrf.mxu2  ;;  %v1128_v1 = vpop.f32.mrf.mxu3 }
 0x28f   :  { %v2240_v2 = vpack.c.bf16 %v2098_v63, %v2097_v62  ;;  %v1259_v4 = vmax.f32 %v959_v0, %v1128_v1  ;;  %v623_v6 = vpop.f32.mrf.mxu0  ;;  %v792_v7 = vpop.f32.mrf.mxu1 }
 0x290   :  { %v1196_v11 = vmax.f32 %v623_v6, %v792_v7 }
 0x291   :  { %2274 = vst [vmem:[%s2867_s3 + $0xf0] sm:$0xff] %v2240_v2   ;;  %v1323_v5 = vmax.f32 %v1195_v3, %v1259_v4 }
 0x293   :  { %v1391_v10 = vadd.f32 %v2746_v28, %v1323_v5 }
 0x295   :  { %vm1455_vm1 = vcmp.gt.f32.partialorder %v1391_v10, 3.5112913 }
 0x296   :  { %v961_v8 = vpop.f32.mrf.mxu2  ;;  %v1130_v9 = vpop.f32.mrf.mxu3  ;;  %v2099_v15 = vsel %vm1455_vm1, 1.0, %v2279_v27 }
 0x297   :  { %v1260_v12 = vmax.f32 %v961_v8, %v1130_v9 }
 0x299   :  { %v1324_v13 = vmax.f32 %v1196_v11, %v1260_v12 }
 0x29b   :  { %v1392_v14 = vadd.f32 %v2746_v28, %v1324_v13 }
 0x29d   :  { %vm1456_vm3 = vcmp.gt.f32.partialorder %v1392_v14, 3.5112913 }
 0x29e   :  { %v2100_v17 = vsel %vm1456_vm3, 1.0, %v2279_v27 }
 0x29f   :  { %v2243_v18 = vpack.c.bf16 %v2100_v17, %v2099_v15 }
 0x2a1   :  { %2275 = vst [vmem:[%s2867_s3 + $0xf8] sm:$0xff] %v2243_v18  }

// kernel: net_forward.5
= control target key start
LH: loop header
LB: loop body
LE: loop exit
PB: predicated region body
PF: predicated region fallthrough
CT: control target
= control target key end

     0   :  { %vm1127_vm0 = vcmask 523264   ;;  %s5127_s1 = inlined_call_operand.vmem [shape: bf16[576,512], index: 1, kind: input, shape index: {}]   ;;  %s5128_s0 = inlined_call_operand.vmem [shape: bf16[128,576], index: 0, kind: input, shape index: {}]   ;;  %s5129_s2 = inlined_call_operand.vmem [shape: f32[1,128], index: 2, kind: input, shape index: {}]   ;;  %s5130_s3 = inlined_call_operand.vmem [shape: bf16[128,128], index: 3, kind: output, shape index: {}]  }
   0x1   :  { %v2558_v0 = vld [vmem:[%s5127_s1 + $0xe0] sm:$0xf]  ;;  %v3138_v1 = vld [vmem:[%s5127_s1 + $0xec] sm:$0xf0] }
   0x2   :  { %v2686_v2 = vld [vmem:[%s5127_s1 + $0x1e0] sm:$0xf]  ;;  %v2559_v3 = vor.u32 %v3138_v1, %v2558_v0  ;;  %v3170_v4 = vld [vmem:[%s5127_s1 + $0x1ec] sm:$0xf0] }
   0x3   :  { %v2814_v5 = vld [vmem:[%s5127_s1 + $0x2e0] sm:$0xf]  ;;  %v3202_v6 = vld [vmem:[%s5127_s1 + $0x2ec] sm:$0xf0]  ;;  %v2687_v7 = vor.u32 %v3170_v4, %v2686_v2 }
   0x4   :  { %v2815_v8 = vor.u32 %v3202_v6, %v2814_v5  ;;  %v2942_v9 = vld [vmem:[%s5127_s1 + $0x3e0] sm:$0xf]  ;;  %v3234_v10 = vld [vmem:[%s5127_s1 + $0x3ec] sm:$0xf0]  ;;  %1152 = vmatpush.bf16.msra.mxu0 %v2559_v3 }
   0x5   :  { %v2542_v11 = vld [vmem:[%s5127_s1 + $0xc0] sm:$0xf]  ;;  %v2943_v12 = vor.u32 %v3234_v10, %v2942_v9  ;;  %v3134_v13 = vld [vmem:[%s5127_s1 + $0xcc] sm:$0xf0]  ;;  %1201 = vmatpush.bf16.msra.mxu1 %v2687_v7 }
   0x6   :  { %v2670_v14 = vld [vmem:[%s5127_s1 + $0x1c0] sm:$0xf]  ;;  %v3166_v15 = vld [vmem:[%s5127_s1 + $0x1cc] sm:$0xf0]  ;;  %1250 = vmatpush.bf16.msra.mxu2 %v2815_v8  ;;  %v2543_v16 = vor.u32 %v3134_v13, %v2542_v11 }
   0x7   :  { %v2671_v17 = vor.u32 %v3166_v15, %v2670_v14  ;;  %v2798_v18 = vld [vmem:[%s5127_s1 + $0x2c0] sm:$0xf]  ;;  %v3198_v19 = vld [vmem:[%s5127_s1 + $0x2cc] sm:$0xf0]  ;;  %1299 = vmatpush.bf16.msra.mxu3 %v2943_v12 }
   0x8   :  { %v2926_v20 = vld [vmem:[%s5127_s1 + $0x3c0] sm:$0xf]  ;;  %v2799_v21 = vor.u32 %v3198_v19, %v2798_v18  ;;  %v3230_v22 = vld [vmem:[%s5127_s1 + $0x3cc] sm:$0xf0]  ;;  %1153 = vmatpush.bf16.msra.mxu0 %v2543_v16 }
   0x9   :  { %v2526_v23 = vld [vmem:[%s5127_s1 + $0xa0] sm:$0xf]  ;;  %v3130_v24 = vld [vmem:[%s5127_s1 + $0xac] sm:$0xf0]  ;;  %v2927_v25 = vor.u32 %v3230_v22, %v2926_v20  ;;  %1202 = vmatpush.bf16.msra.mxu1 %v2671_v17 }
   0xa   :  { %v2654_v26 = vld [vmem:[%s5127_s1 + $0x1a0] sm:$0xf]  ;;  %v3162_v27 = vld [vmem:[%s5127_s1 + $0x1ac] sm:$0xf0]  ;;  %v2527_v29 = vor.u32 %v3130_v24, %v2526_v23  ;;  %1251 = vmatpush.bf16.msra.mxu2 %v2799_v21 }
   0xb   :  { %v2782_v28 = vld [vmem:[%s5127_s1 + $0x2a0] sm:$0xf]  ;;  %v3194_v30 = vld [vmem:[%s5127_s1 + $0x2ac] sm:$0xf0]  ;;  %v2655_v33 = vor.u32 %v3162_v27, %v2654_v26  ;;  %1300 = vmatpush.bf16.msra.mxu3 %v2927_v25 }
   0xc   :  { %v2910_v31 = vld [vmem:[%s5127_s1 + $0x3a0] sm:$0xf]  ;;  %v3226_v32 = vld [vmem:[%s5127_s1 + $0x3ac] sm:$0xf0]  ;;  %v2783_v34 = vor.u32 %v3194_v30, %v2782_v28  ;;  %1154 = vmatpush.bf16.msra.mxu0 %v2527_v29  ;;  %v3070_v29 = vld [vmem:[%s5128_s0 + $0x10] sm:$0xf0] }
   0xd   :  { %v2510_v35 = vld [vmem:[%s5127_s1 + $0x80] sm:$0xf]  ;;  %v3126_v36 = vld [vmem:[%s5127_s1 + $0x8c] sm:$0xf0]  ;;  %v2911_v38 = vor.u32 %v3226_v32, %v2910_v31  ;;  %1203 = vmatpush.bf16.msra.mxu1 %v2655_v33  ;;  %v3068_v30 = vld [vmem:[%s5128_s0 + $0x4] sm:$0xf] }
   0xe   :  { %v2638_v37 = vld [vmem:[%s5127_s1 + $0x180] sm:$0xf]  ;;  %v3158_v39 = vld [vmem:[%s5127_s1 + $0x18c] sm:$0xf0]  ;;  %v2511_v44 = vor.u32 %v3126_v36, %v2510_v35  ;;  %1252 = vmatpush.bf16.msra.mxu2 %v2783_v34  ;;  %v2288_v31 = vld [vmem:[%s5128_s0 + $0x14] sm:$0xf0] }
   0xf   :  { %v2766_v40 = vld [vmem:[%s5127_s1 + $0x280] sm:$0xf]  ;;  %v3190_v41 = vld [vmem:[%s5127_s1 + $0x28c] sm:$0xf0]  ;;  %v2639_v45 = vor.u32 %v3158_v39, %v2638_v37  ;;  %1301 = vmatpush.bf16.msra.mxu3 %v2911_v38  ;;  %v3168_v32 = vld [vmem:[%s5127_s1 + $0x1e4] sm:$0xf] }
  0x10   :  { %v2894_v42 = vld [vmem:[%s5127_s1 + $0x380] sm:$0xf]  ;;  %v3222_v43 = vld [vmem:[%s5127_s1 + $0x38c] sm:$0xf0]  ;;  %v2767_v46 = vor.u32 %v3190_v41, %v2766_v40  ;;  %1155 = vmatpush.bf16.msra.mxu0 %v2511_v44  ;;  %v2688_v33 = vld [vmem:[%s5127_s1 + $0x1f0] sm:$0xf0] }
  0x11   :  { %v2494_v47 = vld [vmem:[%s5127_s1 + $0x60] sm:$0xf]  ;;  %v3122_v48 = vld [vmem:[%s5127_s1 + $0x6c] sm:$0xf0]  ;;  %v2895_v50 = vor.u32 %v3222_v43, %v2894_v42  ;;  %1204 = vmatpush.bf16.msra.mxu1 %v2639_v45  ;;  %v2294_v35 = vld [vmem:[%s5128_s0 + $0x8] sm:$0xf]  ;;  %v2691_v44 = vor.u32 %v3168_v32, %v2688_v33 }
  0x12   :  { %v2622_v49 = vld [vmem:[%s5127_s1 + $0x160] sm:$0xf]  ;;  %v3154_v51 = vld [vmem:[%s5127_s1 + $0x16c] sm:$0xf0]  ;;  %v2495_v56 = vor.u32 %v3122_v48, %v2494_v47  ;;  %1253 = vmatpush.bf16.msra.mxu2 %v2767_v46  ;;  %v3200_v36 = vld [vmem:[%s5127_s1 + $0x2e4] sm:$0xf] }
  0x13   :  { %v2750_v52 = vld [vmem:[%s5127_s1 + $0x260] sm:$0xf]  ;;  %v3186_v53 = vld [vmem:[%s5127_s1 + $0x26c] sm:$0xf0]  ;;  %v2623_v57 = vor.u32 %v3154_v51, %v2622_v49  ;;  %1302 = vmatpush.bf16.msra.mxu3 %v2895_v50  ;;  %v2816_v37 = vld [vmem:[%s5127_s1 + $0x2f0] sm:$0xf0] }
  0x14   :  { %v2878_v54 = vld [vmem:[%s5127_s1 + $0x360] sm:$0xf]  ;;  %v3218_v55 = vld [vmem:[%s5127_s1 + $0x36c] sm:$0xf0]  ;;  %v2751_v58 = vor.u32 %v3186_v53, %v2750_v52  ;;  %1156 = vmatpush.bf16.msra.mxu0 %v2495_v56  ;;  %v3071_v40 = vld [vmem:[%s5128_s0 + $0x18] sm:$0xf0]  ;;  %v2819_v49 = vor.u32 %v3200_v36, %v2816_v37  ;;  %v3554_v53 = vor.u32 %v3068_v30, %v2288_v31 }
  0x15   :  { %v2478_v59 = vld [vmem:[%s5127_s1 + $0x40] sm:$0xf]  ;;  %v3118_v60 = vld [vmem:[%s5127_s1 + $0x4c] sm:$0xf0]  ;;  %v2879_v62 = vor.u32 %v3218_v55, %v2878_v54  ;;  %1205 = vmatpush.bf16.msra.mxu1 %v2623_v57  ;;  %v3069_v41 = vld [vmem:[%s5128_s0 + $0xc] sm:$0xf]  ;;  %v3556_v54 = vor.u32 %v3071_v40, %v2294_v35 }
  0x16   :  { %v2606_v61 = vld [vmem:[%s5127_s1 + $0x140] sm:$0xf]  ;;  %v3150_v63 = vld [vmem:[%s5127_s1 + $0x14c] sm:$0xf0]  ;;  %v2479_v4 = vor.u32 %v3118_v60, %v2478_v59  ;;  %1254 = vmatpush.bf16.msra.mxu2 %v2751_v58  ;;  %v3136_v47 = vld [vmem:[%s5127_s1 + $0xe4] sm:$0xf] }
  0x17   :  { %v2734_v0 = vld [vmem:[%s5127_s1 + $0x240] sm:$0xf]  ;;  %v3182_v1 = vld [vmem:[%s5127_s1 + $0x24c] sm:$0xf0]  ;;  %v2607_v5 = vor.u32 %v3150_v63, %v2606_v61  ;;  %1303 = vmatpush.bf16.msra.mxu3 %v2879_v62  ;;  %v2560_v50 = vld [vmem:[%s5127_s1 + $0xf0] sm:$0xf0] }
  0x18   :  { %v2862_v2 = vld [vmem:[%s5127_s1 + $0x340] sm:$0xf]  ;;  %v3214_v3 = vld [vmem:[%s5127_s1 + $0x34c] sm:$0xf0]  ;;  %v2735_v6 = vor.u32 %v3182_v1, %v2734_v0  ;;  %1157 = vmatpush.bf16.msra.mxu0 %v2479_v4  ;;  %v3164_v51 = vld [vmem:[%s5127_s1 + $0x1c4] sm:$0xf]  ;;  %v2563_v59 = vor.u32 %v3136_v47, %v2560_v50 }
  0x19   :  { %v2462_v7 = vld [vmem:[%s5127_s1 + $0x20] sm:$0xf]  ;;  %v3114_v8 = vld [vmem:[%s5127_s1 + $0x2c] sm:$0xf0]  ;;  %v2863_v10 = vor.u32 %v3214_v3, %v2862_v2  ;;  %1206 = vmatpush.bf16.msra.mxu1 %v2607_v5  ;;  %v2672_v52 = vld [vmem:[%s5127_s1 + $0x1d0] sm:$0xf0] }
  0x1a   :  { %v2590_v9 = vld [vmem:[%s5127_s1 + $0x120] sm:$0xf]  ;;  %v3146_v11 = vld [vmem:[%s5127_s1 + $0x12c] sm:$0xf0]  ;;  %v2463_v17 = vor.u32 %v3114_v8, %v2462_v7  ;;  %1255 = vmatpush.bf16.msra.mxu2 %v2735_v6  ;;  %5179 = vst [vmem:[#allocation2_spill] sm:$0xff] %v3554_v53  ;;  %v2675_v60 = vor.u32 %v3164_v51, %v2672_v52 }
  0x1b   :  { %v2718_v12 = vld [vmem:[%s5127_s1 + $0x220] sm:$0xf]  ;;  %v3178_v13 = vld [vmem:[%s5127_s1 + $0x22c] sm:$0xf0]  ;;  %v2591_v21 = vor.u32 %v3146_v11, %v2590_v9  ;;  %1304 = vmatpush.bf16.msra.mxu3 %v2863_v10  ;;  %v3196_v55 = vld [vmem:[%s5127_s1 + $0x2c4] sm:$0xf] }
  0x1c   :  { %v2846_v14 = vld [vmem:[%s5127_s1 + $0x320] sm:$0xf]  ;;  %v3210_v15 = vld [vmem:[%s5127_s1 + $0x32c] sm:$0xf0]  ;;  %v2719_v22 = vor.u32 %v3178_v13, %v2718_v12  ;;  %1158 = vmatpush.bf16.msra.mxu0 %v2463_v17  ;;  %v2800_v56 = vld [vmem:[%s5127_s1 + $0x2d0] sm:$0xf0] }
  0x1d   :  { %v2446_v16 = vld [vmem:[%s5127_s1] sm:$0xf]  ;;  %v3110_v18 = vld [vmem:[%s5127_s1 + $0xc] sm:$0xf0]  ;;  %v2847_v26 = vor.u32 %v3210_v15, %v2846_v14  ;;  %1207 = vmatpush.bf16.msra.mxu1 %v2591_v21  ;;  %v2803_v61 = vor.u32 %v3196_v55, %v2800_v56  ;;  %v3132_v62 = vld [vmem:[%s5127_s1 + $0xc4] sm:$0xf] }
  0x1e   :  { %v2574_v19 = vld [vmem:[%s5127_s1 + $0x100] sm:$0xf]  ;;  %v3142_v20 = vld [vmem:[%s5127_s1 + $0x10c] sm:$0xf0]  ;;  %v2447_v34 = vor.u32 %v3110_v18, %v2446_v16  ;;  %1256 = vmatpush.bf16.msra.mxu2 %v2719_v22  ;;  %v2544_v63 = vld [vmem:[%s5127_s1 + $0xd0] sm:$0xf0] }
  0x1f   :  { %v2702_v23 = vld [vmem:[%s5127_s1 + $0x200] sm:$0xf]  ;;  %v3174_v24 = vld [vmem:[%s5127_s1 + $0x20c] sm:$0xf0]  ;;  %v2575_v38 = vor.u32 %v3142_v20, %v2574_v19  ;;  %1305 = vmatpush.bf16.msra.mxu3 %v2847_v26  ;;  %v3160_v0 = vld [vmem:[%s5127_s1 + $0x1a4] sm:$0xf]  ;;  %v2547_v3 = vor.u32 %v3132_v62, %v2544_v63 }
  0x20   :  { %v2830_v25 = vld [vmem:[%s5127_s1 + $0x300] sm:$0xf]  ;;  %v3206_v27 = vld [vmem:[%s5127_s1 + $0x30c] sm:$0xf0]  ;;  %v2703_v39 = vor.u32 %v3174_v24, %v2702_v23  ;;  %1159 = vmatpush.bf16.msra.mxu0 %v2447_v34  ;;  %v2656_v1 = vld [vmem:[%s5127_s1 + $0x1b0] sm:$0xf0] }
  0x21   :  { %v2286_v28 = vld [vmem:[%s5128_s0] sm:$0xf]  ;;  %v2831_v43 = vor.u32 %v3206_v27, %v2830_v25  ;;  %v3250_v46 = vld [vmem:[%s5127_s1 + $0x46c] sm:$0xf0]  ;;  %1208 = vmatpush.bf16.msra.mxu1 %v2575_v38  ;;  %v2659_v4 = vor.u32 %v3160_v0, %v2656_v1  ;;  %v3192_v6 = vld [vmem:[%s5127_s1 + $0x2a4] sm:$0xf] }
  0x22   :  { %v2296_v42 = vld [vmem:[%s5128_s0 + $0x1c] sm:$0xf0]  ;;  %v3543_v48 = vor.u32 %v3070_v29, %v2286_v28  ;;  %1257 = vmatpush.bf16.msra.mxu2 %v2703_v39  ;;  %v3246_v5 = vld [vmem:[%s5127_s1 + $0x44c] sm:$0xf0]  ;;  %v2784_v7 = vld [vmem:[%s5127_s1 + $0x2b0] sm:$0xf0] }
  0x23   :  { %v3006_v45 = vld [vmem:[%s5127_s1 + $0x460] sm:$0xf]  ;;  %v3564_v57 = vor.u32 %v3069_v41, %v2296_v42  ;;  %1306 = vmatpush.bf16.msra.mxu3 %v2831_v43  ;;  %v2787_v9 = vor.u32 %v3192_v6, %v2784_v7  ;;  %v3128_v10 = vld [vmem:[%s5127_s1 + $0xa4] sm:$0xf]  ;;  %v2528_v11 = vld [vmem:[%s5127_s1 + $0xb0] sm:$0xf0] }
  0x24   :  { %v3007_v58 = vor.u32 %v3250_v46, %v3006_v45  ;;  %1160 = vmatmul.bf16.vlgmr.msra.gmra.mxu0 %v3543_v48  ;;  %1209 = vmatmul.bf16.vlgmr.msra.gmra.mxu1 %v3554_v53  ;;  %v2990_v2 = vld [vmem:[%s5127_s1 + $0x440] sm:$0xf]  ;;  %v2531_v12 = vor.u32 %v3128_v10, %v2528_v11  ;;  %v2306_v13 = vld [vmem:[%s5128_s0 + $0x28] sm:$0xf]  ;;  %v3075_v14 = vld [vmem:[%s5128_s0 + $0x38] sm:$0xf0] }
  0x25   :  { %1258 = vmatmul.bf16.vlgmr.msra.gmra.mxu2 %v3556_v54  ;;  %1397 = vmatpush.bf16.msrb.mxu1 %v2563_v59  ;;  %v2991_v8 = vor.u32 %v3246_v5, %v2990_v2  ;;  %v3073_v15 = vld [vmem:[%s5128_s0 + $0x2c] sm:$0xf]  ;;  %v2308_v16 = vld [vmem:[%s5128_s0 + $0x3c] sm:$0xf0]  ;;  %v2314_v17 = vld [vmem:[%s5128_s0 + $0x30] sm:$0xf]  ;;  %v3624_v21 = vor.u32 %v3075_v14, %v2306_v13 }
  0x26   :  { %1446 = vmatpush.bf16.msrb.mxu2 %v2691_v44  ;;  %1307 = vmatmul.bf16.vlgmr.msra.gmra.mxu3 %v3564_v57  ;;  %v3076_v18 = vld [vmem:[%s5128_s0 + $0x40] sm:$0xf0]  ;;  %v3074_v19 = vld [vmem:[%s5128_s0 + $0x34] sm:$0xf]  ;;  %v2316_v20 = vld [vmem:[%s5128_s0 + $0x44] sm:$0xf0]  ;;  %v3626_v22 = vor.u32 %v3073_v15, %v2308_v16 }
  0x27   :  { %1495 = vmatpush.bf16.msrb.mxu3 %v2819_v49  ;;  %1352 = vmatpush.bf16.msrb.mxu0 %v3007_v58  ;;  %v3628_v23 = vor.u32 %v3076_v18, %v2314_v17  ;;  %v3630_v24 = vor.u32 %v3074_v19, %v2316_v20  ;;  %v3156_v25 = vld [vmem:[%s5127_s1 + $0x184] sm:$0xf]  ;;  %v2640_v26 = vld [vmem:[%s5127_s1 + $0x190] sm:$0xf0]  ;;  %v2326_v34 = vld [vmem:[%s5128_s0 + $0x50] sm:$0xf] }
  0x28   :  { %5180 = vst [vmem:[#allocation3_spill] sm:$0xff] %v3626_v22  ;;  %v3188_v27 = vld [vmem:[%s5127_s1 + $0x284] sm:$0xf]  ;;  %v2643_v28 = vor.u32 %v3156_v25, %v2640_v26  ;;  %v2768_v29 = vld [vmem:[%s5127_s1 + $0x290] sm:$0xf0] }
  0x29   :  { %1398 = vmatpush.bf16.msrb.mxu1 %v2547_v3  ;;  %5181 = vst [vmem:[#allocation4_spill] sm:$0xff] %v3628_v23  ;;  %v3124_v30 = vld [vmem:[%s5127_s1 + $0x84] sm:$0xf]  ;;  %v2512_v31 = vld [vmem:[%s5127_s1 + $0x90] sm:$0xf0]  ;;  %v2771_v32 = vor.u32 %v3188_v27, %v2768_v29 }
  0x2a   :  { %1447 = vmatpush.bf16.msrb.mxu2 %v2675_v60  ;;  %v2515_v33 = vor.u32 %v3124_v30, %v2512_v31  ;;  %v3080_v35 = vld [vmem:[%s5128_s0 + $0x60] sm:$0xf0]  ;;  %v3078_v36 = vld [vmem:[%s5128_s0 + $0x54] sm:$0xf]  ;;  %v2328_v37 = vld [vmem:[%s5128_s0 + $0x64] sm:$0xf0] }
  0x2b   :  { %1496 = vmatpush.bf16.msrb.mxu3 %v2803_v61  ;;  %1353 = vmatpush.bf16.msrb.mxu0 %v2991_v8  ;;  %v2334_v38 = vld [vmem:[%s5128_s0 + $0x58] sm:$0xf]  ;;  %v3081_v39 = vld [vmem:[%s5128_s0 + $0x68] sm:$0xf0]  ;;  %v3079_v40 = vld [vmem:[%s5128_s0 + $0x5c] sm:$0xf]  ;;  %v3678_v42 = vor.u32 %v3080_v35, %v2326_v34  ;;  %v3680_v43 = vor.u32 %v3078_v36, %v2328_v37 }
  0x2c   :  { %v2336_v41 = vld [vmem:[%s5128_s0 + $0x6c] sm:$0xf0]  ;;  %v3682_v44 = vor.u32 %v3081_v39, %v2334_v38  ;;  %v3152_v46 = vld [vmem:[%s5127_s1 + $0x164] sm:$0xf]  ;;  %v2624_v47 = vld [vmem:[%s5127_s1 + $0x170] sm:$0xf0] }
  0x2d   :  { %1399 = vmatpush.bf16.msrb.mxu1 %v2531_v12  ;;  %5182 = vst [vmem:[#allocation5_spill] sm:$0xff] %v3678_v42  ;;  %v3684_v45 = vor.u32 %v3079_v40, %v2336_v41  ;;  %v2974_v49 = vld [vmem:[%s5127_s1 + $0x420] sm:$0xf]  ;;  %v2627_v50 = vor.u32 %v3152_v46, %v2624_v47  ;;  %v3242_v51 = vld [vmem:[%s5127_s1 + $0x42c] sm:$0xf0] }
  0x2e   :  { %1448 = vmatpush.bf16.msrb.mxu2 %v2659_v4  ;;  %5183 = vst [vmem:[#allocation6_spill] sm:$0xff] %v3680_v43  ;;  %v3184_v52 = vld [vmem:[%s5127_s1 + $0x264] sm:$0xf]  ;;  %v2752_v55 = vld [vmem:[%s5127_s1 + $0x270] sm:$0xf0]  ;;  %v2975_v56 = vor.u32 %v3242_v51, %v2974_v49 }
  0x2f   :  { %1497 = vmatpush.bf16.msrb.mxu3 %v2787_v9  ;;  %5184 = vst [vmem:[#allocation7_spill] sm:$0xff] %v3682_v44  ;;  %v2755_v58 = vor.u32 %v3184_v52, %v2752_v55  ;;  %v3120_v59 = vld [vmem:[%s5127_s1 + $0x64] sm:$0xf]  ;;  %v2496_v60 = vld [vmem:[%s5127_s1 + $0x70] sm:$0xf0] }
  0x30   :  { %v2499_v61 = vor.u32 %v3120_v59, %v2496_v60  ;;  %1354 = vmatpush.bf16.msrb.mxu0 %v2975_v56  ;;  %v2346_v62 = vld [vmem:[%s5128_s0 + $0x78] sm:$0xf]  ;;  %v3085_v63 = vld [vmem:[%s5128_s0 + $0x88] sm:$0xf0]  ;;  %v3083_v0 = vld [vmem:[%s5128_s0 + $0x7c] sm:$0xf] }
  0x31   :  { %1400 = vmatpush.bf16.msrb.mxu1 %v2515_v33  ;;  %v2348_v1 = vld [vmem:[%s5128_s0 + $0x8c] sm:$0xf0]  ;;  %v2354_v2 = vld [vmem:[%s5128_s0 + $0x80] sm:$0xf]  ;;  %v3086_v3 = vld [vmem:[%s5128_s0 + $0x90] sm:$0xf0]  ;;  %v3738_v6 = vor.u32 %v3085_v63, %v2346_v62 }
  0x32   :  { %1449 = vmatpush.bf16.msrb.mxu2 %v2643_v28  ;;  %v3084_v4 = vld [vmem:[%s5128_s0 + $0x84] sm:$0xf]  ;;  %v2356_v5 = vld [vmem:[%s5128_s0 + $0x94] sm:$0xf0]  ;;  %v3740_v7 = vor.u32 %v3083_v0, %v2348_v1  ;;  %v3742_v8 = vor.u32 %v3086_v3, %v2354_v2  ;;  %v2608_v11 = vld [vmem:[%s5127_s1 + $0x150] sm:$0xf0] }
  0x33   :  { %1498 = vmatpush.bf16.msrb.mxu3 %v2771_v32  ;;  %v3744_v9 = vor.u32 %v3084_v4, %v2356_v5  ;;  %v3148_v10 = vld [vmem:[%s5127_s1 + $0x144] sm:$0xf]  ;;  %v2736_v14 = vld [vmem:[%s5127_s1 + $0x250] sm:$0xf0]  ;;  %v2366_v19 = vld [vmem:[%s5128_s0 + $0xa0] sm:$0xf] }
  0x34   :  { %1165 = vmatmul.bf16.gmra.mxu0 %v3624_v21  ;;  %1214 = vmatmul.bf16.gmra.mxu1 %v3626_v22  ;;  %5185 = vst [vmem:[#allocation8_spill] sm:$0xff] %v3740_v7  ;;  %v3180_v12 = vld [vmem:[%s5127_s1 + $0x244] sm:$0xf]  ;;  %v2611_v13 = vor.u32 %v3148_v10, %v2608_v11  ;;  %v2480_v16 = vld [vmem:[%s5127_s1 + $0x50] sm:$0xf0] }
  0x35   :  { %1263 = vmatmul.bf16.gmra.mxu2 %v3628_v23  ;;  %1401 = vmatpush.bf16.msrb.mxu1 %v2499_v61  ;;  %5186 = vst [vmem:[#allocation9_spill] sm:$0xff] %v3742_v8  ;;  %v3116_v15 = vld [vmem:[%s5127_s1 + $0x44] sm:$0xf]  ;;  %v2739_v17 = vor.u32 %v3180_v12, %v2736_v14  ;;  %v3090_v20 = vld [vmem:[%s5128_s0 + $0xb0] sm:$0xf0] }
  0x36   :  { %1312 = vmatmul.bf16.gmra.mxu3 %v3630_v24  ;;  %1450 = vmatpush.bf16.msrb.mxu2 %v2627_v50  ;;  %v2483_v18 = vor.u32 %v3116_v15, %v2480_v16  ;;  %v3088_v25 = vld [vmem:[%s5128_s0 + $0xa4] sm:$0xf]  ;;  %v2368_v26 = vld [vmem:[%s5128_s0 + $0xb4] sm:$0xf0]  ;;  %v2374_v27 = vld [vmem:[%s5128_s0 + $0xa8] sm:$0xf]  ;;  %v3792_v31 = vor.u32 %v3090_v20, %v2366_v19 }
  0x37   :  { %1499 = vmatpush.bf16.msrb.mxu3 %v2755_v58  ;;  %v3091_v28 = vld [vmem:[%s5128_s0 + $0xb8] sm:$0xf0]  ;;  %v3089_v29 = vld [vmem:[%s5128_s0 + $0xac] sm:$0xf]  ;;  %v2376_v30 = vld [vmem:[%s5128_s0 + $0xbc] sm:$0xf0]  ;;  %v3794_v32 = vor.u32 %v3088_v25, %v2368_v26 }
  0x38   :  { %5187 = vst [vmem:[#allocation10_spill] sm:$0xff] %v3792_v31  ;;  %v3796_v33 = vor.u32 %v3091_v28, %v2374_v27  ;;  %v3798_v34 = vor.u32 %v3089_v29, %v2376_v30  ;;  %v3144_v35 = vld [vmem:[%s5127_s1 + $0x124] sm:$0xf]  ;;  %v2592_v36 = vld [vmem:[%s5127_s1 + $0x130] sm:$0xf0] }
  0x39   :  { %1402 = vmatpush.bf16.msrb.mxu1 %v2483_v18  ;;  %5188 = vst [vmem:[#allocation11_spill] sm:$0xff] %v3794_v32  ;;  %v2958_v37 = vld [vmem:[%s5127_s1 + $0x400] sm:$0xf]  ;;  %v2595_v38 = vor.u32 %v3144_v35, %v2592_v36  ;;  %v3238_v39 = vld [vmem:[%s5127_s1 + $0x40c] sm:$0xf0] }
  0x3a   :  { %1451 = vmatpush.bf16.msrb.mxu2 %v2611_v13  ;;  %5189 = vst [vmem:[#allocation12_spill] sm:$0xff] %v3796_v33  ;;  %v3176_v40 = vld [vmem:[%s5127_s1 + $0x224] sm:$0xf]  ;;  %v2720_v41 = vld [vmem:[%s5127_s1 + $0x230] sm:$0xf0]  ;;  %v2959_v46 = vor.u32 %v3238_v39, %v2958_v37 }
  0x3b   :  { %1500 = vmatpush.bf16.msrb.mxu3 %v2739_v17  ;;  %v2723_v47 = vor.u32 %v3176_v40, %v2720_v41  ;;  %v3112_v49 = vld [vmem:[%s5127_s1 + $0x24] sm:$0xf]  ;;  %v2464_v50 = vld [vmem:[%s5127_s1 + $0x30] sm:$0xf0]  ;;  %v2386_v52 = vld [vmem:[%s5128_s0 + $0xc8] sm:$0xf] }
  0x3c   :  { %v2467_v51 = vor.u32 %v3112_v49, %v2464_v50  ;;  %1355 = vmatpush.bf16.msrb.mxu0 %v2959_v46  ;;  %v3095_v55 = vld [vmem:[%s5128_s0 + $0xd8] sm:$0xf0]  ;;  %v3093_v56 = vld [vmem:[%s5128_s0 + $0xcc] sm:$0xf]  ;;  %v2388_v58 = vld [vmem:[%s5128_s0 + $0xdc] sm:$0xf0] }
  0x3d   :  { %v2394_v59 = vld [vmem:[%s5128_s0 + $0xd0] sm:$0xf]  ;;  %v3096_v60 = vld [vmem:[%s5128_s0 + $0xe0] sm:$0xf0]  ;;  %v3094_v61 = vld [vmem:[%s5128_s0 + $0xd4] sm:$0xf]  ;;  %v3852_v63 = vor.u32 %v3095_v55, %v2386_v52  ;;  %v3854_v0 = vor.u32 %v3093_v56, %v2388_v58 }
  0x3e   :  { %1452 = vmatpush.bf16.msrb.mxu2 %v2595_v38  ;;  %1403 = vmatpush.bf16.msrb.mxu1 %v2467_v51  ;;  %v2396_v62 = vld [vmem:[%s5128_s0 + $0xe4] sm:$0xf0]  ;;  %v3856_v1 = vor.u32 %v3096_v60, %v2394_v59  ;;  %v3140_v3 = vld [vmem:[%s5127_s1 + $0x104] sm:$0xf]  ;;  %v2576_v4 = vld [vmem:[%s5127_s1 + $0x110] sm:$0xf0] }
  0x3f   :  { %1501 = vmatpush.bf16.msrb.mxu3 %v2723_v47  ;;  %5190 = vst [vmem:[#allocation13_spill] sm:$0xff] %v3854_v0  ;;  %v3858_v2 = vor.u32 %v3094_v61, %v2396_v62  ;;  %v3172_v5 = vld [vmem:[%s5127_s1 + $0x204] sm:$0xf]  ;;  %v2579_v10 = vor.u32 %v3140_v3, %v2576_v4  ;;  %v2704_v11 = vld [vmem:[%s5127_s1 + $0x210] sm:$0xf0] }
  0x40   :  { %5191 = vst [vmem:[#allocation14_spill] sm:$0xff] %v3856_v1  ;;  %v3108_v12 = vld [vmem:[%s5127_s1 + $0x4] sm:$0xf]  ;;  %v2448_v13 = vld [vmem:[%s5127_s1 + $0x10] sm:$0xf0]  ;;  %v2707_v14 = vor.u32 %v3172_v5, %v2704_v11 }
  0x41   :  { %v2451_v15 = vor.u32 %v3108_v12, %v2448_v13  ;;  %v2406_v16 = vld [vmem:[%s5128_s0 + $0xf0] sm:$0xf]  ;;  %v3100_v17 = vld [vmem:[%s5128_s0 + $0x100] sm:$0xf0]  ;;  %v3098_v18 = vld [vmem:[%s5128_s0 + $0xf4] sm:$0xf] }
  0x42   :  { %1453 = vmatpush.bf16.msrb.mxu2 %v2579_v10  ;;  %v2408_v19 = vld [vmem:[%s5128_s0 + $0x104] sm:$0xf0]  ;;  %v2414_v20 = vld [vmem:[%s5128_s0 + $0xf8] sm:$0xf]  ;;  %v3101_v25 = vld [vmem:[%s5128_s0 + $0x108] sm:$0xf0]  ;;  %v3906_v28 = vor.u32 %v3100_v17, %v2406_v16 }
  0x43   :  { %1502 = vmatpush.bf16.msrb.mxu3 %v2707_v14  ;;  %1404 = vmatpush.bf16.msrb.mxu1 %v2451_v15  ;;  %v3099_v26 = vld [vmem:[%s5128_s0 + $0xfc] sm:$0xf]  ;;  %v2416_v27 = vld [vmem:[%s5128_s0 + $0x10c] sm:$0xf0]  ;;  %v3908_v29 = vor.u32 %v3098_v18, %v2408_v19  ;;  %v3910_v30 = vor.u32 %v3101_v25, %v2414_v20  ;;  %v2566_v36 = vld [vmem:[%s5127_s1 + $0xe8] sm:$0xf] }
  0x44   :  { %1170 = vmatmul.bf16.gmra.mxu0 %v3678_v42  ;;  %1219 = vmatmul.bf16.gmra.mxu1 %v3680_v43  ;;  %5192 = vst [vmem:[#allocation15_spill] sm:$0xff] %v3906_v28  ;;  %v3912_v35 = vor.u32 %v3099_v26, %v2416_v27  ;;  %v3139_v37 = vld [vmem:[%s5127_s1 + $0xf4] sm:$0xf0]  ;;  %v3232_v38 = vld [vmem:[%s5127_s1 + $0x3e4] sm:$0xf] }
  0x45   :  { %1268 = vmatmul.bf16.gmra.mxu2 %v3682_v44  ;;  %5193 = vst [vmem:[#allocation16_spill] sm:$0xff] %v3908_v29  ;;  %v2567_v39 = vor.u32 %v3139_v37, %v2566_v36  ;;  %v2944_v40 = vld [vmem:[%s5127_s1 + $0x3f0] sm:$0xf0]  ;;  %v2694_v41 = vld [vmem:[%s5127_s1 + $0x1e8] sm:$0xf] }
  0x46   :  { %1317 = vmatmul.bf16.gmra.mxu3 %v3684_v45  ;;  %5194 = vst [vmem:[#allocation17_spill] sm:$0xff] %v3910_v30  ;;  %v3171_v46 = vld [vmem:[%s5127_s1 + $0x1f4] sm:$0xf0]  ;;  %v2947_v47 = vor.u32 %v3232_v38, %v2944_v40  ;;  %v3248_v50 = vld [vmem:[%s5127_s1 + $0x464] sm:$0xf] }
  0x47   :  { %v2695_v49 = vor.u32 %v3171_v46, %v2694_v41  ;;  %1642 = vmatpush.bf16.msra.mxu2 %v2567_v39  ;;  %v3008_v51 = vld [vmem:[%s5127_s1 + $0x470] sm:$0xf0]  ;;  %v2426_v55 = vld [vmem:[%s5128_s0 + $0x118] sm:$0xf]  ;;  %v3105_v56 = vld [vmem:[%s5128_s0 + $0x128] sm:$0xf0] }
  0x48   :  { %1544 = vmatpush.bf16.msra.mxu0 %v2947_v47  ;;  %v3011_v52 = vor.u32 %v3248_v50, %v3008_v51  ;;  %v3103_v58 = vld [vmem:[%s5128_s0 + $0x11c] sm:$0xf]  ;;  %v2428_v59 = vld [vmem:[%s5128_s0 + $0x12c] sm:$0xf0]  ;;  %v2434_v60 = vld [vmem:[%s5128_s0 + $0x120] sm:$0xf]  ;;  %v3966_v4 = vor.u32 %v3105_v56, %v2426_v55 }
  0x49   :  { %1691 = vmatpush.bf16.msra.mxu3 %v2695_v49  ;;  %v3106_v61 = vld [vmem:[%s5128_s0 + $0x130] sm:$0xf0]  ;;  %v3104_v62 = vld [vmem:[%s5128_s0 + $0x124] sm:$0xf]  ;;  %v2436_v3 = vld [vmem:[%s5128_s0 + $0x134] sm:$0xf0]  ;;  %v3968_v5 = vor.u32 %v3103_v58, %v2428_v59 }
  0x4a   :  { %1597 = vmatpush.bf16.msra.mxu1 %v3011_v52  ;;  %v3970_v10 = vor.u32 %v3106_v61, %v2434_v60  ;;  %v3972_v11 = vor.u32 %v3104_v62, %v2436_v3  ;;  %v2550_v12 = vld [vmem:[%s5127_s1 + $0xc8] sm:$0xf]  ;;  %v3135_v13 = vld [vmem:[%s5127_s1 + $0xd4] sm:$0xf0]  ;;  %v3228_v14 = vld [vmem:[%s5127_s1 + $0x3c4] sm:$0xf] }
  0x4b   :  { %5195 = vst [vmem:[#allocation18_spill] sm:$0xff] %v3968_v5  ;;  %v2551_v15 = vor.u32 %v3135_v13, %v2550_v12  ;;  %v2928_v16 = vld [vmem:[%s5127_s1 + $0x3d0] sm:$0xf0]  ;;  %v2678_v17 = vld [vmem:[%s5127_s1 + $0x1c8] sm:$0xf] }
  0x4c   :  { %5196 = vst [vmem:[#allocation19_spill] sm:$0xff] %v3970_v10  ;;  %v3167_v18 = vld [vmem:[%s5127_s1 + $0x1d4] sm:$0xf0]  ;;  %v2931_v19 = vor.u32 %v3228_v14, %v2928_v16  ;;  %v2302_v25 = vld [vmem:[%s5128_s0 + $0x10] sm:$0xf] }
  0x4d   :  { %v2679_v20 = vor.u32 %v3167_v18, %v2678_v17  ;;  %1643 = vmatpush.bf16.msra.mxu2 %v2551_v15  ;;  %v3072_v26 = vld [vmem:[%s5128_s0 + $0x20] sm:$0xf0]  ;;  %v2534_v39 = vld [vmem:[%s5127_s1 + $0xa8] sm:$0xf]  ;;  %v3131_v40 = vld [vmem:[%s5127_s1 + $0xb4] sm:$0xf0] }
  0x4e   :  { %1545 = vmatpush.bf16.msra.mxu0 %v2931_v19  ;;  %v4002_v27 = vor.u32 %v3072_v26, %v2302_v25  ;;  %v3224_v41 = vld [vmem:[%s5127_s1 + $0x3a4] sm:$0xf]  ;;  %v2535_v46 = vor.u32 %v3131_v40, %v2534_v39  ;;  %v2912_v47 = vld [vmem:[%s5127_s1 + $0x3b0] sm:$0xf0]  ;;  %v2662_v49 = vld [vmem:[%s5127_s1 + $0x1a8] sm:$0xf] }
  0x4f   :  { %1692 = vmatpush.bf16.msra.mxu3 %v2679_v20  ;;  %v3163_v50 = vld [vmem:[%s5127_s1 + $0x1b4] sm:$0xf0]  ;;  %v2915_v52 = vor.u32 %v3224_v41, %v2912_v47  ;;  %v3244_v3 = vld [vmem:[%s5127_s1 + $0x444] sm:$0xf]  ;;  %v2992_v12 = vld [vmem:[%s5127_s1 + $0x450] sm:$0xf0] }
  0x50   :  { %v2663_v55 = vor.u32 %v3163_v50, %v2662_v49  ;;  %v2995_v13 = vor.u32 %v3244_v3, %v2992_v12  ;;  %v2322_v14 = vld [vmem:[%s5128_s0 + $0x38] sm:$0xf]  ;;  %v3077_v15 = vld [vmem:[%s5128_s0 + $0x48] sm:$0xf0]  ;;  %v3220_v39 = vld [vmem:[%s5127_s1 + $0x384] sm:$0xf] }
  0x51   :  { %1644 = vmatpush.bf16.msra.mxu2 %v2535_v46  ;;  %v4041_v17 = vor.u32 %v3077_v15, %v2322_v14  ;;  %v2896_v41 = vld [vmem:[%s5127_s1 + $0x390] sm:$0xf0]  ;;  %v2646_v46 = vld [vmem:[%s5127_s1 + $0x188] sm:$0xf]  ;;  %v3159_v47 = vld [vmem:[%s5127_s1 + $0x194] sm:$0xf0] }
  0x52   :  { %1546 = vmatpush.bf16.msra.mxu0 %v2915_v52  ;;  %1598 = vmatpush.bf16.msra.mxu1 %v2995_v13  ;;  %v2899_v50 = vor.u32 %v3220_v39, %v2896_v41  ;;  %v3082_v3 = vld [vmem:[%s5128_s0 + $0x70] sm:$0xf0]  ;;  %v3155_v41 = vld [vmem:[%s5127_s1 + $0x174] sm:$0xf0] }
  0x53   :  { %1693 = vmatpush.bf16.msra.mxu3 %v2663_v55  ;;  %v2880_v39 = vld [vmem:[%s5127_s1 + $0x370] sm:$0xf0] }
  0x54   :  { %1175 = vmatmul.bf16.gmra.mxu0 %v3738_v6  ;;  %1224 = vmatmul.bf16.gmra.mxu1 %v3740_v7 }
  0x55   :  { %1273 = vmatmul.bf16.gmra.mxu2 %v3742_v8 }
  0x56   :  { %1322 = vmatmul.bf16.gmra.mxu3 %v3744_v9  ;;  %1547 = vmatpush.bf16.msra.mxu0 %v2899_v50 }
  0x64   :  { %1180 = vmatmul.bf16.gmra.mxu0 %v3792_v31  ;;  %1229 = vmatmul.bf16.gmra.mxu1 %v3794_v32 }
  0x65   :  { %1278 = vmatmul.bf16.gmra.mxu2 %v3796_v33 }
  0x66   :  { %1327 = vmatmul.bf16.gmra.mxu3 %v3798_v34 }
  0x74   :  { %1185 = vmatmul.bf16.gmra.mxu0 %v3852_v63  ;;  %1234 = vmatmul.bf16.gmra.mxu1 %v3854_v0 }
  0x75   :  { %1283 = vmatmul.bf16.gmra.mxu2 %v3856_v1 }
  0x76   :  { %1332 = vmatmul.bf16.gmra.mxu3 %v3858_v2 }
  0x84   :  { %1190 = vmatmul.bf16.gmra.mxu0 %v3906_v28  ;;  %1239 = vmatmul.bf16.gmra.mxu1 %v3908_v29 }
  0x85   :  { %1288 = vmatmul.bf16.gmra.mxu2 %v3910_v30 }
  0x86   :  { %1337 = vmatmul.bf16.gmra.mxu3 %v3912_v35 }
  0x94   :  { %1195 = vmatmul.bf16.gmra.mxu0 %v3966_v4  ;;  %1244 = vmatmul.bf16.gmra.mxu1 %v3968_v5 }
  0x95   :  { %1293 = vmatmul.bf16.gmra.mxu2 %v3970_v10 }
  0x96   :  { %1342 = vmatmul.bf16.gmra.mxu3 %v3972_v11 }
  0xa1   :  { %v1161_v36 = vpop.f32.mrf.mxu0  ;;  %v1210_v37 = vpop.f32.mrf.mxu1 }
  0xa2   :  { %v1211_v38 = vadd.f32 %v1210_v37, %v1161_v36  ;;  %v2518_v37 = vld [vmem:[%s5127_s1 + $0x88] sm:$0xf] }
  0xa4   :  { %3020 = vmatmul.msk.bf16.vlgmr.msrb.gmra.mxu0 %vm1127_vm0, %v4002_v27  ;;  %1405 = vmatmul.bf16.vlgmr.msrb.gmra.mxu1 %v3543_v48 }
  0xa5   :  { %1454 = vmatmul.bf16.vlgmr.msrb.gmra.mxu2 %v3554_v53 }
  0xa6   :  { %1503 = vmatmul.bf16.vlgmr.msrb.gmra.mxu3 %v3556_v54 }
  0xa8   :  { %v1259_v51 = vpop.f32.mrf.mxu2 }
  0xa9   :  { %v1260_v56 = vadd.f32 %v1259_v51, %v1211_v38  ;;  %v1308_v58 = vpop.f32.mrf.mxu3  ;;  %v1163_v59 = vpop.f32.mrf.mxu0  ;;  %v3127_v38 = vld [vmem:[%s5127_s1 + $0x94] sm:$0xf0]  ;;  %v2647_v51 = vor.u32 %v3159_v47, %v2646_v46 }
  0xaa   :  { %v1212_v60 = vpop.f32.mrf.mxu1  ;;  %v2519_v40 = vor.u32 %v3127_v38, %v2518_v37  ;;  %v3216_v37 = vld [vmem:[%s5127_s1 + $0x364] sm:$0xf] }
  0xab   :  { %v4027_v61 = vadd.f32 %v1308_v58, %v1260_v56  ;;  %v1213_v62 = vadd.f32 %v1212_v60, %v1163_v59  ;;  %1694 = vmatpush.bf16.msra.mxu3 %v2647_v51  ;;  %v2883_v47 = vor.u32 %v3216_v37, %v2880_v39  ;;  %v2486_v39 = vld [vmem:[%s5127_s1 + $0x48] sm:$0xf] }
  0xac   :  { %1645 = vmatpush.bf16.msra.mxu2 %v2519_v40  ;;  %v2630_v40 = vld [vmem:[%s5127_s1 + $0x168] sm:$0xf] }
  0xad   :  { %1548 = vmatpush.bf16.msra.mxu0 %v2883_v47  ;;  %v2864_v47 = vld [vmem:[%s5127_s1 + $0x350] sm:$0xf0] }
  0xb0   :  { %v1261_v16 = vpop.f32.mrf.mxu2 }
  0xb1   :  { %v1262_v18 = vadd.f32 %v1261_v16, %v1213_v62  ;;  %v1310_v19 = vpop.f32.mrf.mxu3  ;;  %v1166_v20 = vpop.f32.mrf.mxu0  ;;  %v2342_v62 = vld [vmem:[%s5128_s0 + $0x60] sm:$0xf] }
  0xb2   :  { %v1215_v25 = vpop.f32.mrf.mxu1  ;;  %v4076_v13 = vor.u32 %v3082_v3, %v2342_v62  ;;  %v2976_v62 = vld [vmem:[%s5127_s1 + $0x430] sm:$0xf0] }
  0xb3   :  { %v4043_v26 = vadd.f32 %v1310_v19, %v1262_v18  ;;  %v1216_v36 = vadd.f32 %v1215_v25, %v1166_v20  ;;  %v2502_v25 = vld [vmem:[%s5127_s1 + $0x68] sm:$0xf] }
  0xb4   :  { %3021 = vmatmul.msk.bf16.gmra.mxu0 %vm1127_vm0, %v4041_v17  ;;  %1410 = vmatmul.bf16.gmra.mxu1 %v3624_v21 }
  0xb5   :  { %1459 = vmatmul.bf16.gmra.mxu2 %v3626_v22 }
  0xb6   :  { %1508 = vmatmul.bf16.gmra.mxu3 %v3628_v23  ;;  %v2918_v23 = vld [vmem:[%s5127_s1 + $0x3a8] sm:$0xf] }
  0xb8   :  { %v1264_v49 = vpop.f32.mrf.mxu2 }
  0xb9   :  { %v1265_v52 = vadd.f32 %v1264_v49, %v1216_v36  ;;  %v1313_v55 = vpop.f32.mrf.mxu3  ;;  %v1168_v56 = vpop.f32.mrf.mxu0  ;;  %v3123_v36 = vld [vmem:[%s5127_s1 + $0x74] sm:$0xf0]  ;;  %v2631_v49 = vor.u32 %v3155_v41, %v2630_v40  ;;  %v3212_v41 = vld [vmem:[%s5127_s1 + $0x344] sm:$0xf] }
  0xba   :  { %v1217_v58 = vpop.f32.mrf.mxu1  ;;  %v2503_v38 = vor.u32 %v3123_v36, %v2502_v25  ;;  %v3119_v40 = vld [vmem:[%s5127_s1 + $0x54] sm:$0xf0] }
  0xbb   :  { %v4068_v59 = vadd.f32 %v1313_v55, %v1265_v52  ;;  %v1218_v60 = vadd.f32 %v1217_v58, %v1168_v56  ;;  %1695 = vmatpush.bf16.msra.mxu3 %v2631_v49  ;;  %v2614_v49 = vld [vmem:[%s5127_s1 + $0x148] sm:$0xf] }
  0xbc   :  { %1646 = vmatpush.bf16.msra.mxu2 %v2503_v38 }
  0xc0   :  { %v1266_v12 = vpop.f32.mrf.mxu2 }
  0xc1   :  { %v1267_v14 = vadd.f32 %v1266_v12, %v1218_v60  ;;  %v1315_v15 = vpop.f32.mrf.mxu3  ;;  %v1171_v16 = vpop.f32.mrf.mxu0  ;;  %v3240_v60 = vld [vmem:[%s5127_s1 + $0x424] sm:$0xf]  ;;  %v2362_v12 = vld [vmem:[%s5128_s0 + $0x88] sm:$0xf] }
  0xc2   :  { %v1220_v18 = vpop.f32.mrf.mxu1  ;;  %v2979_v3 = vor.u32 %v3240_v60, %v2976_v62 }
  0xc3   :  { %v4078_v19 = vadd.f32 %v1315_v15, %v1267_v14  ;;  %v1221_v20 = vadd.f32 %v1220_v18, %v1171_v16  ;;  %v3087_v14 = vld [vmem:[%s5128_s0 + $0x98] sm:$0xf0] }
  0xc4   :  { %3022 = vmatmul.msk.bf16.gmra.mxu0 %vm1127_vm0, %v4076_v13  ;;  %1415 = vmatmul.bf16.gmra.mxu1 %v3678_v42  ;;  %v4117_v16 = vor.u32 %v3087_v14, %v2362_v12 }
  0xc5   :  { %1464 = vmatmul.bf16.gmra.mxu2 %v3680_v43  ;;  %1599 = vmatpush.bf16.msra.mxu1 %v2979_v3 }
  0xc6   :  { %1513 = vmatmul.bf16.gmra.mxu3 %v3682_v44 }
  0xc8   :  { %v1269_v46 = vpop.f32.mrf.mxu2 }
  0xc9   :  { %v1270_v50 = vadd.f32 %v1269_v46, %v1221_v20  ;;  %v1318_v51 = vpop.f32.mrf.mxu3  ;;  %v1173_v52 = vpop.f32.mrf.mxu0  ;;  %v2487_v46 = vor.u32 %v3119_v40, %v2486_v39 }
  0xca   :  { %v1222_v55 = vpop.f32.mrf.mxu1 }
  0xcb   :  { %v4103_v56 = vadd.f32 %v1318_v51, %v1270_v50  ;;  %v1223_v58 = vadd.f32 %v1222_v55, %v1173_v52  ;;  %v3151_v50 = vld [vmem:[%s5127_s1 + $0x154] sm:$0xf0]  ;;  %v2867_v52 = vor.u32 %v3212_v41, %v2864_v47  ;;  %1647 = vmatpush.bf16.msra.mxu2 %v2487_v46  ;;  %v2470_v47 = vld [vmem:[%s5127_s1 + $0x28] sm:$0xf] }
  0xcc   :  { %v2615_v55 = vor.u32 %v3151_v50, %v2614_v49  ;;  %v3115_v49 = vld [vmem:[%s5127_s1 + $0x34] sm:$0xf0]  ;;  %v3208_v50 = vld [vmem:[%s5127_s1 + $0x324] sm:$0xf] }
  0xcd   :  { %1549 = vmatpush.bf16.msra.mxu0 %v2867_v52  ;;  %v2848_v52 = vld [vmem:[%s5127_s1 + $0x330] sm:$0xf0] }
  0xce   :  { %1696 = vmatpush.bf16.msra.mxu3 %v2615_v55  ;;  %v2598_v55 = vld [vmem:[%s5127_s1 + $0x128] sm:$0xf] }
  0xd0   :  { %v1271_v15 = vpop.f32.mrf.mxu2 }
  0xd1   :  { %v1272_v18 = vadd.f32 %v1271_v15, %v1223_v58  ;;  %v1320_v20 = vpop.f32.mrf.mxu3  ;;  %v1176_v25 = vpop.f32.mrf.mxu0  ;;  %v2382_v15 = vld [vmem:[%s5128_s0 + $0xb0] sm:$0xf] }
  0xd2   :  { %v1225_v36 = vpop.f32.mrf.mxu1 }
  0xd3   :  { %v4119_v37 = vadd.f32 %v1320_v20, %v1272_v18  ;;  %v1226_v38 = vadd.f32 %v1225_v36, %v1176_v25  ;;  %v3092_v18 = vld [vmem:[%s5128_s0 + $0xc0] sm:$0xf0] }
  0xd4   :  { %3023 = vmatmul.msk.bf16.gmra.mxu0 %vm1127_vm0, %v4117_v16  ;;  %1420 = vmatmul.bf16.gmra.mxu1 %v3738_v6  ;;  %v4152_v25 = vor.u32 %v3092_v18, %v2382_v15 }
  0xd5   :  { %1469 = vmatmul.bf16.gmra.mxu2 %v3740_v7 }
  0xd6   :  { %1518 = vmatmul.bf16.gmra.mxu3 %v3742_v8  ;;  %v3235_v8 = vld [vmem:[%s5127_s1 + $0x3f4] sm:$0xf0] }
  0xd8   :  { %v1274_v51 = vpop.f32.mrf.mxu2 }
  0xd9   :  { %v1275_v58 = vadd.f32 %v1274_v51, %v1226_v38  ;;  %v1323_v60 = vpop.f32.mrf.mxu3  ;;  %v1178_v62 = vpop.f32.mrf.mxu0  ;;  %v2471_v51 = vor.u32 %v3115_v49, %v2470_v47  ;;  %v3097_v49 = vld [vmem:[%s5128_s0 + $0xe8] sm:$0xf0] }
  0xda   :  { %v1227_v3 = vpop.f32.mrf.mxu1 }
  0xdb   :  { %v4144_v12 = vadd.f32 %v1323_v60, %v1275_v58  ;;  %v1228_v14 = vadd.f32 %v1227_v3, %v1178_v62  ;;  %v3147_v58 = vld [vmem:[%s5127_s1 + $0x134] sm:$0xf0]  ;;  %v2851_v62 = vor.u32 %v3208_v50, %v2848_v52  ;;  %1648 = vmatpush.bf16.msra.mxu2 %v2471_v51 }
  0xdc   :  { %v2599_v3 = vor.u32 %v3147_v58, %v2598_v55 }
  0xdd   :  { %1550 = vmatpush.bf16.msra.mxu0 %v2851_v62 }
  0xde   :  { %1697 = vmatpush.bf16.msra.mxu3 %v2599_v3 }
  0xe0   :  { %v1276_v20 = vpop.f32.mrf.mxu2 }
  0xe1   :  { %v1277_v36 = vadd.f32 %v1276_v20, %v1228_v14  ;;  %v1325_v38 = vpop.f32.mrf.mxu3  ;;  %v1181_v39 = vpop.f32.mrf.mxu0 }
  0xe2   :  { %v1230_v40 = vpop.f32.mrf.mxu1 }
  0xe3   :  { %v4154_v41 = vadd.f32 %v1325_v38, %v1277_v36  ;;  %v1231_v46 = vadd.f32 %v1230_v40, %v1181_v39  ;;  %v3236_v39 = vld [vmem:[%s5127_s1 + $0x404] sm:$0xf]  ;;  %v2960_v40 = vld [vmem:[%s5127_s1 + $0x410] sm:$0xf0] }
  0xe4   :  { %3024 = vmatmul.msk.bf16.gmra.mxu0 %vm1127_vm0, %v4152_v25  ;;  %1425 = vmatmul.bf16.gmra.mxu1 %v3792_v31  ;;  %v2963_v47 = vor.u32 %v3236_v39, %v2960_v40  ;;  %v2582_v39 = vld [vmem:[%s5127_s1 + $0x108] sm:$0xf]  ;;  %v3143_v40 = vld [vmem:[%s5127_s1 + $0x114] sm:$0xf0] }
  0xe5   :  { %1474 = vmatmul.bf16.gmra.mxu2 %v3794_v32 }
  0xe6   :  { %1523 = vmatmul.bf16.gmra.mxu3 %v3796_v33  ;;  %1600 = vmatpush.bf16.msra.mxu1 %v2963_v47  ;;  %v2950_v33 = vld [vmem:[%s5127_s1 + $0x3e8] sm:$0xf] }
  0xe8   :  { %v1279_v60 = vpop.f32.mrf.mxu2 }
  0xe9   :  { %v1280_v14 = vadd.f32 %v1279_v60, %v1231_v46  ;;  %v1328_v15 = vpop.f32.mrf.mxu3  ;;  %v1183_v18 = vpop.f32.mrf.mxu0  ;;  %v2402_v46 = vld [vmem:[%s5128_s0 + $0xd8] sm:$0xf] }
  0xea   :  { %v1232_v20 = vpop.f32.mrf.mxu1  ;;  %v4193_v51 = vor.u32 %v3097_v49, %v2402_v46  ;;  %v2583_v49 = vor.u32 %v3143_v40, %v2582_v39 }
  0xeb   :  { %v4179_v36 = vadd.f32 %v1328_v15, %v1280_v14  ;;  %v1233_v38 = vadd.f32 %v1232_v20, %v1183_v18  ;;  %v2454_v14 = vld [vmem:[%s5127_s1 + $0x8] sm:$0xf]  ;;  %v3111_v15 = vld [vmem:[%s5127_s1 + $0x14] sm:$0xf0]  ;;  %v3204_v18 = vld [vmem:[%s5127_s1 + $0x304] sm:$0xf] }
  0xec   :  { %v2455_v20 = vor.u32 %v3111_v15, %v2454_v14  ;;  %1698 = vmatpush.bf16.msra.mxu3 %v2583_v49  ;;  %v2422_v15 = vld [vmem:[%s5128_s0 + $0x100] sm:$0xf]  ;;  %v3251_v49 = vld [vmem:[%s5127_s1 + $0x474] sm:$0xf0] }
  0xee   :  { %1649 = vmatpush.bf16.msra.mxu2 %v2455_v20 }
  0xf0   :  { %v1281_v50 = vpop.f32.mrf.mxu2 }
  0xf1   :  { %v1282_v52 = vadd.f32 %v1281_v50, %v1233_v38  ;;  %v1330_v55 = vpop.f32.mrf.mxu3  ;;  %v1186_v58 = vpop.f32.mrf.mxu0  ;;  %v2832_v38 = vld [vmem:[%s5127_s1 + $0x310] sm:$0xf0] }
  0xf2   :  { %v1235_v60 = vpop.f32.mrf.mxu1  ;;  %v2835_v46 = vor.u32 %v3204_v18, %v2832_v38 }
  0xf3   :  { %v4195_v62 = vadd.f32 %v1330_v55, %v1282_v52  ;;  %v1236_v3 = vadd.f32 %v1235_v60, %v1186_v58 }
  0xf4   :  { %3025 = vmatmul.msk.bf16.gmra.mxu0 %vm1127_vm0, %v4193_v51  ;;  %1430 = vmatmul.bf16.gmra.mxu1 %v3852_v63 }
  0xf5   :  { %1479 = vmatmul.bf16.gmra.mxu2 %v3854_v0  ;;  %1551 = vmatpush.bf16.msra.mxu0 %v2835_v46 }
  0xf6   :  { %1528 = vmatmul.bf16.gmra.mxu3 %v3856_v1  ;;  %v3102_v1 = vld [vmem:[%s5128_s0 + $0x110] sm:$0xf0] }
  0xf7   :  { %v4228_v38 = vor.u32 %v3102_v1, %v2422_v15  ;;  %v3014_v1 = vld [vmem:[%s5127_s1 + $0x468] sm:$0xf] }
  0xf8   :  { %v1284_v47 = vpop.f32.mrf.mxu2 }
  0xf9   :  { %v1285_v50 = vadd.f32 %v1284_v47, %v1236_v3  ;;  %v1333_v52 = vpop.f32.mrf.mxu3  ;;  %v1188_v55 = vpop.f32.mrf.mxu0 }
  0xfa   :  { %v1237_v58 = vpop.f32.mrf.mxu1 }
  0xfb   :  { %v4220_v60 = vadd.f32 %v1333_v52, %v1285_v50  ;;  %v1238_v14 = vadd.f32 %v1237_v58, %v1188_v55  ;;  %v2822_v50 = vld [vmem:[%s5127_s1 + $0x2e8] sm:$0xf]  ;;  %v3015_v52 = vor.u32 %v3251_v49, %v3014_v1  ;;  %v3203_v55 = vld [vmem:[%s5127_s1 + $0x2f4] sm:$0xf0]  ;;  %v3137_v58 = vld [vmem:[%s5127_s1 + $0xec] sm:$0xf] }
  0xfd   :  { %1842 = vmatpush.bf16.msrb.mxu2 %v3015_v52  ;;  %v3107_v52 = vld [vmem:[%s5128_s0 + $0x138] sm:$0xf0] }
 0x100   :  { %v1286_v18 = vpop.f32.mrf.mxu2 }
 0x101   :  { %v1287_v3 = vadd.f32 %v1286_v18, %v1238_v14  ;;  %v1335_v39 = vpop.f32.mrf.mxu3  ;;  %v1191_v20 = vpop.f32.mrf.mxu0  ;;  %v2568_v14 = vld [vmem:[%s5127_s1 + $0xf8] sm:$0xf0]  ;;  %v2823_v18 = vor.u32 %v3203_v55, %v2822_v50  ;;  %v2951_v50 = vor.u32 %v3235_v8, %v2950_v33  ;;  %v2806_v8 = vld [vmem:[%s5127_s1 + $0x2c8] sm:$0xf]  ;;  %v3199_v33 = vld [vmem:[%s5127_s1 + $0x2d4] sm:$0xf0] }
 0x102   :  { %v1240_v40 = vpop.f32.mrf.mxu1 }
 0x103   :  { %v4230_v47 = vadd.f32 %v1335_v39, %v1287_v3  ;;  %v1241_v46 = vadd.f32 %v1240_v40, %v1191_v20  ;;  %v2571_v3 = vor.u32 %v3137_v58, %v2568_v14  ;;  %1740 = vmatpush.bf16.msrb.mxu0 %v2823_v18  ;;  %1789 = vmatpush.bf16.msrb.mxu1 %v2951_v50 }
 0x104   :  { %3026 = vmatmul.msk.bf16.gmra.mxu0 %vm1127_vm0, %v4228_v38  ;;  %1435 = vmatmul.bf16.gmra.mxu1 %v3906_v28 }
 0x105   :  { %1484 = vmatmul.bf16.gmra.mxu2 %v3908_v29  ;;  %1887 = vmatpush.bf16.msrb.mxu3 %v2571_v3 }
 0x106   :  { %1533 = vmatmul.bf16.gmra.mxu3 %v3910_v30 }
 0x108   :  { %v1289_v15 = vpop.f32.mrf.mxu2 }
 0x109   :  { %v1290_v39 = vadd.f32 %v1289_v15, %v1241_v46  ;;  %v1338_v20 = vpop.f32.mrf.mxu3  ;;  %v1193_v40 = vpop.f32.mrf.mxu0  ;;  %v2442_v46 = vld [vmem:[%s5128_s0 + $0x128] sm:$0xf] }
 0x10a   :  { %v1242_v1 = vpop.f32.mrf.mxu1  ;;  %v4269_v58 = vor.u32 %v3107_v52, %v2442_v46 }
 0x10b   :  { %v4255_v49 = vadd.f32 %v1338_v20, %v1290_v39  ;;  %v1243_v30 = vadd.f32 %v1242_v1, %v1193_v40  ;;  %v2807_v40 = vor.u32 %v3199_v33, %v2806_v8  ;;  %v2552_v1 = vld [vmem:[%s5127_s1 + $0xd8] sm:$0xf0]  ;;  %v3231_v8 = vld [vmem:[%s5127_s1 + $0x3d4] sm:$0xf0] }
 0x10d   :  { %1741 = vmatpush.bf16.msrb.mxu0 %v2807_v40 }
 0x110   :  { %v1291_v55 = vpop.f32.mrf.mxu2 }
 0x111   :  { %v1292_v14 = vadd.f32 %v1291_v55, %v1243_v30  ;;  %v1340_v15 = vpop.f32.mrf.mxu3  ;;  %v1196_v18 = vpop.f32.mrf.mxu0  ;;  %v3133_v30 = vld [vmem:[%s5127_s1 + $0xcc] sm:$0xf] }
 0x112   :  { %v1245_v3 = vpop.f32.mrf.mxu1  ;;  %v2555_v46 = vor.u32 %v3133_v30, %v2552_v1 }
 0x113   :  { %v4271_v39 = vadd.f32 %v1340_v15, %v1292_v14  ;;  %v1246_v20 = vadd.f32 %v1245_v3, %v1196_v18 }
 0x114   :  { %3027 = vmatmul.msk.bf16.gmra.mxu0 %vm1127_vm0, %v4269_v58  ;;  %1440 = vmatmul.bf16.gmra.mxu1 %v3966_v4 }
 0x115   :  { %1489 = vmatmul.bf16.gmra.mxu2 %v3968_v5  ;;  %1888 = vmatpush.bf16.msrb.mxu3 %v2555_v46 }
 0x116   :  { %1538 = vmatmul.bf16.gmra.mxu3 %v3970_v10  ;;  %v2934_v10 = vld [vmem:[%s5127_s1 + $0x3c8] sm:$0xf] }
 0x117   :  { %v2935_v33 = vor.u32 %v3231_v8, %v2934_v10  ;;  %v2998_v10 = vld [vmem:[%s5127_s1 + $0x448] sm:$0xf]  ;;  %v2536_v8 = vld [vmem:[%s5127_s1 + $0xb8] sm:$0xf0] }
 0x118   :  { %v1294_v50 = vpop.f32.mrf.mxu2 }
 0x119   :  { %v1295_v52 = vadd.f32 %v1294_v50, %v1246_v20  ;;  %v1343_v55 = vpop.f32.mrf.mxu3  ;;  %v1198_v14 = vpop.f32.mrf.mxu0  ;;  %1790 = vmatpush.bf16.msrb.mxu1 %v2935_v33 }
 0x11a   :  { %v1247_v15 = vpop.f32.mrf.mxu1 }
 0x11b   :  { %v4290_v18 = vadd.f32 %v1343_v55, %v1295_v52  ;;  %v1248_v3 = vadd.f32 %v1247_v15, %v1198_v14  ;;  %v2790_v55 = vld [vmem:[%s5127_s1 + $0x2a8] sm:$0xf]  ;;  %v3195_v15 = vld [vmem:[%s5127_s1 + $0x2b4] sm:$0xf0] }
 0x120   :  { %v1296_v30 = vpop.f32.mrf.mxu2 }
 0x121   :  { %v1297_v20 = vadd.f32 %v1296_v30, %v1248_v3  ;;  %v1345_v1 = vpop.f32.mrf.mxu3  ;;  %v1357_v50 = vpop.f32.mrf.mxu0  ;;  %v3129_v3 = vld [vmem:[%s5127_s1 + $0xac] sm:$0xf]  ;;  %v2791_v30 = vor.u32 %v3195_v15, %v2790_v55  ;;  %v3227_v55 = vld [vmem:[%s5127_s1 + $0x3b4] sm:$0xf0] }
 0x122   :  { %v4299_v40 = vadd.f32 %v1357_v50, %v4027_v61  ;;  %v1406_v46 = vpop.f32.mrf.mxu1  ;;  %v3247_v61 = vld [vmem:[%s5127_s1 + $0x454] sm:$0xf0] }
 0x123   :  { %v4301_v52 = vadd.f32 %v1345_v1, %v1297_v20  ;;  %v2999_v14 = vor.u32 %v3247_v61, %v2998_v10  ;;  %v2539_v20 = vor.u32 %v3129_v3, %v2536_v8  ;;  %1742 = vmatpush.bf16.msrb.mxu0 %v2791_v30  ;;  %v3125_v30 = vld [vmem:[%s5127_s1 + $0x8c] sm:$0xf] }
 0x124   :  { %1552 = vmatmul.bf16.vlgmr.msra.gmra.mxu0 %v3564_v57  ;;  %3028 = vmatmul.msk.bf16.vlgmr.msra.gmra.mxu1 %vm1127_vm0, %v4002_v27 }
 0x125   :  { %1650 = vmatmul.bf16.vlgmr.msra.gmra.mxu2 %v3543_v48  ;;  %1889 = vmatpush.bf16.msrb.mxu3 %v2539_v20 }
 0x126   :  { %1699 = vmatmul.bf16.vlgmr.msra.gmra.mxu3 %v3554_v53  ;;  %1843 = vmatpush.bf16.msrb.mxu2 %v2999_v14 }
 0x128   :  { %v1455_v33 = vpop.f32.mrf.mxu2 }
 0x129   :  { %v1456_v1 = vadd.f32 %v1455_v33, %v1406_v46  ;;  %v1504_v50 = vpop.f32.mrf.mxu3  ;;  %v1359_v53 = vpop.f32.mrf.mxu0  ;;  %v2919_v46 = vor.u32 %v3227_v55, %v2918_v23  ;;  %v2774_v23 = vld [vmem:[%s5127_s1 + $0x288] sm:$0xf] }
 0x12a   :  { %v4327_v10 = vadd.f32 %v1359_v53, %v4043_v26  ;;  %v1408_v61 = vpop.f32.mrf.mxu1 }
 0x12b   :  { %v4329_v44 = vadd.f32 %v1504_v50, %v1456_v1  ;;  %1791 = vmatpush.bf16.msrb.mxu1 %v2919_v46  ;;  %v2520_v1 = vld [vmem:[%s5127_s1 + $0x98] sm:$0xf0] }
 0x130   :  { %v1457_v15 = vpop.f32.mrf.mxu2 }
 0x131   :  { %v1458_v14 = vadd.f32 %v1457_v15, %v1408_v61  ;;  %v1506_v3 = vpop.f32.mrf.mxu3  ;;  %v1362_v53 = vpop.f32.mrf.mxu0  ;;  %v2523_v61 = vor.u32 %v3125_v30, %v2520_v1 }
 0x132   :  { %v4338_v26 = vadd.f32 %v1362_v53, %v4068_v59  ;;  %v1411_v8 = vpop.f32.mrf.mxu1  ;;  %v3191_v59 = vld [vmem:[%s5127_s1 + $0x294] sm:$0xf0] }
 0x133   :  { %v4340_v33 = vadd.f32 %v1506_v3, %v1458_v14  ;;  %v2775_v20 = vor.u32 %v3191_v59, %v2774_v23  ;;  %1890 = vmatpush.bf16.msrb.mxu3 %v2523_v61  ;;  %v2902_v23 = vld [vmem:[%s5127_s1 + $0x388] sm:$0xf]  ;;  %v3223_v59 = vld [vmem:[%s5127_s1 + $0x394] sm:$0xf0] }
 0x134   :  { %5197 = vst [vmem:[#allocation20_spill] sm:$0xff] %v4338_v26  ;;  %1557 = vmatmul.bf16.gmra.mxu0 %v3630_v24  ;;  %3029 = vmatmul.msk.bf16.gmra.mxu1 %vm1127_vm0, %v4041_v17  ;;  %v2903_v30 = vor.u32 %v3223_v59, %v2902_v23  ;;  %v3187_v23 = vld [vmem:[%s5127_s1 + $0x274] sm:$0xf0]  ;;  %v3121_v59 = vld [vmem:[%s5127_s1 + $0x6c] sm:$0xf] }
 0x135   :  { %1655 = vmatmul.bf16.gmra.mxu2 %v3624_v21  ;;  %1743 = vmatpush.bf16.msrb.mxu0 %v2775_v20  ;;  %v5212_v26 = vld [vmem:[#allocation7_spill] sm:$0xff] }
 0x136   :  { %1704 = vmatmul.bf16.gmra.mxu3 %v3626_v22  ;;  %1792 = vmatpush.bf16.msrb.mxu1 %v2903_v30  ;;  %v2504_v30 = vld [vmem:[%s5127_s1 + $0x78] sm:$0xf0] }
 0x138   :  { %v1460_v50 = vpop.f32.mrf.mxu2 }
 0x139   :  { %v1461_v55 = vadd.f32 %v1460_v50, %v1411_v8  ;;  %v1509_v46 = vpop.f32.mrf.mxu3  ;;  %v1364_v15 = vpop.f32.mrf.mxu0 }
 0x13a   :  { %v4360_v14 = vadd.f32 %v1364_v15, %v4078_v19  ;;  %v1413_v3 = vpop.f32.mrf.mxu1  ;;  %v2758_v15 = vld [vmem:[%s5127_s1 + $0x268] sm:$0xf] }
 0x13b   :  { %v4362_v53 = vadd.f32 %v1509_v46, %v1461_v55  ;;  %v2982_v46 = vld [vmem:[%s5127_s1 + $0x428] sm:$0xf] }
 0x13c   :  { %5198 = vst [vmem:[#allocation21_spill] sm:$0xff] %v4360_v14  ;;  %v2760_v14 = vld [vmem:[%s5127_s1 + $0x278] sm:$0xf0] }
 0x140   :  { %v1462_v8 = vpop.f32.mrf.mxu2 }
 0x141   :  { %v1463_v1 = vadd.f32 %v1462_v8, %v1413_v3  ;;  %v1511_v20 = vpop.f32.mrf.mxu3  ;;  %v1367_v50 = vpop.f32.mrf.mxu0 }
 0x142   :  { %v4371_v19 = vadd.f32 %v1367_v50, %v4103_v56  ;;  %v1416_v61 = vpop.f32.mrf.mxu1  ;;  %v3243_v56 = vld [vmem:[%s5127_s1 + $0x434] sm:$0xf0] }
 0x143   :  { %v4373_v55 = vadd.f32 %v1511_v20, %v1463_v1  ;;  %v2983_v3 = vor.u32 %v3243_v56, %v2982_v46  ;;  %v2759_v1 = vor.u32 %v3187_v23, %v2758_v15  ;;  %v2507_v20 = vor.u32 %v3121_v59, %v2504_v30  ;;  %v3219_v15 = vld [vmem:[%s5127_s1 + $0x374] sm:$0xf0] }
 0x144   :  { %5199 = vst [vmem:[#allocation22_spill] sm:$0xff] %v4371_v19  ;;  %1562 = vmatmul.bf16.gmra.mxu0 %v3684_v45  ;;  %3030 = vmatmul.msk.bf16.gmra.mxu1 %vm1127_vm0, %v4076_v13  ;;  %v2886_v19 = vld [vmem:[%s5127_s1 + $0x368] sm:$0xf] }
 0x145   :  { %1660 = vmatmul.bf16.gmra.mxu2 %v3678_v42  ;;  %1744 = vmatpush.bf16.msrb.mxu0 %v2759_v1 }
 0x146   :  { %1709 = vmatmul.bf16.gmra.mxu3 %v3680_v43  ;;  %1844 = vmatpush.bf16.msrb.mxu2 %v2983_v3 }
 0x147   :  { %1891 = vmatpush.bf16.msrb.mxu3 %v2507_v20  ;;  %v2488_v20 = vld [vmem:[%s5127_s1 + $0x58] sm:$0xf0] }
 0x148   :  { %v1465_v8 = vpop.f32.mrf.mxu2 }
 0x149   :  { %v1466_v50 = vadd.f32 %v1465_v8, %v1416_v61  ;;  %v1514_v43 = vpop.f32.mrf.mxu3  ;;  %v1369_v22 = vpop.f32.mrf.mxu0  ;;  %v2887_v61 = vor.u32 %v3219_v15, %v2886_v19  ;;  %v2742_v19 = vld [vmem:[%s5127_s1 + $0x248] sm:$0xf]  ;;  %v3117_v8 = vld [vmem:[%s5127_s1 + $0x4c] sm:$0xf] }
 0x14a   :  { %v4399_v46 = vadd.f32 %v1369_v22, %v4119_v37  ;;  %v1418_v56 = vpop.f32.mrf.mxu1 }
 0x14b   :  { %v4401_v42 = vadd.f32 %v1514_v43, %v1466_v50  ;;  %1793 = vmatpush.bf16.msrb.mxu1 %v2887_v61 }
 0x150   :  { %v1467_v23 = vpop.f32.mrf.mxu2 }
 0x151   :  { %v1468_v3 = vadd.f32 %v1467_v23, %v1418_v56  ;;  %v1516_v59 = vpop.f32.mrf.mxu3  ;;  %v1372_v22 = vpop.f32.mrf.mxu0  ;;  %v2491_v56 = vor.u32 %v3117_v8, %v2488_v20 }
 0x152   :  { %v4410_v37 = vadd.f32 %v1372_v22, %v4144_v12  ;;  %v1421_v30 = vpop.f32.mrf.mxu1  ;;  %v3183_v12 = vld [vmem:[%s5127_s1 + $0x254] sm:$0xf0] }
 0x153   :  { %v4412_v43 = vadd.f32 %v1516_v59, %v1468_v3  ;;  %v2743_v1 = vor.u32 %v3183_v12, %v2742_v19  ;;  %1892 = vmatpush.bf16.msrb.mxu3 %v2491_v56  ;;  %v2870_v19 = vld [vmem:[%s5127_s1 + $0x348] sm:$0xf]  ;;  %v3215_v12 = vld [vmem:[%s5127_s1 + $0x354] sm:$0xf0] }
 0x154   :  { %5200 = vst [vmem:[#allocation23_spill] sm:$0xff] %v4410_v37  ;;  %1567 = vmatmul.bf16.gmra.mxu0 %v3744_v9  ;;  %3031 = vmatmul.msk.bf16.gmra.mxu1 %vm1127_vm0, %v4117_v16  ;;  %v2871_v8 = vor.u32 %v3215_v12, %v2870_v19  ;;  %v3179_v19 = vld [vmem:[%s5127_s1 + $0x234] sm:$0xf0]  ;;  %v3113_v12 = vld [vmem:[%s5127_s1 + $0x2c] sm:$0xf]  ;;  %v5219_v37 = vld [vmem:[#allocation12_spill] sm:$0xff] }
 0x155   :  { %1665 = vmatmul.bf16.gmra.mxu2 %v3738_v6  ;;  %1745 = vmatpush.bf16.msrb.mxu0 %v2743_v1 }
 0x156   :  { %1714 = vmatmul.bf16.gmra.mxu3 %v3740_v7  ;;  %1794 = vmatpush.bf16.msrb.mxu1 %v2871_v8  ;;  %v2472_v8 = vld [vmem:[%s5127_s1 + $0x38] sm:$0xf0] }
 0x158   :  { %v1470_v50 = vpop.f32.mrf.mxu2 }
 0x159   :  { %v1471_v15 = vadd.f32 %v1470_v50, %v1421_v30  ;;  %v1519_v61 = vpop.f32.mrf.mxu3  ;;  %v1374_v23 = vpop.f32.mrf.mxu0 }
 0x15a   :  { %v4432_v3 = vadd.f32 %v1374_v23, %v4154_v41  ;;  %v1423_v59 = vpop.f32.mrf.mxu1  ;;  %v2726_v23 = vld [vmem:[%s5127_s1 + $0x228] sm:$0xf] }
 0x15b   :  { %v4434_v22 = vadd.f32 %v1519_v61, %v1471_v15  ;;  %v2966_v61 = vld [vmem:[%s5127_s1 + $0x408] sm:$0xf] }
 0x15c   :  { %5201 = vst [vmem:[#allocation24_spill] sm:$0xff] %v4432_v3  ;;  %v2728_v3 = vld [vmem:[%s5127_s1 + $0x238] sm:$0xf0] }
 0x160   :  { %v1472_v30 = vpop.f32.mrf.mxu2 }
 0x161   :  { %v1473_v20 = vadd.f32 %v1472_v30, %v1423_v59  ;;  %v1521_v1 = vpop.f32.mrf.mxu3  ;;  %v1377_v50 = vpop.f32.mrf.mxu0 }
 0x162   :  { %v4443_v41 = vadd.f32 %v1377_v50, %v4179_v36  ;;  %v1426_v56 = vpop.f32.mrf.mxu1  ;;  %v3239_v36 = vld [vmem:[%s5127_s1 + $0x414] sm:$0xf0] }
 0x163   :  { %v4445_v15 = vadd.f32 %v1521_v1, %v1473_v20  ;;  %v2967_v59 = vor.u32 %v3239_v36, %v2966_v61  ;;  %v2727_v20 = vor.u32 %v3179_v19, %v2726_v23  ;;  %v2475_v1 = vor.u32 %v3113_v12, %v2472_v8  ;;  %v3211_v23 = vld [vmem:[%s5127_s1 + $0x334] sm:$0xf0] }
 0x164   :  { %5202 = vst [vmem:[#allocation25_spill] sm:$0xff] %v4443_v41  ;;  %1572 = vmatmul.bf16.gmra.mxu0 %v3798_v34  ;;  %3032 = vmatmul.msk.bf16.gmra.mxu1 %vm1127_vm0, %v4152_v25  ;;  %v2854_v41 = vld [vmem:[%s5127_s1 + $0x328] sm:$0xf] }
 0x165   :  { %1670 = vmatmul.bf16.gmra.mxu2 %v3792_v31  ;;  %1746 = vmatpush.bf16.msrb.mxu0 %v2727_v20 }
 0x166   :  { %1719 = vmatmul.bf16.gmra.mxu3 %v3794_v32  ;;  %1845 = vmatpush.bf16.msrb.mxu2 %v2967_v59 }
 0x167   :  { %1893 = vmatpush.bf16.msrb.mxu3 %v2475_v1  ;;  %v2456_v1 = vld [vmem:[%s5127_s1 + $0x18] sm:$0xf0] }
 0x168   :  { %v1475_v30 = vpop.f32.mrf.mxu2 }
 0x169   :  { %v1476_v50 = vadd.f32 %v1475_v30, %v1426_v56  ;;  %v1524_v32 = vpop.f32.mrf.mxu3  ;;  %v1379_v7 = vpop.f32.mrf.mxu0  ;;  %v2855_v56 = vor.u32 %v3211_v23, %v2854_v41  ;;  %v2710_v41 = vld [vmem:[%s5127_s1 + $0x208] sm:$0xf]  ;;  %v3109_v30 = vld [vmem:[%s5127_s1 + $0xc] sm:$0xf] }
 0x16a   :  { %v4471_v61 = vadd.f32 %v1379_v7, %v4195_v62  ;;  %v1428_v36 = vpop.f32.mrf.mxu1 }
 0x16b   :  { %v4473_v31 = vadd.f32 %v1524_v32, %v1476_v50  ;;  %1795 = vmatpush.bf16.msrb.mxu1 %v2855_v56 }
 0x170   :  { %v1477_v19 = vpop.f32.mrf.mxu2 }
 0x171   :  { %v1478_v59 = vadd.f32 %v1477_v19, %v1428_v36  ;;  %v1526_v12 = vpop.f32.mrf.mxu3  ;;  %v1382_v7 = vpop.f32.mrf.mxu0  ;;  %v2459_v36 = vor.u32 %v3109_v30, %v2456_v1 }
 0x172   :  { %v4482_v62 = vadd.f32 %v1382_v7, %v4220_v60  ;;  %v1431_v8 = vpop.f32.mrf.mxu1  ;;  %v3175_v60 = vld [vmem:[%s5127_s1 + $0x214] sm:$0xf0] }
 0x173   :  { %v4484_v32 = vadd.f32 %v1526_v12, %v1478_v59  ;;  %v2711_v20 = vor.u32 %v3175_v60, %v2710_v41  ;;  %1894 = vmatpush.bf16.msrb.mxu3 %v2459_v36  ;;  %v2838_v41 = vld [vmem:[%s5127_s1 + $0x308] sm:$0xf]  ;;  %v3207_v60 = vld [vmem:[%s5127_s1 + $0x314] sm:$0xf0] }
 0x174   :  { %5203 = vst [vmem:[#allocation26_spill] sm:$0xff] %v4482_v62  ;;  %1577 = vmatmul.bf16.gmra.mxu0 %v3858_v2  ;;  %3033 = vmatmul.msk.bf16.gmra.mxu1 %vm1127_vm0, %v4193_v51  ;;  %v2839_v30 = vor.u32 %v3207_v60, %v2838_v41  ;;  %v2696_v41 = vld [vmem:[%s5127_s1 + $0x1f8] sm:$0xf0]  ;;  %v3249_v60 = vld [vmem:[%s5127_s1 + $0x46c] sm:$0xf] }
 0x175   :  { %1675 = vmatmul.bf16.gmra.mxu2 %v3852_v63  ;;  %1747 = vmatpush.bf16.msrb.mxu0 %v2711_v20  ;;  %v5227_v62 = vld [vmem:[#allocation17_spill] sm:$0xff] }
 0x176   :  { %1724 = vmatmul.bf16.gmra.mxu3 %v3854_v0  ;;  %1796 = vmatpush.bf16.msrb.mxu1 %v2839_v30  ;;  %v3016_v30 = vld [vmem:[%s5127_s1 + $0x478] sm:$0xf0] }
 0x178   :  { %v1480_v50 = vpop.f32.mrf.mxu2 }
 0x179   :  { %v1481_v23 = vadd.f32 %v1480_v50, %v1431_v8  ;;  %v1529_v56 = vpop.f32.mrf.mxu3  ;;  %v1384_v19 = vpop.f32.mrf.mxu0 }
 0x17a   :  { %v4504_v59 = vadd.f32 %v1384_v19, %v4230_v47  ;;  %v1433_v12 = vpop.f32.mrf.mxu1  ;;  %v3169_v19 = vld [vmem:[%s5127_s1 + $0x1ec] sm:$0xf] }
 0x17b   :  { %v4506_v7 = vadd.f32 %v1529_v56, %v1481_v23  ;;  %v3233_v56 = vld [vmem:[%s5127_s1 + $0x3ec] sm:$0xf] }
 0x17c   :  { %5204 = vst [vmem:[#allocation27_spill] sm:$0xff] %v4504_v59 }
 0x180   :  { %v1482_v8 = vpop.f32.mrf.mxu2 }
 0x181   :  { %v1483_v1 = vadd.f32 %v1482_v8, %v1433_v12  ;;  %v1531_v20 = vpop.f32.mrf.mxu3  ;;  %v1387_v50 = vpop.f32.mrf.mxu0 }
 0x182   :  { %v4515_v47 = vadd.f32 %v1387_v50, %v4255_v49  ;;  %v1436_v36 = vpop.f32.mrf.mxu1  ;;  %v2952_v49 = vld [vmem:[%s5127_s1 + $0x3f8] sm:$0xf0] }
 0x183   :  { %v4517_v23 = vadd.f32 %v1531_v20, %v1483_v1  ;;  %v2955_v12 = vor.u32 %v3233_v56, %v2952_v49  ;;  %v2699_v1 = vor.u32 %v3169_v19, %v2696_v41  ;;  %v3019_v20 = vor.u32 %v3249_v60, %v3016_v30 }
 0x184   :  { %5205 = vst [vmem:[#allocation28_spill] sm:$0xff] %v4515_v47  ;;  %1582 = vmatmul.bf16.gmra.mxu0 %v3912_v35  ;;  %3034 = vmatmul.msk.bf16.gmra.mxu1 %vm1127_vm0, %v4228_v38  ;;  %v2824_v47 = vld [vmem:[%s5127_s1 + $0x2f8] sm:$0xf0] }
 0x185   :  { %1680 = vmatmul.bf16.gmra.mxu2 %v3906_v28  ;;  %1936 = vmatpush.bf16.msra.mxu0 %v2699_v1  ;;  %v3201_v28 = vld [vmem:[%s5127_s1 + $0x2ec] sm:$0xf]  ;;  %v2680_v1 = vld [vmem:[%s5127_s1 + $0x1d8] sm:$0xf0] }
 0x186   :  { %1729 = vmatmul.bf16.gmra.mxu3 %v3908_v29  ;;  %2034 = vmatpush.bf16.msra.mxu2 %v2955_v12 }
 0x187   :  { %2087 = vmatpush.bf16.msra.mxu3 %v3019_v20 }
 0x188   :  { %v1485_v8 = vpop.f32.mrf.mxu2 }
 0x189   :  { %v1486_v50 = vadd.f32 %v1485_v8, %v1436_v36  ;;  %v1534_v29 = vpop.f32.mrf.mxu3  ;;  %v1389_v0 = vpop.f32.mrf.mxu0  ;;  %v2827_v36 = vor.u32 %v3201_v28, %v2824_v47  ;;  %v3229_v28 = vld [vmem:[%s5127_s1 + $0x3cc] sm:$0xf] }
 0x18a   :  { %v4543_v56 = vadd.f32 %v1389_v0, %v4271_v39  ;;  %v1438_v49 = vpop.f32.mrf.mxu1 }
 0x18b   :  { %v4551_v19 = vadd.f32 %v1534_v29, %v1486_v50  ;;  %1985 = vmatpush.bf16.msra.mxu1 %v2827_v36  ;;  %v2936_v29 = vld [vmem:[%s5127_s1 + $0x3d8] sm:$0xf0] }
 0x18c   :  { %v2939_v47 = vor.u32 %v3229_v28, %v2936_v29  ;;  %v2808_v28 = vld [vmem:[%s5127_s1 + $0x2d8] sm:$0xf0] }
 0x18e   :  { %2035 = vmatpush.bf16.msra.mxu2 %v2939_v47 }
 0x190   :  { %v1487_v41 = vpop.f32.mrf.mxu2 }
 0x191   :  { %v1488_v12 = vadd.f32 %v1487_v41, %v1438_v49  ;;  %v1536_v60 = vpop.f32.mrf.mxu3  ;;  %v1392_v0 = vpop.f32.mrf.mxu0 }
 0x192   :  { %v4554_v39 = vadd.f32 %v1392_v0, %v4290_v18  ;;  %v1441_v30 = vpop.f32.mrf.mxu1  ;;  %v3165_v18 = vld [vmem:[%s5127_s1 + $0x1cc] sm:$0xf] }
 0x193   :  { %v4556_v8 = vadd.f32 %v1536_v60, %v1488_v12  ;;  %v2683_v50 = vor.u32 %v3165_v18, %v2680_v1  ;;  %v3197_v0 = vld [vmem:[%s5127_s1 + $0x2cc] sm:$0xf] }
 0x194   :  { %5206 = vst [vmem:[#allocation29_spill] sm:$0xff] %v4554_v39  ;;  %1587 = vmatmul.bf16.gmra.mxu0 %v3972_v11  ;;  %3035 = vmatmul.msk.bf16.gmra.mxu1 %vm1127_vm0, %v4269_v58  ;;  %v2811_v18 = vor.u32 %v3197_v0, %v2808_v28  ;;  %v2664_v28 = vld [vmem:[%s5127_s1 + $0x1b8] sm:$0xf0]  ;;  %v5233_v39 = vld [vmem:[#allocation2_spill] sm:$0xff] }
 0x195   :  { %1685 = vmatmul.bf16.gmra.mxu2 %v3966_v4  ;;  %1937 = vmatpush.bf16.msra.mxu0 %v2683_v50 }
 0x196   :  { %1734 = vmatmul.bf16.gmra.mxu3 %v3968_v5  ;;  %1986 = vmatpush.bf16.msra.mxu1 %v2811_v18  ;;  %v3000_v18 = vld [vmem:[%s5127_s1 + $0x458] sm:$0xf0] }
 0x198   :  { %v1490_v20 = vpop.f32.mrf.mxu2 }
 0x199   :  { %v1491_v49 = vadd.f32 %v1490_v20, %v1441_v30  ;;  %v1539_v36 = vpop.f32.mrf.mxu3  ;;  %v1394_v41 = vpop.f32.mrf.mxu0 }
 0x19a   :  { %v4576_v12 = vadd.f32 %v1394_v41, %v4301_v52  ;;  %v1443_v60 = vpop.f32.mrf.mxu1 }
 0x19b   :  { %v4584_v29 = vadd.f32 %v1539_v36, %v1491_v49  ;;  %v2920_v36 = vld [vmem:[%s5127_s1 + $0x3b8] sm:$0xf0]  ;;  %v3193_v49 = vld [vmem:[%s5127_s1 + $0x2ac] sm:$0xf] }
 0x1a0   :  { %v1492_v30 = vpop.f32.mrf.mxu2 }
 0x1a1   :  { %v1493_v1 = vadd.f32 %v1492_v30, %v1443_v60  ;;  %v1541_v47 = vpop.f32.mrf.mxu3  ;;  %v1553_v20 = vpop.f32.mrf.mxu0  ;;  %v3161_v60 = vld [vmem:[%s5127_s1 + $0x1ac] sm:$0xf] }
 0x1a2   :  { %v1554_v52 = vadd.f32 %v1553_v20, %v4329_v44  ;;  %v1602_v41 = vpop.f32.mrf.mxu1  ;;  %v3225_v44 = vld [vmem:[%s5127_s1 + $0x3ac] sm:$0xf] }
 0x1a3   :  { %v4587_v50 = vadd.f32 %v1541_v47, %v1493_v1  ;;  %v2923_v0 = vor.u32 %v3225_v44, %v2920_v36  ;;  %v2667_v1 = vor.u32 %v3161_v60, %v2664_v28 }
 0x1a4   :  { %v4589_v5 = vadd.f32 %v1602_v41, %v1554_v52  ;;  %1748 = vmatmul.bf16.vlgmr.msrb.gmra.mxu0 %v3556_v54  ;;  %1797 = vmatmul.bf16.vlgmr.msrb.gmra.mxu1 %v3564_v57 }
 0x1a5   :  { %3036 = vmatmul.msk.bf16.vlgmr.msrb.gmra.mxu2 %vm1127_vm0, %v4002_v27  ;;  %1938 = vmatpush.bf16.msra.mxu0 %v2667_v1 }
 0x1a6   :  { %5207 = vst [vmem:[#allocation30_spill] sm:$0xff] %v4589_v5  ;;  %1895 = vmatmul.bf16.vlgmr.msrb.gmra.mxu3 %v3543_v48  ;;  %v3245_v48 = vld [vmem:[%s5127_s1 + $0x44c] sm:$0xf]  ;;  %2036 = vmatpush.bf16.msra.mxu2 %v2923_v0  ;;  %v2792_v5 = vld [vmem:[%s5127_s1 + $0x2b8] sm:$0xf0] }
 0x1a7   :  { %v3003_v47 = vor.u32 %v3245_v48, %v3000_v18  ;;  %v2795_v60 = vor.u32 %v3193_v49, %v2792_v5  ;;  %v3221_v49 = vld [vmem:[%s5127_s1 + $0x38c] sm:$0xf] }
 0x1a8   :  { %v1651_v30 = vpop.f32.mrf.mxu2  ;;  %v3189_v0 = vld [vmem:[%s5127_s1 + $0x28c] sm:$0xf] }
 0x1a9   :  { %v1700_v20 = vpop.f32.mrf.mxu3  ;;  %v1555_v52 = vpop.f32.mrf.mxu0  ;;  %2088 = vmatpush.bf16.msra.mxu3 %v3003_v47  ;;  %1987 = vmatpush.bf16.msra.mxu1 %v2795_v60  ;;  %v2648_v60 = vld [vmem:[%s5127_s1 + $0x198] sm:$0xf0] }
 0x1aa   :  { %v4616_v41 = vadd.f32 %v1700_v20, %v1651_v30  ;;  %v1556_v44 = vadd.f32 %v1555_v52, %v4340_v33  ;;  %v1604_v36 = vpop.f32.mrf.mxu1  ;;  %v5209_v52 = vld [vmem:[#allocation4_spill] sm:$0xff] }
 0x1ac   :  { %v4625_v28 = vadd.f32 %v1604_v36, %v1556_v44  ;;  %v3157_v44 = vld [vmem:[%s5127_s1 + $0x18c] sm:$0xf] }
 0x1b0   :  { %v1653_v48 = vpop.f32.mrf.mxu2 }
 0x1b1   :  { %v1702_v33 = vpop.f32.mrf.mxu3  ;;  %v1558_v18 = vpop.f32.mrf.mxu0 }
 0x1b2   :  { %v4629_v30 = vadd.f32 %v1702_v33, %v1653_v48  ;;  %v1559_v1 = vadd.f32 %v1558_v18, %v4362_v53  ;;  %v1607_v47 = vpop.f32.mrf.mxu1  ;;  %v2904_v53 = vld [vmem:[%s5127_s1 + $0x398] sm:$0xf0]  ;;  %v2651_v33 = vor.u32 %v3157_v44, %v2648_v60 }
 0x1b3   :  { %v2907_v36 = vor.u32 %v3221_v49, %v2904_v53  ;;  %v2776_v49 = vld [vmem:[%s5127_s1 + $0x298] sm:$0xf0] }
 0x1b4   :  { %v4632_v20 = vadd.f32 %v1607_v47, %v1559_v1  ;;  %1753 = vmatmul.bf16.gmra.mxu0 %v5209_v52  ;;  %1802 = vmatmul.bf16.gmra.mxu1 %v3630_v24  ;;  %v2779_v53 = vor.u32 %v3189_v0, %v2776_v49  ;;  %v3217_v49 = vld [vmem:[%s5127_s1 + $0x36c] sm:$0xf] }
 0x1b5   :  { %3037 = vmatmul.msk.bf16.gmra.mxu2 %vm1127_vm0, %v4041_v17  ;;  %1939 = vmatpush.bf16.msra.mxu0 %v2651_v33 }
 0x1b6   :  { %5208 = vst [vmem:[#allocation31_spill] sm:$0xff] %v4632_v20  ;;  %1900 = vmatmul.bf16.gmra.mxu3 %v3624_v21  ;;  %2037 = vmatpush.bf16.msra.mxu2 %v2907_v36 }
 0x1b7   :  { %1988 = vmatpush.bf16.msra.mxu1 %v2779_v53  ;;  %v3153_v53 = vld [vmem:[%s5127_s1 + $0x16c] sm:$0xf] }
 0x1b8   :  { %v1656_v48 = vpop.f32.mrf.mxu2 }
 0x1b9   :  { %v1705_v21 = vpop.f32.mrf.mxu3  ;;  %v1560_v18 = vpop.f32.mrf.mxu0 }
 0x1ba   :  { %v4653_v1 = vadd.f32 %v1705_v21, %v1656_v48  ;;  %v1561_v47 = vadd.f32 %v1560_v18, %v4373_v55  ;;  %v1609_v5 = vpop.f32.mrf.mxu1 }
 0x1bc   :  { %v4662_v20 = vadd.f32 %v1609_v5, %v1561_v47  ;;  %v5214_v47 = vld [vmem:[#allocation5_spill] sm:$0xff] }
 0x1be   :  { %5210 = vst [vmem:[#allocation4_spill] sm:$0xff] %v4662_v20  ;;  %v3185_v20 = vld [vmem:[%s5127_s1 + $0x26c] sm:$0xf] }
 0x1c0   :  { %v1658_v36 = vpop.f32.mrf.mxu2 }
 0x1c1   :  { %v1707_v60 = vpop.f32.mrf.mxu3  ;;  %v1563_v55 = vpop.f32.mrf.mxu0 }
 0x1c2   :  { %v4666_v48 = vadd.f32 %v1707_v60, %v1658_v36  ;;  %v1564_v33 = vadd.f32 %v1563_v55, %v4401_v42  ;;  %v1612_v21 = vpop.f32.mrf.mxu1  ;;  %v2888_v42 = vld [vmem:[%s5127_s1 + $0x378] sm:$0xf0]  ;;  %v3241_v55 = vld [vmem:[%s5127_s1 + $0x42c] sm:$0xf] }
 0x1c3   :  { %v2891_v36 = vor.u32 %v3217_v49, %v2888_v42  ;;  %v2632_v60 = vld [vmem:[%s5127_s1 + $0x178] sm:$0xf0] }
 0x1c4   :  { %v4669_v18 = vadd.f32 %v1612_v21, %v1564_v33  ;;  %1758 = vmatmul.bf16.gmra.mxu0 %v5212_v26  ;;  %1807 = vmatmul.bf16.gmra.mxu1 %v3684_v45  ;;  %v2984_v33 = vld [vmem:[%s5127_s1 + $0x438] sm:$0xf0] }
 0x1c5   :  { %3038 = vmatmul.msk.bf16.gmra.mxu2 %vm1127_vm0, %v4076_v13  ;;  %v2987_v5 = vor.u32 %v3241_v55, %v2984_v33 }
 0x1c6   :  { %5211 = vst [vmem:[#allocation32_spill] sm:$0xff] %v4669_v18  ;;  %1905 = vmatmul.bf16.gmra.mxu3 %v5214_v47  ;;  %v2635_v47 = vor.u32 %v3153_v53, %v2632_v60  ;;  %2038 = vmatpush.bf16.msra.mxu2 %v2891_v36  ;;  %v2763_v53 = vor.u32 %v3185_v20, %v2760_v14  ;;  %v3213_v20 = vld [vmem:[%s5127_s1 + $0x34c] sm:$0xf] }
 0x1c7   :  { %2089 = vmatpush.bf16.msra.mxu3 %v2987_v5 }
 0x1c8   :  { %v1661_v21 = vpop.f32.mrf.mxu2  ;;  %1940 = vmatpush.bf16.msra.mxu0 %v2635_v47  ;;  %1989 = vmatpush.bf16.msra.mxu1 %v2763_v53  ;;  %v5216_v47 = vld [vmem:[#allocation9_spill] sm:$0xff] }
 0x1c9   :  { %v1710_v44 = vpop.f32.mrf.mxu3  ;;  %v1565_v18 = vpop.f32.mrf.mxu0  ;;  %v2616_v53 = vld [vmem:[%s5127_s1 + $0x158] sm:$0xf0] }
 0x1ca   :  { %v4696_v0 = vadd.f32 %v1710_v44, %v1661_v21  ;;  %v1566_v49 = vadd.f32 %v1565_v18, %v4412_v43  ;;  %v1614_v42 = vpop.f32.mrf.mxu1  ;;  %v3181_v44 = vld [vmem:[%s5127_s1 + $0x24c] sm:$0xf] }
 0x1cc   :  { %v4705_v60 = vadd.f32 %v1614_v42, %v1566_v49  ;;  %v3149_v49 = vld [vmem:[%s5127_s1 + $0x14c] sm:$0xf] }
 0x1d0   :  { %v1663_v36 = vpop.f32.mrf.mxu2 }
 0x1d1   :  { %v1712_v43 = vpop.f32.mrf.mxu3  ;;  %v1568_v18 = vpop.f32.mrf.mxu0 }
 0x1d2   :  { %v4709_v55 = vadd.f32 %v1712_v43, %v1663_v36  ;;  %v1569_v5 = vadd.f32 %v1568_v18, %v4434_v22  ;;  %v1617_v33 = vpop.f32.mrf.mxu1  ;;  %v2872_v22 = vld [vmem:[%s5127_s1 + $0x358] sm:$0xf0]  ;;  %v2619_v43 = vor.u32 %v3149_v49, %v2616_v53 }
 0x1d3   :  { %v2875_v42 = vor.u32 %v3213_v20, %v2872_v22  ;;  %v2744_v20 = vld [vmem:[%s5127_s1 + $0x258] sm:$0xf0] }
 0x1d4   :  { %v4712_v21 = vadd.f32 %v1617_v33, %v1569_v5  ;;  %1763 = vmatmul.bf16.gmra.mxu0 %v5216_v47  ;;  %1812 = vmatmul.bf16.gmra.mxu1 %v3744_v9  ;;  %v2747_v22 = vor.u32 %v3181_v44, %v2744_v20  ;;  %v3209_v20 = vld [vmem:[%s5127_s1 + $0x32c] sm:$0xf] }
 0x1d5   :  { %3039 = vmatmul.msk.bf16.gmra.mxu2 %vm1127_vm0, %v4117_v16  ;;  %1941 = vmatpush.bf16.msra.mxu0 %v2619_v43 }
 0x1d6   :  { %5215 = vst [vmem:[#allocation7_spill] sm:$0xff] %v4712_v21  ;;  %1910 = vmatmul.bf16.gmra.mxu3 %v3738_v6  ;;  %2039 = vmatpush.bf16.msra.mxu2 %v2875_v42 }
 0x1d7   :  { %1990 = vmatpush.bf16.msra.mxu1 %v2747_v22  ;;  %v3145_v22 = vld [vmem:[%s5127_s1 + $0x12c] sm:$0xf] }
 0x1d8   :  { %v1666_v36 = vpop.f32.mrf.mxu2 }
 0x1d9   :  { %v1715_v6 = vpop.f32.mrf.mxu3  ;;  %v1570_v18 = vpop.f32.mrf.mxu0 }
 0x1da   :  { %v4733_v5 = vadd.f32 %v1715_v6, %v1666_v36  ;;  %v1571_v33 = vadd.f32 %v1570_v18, %v4445_v15  ;;  %v1619_v14 = vpop.f32.mrf.mxu1 }
 0x1dc   :  { %v4742_v21 = vadd.f32 %v1619_v14, %v1571_v33  ;;  %v5221_v33 = vld [vmem:[#allocation10_spill] sm:$0xff] }
 0x1de   :  { %5217 = vst [vmem:[#allocation5_spill] sm:$0xff] %v4742_v21  ;;  %v3177_v21 = vld [vmem:[%s5127_s1 + $0x22c] sm:$0xf] }
 0x1e0   :  { %v1668_v42 = vpop.f32.mrf.mxu2 }
 0x1e1   :  { %v1717_v53 = vpop.f32.mrf.mxu3  ;;  %v1573_v15 = vpop.f32.mrf.mxu0 }
 0x1e2   :  { %v4746_v36 = vadd.f32 %v1717_v53, %v1668_v42  ;;  %v1574_v43 = vadd.f32 %v1573_v15, %v4473_v31  ;;  %v1622_v6 = vpop.f32.mrf.mxu1  ;;  %v2856_v31 = vld [vmem:[%s5127_s1 + $0x338] sm:$0xf0]  ;;  %v3237_v15 = vld [vmem:[%s5127_s1 + $0x40c] sm:$0xf] }
 0x1e3   :  { %v2859_v42 = vor.u32 %v3209_v20, %v2856_v31  ;;  %v2600_v53 = vld [vmem:[%s5127_s1 + $0x138] sm:$0xf0] }
 0x1e4   :  { %v4749_v18 = vadd.f32 %v1622_v6, %v1574_v43  ;;  %1768 = vmatmul.bf16.gmra.mxu0 %v5219_v37  ;;  %1817 = vmatmul.bf16.gmra.mxu1 %v3798_v34  ;;  %v2968_v43 = vld [vmem:[%s5127_s1 + $0x418] sm:$0xf0] }
 0x1e5   :  { %3040 = vmatmul.msk.bf16.gmra.mxu2 %vm1127_vm0, %v4152_v25  ;;  %v2971_v14 = vor.u32 %v3237_v15, %v2968_v43 }
 0x1e6   :  { %5218 = vst [vmem:[#allocation9_spill] sm:$0xff] %v4749_v18  ;;  %1915 = vmatmul.bf16.gmra.mxu3 %v5221_v33  ;;  %v2603_v33 = vor.u32 %v3145_v22, %v2600_v53  ;;  %2040 = vmatpush.bf16.msra.mxu2 %v2859_v42  ;;  %v2731_v22 = vor.u32 %v3177_v21, %v2728_v3  ;;  %v3205_v21 = vld [vmem:[%s5127_s1 + $0x30c] sm:$0xf] }
 0x1e7   :  { %2090 = vmatpush.bf16.msra.mxu3 %v2971_v14 }
 0x1e8   :  { %v1671_v6 = vpop.f32.mrf.mxu2  ;;  %1942 = vmatpush.bf16.msra.mxu0 %v2603_v33  ;;  %1991 = vmatpush.bf16.msra.mxu1 %v2731_v22  ;;  %v5224_v33 = vld [vmem:[#allocation14_spill] sm:$0xff]  ;;  %v2584_v22 = vld [vmem:[%s5127_s1 + $0x118] sm:$0xf0] }
 0x1e9   :  { %v1720_v49 = vpop.f32.mrf.mxu3  ;;  %v1575_v18 = vpop.f32.mrf.mxu0 }
 0x1ea   :  { %v4776_v44 = vadd.f32 %v1720_v49, %v1671_v6  ;;  %v1576_v20 = vadd.f32 %v1575_v18, %v4484_v32  ;;  %v1624_v31 = vpop.f32.mrf.mxu1  ;;  %v3173_v49 = vld [vmem:[%s5127_s1 + $0x20c] sm:$0xf] }
 0x1ec   :  { %v4785_v53 = vadd.f32 %v1624_v31, %v1576_v20  ;;  %v3141_v20 = vld [vmem:[%s5127_s1 + $0x10c] sm:$0xf] }
 0x1ee   :  { %5222 = vst [vmem:[#allocation12_spill] sm:$0xff] %v4785_v53 }
 0x1f0   :  { %v1673_v42 = vpop.f32.mrf.mxu2 }
 0x1f1   :  { %v1722_v32 = vpop.f32.mrf.mxu3  ;;  %v1578_v18 = vpop.f32.mrf.mxu0 }
 0x1f2   :  { %v4789_v15 = vadd.f32 %v1722_v32, %v1673_v42  ;;  %v1579_v14 = vadd.f32 %v1578_v18, %v4506_v7  ;;  %v1627_v43 = vpop.f32.mrf.mxu1  ;;  %v2840_v7 = vld [vmem:[%s5127_s1 + $0x318] sm:$0xf0]  ;;  %v2587_v32 = vor.u32 %v3141_v20, %v2584_v22 }
 0x1f3   :  { %v2843_v31 = vor.u32 %v3205_v21, %v2840_v7  ;;  %v2712_v21 = vld [vmem:[%s5127_s1 + $0x218] sm:$0xf0] }
 0x1f4   :  { %v4792_v6 = vadd.f32 %v1627_v43, %v1579_v14  ;;  %1773 = vmatmul.bf16.gmra.mxu0 %v5224_v33  ;;  %1822 = vmatmul.bf16.gmra.mxu1 %v3858_v2  ;;  %v2715_v7 = vor.u32 %v3173_v49, %v2712_v21  ;;  %v5228_v49 = vld [vmem:[#allocation28_spill] sm:$0xff] }
 0x1f5   :  { %3041 = vmatmul.msk.bf16.gmra.mxu2 %vm1127_vm0, %v4193_v51  ;;  %1943 = vmatpush.bf16.msra.mxu0 %v2587_v32 }
 0x1f6   :  { %5223 = vst [vmem:[#allocation10_spill] sm:$0xff] %v4792_v6  ;;  %1920 = vmatmul.bf16.gmra.mxu3 %v3852_v63  ;;  %2041 = vmatpush.bf16.msra.mxu2 %v2843_v31 }
 0x1f7   :  { %1992 = vmatpush.bf16.msra.mxu1 %v2715_v7 }
 0x1f8   :  { %v1676_v42 = vpop.f32.mrf.mxu2 }
 0x1f9   :  { %v1725_v63 = vpop.f32.mrf.mxu3  ;;  %v1580_v18 = vpop.f32.mrf.mxu0 }
 0x1fa   :  { %v4813_v14 = vadd.f32 %v1725_v63, %v1676_v42  ;;  %v1581_v43 = vadd.f32 %v1580_v18, %v4517_v23  ;;  %v1629_v3 = vpop.f32.mrf.mxu1 }
 0x1fc   :  { %v4822_v6 = vadd.f32 %v1629_v3, %v1581_v43  ;;  %v5229_v43 = vld [vmem:[#allocation15_spill] sm:$0xff] }
 0x1fe   :  { %5225 = vst [vmem:[#allocation14_spill] sm:$0xff] %v4822_v6 }
 0x200   :  { %v1678_v31 = vpop.f32.mrf.mxu2 }
 0x201   :  { %v1727_v22 = vpop.f32.mrf.mxu3  ;;  %v1583_v23 = vpop.f32.mrf.mxu0 }
 0x202   :  { %v4826_v42 = vadd.f32 %v1727_v22, %v1678_v31  ;;  %v1584_v32 = vadd.f32 %v1583_v23, %v4551_v19  ;;  %v1632_v63 = vpop.f32.mrf.mxu1 }
 0x204   :  { %v4829_v18 = vadd.f32 %v1632_v63, %v1584_v32  ;;  %1778 = vmatmul.bf16.gmra.mxu0 %v5227_v62  ;;  %1827 = vmatmul.bf16.gmra.mxu1 %v3912_v35 }
 0x205   :  { %3042 = vmatmul.msk.bf16.gmra.mxu2 %vm1127_vm0, %v4228_v38 }
 0x206   :  { %5226 = vst [vmem:[#allocation33_spill] sm:$0xff] %v4829_v18  ;;  %1925 = vmatmul.bf16.gmra.mxu3 %v5229_v43 }
 0x208   :  { %v1681_v21 = vpop.f32.mrf.mxu2 }
 0x209   :  { %v1730_v7 = vpop.f32.mrf.mxu3  ;;  %v1585_v31 = vpop.f32.mrf.mxu0 }
 0x20a   :  { %v4838_v22 = vadd.f32 %v1730_v7, %v1681_v21  ;;  %v1586_v19 = vadd.f32 %v1585_v31, %v4556_v8  ;;  %v1634_v23 = vpop.f32.mrf.mxu1  ;;  %v5232_v21 = vld [vmem:[#allocation19_spill] sm:$0xff] }
 0x20c   :  { %v4841_v32 = vadd.f32 %v1634_v23, %v1586_v19 }
 0x20e   :  { %5230 = vst [vmem:[#allocation17_spill] sm:$0xff] %v4841_v32 }
 0x210   :  { %v1683_v20 = vpop.f32.mrf.mxu2 }
 0x211   :  { %v1732_v6 = vpop.f32.mrf.mxu3  ;;  %v1588_v59 = vpop.f32.mrf.mxu0 }
 0x212   :  { %v4845_v53 = vadd.f32 %v1732_v6, %v1683_v20  ;;  %v1589_v43 = vadd.f32 %v1588_v59, %v4584_v29  ;;  %v1637_v3 = vpop.f32.mrf.mxu1 }
 0x214   :  { %v4848_v18 = vadd.f32 %v1637_v3, %v1589_v43  ;;  %1783 = vmatmul.bf16.gmra.mxu0 %v5232_v21  ;;  %1832 = vmatmul.bf16.gmra.mxu1 %v3972_v11 }
 0x215   :  { %3043 = vmatmul.msk.bf16.gmra.mxu2 %vm1127_vm0, %v4269_v58 }
 0x216   :  { %5231 = vst [vmem:[#allocation28_spill] sm:$0xff] %v4848_v18  ;;  %1930 = vmatmul.bf16.gmra.mxu3 %v3966_v4 }
 0x218   :  { %v1686_v7 = vpop.f32.mrf.mxu2 }
 0x219   :  { %v1735_v6 = vpop.f32.mrf.mxu3  ;;  %v1590_v20 = vpop.f32.mrf.mxu0 }
 0x21a   :  { %v4857_v31 = vadd.f32 %v1735_v6, %v1686_v7  ;;  %v1591_v59 = vadd.f32 %v1590_v20, %v4587_v50  ;;  %v1639_v29 = vpop.f32.mrf.mxu1 }
 0x21c   :  { %v4860_v3 = vadd.f32 %v1639_v29, %v1591_v59 }
 0x21e   :  { %v2147_v19 = vmax.f32 %v4576_v12, %v4860_v3 }
 0x220   :  { %v1688_v23 = vpop.f32.mrf.mxu2 }
 0x221   :  { %v1737_v43 = vpop.f32.mrf.mxu3  ;;  %v1749_v63 = vpop.f32.mrf.mxu0 }
 0x222   :  { %v4864_v32 = vadd.f32 %v1737_v43, %v1688_v23  ;;  %v1750_v4 = vadd.f32 %v1749_v63, %v4616_v41  ;;  %v1798_v8 = vpop.f32.mrf.mxu1  ;;  %v5234_v43 = vld [vmem:[#allocation3_spill] sm:$0xff] }
 0x224   :  { %v1799_v18 = vadd.f32 %v1798_v8, %v1750_v4  ;;  %1944 = vmatmul.bf16.vlgmr.msra.gmra.mxu0 %v5233_v39  ;;  %1993 = vmatmul.bf16.vlgmr.msra.gmra.mxu1 %v3556_v54 }
 0x225   :  { %2042 = vmatmul.bf16.vlgmr.msra.gmra.mxu2 %v3564_v57 }
 0x226   :  { %3044 = vmatmul.msk.bf16.vlgmr.msra.gmra.mxu3 %vm1127_vm0, %v4002_v27 }
 0x228   :  { %v1847_v50 = vpop.f32.mrf.mxu2 }
 0x229   :  { %v4872_v7 = vadd.f32 %v1847_v50, %v1799_v18  ;;  %v4874_v6 = vpop.f32.mrf.mxu3  ;;  %v1751_v20 = vpop.f32.mrf.mxu0 }
 0x22a   :  { %v1752_v59 = vadd.f32 %v1751_v20, %v4629_v30  ;;  %v1800_v41 = vpop.f32.mrf.mxu1 }
 0x22c   :  { %v1801_v63 = vadd.f32 %v1800_v41, %v1752_v59 }
 0x230   :  { %v1849_v8 = vpop.f32.mrf.mxu2 }
 0x231   :  { %v4877_v29 = vadd.f32 %v1849_v8, %v1801_v63  ;;  %v4879_v39 = vpop.f32.mrf.mxu3  ;;  %v1754_v54 = vpop.f32.mrf.mxu0 }
 0x232   :  { %v1755_v57 = vadd.f32 %v1754_v54, %v4653_v1  ;;  %v1803_v23 = vpop.f32.mrf.mxu1 }
 0x234   :  { %v1804_v27 = vadd.f32 %v1803_v23, %v1755_v57  ;;  %1949 = vmatmul.bf16.gmra.mxu0 %v5234_v43  ;;  %1998 = vmatmul.bf16.gmra.mxu1 %v5209_v52  ;;  %v5235_v57 = vld [vmem:[#allocation6_spill] sm:$0xff] }
 0x235   :  { %2047 = vmatmul.bf16.gmra.mxu2 %v3630_v24 }
 0x236   :  { %3045 = vmatmul.msk.bf16.gmra.mxu3 %vm1127_vm0, %v4041_v17 }
 0x238   :  { %v1852_v30 = vpop.f32.mrf.mxu2 }
 0x239   :  { %v4887_v18 = vadd.f32 %v1852_v30, %v1804_v27  ;;  %v4889_v4 = vpop.f32.mrf.mxu3  ;;  %v1756_v50 = vpop.f32.mrf.mxu0 }
 0x23a   :  { %v1757_v20 = vadd.f32 %v1756_v50, %v4666_v48  ;;  %v1805_v1 = vpop.f32.mrf.mxu1 }
 0x23c   :  { %v1806_v59 = vadd.f32 %v1805_v1, %v1757_v20 }
 0x240   :  { %v1854_v41 = vpop.f32.mrf.mxu2 }
 0x241   :  { %v4892_v63 = vadd.f32 %v1854_v41, %v1806_v59  ;;  %v4894_v8 = vpop.f32.mrf.mxu3  ;;  %v1759_v52 = vpop.f32.mrf.mxu0 }
 0x242   :  { %v1760_v24 = vadd.f32 %v1759_v52, %v4696_v0  ;;  %v1808_v54 = vpop.f32.mrf.mxu1  ;;  %v5236_v52 = vld [vmem:[#allocation8_spill] sm:$0xff] }
 0x244   :  { %v1809_v17 = vadd.f32 %v1808_v54, %v1760_v24  ;;  %1954 = vmatmul.bf16.gmra.mxu0 %v5235_v57  ;;  %2003 = vmatmul.bf16.gmra.mxu1 %v5212_v26 }
 0x245   :  { %2052 = vmatmul.bf16.gmra.mxu2 %v3684_v45 }
 0x246   :  { %3046 = vmatmul.msk.bf16.gmra.mxu3 %vm1127_vm0, %v4076_v13 }
 0x248   :  { %v1857_v48 = vpop.f32.mrf.mxu2 }
 0x249   :  { %v4902_v23 = vadd.f32 %v1857_v48, %v1809_v17  ;;  %v4904_v27 = vpop.f32.mrf.mxu3  ;;  %v1761_v43 = vpop.f32.mrf.mxu0 }
 0x24a   :  { %v1762_v30 = vadd.f32 %v1761_v43, %v4709_v55  ;;  %v1810_v0 = vpop.f32.mrf.mxu1 }
 0x24c   :  { %v1811_v50 = vadd.f32 %v1810_v0, %v1762_v30 }
 0x250   :  { %v1859_v20 = vpop.f32.mrf.mxu2 }
 0x251   :  { %v4907_v1 = vadd.f32 %v1859_v20, %v1811_v50  ;;  %v4909_v59 = vpop.f32.mrf.mxu3  ;;  %v1764_v26 = vpop.f32.mrf.mxu0  ;;  %v5237_v20 = vld [vmem:[#allocation11_spill] sm:$0xff] }
 0x252   :  { %v1765_v45 = vadd.f32 %v1764_v26, %v4733_v5  ;;  %v1813_v41 = vpop.f32.mrf.mxu1 }
 0x254   :  { %v1814_v13 = vadd.f32 %v1813_v41, %v1765_v45  ;;  %1959 = vmatmul.bf16.gmra.mxu0 %v5236_v52  ;;  %2008 = vmatmul.bf16.gmra.mxu1 %v5216_v47 }
 0x255   :  { %2057 = vmatmul.bf16.gmra.mxu2 %v3744_v9 }
 0x256   :  { %3047 = vmatmul.msk.bf16.gmra.mxu3 %vm1127_vm0, %v4117_v16 }
 0x258   :  { %v1862_v55 = vpop.f32.mrf.mxu2 }
 0x259   :  { %v4917_v24 = vadd.f32 %v1862_v55, %v1814_v13  ;;  %v4919_v54 = vpop.f32.mrf.mxu3  ;;  %v1766_v17 = vpop.f32.mrf.mxu0 }
 0x25a   :  { %v1767_v57 = vadd.f32 %v1766_v17, %v4746_v36  ;;  %v1815_v5 = vpop.f32.mrf.mxu1 }
 0x25c   :  { %v1816_v48 = vadd.f32 %v1815_v5, %v1767_v57 }
 0x260   :  { %v1864_v43 = vpop.f32.mrf.mxu2 }
 0x261   :  { %v4922_v30 = vadd.f32 %v1864_v43, %v1816_v48  ;;  %v4924_v0 = vpop.f32.mrf.mxu3  ;;  %v1769_v47 = vpop.f32.mrf.mxu0  ;;  %v5238_v48 = vld [vmem:[#allocation13_spill] sm:$0xff] }
 0x262   :  { %v1770_v9 = vadd.f32 %v1769_v47, %v4776_v44  ;;  %v1818_v50 = vpop.f32.mrf.mxu1 }
 0x264   :  { %v1819_v16 = vadd.f32 %v1818_v50, %v1770_v9  ;;  %1964 = vmatmul.bf16.gmra.mxu0 %v5237_v20  ;;  %2013 = vmatmul.bf16.gmra.mxu1 %v5219_v37 }
 0x265   :  { %2062 = vmatmul.bf16.gmra.mxu2 %v3798_v34 }
 0x266   :  { %3048 = vmatmul.msk.bf16.gmra.mxu3 %vm1127_vm0, %v4152_v25 }
 0x268   :  { %v1867_v36 = vpop.f32.mrf.mxu2 }
 0x269   :  { %v4932_v26 = vadd.f32 %v1867_v36, %v1819_v16  ;;  %v4934_v45 = vpop.f32.mrf.mxu3  ;;  %v1771_v41 = vpop.f32.mrf.mxu0 }
 0x26a   :  { %v1772_v13 = vadd.f32 %v1771_v41, %v4789_v15  ;;  %v1820_v44 = vpop.f32.mrf.mxu1 }
 0x26c   :  { %v1821_v52 = vadd.f32 %v1820_v44, %v1772_v13  ;;  %v5239_v44 = vld [vmem:[#allocation16_spill] sm:$0xff] }
 0x270   :  { %v1869_v55 = vpop.f32.mrf.mxu2 }
 0x271   :  { %v4937_v17 = vadd.f32 %v1869_v55, %v1821_v52  ;;  %v4939_v57 = vpop.f32.mrf.mxu3  ;;  %v1774_v37 = vpop.f32.mrf.mxu0 }
 0x272   :  { %v1775_v34 = vadd.f32 %v1774_v37, %v4813_v14  ;;  %v1823_v5 = vpop.f32.mrf.mxu1 }
 0x274   :  { %v1824_v25 = vadd.f32 %v1823_v5, %v1775_v34  ;;  %1969 = vmatmul.bf16.gmra.mxu0 %v5238_v48  ;;  %2018 = vmatmul.bf16.gmra.mxu1 %v5224_v33 }
 0x275   :  { %2067 = vmatmul.bf16.gmra.mxu2 %v3858_v2 }
 0x276   :  { %3049 = vmatmul.msk.bf16.gmra.mxu3 %vm1127_vm0, %v4193_v51 }
 0x278   :  { %v1872_v15 = vpop.f32.mrf.mxu2 }
 0x279   :  { %v4947_v43 = vadd.f32 %v1872_v15, %v1824_v25  ;;  %v4949_v47 = vpop.f32.mrf.mxu3  ;;  %v1776_v9 = vpop.f32.mrf.mxu0 }
 0x27a   :  { %v1777_v50 = vadd.f32 %v1776_v9, %v4826_v42  ;;  %v1825_v14 = vpop.f32.mrf.mxu1 }
 0x27c   :  { %v1826_v16 = vadd.f32 %v1825_v14, %v1777_v50  ;;  %v5240_v50 = vld [vmem:[#allocation18_spill] sm:$0xff] }
 0x280   :  { %v1874_v20 = vpop.f32.mrf.mxu2 }
 0x281   :  { %v4952_v36 = vadd.f32 %v1874_v20, %v1826_v16  ;;  %v4954_v41 = vpop.f32.mrf.mxu3  ;;  %v1779_v33 = vpop.f32.mrf.mxu0 }
 0x282   :  { %v1780_v2 = vadd.f32 %v1779_v33, %v4838_v22  ;;  %v1828_v13 = vpop.f32.mrf.mxu1 }
 0x284   :  { %v1829_v51 = vadd.f32 %v1828_v13, %v1780_v2  ;;  %1974 = vmatmul.bf16.gmra.mxu0 %v5239_v44  ;;  %2023 = vmatmul.bf16.gmra.mxu1 %v5227_v62 }
 0x285   :  { %2072 = vmatmul.bf16.gmra.mxu2 %v3912_v35 }
 0x286   :  { %3050 = vmatmul.msk.bf16.gmra.mxu3 %vm1127_vm0, %v4228_v38 }
 0x288   :  { %v1877_v42 = vpop.f32.mrf.mxu2 }
 0x289   :  { %v4962_v52 = vadd.f32 %v1877_v42, %v1829_v51  ;;  %v4964_v55 = vpop.f32.mrf.mxu3  ;;  %v1781_v37 = vpop.f32.mrf.mxu0 }
 0x28a   :  { %v1782_v34 = vadd.f32 %v1781_v37, %v4845_v53  ;;  %v1830_v22 = vpop.f32.mrf.mxu1 }
 0x28c   :  { %v1831_v5 = vadd.f32 %v1830_v22, %v1782_v34 }
 0x290   :  { %v1879_v25 = vpop.f32.mrf.mxu2 }
 0x291   :  { %v4967_v48 = vadd.f32 %v1879_v25, %v1831_v5  ;;  %v4969_v15 = vpop.f32.mrf.mxu3  ;;  %v1784_v62 = vpop.f32.mrf.mxu0 }
 0x292   :  { %v1785_v35 = vadd.f32 %v1784_v62, %v4857_v31  ;;  %v1833_v9 = vpop.f32.mrf.mxu1 }
 0x294   :  { %v1834_v38 = vadd.f32 %v1833_v9, %v1785_v35  ;;  %1979 = vmatmul.bf16.gmra.mxu0 %v5240_v50  ;;  %2028 = vmatmul.bf16.gmra.mxu1 %v5232_v21  ;;  %v5241_v9 = vld [vmem:[#allocation30_spill] sm:$0xff] }
 0x295   :  { %2077 = vmatmul.bf16.gmra.mxu2 %v3972_v11 }
 0x296   :  { %3051 = vmatmul.msk.bf16.gmra.mxu3 %vm1127_vm0, %v4269_v58 }
 0x298   :  { %v1882_v53 = vpop.f32.mrf.mxu2 }
 0x299   :  { %v4977_v14 = vadd.f32 %v1882_v53, %v1834_v38  ;;  %v4979_v16 = vpop.f32.mrf.mxu3  ;;  %v1786_v20 = vpop.f32.mrf.mxu0  ;;  %v5242_v38 = vmax.f32 %v4299_v40, %v5241_v9  ;;  %v5243_v40 = vmax.f32 %v4327_v10, %v4625_v28 }
 0x29a   :  { %v1787_v33 = vadd.f32 %v1786_v20, %v4864_v32  ;;  %v1835_v31 = vpop.f32.mrf.mxu1 }
 0x29c   :  { %v1836_v2 = vadd.f32 %v1835_v31, %v1787_v33 }
 0x2a0   :  { %v1884_v13 = vpop.f32.mrf.mxu2 }
 0x2a1   :  { %v4982_v51 = vadd.f32 %v1884_v13, %v1836_v2  ;;  %v4984_v44 = vpop.f32.mrf.mxu3  ;;  %v1945_v21 = vpop.f32.mrf.mxu0 }
 0x2a2   :  { %v1994_v11 = vpop.f32.mrf.mxu1  ;;  %v1946_v42 = vadd.f32 %v1945_v21, %v4874_v6  ;;  %v4995_v6 = vld [vmem:[%s5129_s2] ss:$0 sm:$0xff] }
 0x2a4   :  { %v1995_v58 = vadd.f32 %v1994_v11, %v1946_v42 }
 0x2a8   :  { %v2043_v37 = vpop.f32.mrf.mxu2 }
 0x2a9   :  { %v2044_v34 = vadd.f32 %v2043_v37, %v1995_v58  ;;  %v2092_v22 = vpop.f32.mrf.mxu3  ;;  %v1947_v5 = vpop.f32.mrf.mxu0 }
 0x2aa   :  { %v1996_v25 = vpop.f32.mrf.mxu1  ;;  %v1948_v32 = vadd.f32 %v1947_v5, %v4879_v39 }
 0x2ab   :  { %v2093_v62 = vadd.f32 %v2092_v22, %v2044_v34 }
 0x2ac   :  { %v1997_v53 = vadd.f32 %v1996_v25, %v1948_v32 }
 0x2ad   :  { %v2148_v35 = vmax.f32 %v4872_v7, %v2093_v62 }
 0x2af   :  { %v2164_v50 = vmax.f32 %v5242_v38, %v2148_v35  ;;  %v3285_v35 = vmov 0.0   ;;  %v5244_v38 = vld [vmem:[#allocation20_spill] sm:$0xff] }
 0x2b0   :  { %v2045_v20 = vpop.f32.mrf.mxu2 }
 0x2b1   :  { %v2046_v33 = vadd.f32 %v2045_v20, %v1997_v53  ;;  %v2094_v31 = vpop.f32.mrf.mxu3  ;;  %v1950_v2 = vpop.f32.mrf.mxu0  ;;  %v2184_v7 = vadd.f32 %v4995_v6, %v2164_v50  ;;  %v5245_v50 = vld [vmem:[#allocation31_spill] sm:$0xff] }
 0x2b2   :  { %v1999_v13 = vpop.f32.mrf.mxu1  ;;  %v1951_v39 = vadd.f32 %v1950_v2, %v4889_v4  ;;  %v5246_v53 = vmax.f32 %v5244_v38, %v5245_v50  ;;  %v5250_v38 = vld [vmem:[#allocation22_spill] sm:$0xff]  ;;  %v5251_v50 = vld [vmem:[#allocation32_spill] sm:$0xff] }
 0x2b3   :  { %v2095_v21 = vadd.f32 %v2094_v31, %v2046_v33  ;;  %vm2200_vm1 = vcmp.gt.f32.partialorder %v2184_v7, 3.494438 }
 0x2b4   :  { %v2000_v58 = vadd.f32 %v1999_v13, %v1951_v39 }
 0x2b5   :  { %v2149_v11 = vmax.f32 %v4877_v29, %v2095_v21  ;;  %v3052_v29 = vsel %vm2200_vm1, 1.0, %v3285_v35 }
 0x2b7   :  { %v2165_v42 = vmax.f32 %v5243_v40, %v2149_v11  ;;  %v5247_v40 = vld [vmem:[#allocation21_spill] sm:$0xff] }
 0x2b8   :  { %v2048_v37 = vpop.f32.mrf.mxu2 }
 0x2b9   :  { %v2185_v34 = vadd.f32 %v4995_v6, %v2165_v42  ;;  %v2049_v22 = vadd.f32 %v2048_v37, %v2000_v58  ;;  %v2097_v5 = vpop.f32.mrf.mxu3  ;;  %v1952_v25 = vpop.f32.mrf.mxu0  ;;  %v5248_v42 = vld [vmem:[#allocation4_spill] sm:$0xff] }
 0x2ba   :  { %v2001_v62 = vpop.f32.mrf.mxu1  ;;  %v1953_v4 = vadd.f32 %v1952_v25, %v4894_v8  ;;  %v5249_v58 = vmax.f32 %v5247_v40, %v5248_v42 }
 0x2bb   :  { %vm2201_vm2 = vcmp.gt.f32.partialorder %v2185_v34, 3.494438  ;;  %v2098_v32 = vadd.f32 %v2097_v5, %v2049_v22 }
 0x2bc   :  { %v3053_v9 = vsel %vm2201_vm2, 1.0, %v3285_v35  ;;  %v2002_v33 = vadd.f32 %v2001_v62, %v1953_v4 }
 0x2bd   :  { %v3253_v10 = vpack.c.bf16 %v3053_v9, %v3052_v29  ;;  %v2150_v28 = vmax.f32 %v4887_v18, %v2098_v32 }
 0x2bf   :  { %3254 = vst [vmem:[%s5130_s3] sm:$0xff] %v3253_v10   ;;  %v2166_v20 = vmax.f32 %v5246_v53, %v2150_v28  ;;  %v5252_v53 = vmax.f32 %v5250_v38, %v5251_v50 }
 0x2c0   :  { %v2050_v31 = vpop.f32.mrf.mxu2 }
 0x2c1   :  { %v2051_v2 = vadd.f32 %v2050_v31, %v2002_v33  ;;  %v2099_v8 = vpop.f32.mrf.mxu3  ;;  %v1955_v13 = vpop.f32.mrf.mxu0  ;;  %v2186_v11 = vadd.f32 %v4995_v6, %v2166_v20 }
 0x2c2   :  { %v2004_v21 = vpop.f32.mrf.mxu1  ;;  %v1956_v7 = vadd.f32 %v1955_v13, %v4904_v27 }
 0x2c3   :  { %v2100_v39 = vadd.f32 %v2099_v8, %v2051_v2  ;;  %vm2202_vm3 = vcmp.gt.f32.partialorder %v2186_v11, 3.494438  ;;  %v5253_v11 = vmax.f32 %v4399_v46, %v4705_v60  ;;  %v5254_v60 = vld [vmem:[#allocation23_spill] sm:$0xff] }
 0x2c4   :  { %v2005_v34 = vadd.f32 %v2004_v21, %v1956_v7  ;;  %v3054_v9 = vsel %vm2202_vm3, 1.0, %v3285_v35 }
 0x2c5   :  { %v2151_v18 = vmax.f32 %v4892_v63, %v2100_v39 }
 0x2c7   :  { %v2167_v37 = vmax.f32 %v5249_v58, %v2151_v18 }
 0x2c8   :  { %v2053_v22 = vpop.f32.mrf.mxu2 }
 0x2c9   :  { %v2187_v5 = vadd.f32 %v4995_v6, %v2167_v37  ;;  %v2054_v25 = vadd.f32 %v2053_v22, %v2005_v34  ;;  %v2102_v62 = vpop.f32.mrf.mxu3  ;;  %v1957_v32 = vpop.f32.mrf.mxu0 }
 0x2ca   :  { %v2006_v4 = vpop.f32.mrf.mxu1  ;;  %v1958_v27 = vadd.f32 %v1957_v32, %v4909_v59 }
 0x2cb   :  { %vm2203_vm4 = vcmp.gt.f32.partialorder %v2187_v5, 3.494438  ;;  %v2103_v29 = vadd.f32 %v2102_v62, %v2054_v25 }
 0x2cc   :  { %v3055_v63 = vsel %vm2203_vm4, 1.0, %v3285_v35  ;;  %v2007_v33 = vadd.f32 %v2006_v4, %v1958_v27  ;;  %v5255_v4 = vld [vmem:[#allocation7_spill] sm:$0xff] }
 0x2cd   :  { %v3256_v10 = vpack.c.bf16 %v3055_v63, %v3054_v9  ;;  %v2152_v28 = vmax.f32 %v4902_v23, %v2103_v29  ;;  %v5256_v29 = vmax.f32 %v5254_v60, %v5255_v4 }
 0x2cf   :  { %3276 = vst [vmem:[%s5130_s3 + $0x8] sm:$0xff] %v3256_v10   ;;  %v2168_v20 = vmax.f32 %v5252_v53, %v2152_v28 }
 0x2d0   :  { %v2055_v31 = vpop.f32.mrf.mxu2 }
 0x2d1   :  { %v2056_v2 = vadd.f32 %v2055_v31, %v2007_v33  ;;  %v2104_v8 = vpop.f32.mrf.mxu3  ;;  %v1960_v59 = vpop.f32.mrf.mxu0  ;;  %v2188_v7 = vadd.f32 %v4995_v6, %v2168_v20  ;;  %v5257_v33 = vld [vmem:[#allocation24_spill] sm:$0xff]  ;;  %v5258_v31 = vld [vmem:[#allocation5_spill] sm:$0xff] }
 0x2d2   :  { %v2009_v13 = vpop.f32.mrf.mxu1  ;;  %v1961_v39 = vadd.f32 %v1960_v59, %v4919_v54 }
 0x2d3   :  { %v2105_v21 = vadd.f32 %v2104_v8, %v2056_v2  ;;  %vm2204_vm5 = vcmp.gt.f32.partialorder %v2188_v7, 3.494438  ;;  %v5259_v2 = vmax.f32 %v5257_v33, %v5258_v31  ;;  %v5265_v31 = vld [vmem:[#allocation26_spill] sm:$0xff] }
 0x2d4   :  { %v2010_v40 = vadd.f32 %v2009_v13, %v1961_v39  ;;  %v3056_v62 = vsel %vm2204_vm5, 1.0, %v3285_v35 }
 0x2d5   :  { %v2153_v23 = vmax.f32 %v4907_v1, %v2105_v21 }
 0x2d7   :  { %v2169_v18 = vmax.f32 %v5253_v11, %v2153_v23 }
 0x2d8   :  { %v2058_v42 = vpop.f32.mrf.mxu2 }
 0x2d9   :  { %v2189_v58 = vadd.f32 %v4995_v6, %v2169_v18  ;;  %v2059_v37 = vadd.f32 %v2058_v42, %v2010_v40  ;;  %v2107_v34 = vpop.f32.mrf.mxu3  ;;  %v1962_v22 = vpop.f32.mrf.mxu0 }
 0x2da   :  { %v2011_v5 = vpop.f32.mrf.mxu1  ;;  %v1963_v54 = vadd.f32 %v1962_v22, %v4924_v0 }
 0x2db   :  { %vm2205_vm6 = vcmp.gt.f32.partialorder %v2189_v58, 3.494438  ;;  %v2108_v25 = vadd.f32 %v2107_v34, %v2059_v37  ;;  %v5260_v37 = vld [vmem:[#allocation25_spill] sm:$0xff] }
 0x2dc   :  { %v3057_v1 = vsel %vm2205_vm6, 1.0, %v3285_v35  ;;  %v2012_v9 = vadd.f32 %v2011_v5, %v1963_v54  ;;  %v5261_v34 = vld [vmem:[#allocation9_spill] sm:$0xff] }
 0x2dd   :  { %v3259_v32 = vpack.c.bf16 %v3057_v1, %v3056_v62  ;;  %v2154_v46 = vmax.f32 %v4917_v24, %v2108_v25  ;;  %v5262_v22 = vmax.f32 %v5260_v37, %v5261_v34 }
 0x2df   :  { %3277 = vst [vmem:[%s5130_s3 + $0x10] sm:$0xff] %v3259_v32   ;;  %v2170_v27 = vmax.f32 %v5256_v29, %v2154_v46  ;;  %v5263_v29 = vld [vmem:[#allocation12_spill] sm:$0xff] }
 0x2e0   :  { %v2060_v63 = vpop.f32.mrf.mxu2 }
 0x2e1   :  { %v2061_v10 = vadd.f32 %v2060_v63, %v2012_v9  ;;  %v2109_v28 = vpop.f32.mrf.mxu3  ;;  %v1965_v0 = vpop.f32.mrf.mxu0  ;;  %v2190_v20 = vadd.f32 %v4995_v6, %v2170_v27  ;;  %v5264_v27 = vmax.f32 %v4471_v61, %v5263_v29 }
 0x2e2   :  { %v2014_v38 = vpop.f32.mrf.mxu1  ;;  %v1966_v53 = vadd.f32 %v1965_v0, %v4934_v45 }
 0x2e3   :  { %v2110_v50 = vadd.f32 %v2109_v28, %v2061_v10  ;;  %vm2206_vm7 = vcmp.gt.f32.partialorder %v2190_v20, 3.494438 }
 0x2e4   :  { %v2015_v59 = vadd.f32 %v2014_v38, %v1966_v53  ;;  %v3058_v40 = vsel %vm2206_vm7, 1.0, %v3285_v35 }
 0x2e5   :  { %v2155_v24 = vmax.f32 %v4922_v30, %v2110_v50 }
 0x2e7   :  { %v2171_v8 = vmax.f32 %v5259_v2, %v2155_v24  ;;  %v5266_v2 = vld [vmem:[#allocation10_spill] sm:$0xff] }
 0x2e8   :  { %v2063_v13 = vpop.f32.mrf.mxu2 }
 0x2e9   :  { %v2191_v21 = vadd.f32 %v4995_v6, %v2171_v8  ;;  %v2064_v39 = vadd.f32 %v2063_v13, %v2015_v59  ;;  %v2112_v7 = vpop.f32.mrf.mxu3  ;;  %v1967_v23 = vpop.f32.mrf.mxu0  ;;  %v5267_v8 = vmax.f32 %v5265_v31, %v5266_v2 }
 0x2ea   :  { %v2016_v11 = vpop.f32.mrf.mxu1  ;;  %v1968_v45 = vadd.f32 %v1967_v23, %v4939_v57 }
 0x2eb   :  { %vm2207_vm8 = vcmp.gt.f32.partialorder %v2191_v21, 3.494438  ;;  %v2113_v18 = vadd.f32 %v2112_v7, %v2064_v39 }
 0x2ec   :  { %v3059_v30 = vsel %vm2207_vm8, 1.0, %v3285_v35  ;;  %v2017_v25 = vadd.f32 %v2016_v11, %v1968_v45 }
 0x2ed   :  { %v3262_v42 = vpack.c.bf16 %v3059_v30, %v3058_v40  ;;  %v2156_v58 = vmax.f32 %v4932_v26, %v2113_v18  ;;  %v5268_v40 = vld [vmem:[#allocation27_spill] sm:$0xff]  ;;  %v5269_v30 = vld [vmem:[#allocation14_spill] sm:$0xff] }
 0x2ef   :  { %3278 = vst [vmem:[%s5130_s3 + $0x18] sm:$0xff] %v3262_v42   ;;  %v2172_v5 = vmax.f32 %v5262_v22, %v2156_v58  ;;  %v5270_v42 = vmax.f32 %v5268_v40, %v5269_v30 }
 0x2f0   :  { %v2065_v54 = vpop.f32.mrf.mxu2 }
 0x2f1   :  { %v2066_v62 = vadd.f32 %v2065_v54, %v2017_v25  ;;  %v2114_v1 = vpop.f32.mrf.mxu3  ;;  %v1970_v57 = vpop.f32.mrf.mxu0  ;;  %v2192_v4 = vadd.f32 %v4995_v6, %v2172_v5 }
 0x2f2   :  { %v2019_v32 = vpop.f32.mrf.mxu1  ;;  %v1971_v60 = vadd.f32 %v1970_v57, %v4949_v47 }
 0x2f3   :  { %v2115_v46 = vadd.f32 %v2114_v1, %v2066_v62  ;;  %vm2208_vm9 = vcmp.gt.f32.partialorder %v2192_v4, 3.494438 }
 0x2f4   :  { %v2020_v63 = vadd.f32 %v2019_v32, %v1971_v60  ;;  %v3060_v24 = vsel %vm2208_vm9, 1.0, %v3285_v35  ;;  %v5271_v60 = vld [vmem:[#allocation33_spill] sm:$0xff] }
 0x2f5   :  { %v2157_v26 = vmax.f32 %v4937_v17, %v2115_v46  ;;  %v5272_v4 = vmax.f32 %v5228_v49, %v5271_v60 }
 0x2f7   :  { %v2173_v9 = vmax.f32 %v5264_v27, %v2157_v26 }
 0x2f8   :  { %v2068_v10 = vpop.f32.mrf.mxu2 }
 0x2f9   :  { %v2193_v28 = vadd.f32 %v4995_v6, %v2173_v9  ;;  %v2069_v0 = vadd.f32 %v2068_v10, %v2020_v63  ;;  %v2117_v38 = vpop.f32.mrf.mxu3  ;;  %v1972_v50 = vpop.f32.mrf.mxu0 }
 0x2fa   :  { %v2021_v53 = vpop.f32.mrf.mxu1  ;;  %v1973_v47 = vadd.f32 %v1972_v50, %v4954_v41  ;;  %v5273_v50 = vld [vmem:[#allocation17_spill] sm:$0xff] }
 0x2fb   :  { %vm2209_vm10 = vcmp.gt.f32.partialorder %v2193_v28, 3.494438  ;;  %v2118_v20 = vadd.f32 %v2117_v38, %v2069_v0 }
 0x2fc   :  { %v3061_v17 = vsel %vm2209_vm10, 1.0, %v3285_v35  ;;  %v2022_v13 = vadd.f32 %v2021_v53, %v1973_v47  ;;  %v5274_v53 = vmax.f32 %v4543_v56, %v5273_v50 }
 0x2fd   :  { %v3265_v33 = vpack.c.bf16 %v3061_v17, %v3060_v24  ;;  %v2158_v61 = vmax.f32 %v4947_v43, %v2118_v20 }
 0x2ff   :  { %3279 = vst [vmem:[%s5130_s3 + $0x20] sm:$0xff] %v3265_v33   ;;  %v2174_v59 = vmax.f32 %v5267_v8, %v2158_v61 }
 0x300   :  { %v2070_v21 = vpop.f32.mrf.mxu2 }
 0x301   :  { %v2071_v39 = vadd.f32 %v2070_v21, %v2022_v13  ;;  %v2119_v7 = vpop.f32.mrf.mxu3  ;;  %v1975_v41 = vpop.f32.mrf.mxu0  ;;  %v2194_v45 = vadd.f32 %v4995_v6, %v2174_v59  ;;  %v5275_v13 = vld [vmem:[#allocation29_spill] sm:$0xff]  ;;  %v5276_v21 = vld [vmem:[#allocation28_spill] sm:$0xff] }
 0x302   :  { %v2024_v23 = vpop.f32.mrf.mxu1  ;;  %v1976_v18 = vadd.f32 %v1975_v41, %v4964_v55 }
 0x303   :  { %v2120_v11 = vadd.f32 %v2119_v7, %v2071_v39  ;;  %vm2210_vm11 = vcmp.gt.f32.partialorder %v2194_v45, 3.494438  ;;  %v5277_v39 = vmax.f32 %v5275_v13, %v5276_v21 }
 0x304   :  { %v2025_v37 = vadd.f32 %v2024_v23, %v1976_v18  ;;  %v3062_v57 = vsel %vm2210_vm11, 1.0, %v3285_v35 }
 0x305   :  { %v2159_v43 = vmax.f32 %v4952_v36, %v2120_v11 }
 0x307   :  { %v2175_v58 = vmax.f32 %v5270_v42, %v2159_v43 }
 0x308   :  { %v2073_v34 = vpop.f32.mrf.mxu2 }
 0x309   :  { %v2195_v22 = vadd.f32 %v4995_v6, %v2175_v58  ;;  %v2074_v5 = vadd.f32 %v2073_v34, %v2025_v37  ;;  %v2122_v25 = vpop.f32.mrf.mxu3  ;;  %v1977_v54 = vpop.f32.mrf.mxu0 }
 0x30a   :  { %v2026_v62 = vpop.f32.mrf.mxu1  ;;  %v1978_v55 = vadd.f32 %v1977_v54, %v4969_v15 }
 0x30b   :  { %vm2211_vm12 = vcmp.gt.f32.partialorder %v2195_v22, 3.494438  ;;  %v2123_v1 = vadd.f32 %v2122_v25, %v2074_v5 }
 0x30c   :  { %v3063_v36 = vsel %vm2211_vm12, 1.0, %v3285_v35  ;;  %v2027_v29 = vadd.f32 %v2026_v62, %v1978_v55 }
 0x30d   :  { %v3268_v32 = vpack.c.bf16 %v3063_v36, %v3062_v57  ;;  %v2160_v46 = vmax.f32 %v4962_v52, %v2123_v1 }
 0x30f   :  { %3280 = vst [vmem:[%s5130_s3 + $0x28] sm:$0xff] %v3268_v32   ;;  %v2176_v26 = vmax.f32 %v5272_v4, %v2160_v46 }
 0x310   :  { %v2075_v27 = vpop.f32.mrf.mxu2 }
 0x311   :  { %v2076_v9 = vadd.f32 %v2075_v27, %v2027_v29  ;;  %v2124_v63 = vpop.f32.mrf.mxu3  ;;  %v1980_v15 = vpop.f32.mrf.mxu0  ;;  %v2196_v38 = vadd.f32 %v4995_v6, %v2176_v26 }
 0x312   :  { %v1981_v28 = vadd.f32 %v1980_v15, %v4979_v16  ;;  %v2029_v0 = vpop.f32.mrf.mxu1 }
 0x313   :  { %v2125_v10 = vadd.f32 %v2124_v63, %v2076_v9  ;;  %vm2212_vm13 = vcmp.gt.f32.partialorder %v2196_v38, 3.494438 }
 0x314   :  { %v2030_v47 = vadd.f32 %v2029_v0, %v1981_v28  ;;  %v3064_v2 = vsel %vm2212_vm13, 1.0, %v3285_v35 }
 0x315   :  { %v2161_v52 = vmax.f32 %v4967_v48, %v2125_v10 }
 0x317   :  { %v2177_v20 = vmax.f32 %v5274_v53, %v2161_v52 }
 0x318   :  { %v2078_v49 = vpop.f32.mrf.mxu2 }
 0x319   :  { %v2197_v24 = vadd.f32 %v4995_v6, %v2177_v20  ;;  %v2079_v17 = vadd.f32 %v2078_v49, %v2030_v47  ;;  %v2127_v33 = vpop.f32.mrf.mxu3  ;;  %v1982_v61 = vpop.f32.mrf.mxu0 }
 0x31a   :  { %v1983_v16 = vadd.f32 %v1982_v61, %v4984_v44  ;;  %v2031_v59 = vpop.f32.mrf.mxu1 }
 0x31b   :  { %vm2213_vm14 = vcmp.gt.f32.partialorder %v2197_v24, 3.494438  ;;  %v2128_v31 = vadd.f32 %v2127_v33, %v2079_v17 }
 0x31c   :  { %v3065_v48 = vsel %vm2213_vm14, 1.0, %v3285_v35  ;;  %v2032_v41 = vadd.f32 %v2031_v59, %v1983_v16 }
 0x31d   :  { %v3271_v8 = vpack.c.bf16 %v3065_v48, %v3064_v2  ;;  %v2162_v56 = vmax.f32 %v4977_v14, %v2128_v31 }
 0x31f   :  { %3281 = vst [vmem:[%s5130_s3 + $0x30] sm:$0xff] %v3271_v8   ;;  %v2178_v7 = vmax.f32 %v5277_v39, %v2162_v56 }
 0x320   :  { %v2080_v23 = vpop.f32.mrf.mxu2 }
 0x321   :  { %v2081_v11 = vadd.f32 %v2080_v23, %v2032_v41  ;;  %v2129_v44 = vpop.f32.mrf.mxu3  ;;  %v2198_v45 = vadd.f32 %v4995_v6, %v2178_v7 }
 0x323   :  { %v2130_v18 = vadd.f32 %v2129_v44, %v2081_v11  ;;  %vm2214_vm15 = vcmp.gt.f32.partialorder %v2198_v45, 3.494438 }
 0x324   :  { %v3066_v30 = vsel %vm2214_vm15, 1.0, %v3285_v35 }
 0x325   :  { %v2163_v43 = vmax.f32 %v4982_v51, %v2130_v18 }
 0x327   :  { %v2179_v14 = vmax.f32 %v2147_v19, %v2163_v43 }
 0x329   :  { %v2199_v40 = vadd.f32 %v4995_v6, %v2179_v14 }
 0x32b   :  { %vm2215_vm0 = vcmp.gt.f32.partialorder %v2199_v40, 3.494438 }
 0x32c   :  { %v3067_v42 = vsel %vm2215_vm0, 1.0, %v3285_v35 }
 0x32d   :  { %v3274_v58 = vpack.c.bf16 %v3067_v42, %v3066_v30 }
 0x32f   :  { %3282 = vst [vmem:[%s5130_s3 + $0x38] sm:$0xff] %v3274_v58  }

// kernel: net_forward.7
= control target key start
LH: loop header
LB: loop body
LE: loop exit
PB: predicated region body
PF: predicated region fallthrough
CT: control target
= control target key end

     0   :  { %10 = vsyncpa [#allocation3], 0  ;;  %s1303_s0 = inlined_call_operand.vmem [shape: bf16[2,1024], index: 0, kind: input, shape index: {}]   ;;  %s1304_s1 = inlined_call_operand.vmem [shape: bf16[1024,128], index: 1, kind: input, shape index: {}]   ;;  %s1305_s2 = inlined_call_operand.vmem [shape: f32[1,128], index: 2, kind: input, shape index: {}]   ;;  %s1306_s3 = inlined_call_operand.hbm [shape: f32[2,128], index: 3, kind: output, shape index: {0}]   ;;  %s1307_s4 = inlined_call_operand.hbm [shape: f32[2,128], index: 4, kind: output, shape index: {1}]  }
   0x1   :  { %v958_v0 = vld [vmem:[%s1304_s1 + $0x38] sm:$0xff]  ;;  %v957_v4 = vld [vmem:[%s1304_s1 + $0x30] sm:$0xff]  ;;  %v956_v8 = vld [vmem:[%s1304_s1 + $0x28] sm:$0xff] }
   0x2   :  { %v966_v1 = vld [vmem:[%s1304_s1 + $0x78] sm:$0xff]  ;;  %553 = vmatpush.bf16.msra.mxu0 %v958_v0  ;;  %v965_v5 = vld [vmem:[%s1304_s1 + $0x70] sm:$0xff]  ;;  %v964_v9 = vld [vmem:[%s1304_s1 + $0x68] sm:$0xff] }
   0x3   :  { %v974_v2 = vld [vmem:[%s1304_s1 + $0xb8] sm:$0xff]  ;;  %566 = vmatpush.bf16.msra.mxu1 %v966_v1  ;;  %v973_v6 = vld [vmem:[%s1304_s1 + $0xb0] sm:$0xff]  ;;  %v972_v10 = vld [vmem:[%s1304_s1 + $0xa8] sm:$0xff] }
   0x4   :  { %v982_v3 = vld [vmem:[%s1304_s1 + $0xf8] sm:$0xff]  ;;  %579 = vmatpush.bf16.msra.mxu2 %v974_v2  ;;  %v981_v7 = vld [vmem:[%s1304_s1 + $0xf0] sm:$0xff]  ;;  %v980_v11 = vld [vmem:[%s1304_s1 + $0xe8] sm:$0xff] }
   0x5   :  { %592 = vmatpush.bf16.msra.mxu3 %v982_v3  ;;  %v955_v12 = vld [vmem:[%s1304_s1 + $0x20] sm:$0xff]  ;;  %v954_v17 = vld [vmem:[%s1304_s1 + $0x18] sm:$0xff]  ;;  %v953_v21 = vld [vmem:[%s1304_s1 + $0x10] sm:$0xff] }
   0x6   :  { %554 = vmatpush.bf16.msra.mxu0 %v957_v4  ;;  %v963_v13 = vld [vmem:[%s1304_s1 + $0x60] sm:$0xff]  ;;  %v962_v18 = vld [vmem:[%s1304_s1 + $0x58] sm:$0xff]  ;;  %v961_v22 = vld [vmem:[%s1304_s1 + $0x50] sm:$0xff] }
   0x7   :  { %567 = vmatpush.bf16.msra.mxu1 %v965_v5  ;;  %v971_v14 = vld [vmem:[%s1304_s1 + $0xa0] sm:$0xff]  ;;  %v970_v19 = vld [vmem:[%s1304_s1 + $0x98] sm:$0xff] }
   0x8   :  { %580 = vmatpush.bf16.msra.mxu2 %v973_v6  ;;  %v979_v15 = vld [vmem:[%s1304_s1 + $0xe0] sm:$0xff]  ;;  %v978_v20 = vld [vmem:[%s1304_s1 + $0xd8] sm:$0xff] }
   0x9   :  { %593 = vmatpush.bf16.msra.mxu3 %v981_v7  ;;  %v18_v16 = vld [vmem:[%s1303_s0] sm:$0xff] }
   0xa   :  { %555 = vmatpush.bf16.msra.mxu0 %v956_v8  ;;  %152 = vst [vmem:[#allocation1] ss:$9 sm:$0xff] %v18_v16 }
   0xb   :  { %568 = vmatpush.bf16.msra.mxu1 %v964_v9 }
   0xc   :  { %581 = vmatpush.bf16.msra.mxu2 %v972_v10 }
   0xd   :  { %594 = vmatpush.bf16.msra.mxu3 %v980_v11 }
   0xe   :  { %556 = vmatpush.bf16.msra.mxu0 %v955_v12 }
   0xf   :  { %569 = vmatpush.bf16.msra.mxu1 %v963_v13 }
  0x10   :  { %582 = vmatpush.bf16.msra.mxu2 %v971_v14 }
  0x11   :  { %595 = vmatpush.bf16.msra.mxu3 %v979_v15 }
  0x12   :  { %557 = vmatpush.bf16.msra.mxu0 %v954_v17 }
  0x13   :  { %570 = vmatpush.bf16.msra.mxu1 %v962_v18 }
  0x14   :  { %11 = vsyncpa [#allocation5], 0  ;;  %583 = vmatpush.bf16.msra.mxu2 %v970_v19  ;;  %v969_v23 = vld [vmem:[%s1304_s1 + $0x90] sm:$0xff]  ;;  %v952_v25 = vld [vmem:[%s1304_s1 + $0x8] sm:$0xff]  ;;  %s1071_s12 = smov [#allocation4]   ;;  %s680_s16 = sshll.u32 %s1307_s4, 4  ;;  %s681_s16 = int_to_ptr.hbm [resolvable:$true] %s680_s16 }
  0x15   :  { %596 = vmatpush.bf16.msra.mxu3 %v978_v20  ;;  %v977_v24 = vld [vmem:[%s1304_s1 + $0xd0] sm:$0xff]  ;;  %v960_v26 = vld [vmem:[%s1304_s1 + $0x48] sm:$0xff]  ;;  %v951_v29 = vld [vmem:[%s1304_s1] sm:$0xff]  ;;  %s678_s13 = sshll.u32 %s1071_s12, 4  ;;  %s669_s20 = sshll.u32 %s1306_s3, 4  ;;  %s679_s13 = int_to_ptr.vmem [resolvable:$true] %s678_s13  ;;  %s670_s20 = int_to_ptr.hbm [resolvable:$true] %s669_s20 }
  0x16   :  { %558 = vmatpush.bf16.msra.mxu0 %v953_v21  ;;  %v968_v27 = vld [vmem:[%s1304_s1 + $0x88] sm:$0xff]  ;;  %v959_v30 = vld [vmem:[%s1304_s1 + $0x40] sm:$0xff]  ;;  %v990_v33 = vld [vmem:[%s1304_s1 + $0x138] sm:$0xff] }
  0x17   :  { %571 = vmatpush.bf16.msra.mxu1 %v961_v22  ;;  %v976_v28 = vld [vmem:[%s1304_s1 + $0xc8] sm:$0xff]  ;;  %v967_v31 = vld [vmem:[%s1304_s1 + $0x80] sm:$0xff]  ;;  %v998_v34 = vld [vmem:[%s1304_s1 + $0x178] sm:$0xff] }
  0x18   :  { %584 = vmatpush.bf16.msra.mxu2 %v969_v23  ;;  %v975_v32 = vld [vmem:[%s1304_s1 + $0xc0] sm:$0xff]  ;;  %v1006_v35 = vld [vmem:[%s1304_s1 + $0x1b8] sm:$0xff]  ;;  %v989_v37 = vld [vmem:[%s1304_s1 + $0x130] sm:$0xff] }
  0x19   :  { %597 = vmatpush.bf16.msra.mxu3 %v977_v24  ;;  %v1014_v36 = vld [vmem:[%s1304_s1 + $0x1f8] sm:$0xff]  ;;  %v997_v40 = vld [vmem:[%s1304_s1 + $0x170] sm:$0xff]  ;;  %v153_v41 = vld [vmem:[#allocation1] sm:$0xff] }
  0x1a   :  { %559 = vmatpush.bf16.msra.mxu0 %v952_v25  ;;  %v155_v38 = vld [vmem:[#allocation1 + $0x12] sm:$0xff]  ;;  %v156_v39 = vld [vmem:[#allocation1 + $0x1b] sm:$0xff]  ;;  %v154_v42 = vld [vmem:[#allocation1 + $0x9] sm:$0xff] }
  0x1b   :  { %572 = vmatpush.bf16.msra.mxu1 %v960_v26  ;;  %v1005_v43 = vld [vmem:[%s1304_s1 + $0x1b0] sm:$0xff]  ;;  %v988_v45 = vld [vmem:[%s1304_s1 + $0x128] sm:$0xff]  ;;  %v987_v49 = vld [vmem:[%s1304_s1 + $0x120] sm:$0xff] }
  0x1c   :  { %585 = vmatpush.bf16.msra.mxu2 %v968_v27  ;;  %v1013_v44 = vld [vmem:[%s1304_s1 + $0x1f0] sm:$0xff]  ;;  %v996_v46 = vld [vmem:[%s1304_s1 + $0x168] sm:$0xff]  ;;  %v995_v50 = vld [vmem:[%s1304_s1 + $0x160] sm:$0xff] }
  0x1d   :  { %598 = vmatpush.bf16.msra.mxu3 %v976_v28  ;;  %v1004_v47 = vld [vmem:[%s1304_s1 + $0x1a8] sm:$0xff]  ;;  %v1003_v51 = vld [vmem:[%s1304_s1 + $0x1a0] sm:$0xff]  ;;  %v986_v53 = vld [vmem:[%s1304_s1 + $0x118] sm:$0xff] }
  0x1e   :  { %560 = vmatpush.bf16.msra.mxu0 %v951_v29  ;;  %v1012_v48 = vld [vmem:[%s1304_s1 + $0x1e8] sm:$0xff]  ;;  %v1011_v52 = vld [vmem:[%s1304_s1 + $0x1e0] sm:$0xff]  ;;  %v994_v54 = vld [vmem:[%s1304_s1 + $0x158] sm:$0xff] }
  0x1f   :  { %573 = vmatpush.bf16.msra.mxu1 %v959_v30  ;;  %v1002_v55 = vld [vmem:[%s1304_s1 + $0x198] sm:$0xff]  ;;  %v985_v57 = vld [vmem:[%s1304_s1 + $0x110] sm:$0xff]  ;;  %v984_v61 = vld [vmem:[%s1304_s1 + $0x108] sm:$0xff] }
  0x20   :  { %586 = vmatpush.bf16.msra.mxu2 %v967_v31  ;;  %v1010_v56 = vld [vmem:[%s1304_s1 + $0x1d8] sm:$0xff]  ;;  %v993_v58 = vld [vmem:[%s1304_s1 + $0x150] sm:$0xff]  ;;  %v992_v62 = vld [vmem:[%s1304_s1 + $0x148] sm:$0xff] }
  0x21   :  { %599 = vmatpush.bf16.msra.mxu3 %v975_v32  ;;  %561 = vmatmul.bf16.vlgmr.msra.gmra.mxu0 %v153_v41  ;;  %v1001_v59 = vld [vmem:[%s1304_s1 + $0x190] sm:$0xff]  ;;  %v1000_v63 = vld [vmem:[%s1304_s1 + $0x188] sm:$0xff]  ;;  %v983_v1 = vld [vmem:[%s1304_s1 + $0x100] sm:$0xff]  ;;  %v1073_v32 = vmov 0.0  }
  0x22   :  { %605 = vmatpush.bf16.msrb.mxu0 %v990_v33  ;;  %574 = vmatmul.bf16.vlgmr.msra.gmra.mxu1 %v154_v42  ;;  %v1009_v60 = vld [vmem:[%s1304_s1 + $0x1d0] sm:$0xff]  ;;  %v1008_v0 = vld [vmem:[%s1304_s1 + $0x1c8] sm:$0xff]  ;;  %v991_v2 = vld [vmem:[%s1304_s1 + $0x140] sm:$0xff] }
  0x23   :  { %618 = vmatpush.bf16.msrb.mxu1 %v998_v34  ;;  %587 = vmatmul.bf16.vlgmr.msra.gmra.mxu2 %v155_v38  ;;  %v999_v3 = vld [vmem:[%s1304_s1 + $0x180] sm:$0xff]  ;;  %v158_v6 = vld [vmem:[#allocation1 + $0x2d] sm:$0xff]  ;;  %v159_v7 = vld [vmem:[#allocation1 + $0x36] sm:$0xff] }
  0x24   :  { %631 = vmatpush.bf16.msrb.mxu2 %v1006_v35  ;;  %600 = vmatmul.bf16.vlgmr.msra.gmra.mxu3 %v156_v39  ;;  %v1007_v4 = vld [vmem:[%s1304_s1 + $0x1c0] sm:$0xff] }
  0x25   :  { %644 = vmatpush.bf16.msrb.mxu3 %v1014_v36  ;;  %v157_v5 = vld [vmem:[#allocation1 + $0x24] sm:$0xff]  ;;  %v1018_v15 = vld [vmem:[%s1305_s2] ss:$0 sm:$0xff]  ;;  %s1072_s2 = smov [#allocation2]  }
  0x26   :  { %606 = vmatpush.bf16.msrb.mxu0 %v989_v37  ;;  %v160_v8 = vld [vmem:[#allocation1 + $0x3f] sm:$0xff]  ;;  %s667_s17 = sshll.u32 %s1072_s2, 4  ;;  %s668_s17 = int_to_ptr.vmem [resolvable:$true] %s667_s17 }
  0x27   :  { %619 = vmatpush.bf16.msrb.mxu1 %v997_v40 }
  0x28   :  { %632 = vmatpush.bf16.msrb.mxu2 %v1005_v43 }
  0x29   :  { %645 = vmatpush.bf16.msrb.mxu3 %v1013_v44 }
  0x2a   :  { %607 = vmatpush.bf16.msrb.mxu0 %v988_v45 }
  0x2b   :  { %620 = vmatpush.bf16.msrb.mxu1 %v996_v46 }
  0x2c   :  { %633 = vmatpush.bf16.msrb.mxu2 %v1004_v47 }
  0x2d   :  { %646 = vmatpush.bf16.msrb.mxu3 %v1012_v48 }
  0x2e   :  { %608 = vmatpush.bf16.msrb.mxu0 %v987_v49 }
  0x2f   :  { %621 = vmatpush.bf16.msrb.mxu1 %v995_v50 }
  0x30   :  { %634 = vmatpush.bf16.msrb.mxu2 %v1003_v51 }
  0x31   :  { %647 = vmatpush.bf16.msrb.mxu3 %v1011_v52 }
  0x32   :  { %609 = vmatpush.bf16.msrb.mxu0 %v986_v53 }
  0x33   :  { %622 = vmatpush.bf16.msrb.mxu1 %v994_v54 }
  0x34   :  { %635 = vmatpush.bf16.msrb.mxu2 %v1002_v55 }
  0x35   :  { %648 = vmatpush.bf16.msrb.mxu3 %v1010_v56 }
  0x36   :  { %610 = vmatpush.bf16.msrb.mxu0 %v985_v57 }
  0x37   :  { %623 = vmatpush.bf16.msrb.mxu1 %v993_v58 }
  0x38   :  { %636 = vmatpush.bf16.msrb.mxu2 %v1001_v59 }
  0x39   :  { %649 = vmatpush.bf16.msrb.mxu3 %v1009_v60 }
  0x3a   :  { %611 = vmatpush.bf16.msrb.mxu0 %v984_v61 }
  0x3b   :  { %624 = vmatpush.bf16.msrb.mxu1 %v992_v62 }
  0x3c   :  { %637 = vmatpush.bf16.msrb.mxu2 %v1000_v63 }
  0x3d   :  { %650 = vmatpush.bf16.msrb.mxu3 %v1008_v0 }
  0x3e   :  { %612 = vmatpush.bf16.msrb.mxu0 %v983_v1 }
  0x3f   :  { %625 = vmatpush.bf16.msrb.mxu1 %v991_v2 }
  0x40   :  { %638 = vmatpush.bf16.msrb.mxu2 %v999_v3 }
  0x41   :  { %651 = vmatpush.bf16.msrb.mxu3 %v1007_v4  ;;  %613 = vmatmul.bf16.vlgmr.msrb.gmra.mxu0 %v157_v5 }
  0x42   :  { %626 = vmatmul.bf16.vlgmr.msrb.gmra.mxu1 %v158_v6 }
  0x43   :  { %639 = vmatmul.bf16.vlgmr.msrb.gmra.mxu2 %v159_v7 }
  0x44   :  { %652 = vmatmul.bf16.vlgmr.msrb.gmra.mxu3 %v160_v8 }
  0x9e   :  { %v562_v9 = vpop.f32.mrf.mxu0 }
  0x9f   :  { %v575_v10 = vpop.f32.mrf.mxu1  ;;  %v563_v18 = vadd.f32 %v1018_v15, %v562_v9 }
  0xa1   :  { %v576_v19 = vadd.f32 %v575_v10, %v563_v18 }
  0xa6   :  { %v588_v11 = vpop.f32.mrf.mxu2  ;;  %v564_v13 = vpop.f32.mrf.mxu0 }
  0xa7   :  { %v601_v12 = vpop.f32.mrf.mxu3  ;;  %v577_v14 = vpop.f32.mrf.mxu1  ;;  %v589_v20 = vadd.f32 %v588_v11, %v576_v19 }
  0xa9   :  { %v602_v21 = vadd.f32 %v601_v12, %v589_v20 }
  0xae   :  { %v590_v16 = vpop.f32.mrf.mxu2 }
  0xaf   :  { %v603_v17 = vpop.f32.mrf.mxu3 }
  0xbe   :  { %v614_v22 = vpop.f32.mrf.mxu0 }
  0xbf   :  { %v627_v23 = vpop.f32.mrf.mxu1  ;;  %v615_v24 = vadd.f32 %v614_v22, %v602_v21 }
  0xc1   :  { %v628_v25 = vadd.f32 %v627_v23, %v615_v24 }
  0xc6   :  { %v640_v26 = vpop.f32.mrf.mxu2  ;;  %v616_v29 = vpop.f32.mrf.mxu0 }
  0xc7   :  { %v653_v27 = vpop.f32.mrf.mxu3  ;;  %v641_v28 = vadd.f32 %v640_v26, %v628_v25  ;;  %v629_v30 = vpop.f32.mrf.mxu1 }
  0xc9   :  { %v654_v31 = vadd.f32 %v653_v27, %v641_v28 }
  0xcb   :  { %vm657_vm0 = vcmp.gt.f32.partialorder %v654_v31, 0.36414692  ;;  %661 = vst [vmem:[#allocation4] sm:$0x3] %v654_v31 }
  0xcc   :  { %v950_v33 = vsel %vm657_vm0, 1.0, %v1073_v32  ;;  %683 = dma.vmem_to_hbm [thread:$0]  %s679_s13, 32, %s681_s16, [#allocation5]  }
  0xcd   :  { %660 = vst [vmem:[#allocation2] sm:$0x3] %v950_v33 }
  0xce   :  { %v642_v34 = vpop.f32.mrf.mxu2  ;;  %672 = dma.vmem_to_hbm [thread:$0]  %s668_s17, 32, %s670_s20, [#allocation3]  }
  0xcf   :  { %v655_v35 = vpop.f32.mrf.mxu3 }
  0xd0   :  { %1067 = dma.done.wait [#allocation3], 32  }
  0xd1   :  { %1068 = vsyncadd [#allocation3], 4294967264 }
  0xd2   :  { %1069 = dma.done.wait [#allocation5], 32  }
  0xd3   :  { %1070 = vsyncadd [#allocation5], 4294967264 }
  0xd4   :  { %692 = vsyncpa [#allocation3], 1 }
  0xd5   :  { %693 = vsyncpa [#allocation5], 1 }

// kernel: net_forward.6
= control target key start
LH: loop header
LB: loop body
LE: loop exit
PB: predicated region body
PF: predicated region fallthrough
CT: control target
= control target key end

     0   :  { %s6186_s1 = inlined_call_operand.vmem [shape: bf16[1152,512], index: 1, kind: input, shape index: {}]   ;;  %s6187_s0 = inlined_call_operand.vmem [shape: bf16[32,1152], index: 0, kind: input, shape index: {}]   ;;  %s6188_s2 = inlined_call_operand.vmem [shape: f32[1,128], index: 2, kind: input, shape index: {}]   ;;  %s6189_s3 = inlined_call_operand.vmem [shape: bf16[32,128], index: 3, kind: output, shape index: {}]  }
   0x1   :  { %v2768_v0 = vld [vmem:[%s6186_s1 + $0xe0] sm:$0xf]  ;;  %v3858_v1 = vld [vmem:[%s6186_s1 + $0xec] sm:$0xf0] }
   0x2   :  { %v2896_v2 = vld [vmem:[%s6186_s1 + $0x1e0] sm:$0xf]  ;;  %v2769_v3 = vor.u32 %v3858_v1, %v2768_v0  ;;  %v3890_v4 = vld [vmem:[%s6186_s1 + $0x1ec] sm:$0xf0] }
   0x3   :  { %v3024_v5 = vld [vmem:[%s6186_s1 + $0x2e0] sm:$0xf]  ;;  %v3922_v6 = vld [vmem:[%s6186_s1 + $0x2ec] sm:$0xf0]  ;;  %v2897_v7 = vor.u32 %v3890_v4, %v2896_v2 }
   0x4   :  { %v3025_v8 = vor.u32 %v3922_v6, %v3024_v5  ;;  %v3152_v9 = vld [vmem:[%s6186_s1 + $0x3e0] sm:$0xf]  ;;  %v3954_v10 = vld [vmem:[%s6186_s1 + $0x3ec] sm:$0xf0]  ;;  %1854 = vmatpush.bf16.msra.mxu0 %v2769_v3 }
   0x5   :  { %v2752_v11 = vld [vmem:[%s6186_s1 + $0xc0] sm:$0xf]  ;;  %v3153_v12 = vor.u32 %v3954_v10, %v3152_v9  ;;  %v3854_v13 = vld [vmem:[%s6186_s1 + $0xcc] sm:$0xf0]  ;;  %1873 = vmatpush.bf16.msra.mxu1 %v2897_v7 }
   0x6   :  { %v2880_v14 = vld [vmem:[%s6186_s1 + $0x1c0] sm:$0xf]  ;;  %v3886_v15 = vld [vmem:[%s6186_s1 + $0x1cc] sm:$0xf0]  ;;  %1892 = vmatpush.bf16.msra.mxu2 %v3025_v8  ;;  %v2753_v16 = vor.u32 %v3854_v13, %v2752_v11 }
   0x7   :  { %v2881_v17 = vor.u32 %v3886_v15, %v2880_v14  ;;  %v3008_v18 = vld [vmem:[%s6186_s1 + $0x2c0] sm:$0xf]  ;;  %v3918_v19 = vld [vmem:[%s6186_s1 + $0x2cc] sm:$0xf0]  ;;  %1911 = vmatpush.bf16.msra.mxu3 %v3153_v12 }
   0x8   :  { %v3136_v20 = vld [vmem:[%s6186_s1 + $0x3c0] sm:$0xf]  ;;  %v3009_v21 = vor.u32 %v3918_v19, %v3008_v18  ;;  %v3950_v22 = vld [vmem:[%s6186_s1 + $0x3cc] sm:$0xf0]  ;;  %1855 = vmatpush.bf16.msra.mxu0 %v2753_v16 }
   0x9   :  { %v2736_v23 = vld [vmem:[%s6186_s1 + $0xa0] sm:$0xf]  ;;  %v3850_v24 = vld [vmem:[%s6186_s1 + $0xac] sm:$0xf0]  ;;  %v3137_v25 = vor.u32 %v3950_v22, %v3136_v20  ;;  %1874 = vmatpush.bf16.msra.mxu1 %v2881_v17 }
   0xa   :  { %v2864_v26 = vld [vmem:[%s6186_s1 + $0x1a0] sm:$0xf]  ;;  %v3882_v27 = vld [vmem:[%s6186_s1 + $0x1ac] sm:$0xf0]  ;;  %v2737_v29 = vor.u32 %v3850_v24, %v2736_v23  ;;  %1893 = vmatpush.bf16.msra.mxu2 %v3009_v21 }
   0xb   :  { %v2992_v28 = vld [vmem:[%s6186_s1 + $0x2a0] sm:$0xf]  ;;  %v3914_v30 = vld [vmem:[%s6186_s1 + $0x2ac] sm:$0xf0]  ;;  %v2865_v33 = vor.u32 %v3882_v27, %v2864_v26  ;;  %1912 = vmatpush.bf16.msra.mxu3 %v3137_v25 }
   0xc   :  { %v3120_v31 = vld [vmem:[%s6186_s1 + $0x3a0] sm:$0xf]  ;;  %v3946_v32 = vld [vmem:[%s6186_s1 + $0x3ac] sm:$0xf0]  ;;  %v2993_v34 = vor.u32 %v3914_v30, %v2992_v28  ;;  %1856 = vmatpush.bf16.msra.mxu0 %v2737_v29  ;;  %v3814_v29 = vld [vmem:[%s6187_s0 + $0x20] sm:$0xf0] }
   0xd   :  { %v2720_v35 = vld [vmem:[%s6186_s1 + $0x80] sm:$0xf]  ;;  %v3846_v36 = vld [vmem:[%s6186_s1 + $0x8c] sm:$0xf0]  ;;  %v3121_v38 = vor.u32 %v3946_v32, %v3120_v31  ;;  %1875 = vmatpush.bf16.msra.mxu1 %v2865_v33  ;;  %v3810_v30 = vld [vmem:[%s6187_s0 + $0x4] sm:$0xf] }
   0xe   :  { %v2848_v37 = vld [vmem:[%s6186_s1 + $0x180] sm:$0xf]  ;;  %v3878_v39 = vld [vmem:[%s6186_s1 + $0x18c] sm:$0xf0]  ;;  %v2721_v44 = vor.u32 %v3846_v36, %v2720_v35  ;;  %1894 = vmatpush.bf16.msra.mxu2 %v2993_v34  ;;  %v2586_v31 = vld [vmem:[%s6187_s0 + $0x24] sm:$0xf0] }
   0xf   :  { %v2976_v40 = vld [vmem:[%s6186_s1 + $0x280] sm:$0xf]  ;;  %v3910_v41 = vld [vmem:[%s6186_s1 + $0x28c] sm:$0xf0]  ;;  %v2849_v45 = vor.u32 %v3878_v39, %v2848_v37  ;;  %1913 = vmatpush.bf16.msra.mxu3 %v3121_v38  ;;  %v2592_v35 = vld [vmem:[%s6187_s0 + $0x8] sm:$0xf] }
  0x10   :  { %v3104_v42 = vld [vmem:[%s6186_s1 + $0x380] sm:$0xf]  ;;  %v3942_v43 = vld [vmem:[%s6186_s1 + $0x38c] sm:$0xf0]  ;;  %v2977_v46 = vor.u32 %v3910_v41, %v2976_v40  ;;  %1857 = vmatpush.bf16.msra.mxu0 %v2721_v44  ;;  %v3815_v40 = vld [vmem:[%s6187_s0 + $0x28] sm:$0xf0] }
  0x11   :  { %v2704_v47 = vld [vmem:[%s6186_s1 + $0x60] sm:$0xf]  ;;  %v3842_v48 = vld [vmem:[%s6186_s1 + $0x6c] sm:$0xf0]  ;;  %v3105_v50 = vor.u32 %v3942_v43, %v3104_v42  ;;  %1876 = vmatpush.bf16.msra.mxu1 %v2849_v45  ;;  %v3811_v41 = vld [vmem:[%s6187_s0 + $0xc] sm:$0xf] }
  0x12   :  { %v2832_v49 = vld [vmem:[%s6186_s1 + $0x160] sm:$0xf]  ;;  %v3874_v51 = vld [vmem:[%s6186_s1 + $0x16c] sm:$0xf0]  ;;  %v2705_v56 = vor.u32 %v3842_v48, %v2704_v47  ;;  %1895 = vmatpush.bf16.msra.mxu2 %v2977_v46 }
  0x13   :  { %v2960_v52 = vld [vmem:[%s6186_s1 + $0x260] sm:$0xf]  ;;  %v3906_v53 = vld [vmem:[%s6186_s1 + $0x26c] sm:$0xf0]  ;;  %v2833_v57 = vor.u32 %v3874_v51, %v2832_v49  ;;  %1914 = vmatpush.bf16.msra.mxu3 %v3105_v50 }
  0x14   :  { %v3088_v54 = vld [vmem:[%s6186_s1 + $0x360] sm:$0xf]  ;;  %v3938_v55 = vld [vmem:[%s6186_s1 + $0x36c] sm:$0xf0]  ;;  %v2961_v58 = vor.u32 %v3906_v53, %v2960_v52  ;;  %1858 = vmatpush.bf16.msra.mxu0 %v2705_v56  ;;  %v4394_v53 = vor.u32 %v3810_v30, %v2586_v31 }
  0x15   :  { %v2688_v59 = vld [vmem:[%s6186_s1 + $0x40] sm:$0xf]  ;;  %v3838_v60 = vld [vmem:[%s6186_s1 + $0x4c] sm:$0xf0]  ;;  %v3089_v62 = vor.u32 %v3938_v55, %v3088_v54  ;;  %1877 = vmatpush.bf16.msra.mxu1 %v2833_v57  ;;  %v4396_v54 = vor.u32 %v3815_v40, %v2592_v35 }
  0x16   :  { %v2816_v61 = vld [vmem:[%s6186_s1 + $0x140] sm:$0xf]  ;;  %v3870_v63 = vld [vmem:[%s6186_s1 + $0x14c] sm:$0xf0]  ;;  %v2689_v4 = vor.u32 %v3838_v60, %v2688_v59  ;;  %1896 = vmatpush.bf16.msra.mxu2 %v2961_v58 }
  0x17   :  { %v2944_v0 = vld [vmem:[%s6186_s1 + $0x240] sm:$0xf]  ;;  %v3902_v1 = vld [vmem:[%s6186_s1 + $0x24c] sm:$0xf0]  ;;  %v2817_v5 = vor.u32 %v3870_v63, %v2816_v61  ;;  %1915 = vmatpush.bf16.msra.mxu3 %v3089_v62 }
  0x18   :  { %v3072_v2 = vld [vmem:[%s6186_s1 + $0x340] sm:$0xf]  ;;  %v3934_v3 = vld [vmem:[%s6186_s1 + $0x34c] sm:$0xf0]  ;;  %v2945_v6 = vor.u32 %v3902_v1, %v2944_v0  ;;  %1859 = vmatpush.bf16.msra.mxu0 %v2689_v4 }
  0x19   :  { %v2672_v7 = vld [vmem:[%s6186_s1 + $0x20] sm:$0xf]  ;;  %v3834_v8 = vld [vmem:[%s6186_s1 + $0x2c] sm:$0xf0]  ;;  %v3073_v10 = vor.u32 %v3934_v3, %v3072_v2  ;;  %1878 = vmatpush.bf16.msra.mxu1 %v2817_v5 }
  0x1a   :  { %v2800_v9 = vld [vmem:[%s6186_s1 + $0x120] sm:$0xf]  ;;  %v3866_v11 = vld [vmem:[%s6186_s1 + $0x12c] sm:$0xf0]  ;;  %v2673_v17 = vor.u32 %v3834_v8, %v2672_v7  ;;  %1897 = vmatpush.bf16.msra.mxu2 %v2945_v6 }
  0x1b   :  { %v2928_v12 = vld [vmem:[%s6186_s1 + $0x220] sm:$0xf]  ;;  %v3898_v13 = vld [vmem:[%s6186_s1 + $0x22c] sm:$0xf0]  ;;  %v2801_v21 = vor.u32 %v3866_v11, %v2800_v9  ;;  %1916 = vmatpush.bf16.msra.mxu3 %v3073_v10 }
  0x1c   :  { %v3056_v14 = vld [vmem:[%s6186_s1 + $0x320] sm:$0xf]  ;;  %v3930_v15 = vld [vmem:[%s6186_s1 + $0x32c] sm:$0xf0]  ;;  %v2929_v22 = vor.u32 %v3898_v13, %v2928_v12  ;;  %1860 = vmatpush.bf16.msra.mxu0 %v2673_v17 }
  0x1d   :  { %v2656_v16 = vld [vmem:[%s6186_s1] sm:$0xf]  ;;  %v3830_v18 = vld [vmem:[%s6186_s1 + $0xc] sm:$0xf0]  ;;  %v3057_v26 = vor.u32 %v3930_v15, %v3056_v14  ;;  %1879 = vmatpush.bf16.msra.mxu1 %v2801_v21 }
  0x1e   :  { %v2784_v19 = vld [vmem:[%s6186_s1 + $0x100] sm:$0xf]  ;;  %v3862_v20 = vld [vmem:[%s6186_s1 + $0x10c] sm:$0xf0]  ;;  %v2657_v34 = vor.u32 %v3830_v18, %v2656_v16  ;;  %1898 = vmatpush.bf16.msra.mxu2 %v2929_v22 }
  0x1f   :  { %v2912_v23 = vld [vmem:[%s6186_s1 + $0x200] sm:$0xf]  ;;  %v3894_v24 = vld [vmem:[%s6186_s1 + $0x20c] sm:$0xf0]  ;;  %v2785_v38 = vor.u32 %v3862_v20, %v2784_v19  ;;  %1917 = vmatpush.bf16.msra.mxu3 %v3057_v26  ;;  %v3823_v26 = vld [vmem:[%s6187_s0 + $0x68] sm:$0xf0] }
  0x20   :  { %v3040_v25 = vld [vmem:[%s6186_s1 + $0x300] sm:$0xf]  ;;  %v3926_v27 = vld [vmem:[%s6186_s1 + $0x30c] sm:$0xf0]  ;;  %v2913_v39 = vor.u32 %v3894_v24, %v2912_v23  ;;  %1861 = vmatpush.bf16.msra.mxu0 %v2657_v34 }
  0x21   :  { %v2584_v28 = vld [vmem:[%s6187_s0] sm:$0xf]  ;;  %v4050_v33 = vld [vmem:[%s6186_s1 + $0x6ec] sm:$0xf0]  ;;  %v3041_v43 = vor.u32 %v3926_v27, %v3040_v25  ;;  %1880 = vmatpush.bf16.msra.mxu1 %v2785_v38  ;;  %v2620_v25 = vld [vmem:[%s6187_s0 + $0x48] sm:$0xf] }
  0x22   :  { %v3536_v32 = vld [vmem:[%s6186_s1 + $0x6e0] sm:$0xf]  ;;  %v4018_v37 = vld [vmem:[%s6186_s1 + $0x5ec] sm:$0xf0]  ;;  %v4383_v48 = vor.u32 %v3814_v29, %v2584_v28  ;;  %1899 = vmatpush.bf16.msra.mxu2 %v2913_v39  ;;  %v3819_v28 = vld [vmem:[%s6187_s0 + $0x4c] sm:$0xf] }
  0x23   :  { %v3408_v36 = vld [vmem:[%s6186_s1 + $0x5e0] sm:$0xf]  ;;  %v2594_v42 = vld [vmem:[%s6187_s0 + $0x2c] sm:$0xf0]  ;;  %v3537_v44 = vor.u32 %v4050_v33, %v3536_v32  ;;  %1918 = vmatpush.bf16.msra.mxu3 %v3041_v43  ;;  %v2630_v38 = vld [vmem:[%s6187_s0 + $0x74] sm:$0xf0] }
  0x24   :  { %v3280_v45 = vld [vmem:[%s6186_s1 + $0x4e0] sm:$0xf]  ;;  %v3986_v46 = vld [vmem:[%s6186_s1 + $0x4ec] sm:$0xf0]  ;;  %v3409_v49 = vor.u32 %v4018_v37, %v3408_v36  ;;  %v4404_v57 = vor.u32 %v3811_v41, %v2594_v42  ;;  %1862 = vmatmul.bf16.vlgmr.msra.gmra.mxu0 %v4383_v48  ;;  %1881 = vmatmul.bf16.vlgmr.msra.gmra.mxu1 %v4394_v53  ;;  %v3824_v36 = vld [vmem:[%s6187_s0 + $0x70] sm:$0xf0] }
  0x25   :  { %v3664_v47 = vld [vmem:[%s6186_s1 + $0x7e0] sm:$0xf]  ;;  %v4082_v50 = vld [vmem:[%s6186_s1 + $0x7ec] sm:$0xf0]  ;;  %v3281_v58 = vor.u32 %v3986_v46, %v3280_v45  ;;  %1900 = vmatmul.bf16.vlgmr.msra.gmra.mxu2 %v4396_v54  ;;  %v3820_v37 = vld [vmem:[%s6187_s0 + $0x54] sm:$0xf] }
  0x26   :  { %v3520_v51 = vld [vmem:[%s6186_s1 + $0x6c0] sm:$0xf]  ;;  %v4046_v52 = vld [vmem:[%s6186_s1 + $0x6cc] sm:$0xf0]  ;;  %1968 = vmatpush.bf16.msrb.mxu2 %v3537_v44  ;;  %v3665_v59 = vor.u32 %v4082_v50, %v3664_v47  ;;  %1949 = vmatpush.bf16.msrb.mxu1 %v3409_v49  ;;  %v4515_v44 = vor.u32 %v3823_v26, %v2620_v25 }
  0x27   :  { %v3392_v55 = vld [vmem:[%s6186_s1 + $0x5c0] sm:$0xf]  ;;  %v4014_v56 = vld [vmem:[%s6186_s1 + $0x5cc] sm:$0xf0]  ;;  %v3521_v60 = vor.u32 %v4046_v52, %v3520_v51  ;;  %1919 = vmatmul.bf16.vlgmr.msra.gmra.mxu3 %v4404_v57  ;;  %1930 = vmatpush.bf16.msrb.mxu0 %v3281_v58 }
  0x28   :  { %v3264_v61 = vld [vmem:[%s6186_s1 + $0x4c0] sm:$0xf]  ;;  %v3982_v62 = vld [vmem:[%s6186_s1 + $0x4cc] sm:$0xf0]  ;;  %v3393_v0 = vor.u32 %v4014_v56, %v3392_v55  ;;  %1987 = vmatpush.bf16.msrb.mxu3 %v3665_v59  ;;  %v4536_v56 = vor.u32 %v3820_v37, %v2630_v38  ;;  %v3920_v37 = vld [vmem:[%s6186_s1 + $0x2e4] sm:$0xf] }
  0x29   :  { %v3648_v63 = vld [vmem:[%s6186_s1 + $0x7c0] sm:$0xf]  ;;  %v4078_v1 = vld [vmem:[%s6186_s1 + $0x7cc] sm:$0xf0]  ;;  %v3265_v6 = vor.u32 %v3982_v62, %v3264_v61 }
  0x2a   :  { %v3504_v2 = vld [vmem:[%s6186_s1 + $0x6a0] sm:$0xf]  ;;  %v4042_v3 = vld [vmem:[%s6186_s1 + $0x6ac] sm:$0xf0]  ;;  %1969 = vmatpush.bf16.msrb.mxu2 %v3521_v60  ;;  %v3649_v7 = vor.u32 %v4078_v1, %v3648_v63  ;;  %1950 = vmatpush.bf16.msrb.mxu1 %v3393_v0 }
  0x2b   :  { %v3376_v4 = vld [vmem:[%s6186_s1 + $0x5a0] sm:$0xf]  ;;  %v4010_v5 = vld [vmem:[%s6186_s1 + $0x5ac] sm:$0xf0]  ;;  %v3505_v8 = vor.u32 %v4042_v3, %v3504_v2  ;;  %1931 = vmatpush.bf16.msrb.mxu0 %v3265_v6 }
  0x2c   :  { %v3248_v9 = vld [vmem:[%s6186_s1 + $0x4a0] sm:$0xf]  ;;  %v3978_v10 = vld [vmem:[%s6186_s1 + $0x4ac] sm:$0xf0]  ;;  %v3377_v12 = vor.u32 %v4010_v5, %v3376_v4  ;;  %1988 = vmatpush.bf16.msrb.mxu3 %v3649_v7 }
  0x2d   :  { %v3632_v11 = vld [vmem:[%s6186_s1 + $0x7a0] sm:$0xf]  ;;  %v4074_v13 = vld [vmem:[%s6186_s1 + $0x7ac] sm:$0xf0]  ;;  %v3249_v18 = vor.u32 %v3978_v10, %v3248_v9 }
  0x2e   :  { %v3488_v14 = vld [vmem:[%s6186_s1 + $0x680] sm:$0xf]  ;;  %v4038_v15 = vld [vmem:[%s6186_s1 + $0x68c] sm:$0xf0]  ;;  %1970 = vmatpush.bf16.msrb.mxu2 %v3505_v8  ;;  %v3633_v22 = vor.u32 %v4074_v13, %v3632_v11  ;;  %1951 = vmatpush.bf16.msrb.mxu1 %v3377_v12 }
  0x2f   :  { %v3360_v16 = vld [vmem:[%s6186_s1 + $0x580] sm:$0xf]  ;;  %v4006_v17 = vld [vmem:[%s6186_s1 + $0x58c] sm:$0xf0]  ;;  %v3489_v23 = vor.u32 %v4038_v15, %v3488_v14  ;;  %1932 = vmatpush.bf16.msrb.mxu0 %v3249_v18  ;;  %v3888_v18 = vld [vmem:[%s6186_s1 + $0x1e4] sm:$0xf] }
  0x30   :  { %v3232_v19 = vld [vmem:[%s6186_s1 + $0x480] sm:$0xf]  ;;  %v3974_v20 = vld [vmem:[%s6186_s1 + $0x48c] sm:$0xf0]  ;;  %v3361_v27 = vor.u32 %v4006_v17, %v3360_v16  ;;  %1989 = vmatpush.bf16.msrb.mxu3 %v3633_v22  ;;  %v3856_v22 = vld [vmem:[%s6186_s1 + $0xe4] sm:$0xf] }
  0x31   :  { %v3616_v21 = vld [vmem:[%s6186_s1 + $0x780] sm:$0xf]  ;;  %v4070_v24 = vld [vmem:[%s6186_s1 + $0x78c] sm:$0xf0]  ;;  %v3233_v35 = vor.u32 %v3974_v20, %v3232_v19  ;;  %v2898_v19 = vld [vmem:[%s6186_s1 + $0x1f0] sm:$0xf0] }
  0x32   :  { %v2622_v29 = vld [vmem:[%s6187_s0 + $0x6c] sm:$0xf0]  ;;  %v3472_v30 = vld [vmem:[%s6186_s1 + $0x660] sm:$0xf]  ;;  %1971 = vmatpush.bf16.msrb.mxu2 %v3489_v23  ;;  %v3617_v39 = vor.u32 %v4070_v24, %v3616_v21  ;;  %1952 = vmatpush.bf16.msrb.mxu1 %v3361_v27  ;;  %v2770_v23 = vld [vmem:[%s6186_s1 + $0xf0] sm:$0xf0] }
  0x33   :  { %v4034_v31 = vld [vmem:[%s6186_s1 + $0x66c] sm:$0xf0]  ;;  %v3344_v33 = vld [vmem:[%s6186_s1 + $0x560] sm:$0xf]  ;;  %v4526_v50 = vor.u32 %v3819_v28, %v2622_v29  ;;  %1933 = vmatpush.bf16.msrb.mxu0 %v3233_v35  ;;  %v2773_v38 = vor.u32 %v3856_v22, %v2770_v23 }
  0x34   :  { %v2628_v32 = vld [vmem:[%s6187_s0 + $0x50] sm:$0xf]  ;;  %v3473_v40 = vor.u32 %v4034_v31, %v3472_v30  ;;  %v3216_v41 = vld [vmem:[%s6186_s1 + $0x460] sm:$0xf]  ;;  %1990 = vmatpush.bf16.msrb.mxu3 %v3617_v39  ;;  %1867 = vmatmul.bf16.gmra.mxu0 %v4515_v44  ;;  %v3816_v31 = vld [vmem:[%s6187_s0 + $0x30] sm:$0xf0] }
  0x35   :  { %v4002_v34 = vld [vmem:[%s6186_s1 + $0x56c] sm:$0xf0]  ;;  %v3600_v43 = vld [vmem:[%s6186_s1 + $0x760] sm:$0xf]  ;;  %v4528_v51 = vor.u32 %v3824_v36, %v2628_v32  ;;  %1886 = vmatmul.bf16.gmra.mxu1 %v4526_v50  ;;  %v3812_v32 = vld [vmem:[%s6187_s0 + $0x14] sm:$0xf] }
  0x36   :  { %v3970_v42 = vld [vmem:[%s6186_s1 + $0x46c] sm:$0xf0]  ;;  %v3345_v45 = vor.u32 %v4002_v34, %v3344_v33  ;;  %v3456_v47 = vld [vmem:[%s6186_s1 + $0x640] sm:$0xf]  ;;  %1972 = vmatpush.bf16.msrb.mxu2 %v3473_v40  ;;  %v2602_v33 = vld [vmem:[%s6187_s0 + $0x34] sm:$0xf0]  ;;  %v2901_v34 = vor.u32 %v3888_v18, %v2898_v19 }
  0x37   :  { %v4066_v46 = vld [vmem:[%s6186_s1 + $0x76c] sm:$0xf0]  ;;  %v3328_v52 = vld [vmem:[%s6186_s1 + $0x540] sm:$0xf]  ;;  %v3217_v58 = vor.u32 %v3970_v42, %v3216_v41  ;;  %1905 = vmatmul.bf16.gmra.mxu2 %v4528_v51  ;;  %1924 = vmatmul.bf16.gmra.mxu3 %v4536_v56  ;;  %v3026_v39 = vld [vmem:[%s6186_s1 + $0x2f0] sm:$0xf0] }
  0x38   :  { %v4030_v49 = vld [vmem:[%s6186_s1 + $0x64c] sm:$0xf0]  ;;  %v3601_v59 = vor.u32 %v4066_v46, %v3600_v43  ;;  %v3200_v61 = vld [vmem:[%s6186_s1 + $0x440] sm:$0xf]  ;;  %1953 = vmatpush.bf16.msrb.mxu1 %v3345_v45  ;;  %v3884_v40 = vld [vmem:[%s6186_s1 + $0x1c4] sm:$0xf] }
  0x39   :  { %v3998_v55 = vld [vmem:[%s6186_s1 + $0x54c] sm:$0xf0]  ;;  %v3457_v60 = vor.u32 %v4030_v49, %v3456_v47  ;;  %v3584_v63 = vld [vmem:[%s6186_s1 + $0x740] sm:$0xf]  ;;  %1934 = vmatpush.bf16.msrb.mxu0 %v3217_v58  ;;  %v2882_v41 = vld [vmem:[%s6186_s1 + $0x1d0] sm:$0xf0] }
  0x3a   :  { %v3966_v62 = vld [vmem:[%s6186_s1 + $0x44c] sm:$0xf0]  ;;  %v3329_v0 = vor.u32 %v3998_v55, %v3328_v52  ;;  %v3440_v2 = vld [vmem:[%s6186_s1 + $0x620] sm:$0xf]  ;;  %1991 = vmatpush.bf16.msrb.mxu3 %v3601_v59  ;;  %v2608_v43 = vld [vmem:[%s6187_s0 + $0x18] sm:$0xf]  ;;  %v3029_v59 = vor.u32 %v3920_v37, %v3026_v39 }
  0x3b   :  { %v4062_v1 = vld [vmem:[%s6186_s1 + $0x74c] sm:$0xf0]  ;;  %v3312_v4 = vld [vmem:[%s6186_s1 + $0x520] sm:$0xf]  ;;  %v3201_v6 = vor.u32 %v3966_v62, %v3200_v61  ;;  %1973 = vmatpush.bf16.msrb.mxu2 %v3457_v60  ;;  %v3817_v45 = vld [vmem:[%s6187_s0 + $0x38] sm:$0xf0]  ;;  %v2885_v60 = vor.u32 %v3884_v40, %v2882_v41 }
  0x3c   :  { %v4026_v3 = vld [vmem:[%s6186_s1 + $0x62c] sm:$0xf0]  ;;  %v3184_v7 = vld [vmem:[%s6186_s1 + $0x420] sm:$0xf]  ;;  %v3585_v8 = vor.u32 %v4062_v1, %v3584_v63  ;;  %1954 = vmatpush.bf16.msrb.mxu1 %v3329_v0  ;;  %v3813_v46 = vld [vmem:[%s6187_s0 + $0x1c] sm:$0xf]  ;;  %v4673_v1 = vor.u32 %v3812_v32, %v2602_v33 }
  0x3d   :  { %v3994_v5 = vld [vmem:[%s6186_s1 + $0x52c] sm:$0xf0]  ;;  %v3441_v9 = vor.u32 %v4026_v3, %v3440_v2  ;;  %v3568_v11 = vld [vmem:[%s6186_s1 + $0x720] sm:$0xf]  ;;  %1935 = vmatpush.bf16.msrb.mxu0 %v3201_v6  ;;  %v3852_v61 = vld [vmem:[%s6186_s1 + $0xc4] sm:$0xf] }
  0x3e   :  { %v3962_v10 = vld [vmem:[%s6186_s1 + $0x42c] sm:$0xf0]  ;;  %v3313_v13 = vor.u32 %v3994_v5, %v3312_v4  ;;  %v3424_v14 = vld [vmem:[%s6186_s1 + $0x600] sm:$0xf]  ;;  %1992 = vmatpush.bf16.msrb.mxu3 %v3585_v8  ;;  %v2754_v62 = vld [vmem:[%s6186_s1 + $0xd0] sm:$0xf0]  ;;  %v4684_v5 = vor.u32 %v3817_v45, %v2608_v43 }
  0x3f   :  { %v4058_v12 = vld [vmem:[%s6186_s1 + $0x72c] sm:$0xf0]  ;;  %v3296_v16 = vld [vmem:[%s6186_s1 + $0x500] sm:$0xf]  ;;  %v3185_v20 = vor.u32 %v3962_v10, %v3184_v7  ;;  %1974 = vmatpush.bf16.msrb.mxu2 %v3441_v9  ;;  %v3916_v63 = vld [vmem:[%s6186_s1 + $0x2c4] sm:$0xf]  ;;  %v2757_v8 = vor.u32 %v3852_v61, %v2754_v62 }
  0x40   :  { %v4022_v15 = vld [vmem:[%s6186_s1 + $0x60c] sm:$0xf0]  ;;  %v3168_v21 = vld [vmem:[%s6186_s1 + $0x400] sm:$0xf]  ;;  %v3569_v24 = vor.u32 %v4058_v12, %v3568_v11  ;;  %1955 = vmatpush.bf16.msrb.mxu1 %v3313_v13  ;;  %v3010_v2 = vld [vmem:[%s6186_s1 + $0x2d0] sm:$0xf0] }
  0x41   :  { %v3990_v17 = vld [vmem:[%s6186_s1 + $0x50c] sm:$0xf0]  ;;  %v3425_v25 = vor.u32 %v4022_v15, %v3424_v14  ;;  %v3552_v27 = vld [vmem:[%s6186_s1 + $0x700] sm:$0xf]  ;;  %1936 = vmatpush.bf16.msrb.mxu0 %v3185_v20  ;;  %v3880_v3 = vld [vmem:[%s6186_s1 + $0x1a4] sm:$0xf]  ;;  %v3013_v11 = vor.u32 %v3916_v63, %v3010_v2 }
  0x42   :  { %v3958_v26 = vld [vmem:[%s6186_s1 + $0x40c] sm:$0xf0]  ;;  %v3297_v29 = vor.u32 %v3990_v17, %v3296_v16  ;;  %v3792_v35 = vld [vmem:[%s6186_s1 + $0x8e0] sm:$0xf]  ;;  %1993 = vmatpush.bf16.msrb.mxu3 %v3569_v24  ;;  %v2866_v4 = vld [vmem:[%s6186_s1 + $0x1b0] sm:$0xf0] }
  0x43   :  { %v4054_v28 = vld [vmem:[%s6186_s1 + $0x70c] sm:$0xf0]  ;;  %v3169_v42 = vor.u32 %v3958_v26, %v3168_v21  ;;  %1975 = vmatpush.bf16.msrb.mxu2 %v3425_v25  ;;  %v2610_v49 = vld [vmem:[%s6187_s0 + $0x3c] sm:$0xf0]  ;;  %v2869_v12 = vor.u32 %v3880_v3, %v2866_v4  ;;  %v3848_v13 = vld [vmem:[%s6186_s1 + $0xa4] sm:$0xf] }
  0x44   :  { %v2600_v30 = vld [vmem:[%s6187_s0 + $0x10] sm:$0xf]  ;;  %v3553_v47 = vor.u32 %v4054_v28, %v3552_v27  ;;  %v3776_v55 = vld [vmem:[%s6186_s1 + $0x8c0] sm:$0xf]  ;;  %1956 = vmatpush.bf16.msrb.mxu1 %v3297_v29  ;;  %v4686_v6 = vor.u32 %v3813_v46, %v2610_v49  ;;  %v2738_v14 = vld [vmem:[%s6186_s1 + $0xb0] sm:$0xf0] }
  0x45   :  { %v4114_v36 = vld [vmem:[%s6186_s1 + $0x8ec] sm:$0xf0]  ;;  %v4671_v0 = vor.u32 %v3816_v31, %v2600_v30  ;;  %1937 = vmatpush.bf16.msrb.mxu0 %v3169_v42  ;;  %v3760_v9 = vld [vmem:[%s6186_s1 + $0x8a0] sm:$0xf]  ;;  %v3912_v15 = vld [vmem:[%s6186_s1 + $0x2a4] sm:$0xf]  ;;  %v2741_v20 = vor.u32 %v3848_v13, %v2738_v14 }
  0x46   :  { %v3793_v52 = vor.u32 %v4114_v36, %v3792_v35  ;;  %v4110_v58 = vld [vmem:[%s6186_s1 + $0x8cc] sm:$0xf0]  ;;  %1994 = vmatpush.bf16.msrb.mxu3 %v3553_v47  ;;  %v2994_v16 = vld [vmem:[%s6186_s1 + $0x2b0] sm:$0xf0]  ;;  %v3876_v17 = vld [vmem:[%s6186_s1 + $0x184] sm:$0xf] }
  0x47   :  { %2044 = vmatpush.bf16.msra.mxu2 %v2901_v34  ;;  %v3777_v7 = vor.u32 %v4110_v58, %v3776_v55  ;;  %v4106_v10 = vld [vmem:[%s6186_s1 + $0x8ac] sm:$0xf0]  ;;  %1957 = vmatmul.bf16.vlgmr.msrb.gmra.mxu1 %v4673_v1  ;;  %v2850_v18 = vld [vmem:[%s6186_s1 + $0x190] sm:$0xf0]  ;;  %v3744_v21 = vld [vmem:[%s6186_s1 + $0x880] sm:$0xf]  ;;  %v2997_v23 = vor.u32 %v3912_v15, %v2994_v16 }
  0x48   :  { %2025 = vmatpush.bf16.msra.mxu1 %v2773_v38  ;;  %1938 = vmatmul.bf16.vlgmr.msrb.gmra.mxu0 %v4671_v0  ;;  %v3761_v19 = vor.u32 %v4106_v10, %v3760_v9  ;;  %v4102_v22 = vld [vmem:[%s6186_s1 + $0x88c] sm:$0xf0]  ;;  %v2853_v24 = vor.u32 %v3876_v17, %v2850_v18  ;;  %v3844_v25 = vld [vmem:[%s6186_s1 + $0x84] sm:$0xf]  ;;  %v2722_v26 = vld [vmem:[%s6186_s1 + $0x90] sm:$0xf0] }
  0x49   :  { %2006 = vmatpush.bf16.msra.mxu0 %v3793_v52  ;;  %1976 = vmatmul.bf16.vlgmr.msrb.gmra.mxu2 %v4684_v5  ;;  %v3908_v27 = vld [vmem:[%s6186_s1 + $0x284] sm:$0xf]  ;;  %v2978_v28 = vld [vmem:[%s6186_s1 + $0x290] sm:$0xf0]  ;;  %v3745_v31 = vor.u32 %v4102_v22, %v3744_v21  ;;  %v2725_v32 = vor.u32 %v3844_v25, %v2722_v26  ;;  %v3728_v33 = vld [vmem:[%s6186_s1 + $0x860] sm:$0xf] }
  0x4a   :  { %2063 = vmatpush.bf16.msra.mxu3 %v3029_v59  ;;  %v3872_v29 = vld [vmem:[%s6186_s1 + $0x164] sm:$0xf]  ;;  %v2834_v30 = vld [vmem:[%s6186_s1 + $0x170] sm:$0xf0]  ;;  %v4098_v34 = vld [vmem:[%s6186_s1 + $0x86c] sm:$0xf0]  ;;  %v2981_v35 = vor.u32 %v3908_v27, %v2978_v28 }
  0x4b   :  { %2045 = vmatpush.bf16.msra.mxu2 %v2885_v60  ;;  %1995 = vmatmul.bf16.vlgmr.msrb.gmra.mxu3 %v4686_v6  ;;  %v2636_v36 = vld [vmem:[%s6187_s0 + $0x58] sm:$0xf]  ;;  %v3825_v37 = vld [vmem:[%s6187_s0 + $0x78] sm:$0xf0]  ;;  %v2638_v39 = vld [vmem:[%s6187_s0 + $0x7c] sm:$0xf0]  ;;  %v2837_v40 = vor.u32 %v3872_v29, %v2834_v30  ;;  %v3729_v59 = vor.u32 %v4098_v34, %v3728_v33 }
  0x4c   :  { %2026 = vmatpush.bf16.msra.mxu1 %v2757_v8  ;;  %v3821_v38 = vld [vmem:[%s6187_s0 + $0x5c] sm:$0xf]  ;;  %v3840_v41 = vld [vmem:[%s6186_s1 + $0x64] sm:$0xf]  ;;  %v2706_v42 = vld [vmem:[%s6186_s1 + $0x70] sm:$0xf0]  ;;  %v4803_v8 = vor.u32 %v3825_v37, %v2636_v36 }
  0x4d   :  { %2007 = vmatpush.bf16.msra.mxu0 %v3777_v7  ;;  %v3904_v43 = vld [vmem:[%s6186_s1 + $0x264] sm:$0xf]  ;;  %v2962_v45 = vld [vmem:[%s6186_s1 + $0x270] sm:$0xf0]  ;;  %v2644_v49 = vld [vmem:[%s6187_s0 + $0x60] sm:$0xf]  ;;  %v2709_v60 = vor.u32 %v3840_v41, %v2706_v42  ;;  %v4805_v9 = vor.u32 %v3821_v38, %v2638_v39 }
  0x4e   :  { %2064 = vmatpush.bf16.msra.mxu3 %v3013_v11  ;;  %v3868_v46 = vld [vmem:[%s6186_s1 + $0x144] sm:$0xf]  ;;  %v2818_v47 = vld [vmem:[%s6186_s1 + $0x150] sm:$0xf0]  ;;  %v2646_v58 = vld [vmem:[%s6187_s0 + $0x84] sm:$0xf0]  ;;  %v2965_v63 = vor.u32 %v3904_v43, %v2962_v45 }
  0x4f   :  { %2046 = vmatpush.bf16.msra.mxu2 %v2869_v12  ;;  %v3826_v52 = vld [vmem:[%s6187_s0 + $0x80] sm:$0xf0]  ;;  %v3712_v61 = vld [vmem:[%s6186_s1 + $0x840] sm:$0xf]  ;;  %v4094_v62 = vld [vmem:[%s6186_s1 + $0x84c] sm:$0xf0]  ;;  %v2821_v2 = vor.u32 %v3868_v46, %v2818_v47 }
  0x50   :  { %2027 = vmatpush.bf16.msra.mxu1 %v2741_v20  ;;  %v3822_v55 = vld [vmem:[%s6187_s0 + $0x64] sm:$0xf]  ;;  %v2690_v4 = vld [vmem:[%s6186_s1 + $0x50] sm:$0xf0]  ;;  %v4816_v13 = vor.u32 %v3826_v52, %v2644_v49  ;;  %v3713_v15 = vor.u32 %v4094_v62, %v3712_v61  ;;  %v3696_v17 = vld [vmem:[%s6186_s1 + $0x820] sm:$0xf] }
  0x51   :  { %2008 = vmatpush.bf16.msra.mxu0 %v3761_v19  ;;  %v3836_v3 = vld [vmem:[%s6186_s1 + $0x44] sm:$0xf]  ;;  %v2946_v10 = vld [vmem:[%s6186_s1 + $0x250] sm:$0xf0]  ;;  %v4818_v14 = vor.u32 %v3822_v55, %v2646_v58  ;;  %v4090_v18 = vld [vmem:[%s6186_s1 + $0x82c] sm:$0xf0] }
  0x52   :  { %2065 = vmatpush.bf16.msra.mxu3 %v2997_v23  ;;  %v3900_v7 = vld [vmem:[%s6186_s1 + $0x244] sm:$0xf]  ;;  %v2802_v12 = vld [vmem:[%s6186_s1 + $0x130] sm:$0xf0]  ;;  %v2693_v16 = vor.u32 %v3836_v3, %v2690_v4  ;;  %v3697_v29 = vor.u32 %v4090_v18, %v3696_v17 }
  0x53   :  { %2047 = vmatpush.bf16.msra.mxu2 %v2853_v24  ;;  %v3864_v11 = vld [vmem:[%s6186_s1 + $0x124] sm:$0xf]  ;;  %v2949_v19 = vor.u32 %v3900_v7, %v2946_v10  ;;  %v2674_v22 = vld [vmem:[%s6186_s1 + $0x30] sm:$0xf0] }
  0x54   :  { %2028 = vmatpush.bf16.msra.mxu1 %v2725_v32  ;;  %v2805_v20 = vor.u32 %v3864_v11, %v2802_v12  ;;  %v3832_v21 = vld [vmem:[%s6186_s1 + $0x24] sm:$0xf]  ;;  %v2930_v24 = vld [vmem:[%s6186_s1 + $0x230] sm:$0xf0]  ;;  %v4086_v32 = vld [vmem:[%s6186_s1 + $0x80c] sm:$0xf0] }
  0x55   :  { %2009 = vmatpush.bf16.msra.mxu0 %v3745_v31  ;;  %v3896_v23 = vld [vmem:[%s6186_s1 + $0x224] sm:$0xf]  ;;  %v2786_v26 = vld [vmem:[%s6186_s1 + $0x110] sm:$0xf0]  ;;  %v2677_v30 = vor.u32 %v3832_v21, %v2674_v22  ;;  %v3680_v31 = vld [vmem:[%s6186_s1 + $0x800] sm:$0xf] }
  0x56   :  { %2066 = vmatpush.bf16.msra.mxu3 %v2981_v35  ;;  %v3860_v25 = vld [vmem:[%s6186_s1 + $0x104] sm:$0xf]  ;;  %v3410_v28 = vld [vmem:[%s6186_s1 + $0x5f0] sm:$0xf0]  ;;  %v2933_v34 = vor.u32 %v3896_v23, %v2930_v24  ;;  %v3681_v47 = vor.u32 %v4086_v32, %v3680_v31 }
  0x57   :  { %2048 = vmatpush.bf16.msra.mxu2 %v2837_v40  ;;  %1962 = vmatmul.bf16.gmra.mxu1 %v4805_v9  ;;  %v4016_v27 = vld [vmem:[%s6186_s1 + $0x5e4] sm:$0xf]  ;;  %v2789_v35 = vor.u32 %v3860_v25, %v2786_v26  ;;  %v2658_v36 = vld [vmem:[%s6186_s1 + $0x10] sm:$0xf0] }
  0x58   :  { %2029 = vmatpush.bf16.msra.mxu1 %v2709_v60  ;;  %1943 = vmatmul.bf16.gmra.mxu0 %v4803_v8  ;;  %v3828_v33 = vld [vmem:[%s6186_s1 + $0x4] sm:$0xf]  ;;  %v2914_v38 = vld [vmem:[%s6186_s1 + $0x210] sm:$0xf0]  ;;  %v3413_v39 = vor.u32 %v4016_v27, %v3410_v28 }
  0x59   :  { %2010 = vmatpush.bf16.msra.mxu0 %v3729_v59  ;;  %1981 = vmatmul.bf16.gmra.mxu2 %v4816_v13  ;;  %v3892_v37 = vld [vmem:[%s6186_s1 + $0x204] sm:$0xf]  ;;  %v3154_v41 = vld [vmem:[%s6186_s1 + $0x3f0] sm:$0xf0]  ;;  %v2661_v49 = vor.u32 %v3828_v33, %v2658_v36 }
  0x5a   :  { %2067 = vmatpush.bf16.msra.mxu3 %v2965_v63  ;;  %v3952_v40 = vld [vmem:[%s6186_s1 + $0x3e4] sm:$0xf]  ;;  %v3282_v43 = vld [vmem:[%s6186_s1 + $0x4f0] sm:$0xf0]  ;;  %v2917_v58 = vor.u32 %v3892_v37, %v2914_v38 }
  0x5b   :  { %2049 = vmatpush.bf16.msra.mxu2 %v2821_v2  ;;  %2000 = vmatmul.bf16.gmra.mxu3 %v4818_v14  ;;  %v3984_v42 = vld [vmem:[%s6186_s1 + $0x4e4] sm:$0xf]  ;;  %v3538_v46 = vld [vmem:[%s6186_s1 + $0x6f0] sm:$0xf0]  ;;  %v3157_v59 = vor.u32 %v3952_v40, %v3154_v41  ;;  %v2616_v2 = vld [vmem:[%s6187_s0 + $0x20] sm:$0xf] }
  0x5c   :  { %2030 = vmatpush.bf16.msra.mxu1 %v2693_v16  ;;  %v4048_v45 = vld [vmem:[%s6186_s1 + $0x6e4] sm:$0xf]  ;;  %v3394_v55 = vld [vmem:[%s6186_s1 + $0x5d0] sm:$0xf0]  ;;  %v3285_v60 = vor.u32 %v3984_v42, %v3282_v43 }
  0x5d   :  { %2011 = vmatpush.bf16.msra.mxu0 %v3713_v15  ;;  %v4012_v52 = vld [vmem:[%s6186_s1 + $0x5c4] sm:$0xf]  ;;  %v3541_v61 = vor.u32 %v4048_v45, %v3538_v46  ;;  %v3138_v63 = vld [vmem:[%s6186_s1 + $0x3d0] sm:$0xf0] }
  0x5e   :  { %2068 = vmatpush.bf16.msra.mxu3 %v2949_v19  ;;  %v3948_v62 = vld [vmem:[%s6186_s1 + $0x3c4] sm:$0xf]  ;;  %v3397_v4 = vor.u32 %v4012_v52, %v3394_v55  ;;  %v3266_v10 = vld [vmem:[%s6186_s1 + $0x4d0] sm:$0xf0] }
  0x5f   :  { %2050 = vmatpush.bf16.msra.mxu2 %v2805_v20  ;;  %v3818_v3 = vld [vmem:[%s6187_s0 + $0x40] sm:$0xf0]  ;;  %v3141_v11 = vor.u32 %v3948_v62, %v3138_v63  ;;  %v3522_v15 = vld [vmem:[%s6186_s1 + $0x6d0] sm:$0xf0] }
  0x60   :  { %2031 = vmatpush.bf16.msra.mxu1 %v2677_v30  ;;  %v3980_v7 = vld [vmem:[%s6186_s1 + $0x4c4] sm:$0xf]  ;;  %v4923_v17 = vor.u32 %v3818_v3, %v2616_v2  ;;  %v3378_v18 = vld [vmem:[%s6186_s1 + $0x5b0] sm:$0xf0]  ;;  %v2652_v3 = vld [vmem:[%s6187_s0 + $0x68] sm:$0xf] }
  0x61   :  { %2012 = vmatpush.bf16.msra.mxu0 %v3697_v29  ;;  %v4044_v12 = vld [vmem:[%s6186_s1 + $0x6c4] sm:$0xf]  ;;  %v3122_v20 = vld [vmem:[%s6186_s1 + $0x3b0] sm:$0xf0]  ;;  %v3269_v21 = vor.u32 %v3980_v7, %v3266_v10 }
  0x62   :  { %2069 = vmatpush.bf16.msra.mxu3 %v2933_v34  ;;  %v4008_v16 = vld [vmem:[%s6186_s1 + $0x5a4] sm:$0xf]  ;;  %v3525_v22 = vor.u32 %v4044_v12, %v3522_v15  ;;  %v3250_v24 = vld [vmem:[%s6186_s1 + $0x4b0] sm:$0xf0] }
  0x63   :  { %2051 = vmatpush.bf16.msra.mxu2 %v2789_v35  ;;  %v3944_v19 = vld [vmem:[%s6186_s1 + $0x3a4] sm:$0xf]  ;;  %v3381_v25 = vor.u32 %v4008_v16, %v3378_v18  ;;  %v3506_v28 = vld [vmem:[%s6186_s1 + $0x6b0] sm:$0xf0] }
  0x64   :  { %2032 = vmatpush.bf16.msra.mxu1 %v2661_v49  ;;  %v3976_v23 = vld [vmem:[%s6186_s1 + $0x4a4] sm:$0xf]  ;;  %v3125_v26 = vor.u32 %v3944_v19, %v3122_v20  ;;  %v3362_v30 = vld [vmem:[%s6186_s1 + $0x590] sm:$0xf0] }
  0x65   :  { %2013 = vmatpush.bf16.msra.mxu0 %v3681_v47  ;;  %v4040_v27 = vld [vmem:[%s6186_s1 + $0x6a4] sm:$0xf]  ;;  %v3106_v32 = vld [vmem:[%s6186_s1 + $0x390] sm:$0xf0]  ;;  %v3253_v33 = vor.u32 %v3976_v23, %v3250_v24 }
  0x66   :  { %2070 = vmatpush.bf16.msra.mxu3 %v2917_v58  ;;  %v4004_v29 = vld [vmem:[%s6186_s1 + $0x584] sm:$0xf]  ;;  %v3509_v34 = vor.u32 %v4040_v27, %v3506_v28  ;;  %v3234_v36 = vld [vmem:[%s6186_s1 + $0x490] sm:$0xf0] }
  0x67   :  { %2120 = vmatpush.bf16.msrb.mxu2 %v3413_v39  ;;  %2033 = vmatmul.bf16.vlgmr.msra.gmra.mxu1 %v4383_v48  ;;  %v3940_v31 = vld [vmem:[%s6186_s1 + $0x384] sm:$0xf]  ;;  %v3365_v37 = vor.u32 %v4004_v29, %v3362_v30  ;;  %v3490_v40 = vld [vmem:[%s6186_s1 + $0x690] sm:$0xf0] }
  0x68   :  { %2101 = vmatpush.bf16.msrb.mxu1 %v3285_v60  ;;  %2014 = vmatmul.bf16.vlgmr.msra.gmra.mxu0 %v4923_v17  ;;  %v3972_v35 = vld [vmem:[%s6186_s1 + $0x484] sm:$0xf]  ;;  %v3109_v38 = vor.u32 %v3940_v31, %v3106_v32  ;;  %v3346_v42 = vld [vmem:[%s6186_s1 + $0x570] sm:$0xf0] }
  0x69   :  { %2082 = vmatpush.bf16.msrb.mxu0 %v3157_v59  ;;  %2052 = vmatmul.bf16.vlgmr.msra.gmra.mxu2 %v4394_v53  ;;  %v4036_v39 = vld [vmem:[%s6186_s1 + $0x684] sm:$0xf]  ;;  %v3090_v45 = vld [vmem:[%s6186_s1 + $0x370] sm:$0xf0]  ;;  %v3237_v46 = vor.u32 %v3972_v35, %v3234_v36 }
  0x6a   :  { %2139 = vmatpush.bf16.msrb.mxu3 %v3541_v61  ;;  %v4000_v41 = vld [vmem:[%s6186_s1 + $0x564] sm:$0xf]  ;;  %v3493_v47 = vor.u32 %v4036_v39, %v3490_v40  ;;  %v3218_v52 = vld [vmem:[%s6186_s1 + $0x470] sm:$0xf0] }
  0x6b   :  { %2121 = vmatpush.bf16.msrb.mxu2 %v3397_v4  ;;  %2071 = vmatmul.bf16.vlgmr.msra.gmra.mxu3 %v4396_v54  ;;  %v3936_v43 = vld [vmem:[%s6186_s1 + $0x364] sm:$0xf]  ;;  %v3349_v55 = vor.u32 %v4000_v41, %v3346_v42  ;;  %v3474_v60 = vld [vmem:[%s6186_s1 + $0x670] sm:$0xf0]  ;;  %v3827_v4 = vld [vmem:[%s6187_s0 + $0x88] sm:$0xf0] }
  0x6c   :  { %2102 = vmatpush.bf16.msrb.mxu1 %v3269_v21  ;;  %v3968_v49 = vld [vmem:[%s6186_s1 + $0x464] sm:$0xf]  ;;  %v3093_v58 = vor.u32 %v3936_v43, %v3090_v45  ;;  %v3330_v62 = vld [vmem:[%s6186_s1 + $0x550] sm:$0xf0]  ;;  %v5031_v21 = vor.u32 %v3827_v4, %v2652_v3 }
  0x6d   :  { %2083 = vmatpush.bf16.msrb.mxu0 %v3141_v11  ;;  %v4032_v59 = vld [vmem:[%s6186_s1 + $0x664] sm:$0xf]  ;;  %v3074_v2 = vld [vmem:[%s6186_s1 + $0x350] sm:$0xf0]  ;;  %v3221_v7 = vor.u32 %v3968_v49, %v3218_v52 }
  0x6e   :  { %2140 = vmatpush.bf16.msrb.mxu3 %v3525_v22  ;;  %v3996_v61 = vld [vmem:[%s6186_s1 + $0x544] sm:$0xf]  ;;  %v3477_v10 = vor.u32 %v4032_v59, %v3474_v60  ;;  %v3202_v12 = vld [vmem:[%s6186_s1 + $0x450] sm:$0xf0] }
  0x6f   :  { %2122 = vmatpush.bf16.msrb.mxu2 %v3381_v25  ;;  %v3932_v63 = vld [vmem:[%s6186_s1 + $0x344] sm:$0xf]  ;;  %v3333_v15 = vor.u32 %v3996_v61, %v3330_v62  ;;  %v3458_v19 = vld [vmem:[%s6186_s1 + $0x650] sm:$0xf0]  ;;  %v2904_v61 = vld [vmem:[%s6186_s1 + $0x1e8] sm:$0xf] }
  0x70   :  { %2103 = vmatpush.bf16.msrb.mxu1 %v3253_v33  ;;  %v3964_v11 = vld [vmem:[%s6186_s1 + $0x444] sm:$0xf]  ;;  %v3077_v16 = vor.u32 %v3932_v63, %v3074_v2  ;;  %v3314_v22 = vld [vmem:[%s6186_s1 + $0x530] sm:$0xf0]  ;;  %v3891_v62 = vld [vmem:[%s6186_s1 + $0x1f4] sm:$0xf0] }
  0x71   :  { %2084 = vmatpush.bf16.msrb.mxu0 %v3125_v26  ;;  %v4028_v18 = vld [vmem:[%s6186_s1 + $0x644] sm:$0xf]  ;;  %v3058_v24 = vld [vmem:[%s6186_s1 + $0x330] sm:$0xf0]  ;;  %v3205_v25 = vor.u32 %v3964_v11, %v3202_v12  ;;  %v2760_v63 = vld [vmem:[%s6186_s1 + $0xc8] sm:$0xf]  ;;  %v2905_v12 = vor.u32 %v3891_v62, %v2904_v61 }
  0x72   :  { %2141 = vmatpush.bf16.msrb.mxu3 %v3509_v34  ;;  %v3992_v20 = vld [vmem:[%s6186_s1 + $0x524] sm:$0xf]  ;;  %v3461_v26 = vor.u32 %v4028_v18, %v3458_v19  ;;  %v3186_v28 = vld [vmem:[%s6186_s1 + $0x430] sm:$0xf0]  ;;  %v3855_v2 = vld [vmem:[%s6186_s1 + $0xd4] sm:$0xf0] }
  0x73   :  { %2123 = vmatpush.bf16.msrb.mxu2 %v3365_v37  ;;  %v3928_v23 = vld [vmem:[%s6186_s1 + $0x324] sm:$0xf]  ;;  %v3317_v30 = vor.u32 %v3992_v20, %v3314_v22  ;;  %v3442_v32 = vld [vmem:[%s6186_s1 + $0x630] sm:$0xf0]  ;;  %v2776_v37 = vld [vmem:[%s6186_s1 + $0xe8] sm:$0xf] }
  0x74   :  { %2104 = vmatpush.bf16.msrb.mxu1 %v3237_v46  ;;  %v3960_v27 = vld [vmem:[%s6186_s1 + $0x424] sm:$0xf]  ;;  %v3061_v31 = vor.u32 %v3928_v23, %v3058_v24  ;;  %v3298_v34 = vld [vmem:[%s6186_s1 + $0x510] sm:$0xf0]  ;;  %v2888_v20 = vld [vmem:[%s6186_s1 + $0x1c8] sm:$0xf] }
  0x75   :  { %2085 = vmatpush.bf16.msrb.mxu0 %v3109_v38  ;;  %v4024_v29 = vld [vmem:[%s6186_s1 + $0x624] sm:$0xf]  ;;  %v3042_v36 = vld [vmem:[%s6186_s1 + $0x310] sm:$0xf0]  ;;  %v3859_v38 = vld [vmem:[%s6186_s1 + $0xf4] sm:$0xf0]  ;;  %v3189_v41 = vor.u32 %v3960_v27, %v3186_v28 }
  0x76   :  { %2142 = vmatpush.bf16.msrb.mxu3 %v3493_v47  ;;  %v3988_v33 = vld [vmem:[%s6186_s1 + $0x504] sm:$0xf]  ;;  %v3666_v40 = vld [vmem:[%s6186_s1 + $0x7f0] sm:$0xf0]  ;;  %v3445_v42 = vor.u32 %v4024_v29, %v3442_v32  ;;  %v2777_v59 = vor.u32 %v3859_v38, %v2776_v37  ;;  %v3887_v22 = vld [vmem:[%s6186_s1 + $0x1d4] sm:$0xf0] }
  0x77   :  { %2124 = vmatpush.bf16.msrb.mxu2 %v3349_v55  ;;  %2038 = vmatmul.bf16.gmra.mxu1 %v4515_v44  ;;  %v3924_v35 = vld [vmem:[%s6186_s1 + $0x304] sm:$0xf]  ;;  %v3170_v45 = vld [vmem:[%s6186_s1 + $0x410] sm:$0xf0]  ;;  %v3301_v47 = vor.u32 %v3988_v33, %v3298_v34  ;;  %v2744_v23 = vld [vmem:[%s6186_s1 + $0xa8] sm:$0xf] }
  0x78   :  { %2105 = vmatpush.bf16.msrb.mxu1 %v3221_v7  ;;  %2019 = vmatmul.bf16.gmra.mxu0 %v5031_v21  ;;  %v4080_v39 = vld [vmem:[%s6186_s1 + $0x7e4] sm:$0xf]  ;;  %v3045_v49 = vor.u32 %v3924_v35, %v3042_v36  ;;  %v3426_v52 = vld [vmem:[%s6186_s1 + $0x610] sm:$0xf0]  ;;  %v3851_v24 = vld [vmem:[%s6186_s1 + $0xb4] sm:$0xf0] }
  0x79   :  { %2086 = vmatpush.bf16.msrb.mxu0 %v3093_v58  ;;  %2057 = vmatmul.bf16.gmra.mxu2 %v4526_v50  ;;  %v3956_v43 = vld [vmem:[%s6186_s1 + $0x404] sm:$0xf]  ;;  %v3794_v58 = vld [vmem:[%s6186_s1 + $0x8f0] sm:$0xf0]  ;;  %v3669_v60 = vor.u32 %v4080_v39, %v3666_v40  ;;  %v3883_v32 = vld [vmem:[%s6186_s1 + $0x1b4] sm:$0xf0]  ;;  %v2745_v33 = vor.u32 %v3851_v24, %v2744_v23 }
  0x7a   :  { %2143 = vmatpush.bf16.msrb.mxu3 %v3477_v10  ;;  %v4020_v46 = vld [vmem:[%s6186_s1 + $0x604] sm:$0xf]  ;;  %v3650_v4 = vld [vmem:[%s6186_s1 + $0x7d0] sm:$0xf0]  ;;  %v3173_v7 = vor.u32 %v3956_v43, %v3170_v45  ;;  %v2728_v35 = vld [vmem:[%s6186_s1 + $0x88] sm:$0xf] }
  0x7b   :  { %2125 = vmatpush.bf16.msrb.mxu2 %v3333_v15  ;;  %2076 = vmatmul.bf16.gmra.mxu3 %v4528_v51  ;;  %v4112_v55 = vld [vmem:[%s6186_s1 + $0x8e4] sm:$0xf]  ;;  %v3429_v10 = vor.u32 %v4020_v46, %v3426_v52  ;;  %v3778_v19 = vld [vmem:[%s6186_s1 + $0x8d0] sm:$0xf0]  ;;  %v3847_v36 = vld [vmem:[%s6186_s1 + $0x94] sm:$0xf0] }
  0x7c   :  { %2106 = vmatpush.bf16.msrb.mxu1 %v3205_v25  ;;  %v4076_v3 = vld [vmem:[%s6186_s1 + $0x7c4] sm:$0xf]  ;;  %v3797_v11 = vor.u32 %v4112_v55, %v3794_v58  ;;  %v3634_v28 = vld [vmem:[%s6186_s1 + $0x7b0] sm:$0xf0]  ;;  %v2856_v43 = vld [vmem:[%s6186_s1 + $0x188] sm:$0xf]  ;;  %v2729_v46 = vor.u32 %v3847_v36, %v2728_v35 }
  0x7d   :  { %2087 = vmatpush.bf16.msrb.mxu0 %v3077_v16  ;;  %v4108_v15 = vld [vmem:[%s6186_s1 + $0x8c4] sm:$0xf]  ;;  %v2761_v16 = vor.u32 %v3855_v2, %v2760_v63  ;;  %v3653_v18 = vor.u32 %v4076_v3, %v3650_v4  ;;  %v3618_v40 = vld [vmem:[%s6186_s1 + $0x790] sm:$0xf0]  ;;  %v3879_v45 = vld [vmem:[%s6186_s1 + $0x194] sm:$0xf0] }
  0x7e   :  { %2144 = vmatpush.bf16.msrb.mxu3 %v3461_v26  ;;  %v3781_v25 = vor.u32 %v4108_v15, %v3778_v19  ;;  %v2889_v26 = vor.u32 %v3887_v22, %v2888_v20  ;;  %v4072_v27 = vld [vmem:[%s6186_s1 + $0x7a4] sm:$0xf]  ;;  %v3843_v52 = vld [vmem:[%s6186_s1 + $0x74] sm:$0xf0]  ;;  %v2857_v58 = vor.u32 %v3879_v45, %v2856_v43  ;;  %v3730_v62 = vld [vmem:[%s6186_s1 + $0x870] sm:$0xf0] }
  0x7f   :  { %2126 = vmatpush.bf16.msrb.mxu2 %v3317_v30  ;;  %v4104_v29 = vld [vmem:[%s6186_s1 + $0x8a4] sm:$0xf]  ;;  %v3762_v30 = vld [vmem:[%s6186_s1 + $0x8b0] sm:$0xf0]  ;;  %v3637_v34 = vor.u32 %v4072_v27, %v3634_v28  ;;  %v2840_v63 = vld [vmem:[%s6186_s1 + $0x168] sm:$0xf] }
  0x80   :  { %2107 = vmatpush.bf16.msrb.mxu1 %v3189_v41  ;;  %v3765_v37 = vor.u32 %v4104_v29, %v3762_v30  ;;  %v4068_v39 = vld [vmem:[%s6186_s1 + $0x784] sm:$0xf]  ;;  %v3875_v2 = vld [vmem:[%s6186_s1 + $0x174] sm:$0xf0]  ;;  %v3714_v19 = vld [vmem:[%s6186_s1 + $0x850] sm:$0xf0] }
  0x81   :  { %2088 = vmatpush.bf16.msrb.mxu0 %v3061_v31  ;;  %v2872_v31 = vld [vmem:[%s6186_s1 + $0x1a8] sm:$0xf]  ;;  %v4100_v41 = vld [vmem:[%s6186_s1 + $0x884] sm:$0xf]  ;;  %v3871_v22 = vld [vmem:[%s6186_s1 + $0x154] sm:$0xf0] }
  0x82   :  { %2145 = vmatpush.bf16.msrb.mxu3 %v3445_v42  ;;  %v2873_v38 = vor.u32 %v3883_v32, %v2872_v31  ;;  %v3746_v42 = vld [vmem:[%s6186_s1 + $0x890] sm:$0xf0]  ;;  %v4096_v61 = vld [vmem:[%s6186_s1 + $0x864] sm:$0xf]  ;;  %v2824_v20 = vld [vmem:[%s6186_s1 + $0x148] sm:$0xf] }
  0x83   :  { %2127 = vmatpush.bf16.msrb.mxu2 %v3301_v47  ;;  %v3621_v47 = vor.u32 %v4068_v39, %v3618_v40  ;;  %v3749_v55 = vor.u32 %v4100_v41, %v3746_v42  ;;  %v4060_v15 = vld [vmem:[%s6186_s1 + $0x744] sm:$0xf]  ;;  %v2825_v28 = vor.u32 %v3871_v22, %v2824_v20  ;;  %v3570_v30 = vld [vmem:[%s6186_s1 + $0x730] sm:$0xf0]  ;;  %v2664_v35 = vld [vmem:[%s6186_s1 + $0x8] sm:$0xf] }
  0x84   :  { %2108 = vmatpush.bf16.msrb.mxu1 %v3173_v7  ;;  %v2696_v7 = vld [vmem:[%s6186_s1 + $0x48] sm:$0xf]  ;;  %v4056_v29 = vld [vmem:[%s6186_s1 + $0x724] sm:$0xf]  ;;  %v3698_v32 = vld [vmem:[%s6186_s1 + $0x830] sm:$0xf0] }
  0x85   :  { %2089 = vmatpush.bf16.msrb.mxu0 %v3045_v49  ;;  %v2712_v49 = vld [vmem:[%s6186_s1 + $0x68] sm:$0xf]  ;;  %v4088_v31 = vld [vmem:[%s6186_s1 + $0x824] sm:$0xf]  ;;  %v3554_v40 = vld [vmem:[%s6186_s1 + $0x710] sm:$0xf0] }
  0x86   :  { %2146 = vmatpush.bf16.msrb.mxu3 %v3429_v10  ;;  %v2713_v3 = vor.u32 %v3843_v52, %v2712_v49  ;;  %v3839_v10 = vld [vmem:[%s6186_s1 + $0x54] sm:$0xf0]  ;;  %v4052_v39 = vld [vmem:[%s6186_s1 + $0x704] sm:$0xf]  ;;  %v3701_v41 = vor.u32 %v4088_v31, %v3698_v32  ;;  %v3682_v45 = vld [vmem:[%s6186_s1 + $0x810] sm:$0xf0] }
  0x87   :  { %2196 = vmatpush.bf16.msra.mxu2 %v2777_v59  ;;  %2109 = vmatmul.bf16.vlgmr.msrb.gmra.mxu1 %v4671_v0  ;;  %v4064_v59 = vld [vmem:[%s6186_s1 + $0x764] sm:$0xf]  ;;  %v2697_v23 = vor.u32 %v3839_v10, %v2696_v7  ;;  %v3288_v49 = vld [vmem:[%s6186_s1 + $0x4e8] sm:$0xf]  ;;  %v3987_v52 = vld [vmem:[%s6186_s1 + $0x4f4] sm:$0xf0] }
  0x88   :  { %2177 = vmatpush.bf16.msra.mxu1 %v3797_v11  ;;  %2090 = vmatmul.bf16.vlgmr.msrb.gmra.mxu0 %v4404_v57  ;;  %v3733_v11 = vor.u32 %v4096_v61, %v3730_v62  ;;  %v4084_v43 = vld [vmem:[%s6186_s1 + $0x804] sm:$0xf]  ;;  %v3557_v61 = vor.u32 %v4052_v39, %v3554_v40  ;;  %v3955_v62 = vld [vmem:[%s6186_s1 + $0x3f4] sm:$0xf0]  ;;  %v3289_v7 = vor.u32 %v3987_v52, %v3288_v49  ;;  %v3144_v20 = vld [vmem:[%s6186_s1 + $0x3c8] sm:$0xf] }
  0x89   :  { %2158 = vmatpush.bf16.msra.mxu0 %v3669_v60  ;;  %2128 = vmatmul.bf16.vlgmr.msrb.gmra.mxu2 %v4673_v1  ;;  %v3602_v60 = vld [vmem:[%s6186_s1 + $0x770] sm:$0xf0]  ;;  %v3951_v22 = vld [vmem:[%s6186_s1 + $0x3d4] sm:$0xf0]  ;;  %v3000_v31 = vld [vmem:[%s6186_s1 + $0x2a8] sm:$0xf] }
  0x8a   :  { %2215 = vmatpush.bf16.msra.mxu3 %v2905_v12  ;;  %v3605_v4 = vor.u32 %v4064_v59, %v3602_v60  ;;  %v2841_v12 = vor.u32 %v3875_v2, %v2840_v63  ;;  %v3160_v59 = vld [vmem:[%s6186_s1 + $0x3e8] sm:$0xf]  ;;  %v4019_v2 = vld [vmem:[%s6186_s1 + $0x5f4] sm:$0xf0] }
  0x8b   :  { %2197 = vmatpush.bf16.msra.mxu2 %v2761_v16  ;;  %2147 = vmatmul.bf16.vlgmr.msrb.gmra.mxu3 %v4684_v5  ;;  %v3586_v16 = vld [vmem:[%s6186_s1 + $0x750] sm:$0xf0]  ;;  %v3416_v63 = vld [vmem:[%s6186_s1 + $0x5e8] sm:$0xf]  ;;  %v3915_v32 = vld [vmem:[%s6186_s1 + $0x2b4] sm:$0xf0] }
  0x8c   :  { %2178 = vmatpush.bf16.msra.mxu1 %v3781_v25  ;;  %v3589_v24 = vor.u32 %v4060_v15, %v3586_v16  ;;  %v2680_v25 = vld [vmem:[%s6186_s1 + $0x28] sm:$0xf]  ;;  %v3161_v15 = vor.u32 %v3955_v62, %v3160_v59  ;;  %v3417_v16 = vor.u32 %v4019_v2, %v3416_v63  ;;  %v3911_v49 = vld [vmem:[%s6186_s1 + $0x294] sm:$0xf0] }
  0x8d   :  { %2159 = vmatpush.bf16.msra.mxu0 %v3653_v18  ;;  %v4092_v18 = vld [vmem:[%s6186_s1 + $0x844] sm:$0xf]  ;;  %v3112_v52 = vld [vmem:[%s6186_s1 + $0x388] sm:$0xf]  ;;  %v4007_v59 = vld [vmem:[%s6186_s1 + $0x594] sm:$0xf0] }
  0x8e   :  { %2216 = vmatpush.bf16.msra.mxu3 %v2889_v26  ;;  %v3835_v26 = vld [vmem:[%s6186_s1 + $0x34] sm:$0xf0]  ;;  %v3717_v27 = vor.u32 %v4092_v18, %v3714_v19  ;;  %v3016_v18 = vld [vmem:[%s6186_s1 + $0x2c8] sm:$0xf] }
  0x8f   :  { %2198 = vmatpush.bf16.msra.mxu2 %v2745_v33  ;;  %v2808_v33 = vld [vmem:[%s6186_s1 + $0x128] sm:$0xf]  ;;  %v2681_v36 = vor.u32 %v3835_v26, %v2680_v25  ;;  %v3919_v19 = vld [vmem:[%s6186_s1 + $0x2d4] sm:$0xf0] }
  0x90   :  { %2179 = vmatpush.bf16.msra.mxu1 %v3765_v37  ;;  %v3573_v37 = vor.u32 %v4056_v29, %v3570_v30  ;;  %v3017_v26 = vor.u32 %v3919_v19, %v3016_v18  ;;  %v3256_v29 = vld [vmem:[%s6186_s1 + $0x4a8] sm:$0xf]  ;;  %v3979_v30 = vld [vmem:[%s6186_s1 + $0x4b4] sm:$0xf0] }
  0x91   :  { %2160 = vmatpush.bf16.msra.mxu0 %v3637_v34  ;;  %v3867_v34 = vld [vmem:[%s6186_s1 + $0x134] sm:$0xf0]  ;;  %v3257_v40 = vor.u32 %v3979_v30, %v3256_v29  ;;  %v3224_v62 = vld [vmem:[%s6186_s1 + $0x468] sm:$0xf] }
  0x92   :  { %2217 = vmatpush.bf16.msra.mxu3 %v2873_v38  ;;  %v3831_v38 = vld [vmem:[%s6186_s1 + $0x14] sm:$0xf0]  ;;  %v2809_v42 = vor.u32 %v3867_v34, %v2808_v33  ;;  %v3128_v33 = vld [vmem:[%s6186_s1 + $0x3a8] sm:$0xf] }
  0x93   :  { %2199 = vmatpush.bf16.msra.mxu2 %v2729_v46  ;;  %v2792_v46 = vld [vmem:[%s6186_s1 + $0x108] sm:$0xf]  ;;  %v2665_v60 = vor.u32 %v3831_v38, %v2664_v35  ;;  %v3947_v35 = vld [vmem:[%s6186_s1 + $0x3b4] sm:$0xf0] }
  0x94   :  { %2180 = vmatpush.bf16.msra.mxu1 %v3749_v55  ;;  %v3032_v55 = vld [vmem:[%s6186_s1 + $0x2e8] sm:$0xf]  ;;  %v3971_v63 = vld [vmem:[%s6186_s1 + $0x474] sm:$0xf0] }
  0x95   :  { %2161 = vmatpush.bf16.msra.mxu0 %v3621_v47  ;;  %v3863_v47 = vld [vmem:[%s6186_s1 + $0x114] sm:$0xf0]  ;;  %v3352_v19 = vld [vmem:[%s6186_s1 + $0x568] sm:$0xf] }
  0x96   :  { %2218 = vmatpush.bf16.msra.mxu3 %v2857_v58  ;;  %v3923_v58 = vld [vmem:[%s6186_s1 + $0x2f4] sm:$0xf0] }
  0x97   :  { %2200 = vmatpush.bf16.msra.mxu2 %v2713_v3  ;;  %2114 = vmatmul.bf16.gmra.mxu1 %v4803_v8  ;;  %v3685_v3 = vor.u32 %v4084_v43, %v3682_v45  ;;  %v3033_v10 = vor.u32 %v3923_v58, %v3032_v55  ;;  %v3975_v43 = vld [vmem:[%s6186_s1 + $0x494] sm:$0xf0]  ;;  %v3129_v45 = vor.u32 %v3947_v35, %v3128_v33  ;;  %v3368_v58 = vld [vmem:[%s6186_s1 + $0x588] sm:$0xf] }
  0x98   :  { %2181 = vmatpush.bf16.msra.mxu1 %v3733_v11  ;;  %2095 = vmatmul.bf16.gmra.mxu0 %v4536_v56  ;;  %v3272_v11 = vld [vmem:[%s6186_s1 + $0x4c8] sm:$0xf]  ;;  %v3943_v55 = vld [vmem:[%s6186_s1 + $0x394] sm:$0xf0] }
  0x99   :  { %2162 = vmatpush.bf16.msra.mxu0 %v3605_v4  ;;  %2133 = vmatmul.bf16.gmra.mxu2 %v4805_v9  ;;  %v2793_v4 = vor.u32 %v3863_v47, %v2792_v46  ;;  %v2984_v47 = vld [vmem:[%s6186_s1 + $0x288] sm:$0xf]  ;;  %v3939_v18 = vld [vmem:[%s6186_s1 + $0x374] sm:$0xf0] }
  0x9a   :  { %2219 = vmatpush.bf16.msra.mxu3 %v2841_v12  ;;  %v3983_v12 = vld [vmem:[%s6186_s1 + $0x4d4] sm:$0xf0]  ;;  %v3080_v33 = vld [vmem:[%s6186_s1 + $0x348] sm:$0xf] }
  0x9b   :  { %2201 = vmatpush.bf16.msra.mxu2 %v2697_v23  ;;  %2152 = vmatmul.bf16.gmra.mxu3 %v4816_v13  ;;  %v3400_v23 = vld [vmem:[%s6186_s1 + $0x5c8] sm:$0xf]  ;;  %v3273_v25 = vor.u32 %v3983_v12, %v3272_v11 }
  0x9c   :  { %2182 = vmatpush.bf16.msra.mxu1 %v3717_v27  ;;  %v3145_v27 = vor.u32 %v3951_v22, %v3144_v20  ;;  %v3096_v11 = vld [vmem:[%s6186_s1 + $0x368] sm:$0xf]  ;;  %v4003_v20 = vld [vmem:[%s6186_s1 + $0x574] sm:$0xf0] }
  0x9d   :  { %2163 = vmatpush.bf16.msra.mxu0 %v3589_v24  ;;  %v4015_v24 = vld [vmem:[%s6186_s1 + $0x5d4] sm:$0xf0]  ;;  %v3097_v29 = vor.u32 %v3939_v18, %v3096_v11  ;;  %v3353_v30 = vor.u32 %v4003_v20, %v3352_v19  ;;  %v3336_v35 = vld [vmem:[%s6186_s1 + $0x548] sm:$0xf] }
  0x9e   :  { %2220 = vmatpush.bf16.msra.mxu3 %v2825_v28  ;;  %v3401_v28 = vor.u32 %v4015_v24, %v3400_v23  ;;  %v3225_v23 = vor.u32 %v3971_v63, %v3224_v62  ;;  %v3176_v63 = vld [vmem:[%s6186_s1 + $0x408] sm:$0xf]  ;;  %v3895_v11 = vld [vmem:[%s6186_s1 + $0x214] sm:$0xf0] }
  0x9f   :  { %2202 = vmatpush.bf16.msra.mxu2 %v2681_v36  ;;  %v3384_v36 = vld [vmem:[%s6186_s1 + $0x5a8] sm:$0xf]  ;;  %v3927_v18 = vld [vmem:[%s6186_s1 + $0x314] sm:$0xf0] }
  0xa0   :  { %2183 = vmatpush.bf16.msra.mxu1 %v3701_v41  ;;  %v3001_v41 = vor.u32 %v3915_v32, %v3000_v31  ;;  %v2952_v31 = vld [vmem:[%s6186_s1 + $0x248] sm:$0xf]  ;;  %v3903_v32 = vld [vmem:[%s6186_s1 + $0x254] sm:$0xf0] }
  0xa1   :  { %2164 = vmatpush.bf16.msra.mxu0 %v3573_v37  ;;  %v1863_v34 = vpop.f32.mrf.mxu0  ;;  %v4011_v37 = vld [vmem:[%s6186_s1 + $0x5b4] sm:$0xf0]  ;;  %v1882_v38 = vpop.f32.mrf.mxu1  ;;  %v3304_v19 = vld [vmem:[%s6186_s1 + $0x508] sm:$0xf] }
  0xa2   :  { %2221 = vmatpush.bf16.msra.mxu3 %v2809_v42  ;;  %v1883_v39 = vadd.f32 %v1882_v38, %v1863_v34  ;;  %v3240_v42 = vld [vmem:[%s6186_s1 + $0x488] sm:$0xf]  ;;  %v3385_v46 = vor.u32 %v4011_v37, %v3384_v36  ;;  %v3935_v34 = vld [vmem:[%s6186_s1 + $0x354] sm:$0xf0]  ;;  %v2953_v38 = vor.u32 %v3903_v32, %v2952_v31  ;;  %v3857_v31 = vld [vmem:[%s6186_s1 + $0xec] sm:$0xf] }
  0xa3   :  { %2203 = vmatpush.bf16.msra.mxu2 %v2665_v60  ;;  %v3241_v60 = vor.u32 %v3975_v43, %v3240_v42  ;;  %v3999_v36 = vld [vmem:[%s6186_s1 + $0x554] sm:$0xf0]  ;;  %v3081_v42 = vor.u32 %v3935_v34, %v3080_v33  ;;  %v2778_v32 = vld [vmem:[%s6186_s1 + $0xf8] sm:$0xf0] }
  0xa4   :  { %2184 = vmatpush.bf16.msra.mxu1 %v3685_v3  ;;  %v3113_v3 = vor.u32 %v3943_v55, %v3112_v52  ;;  %v3337_v43 = vor.u32 %v3999_v36, %v3336_v35  ;;  %v3991_v20 = vld [vmem:[%s6186_s1 + $0x514] sm:$0xf0] }
  0xa5   :  { %2165 = vmatpush.bf16.msra.mxu0 %v3557_v61  ;;  %v2985_v61 = vor.u32 %v3911_v49, %v2984_v47  ;;  %v3064_v47 = vld [vmem:[%s6186_s1 + $0x328] sm:$0xf]  ;;  %v3305_v35 = vor.u32 %v3991_v20, %v3304_v19  ;;  %v4075_v20 = vld [vmem:[%s6186_s1 + $0x7b4] sm:$0xf0] }
  0xa6   :  { %2222 = vmatpush.bf16.msra.mxu3 %v2793_v4  ;;  %v3369_v4 = vor.u32 %v4007_v59, %v3368_v58  ;;  %v3931_v58 = vld [vmem:[%s6186_s1 + $0x334] sm:$0xf0]  ;;  %v3320_v59 = vld [vmem:[%s6186_s1 + $0x528] sm:$0xf] }
  0xa7   :  { %2272 = vmatpush.bf16.msrb.mxu2 %v3289_v7  ;;  %2185 = vmatmul.bf16.vlgmr.msra.gmra.mxu1 %v4923_v17  ;;  %v2968_v7 = vld [vmem:[%s6186_s1 + $0x268] sm:$0xf] }
  0xa8   :  { %2253 = vmatpush.bf16.msrb.mxu1 %v3161_v15  ;;  %2166 = vmatmul.bf16.vlgmr.msra.gmra.mxu0 %v4686_v6  ;;  %v1901_v2 = vpop.f32.mrf.mxu2 }
  0xa9   :  { %2234 = vmatpush.bf16.msrb.mxu0 %v3033_v10  ;;  %2204 = vmatmul.bf16.vlgmr.msra.gmra.mxu2 %v4383_v48  ;;  %v3907_v10 = vld [vmem:[%s6186_s1 + $0x274] sm:$0xf0]  ;;  %v1902_v12 = vadd.f32 %v1901_v2, %v1883_v39  ;;  %v1884_v22 = vpop.f32.mrf.mxu1  ;;  %v3192_v39 = vld [vmem:[%s6186_s1 + $0x428] sm:$0xf] }
  0xaa   :  { %2291 = vmatpush.bf16.msrb.mxu3 %v3417_v16  ;;  %v1920_v15 = vpop.f32.mrf.mxu3  ;;  %v1865_v16 = vpop.f32.mrf.mxu0 }
  0xab   :  { %2273 = vmatpush.bf16.msrb.mxu2 %v3273_v25  ;;  %2223 = vmatmul.bf16.vlgmr.msra.gmra.mxu3 %v4394_v53  ;;  %v5406_v24 = vadd.f32 %v1920_v15, %v1902_v12  ;;  %v1885_v25 = vadd.f32 %v1884_v22, %v1865_v16  ;;  %v3065_v12 = vor.u32 %v3931_v58, %v3064_v47  ;;  %v3048_v16 = vld [vmem:[%s6186_s1 + $0x308] sm:$0xf] }
  0xac   :  { %2254 = vmatpush.bf16.msrb.mxu1 %v3145_v27  ;;  %v3208_v27 = vld [vmem:[%s6186_s1 + $0x448] sm:$0xf]  ;;  %v3049_v34 = vor.u32 %v3927_v18, %v3048_v16 }
  0xad   :  { %2235 = vmatpush.bf16.msrb.mxu0 %v3017_v26  ;;  %v2969_v26 = vor.u32 %v3907_v10, %v2968_v7  ;;  %v3959_v7 = vld [vmem:[%s6186_s1 + $0x414] sm:$0xf0]  ;;  %v2920_v10 = vld [vmem:[%s6186_s1 + $0x208] sm:$0xf] }
  0xae   :  { %2292 = vmatpush.bf16.msrb.mxu3 %v3401_v28  ;;  %v3967_v28 = vld [vmem:[%s6186_s1 + $0x454] sm:$0xf0]  ;;  %v3800_v22 = vld [vmem:[%s6186_s1 + $0x8e8] sm:$0xf] }
  0xaf   :  { %2274 = vmatpush.bf16.msrb.mxu2 %v3257_v40  ;;  %v3209_v37 = vor.u32 %v3967_v28, %v3208_v27  ;;  %v3963_v40 = vld [vmem:[%s6186_s1 + $0x434] sm:$0xf0]  ;;  %v3672_v27 = vld [vmem:[%s6186_s1 + $0x7e8] sm:$0xf]  ;;  %v3177_v28 = vor.u32 %v3959_v7, %v3176_v63 }
  0xb0   :  { %2255 = vmatpush.bf16.msrb.mxu1 %v3129_v45  ;;  %v2936_v45 = vld [vmem:[%s6186_s1 + $0x228] sm:$0xf]  ;;  %v3193_v62 = vor.u32 %v3963_v40, %v3192_v39 }
  0xb1   :  { %2236 = vmatpush.bf16.msrb.mxu0 %v3001_v41  ;;  %v1903_v41 = vpop.f32.mrf.mxu2  ;;  %v3528_v47 = vld [vmem:[%s6186_s1 + $0x6c8] sm:$0xf] }
  0xb2   :  { %2293 = vmatpush.bf16.msrb.mxu3 %v3385_v46  ;;  %v3899_v46 = vld [vmem:[%s6186_s1 + $0x234] sm:$0xf0]  ;;  %v1904_v49 = vadd.f32 %v1903_v41, %v1885_v25  ;;  %v1922_v52 = vpop.f32.mrf.mxu3  ;;  %v1868_v55 = vpop.f32.mrf.mxu0  ;;  %v3544_v25 = vld [vmem:[%s6186_s1 + $0x6e8] sm:$0xf] }
  0xb3   :  { %2275 = vmatpush.bf16.msrb.mxu2 %v3241_v60  ;;  %v3995_v60 = vld [vmem:[%s6186_s1 + $0x534] sm:$0xf0]  ;;  %v3784_v41 = vld [vmem:[%s6186_s1 + $0x8c8] sm:$0xf] }
  0xb4   :  { %2256 = vmatpush.bf16.msrb.mxu1 %v3113_v3  ;;  %v5459_v2 = vadd.f32 %v1922_v52, %v1904_v49  ;;  %v3321_v15 = vor.u32 %v3995_v60, %v3320_v59  ;;  %v4047_v49 = vld [vmem:[%s6186_s1 + $0x6d4] sm:$0xf0]  ;;  %v3656_v52 = vld [vmem:[%s6186_s1 + $0x7c8] sm:$0xf]  ;;  %v3853_v60 = vld [vmem:[%s6186_s1 + $0xcc] sm:$0xf] }
  0xb5   :  { %2237 = vmatpush.bf16.msrb.mxu0 %v2985_v61  ;;  %v1887_v61 = vpop.f32.mrf.mxu1  ;;  %v4079_v59 = vld [vmem:[%s6186_s1 + $0x7d4] sm:$0xf0]  ;;  %v3529_v63 = vor.u32 %v4047_v49, %v3528_v47  ;;  %v3768_v7 = vld [vmem:[%s6186_s1 + $0x8a8] sm:$0xf] }
  0xb6   :  { %2294 = vmatpush.bf16.msrb.mxu3 %v3369_v4  ;;  %v1888_v3 = vadd.f32 %v1887_v61, %v1868_v55  ;;  %v2937_v4 = vor.u32 %v3899_v46, %v2936_v45  ;;  %v2781_v46 = vor.u32 %v3857_v31, %v2778_v32  ;;  %v2762_v61 = vld [vmem:[%s6186_s1 + $0xd8] sm:$0xf0]  ;;  %v3640_v16 = vld [vmem:[%s6186_s1 + $0x7a8] sm:$0xf]  ;;  %v4103_v32 = vld [vmem:[%s6186_s1 + $0x894] sm:$0xf0] }
  0xb7   :  { %2276 = vmatpush.bf16.msrb.mxu2 %v3225_v23  ;;  %2190 = vmatmul.bf16.gmra.mxu1 %v5031_v21  ;;  %v4115_v23 = vld [vmem:[%s6186_s1 + $0x8f4] sm:$0xf0]  ;;  %v3752_v31 = vld [vmem:[%s6186_s1 + $0x888] sm:$0xf] }
  0xb8   :  { %2257 = vmatpush.bf16.msrb.mxu1 %v3097_v29  ;;  %2171 = vmatmul.bf16.gmra.mxu0 %v4818_v14  ;;  %v2921_v29 = vor.u32 %v3895_v11, %v2920_v10  ;;  %v3801_v39 = vor.u32 %v4115_v23, %v3800_v22  ;;  %v4107_v10 = vld [vmem:[%s6186_s1 + $0x8b4] sm:$0xf0]  ;;  %v3849_v22 = vld [vmem:[%s6186_s1 + $0xac] sm:$0xf]  ;;  %v2746_v23 = vld [vmem:[%s6186_s1 + $0xb8] sm:$0xf0] }
  0xb9   :  { %2238 = vmatpush.bf16.msrb.mxu0 %v2969_v26  ;;  %2209 = vmatmul.bf16.gmra.mxu2 %v4515_v44  ;;  %v4051_v26 = vld [vmem:[%s6186_s1 + $0x6f4] sm:$0xf0]  ;;  %v3480_v49 = vld [vmem:[%s6186_s1 + $0x668] sm:$0xf] }
  0xba   :  { %2295 = vmatpush.bf16.msrb.mxu3 %v3353_v30  ;;  %v4083_v30 = vld [vmem:[%s6186_s1 + $0x7f4] sm:$0xf0]  ;;  %v1906_v33 = vpop.f32.mrf.mxu2  ;;  %v3545_v40 = vor.u32 %v4051_v26, %v3544_v25 }
  0xbb   :  { %2277 = vmatpush.bf16.msrb.mxu2 %v3209_v37  ;;  %2228 = vmatmul.bf16.gmra.mxu3 %v4526_v50  ;;  %v1907_v36 = vadd.f32 %v1906_v33, %v1888_v3  ;;  %v1925_v37 = vpop.f32.mrf.mxu3  ;;  %v3673_v45 = vor.u32 %v4083_v30, %v3672_v27  ;;  %v3657_v3 = vor.u32 %v4079_v59, %v3656_v52  ;;  %v4035_v52 = vld [vmem:[%s6186_s1 + $0x674] sm:$0xf0] }
  0xbc   :  { %2258 = vmatpush.bf16.msrb.mxu1 %v3081_v42  ;;  %v4111_v42 = vld [vmem:[%s6186_s1 + $0x8d4] sm:$0xf0]  ;;  %v3641_v33 = vor.u32 %v4075_v20, %v3640_v16 }
  0xbd   :  { %2239 = vmatpush.bf16.msrb.mxu0 %v2953_v38  ;;  %v1870_v38 = vpop.f32.mrf.mxu0  ;;  %v5525_v55 = vadd.f32 %v1925_v37, %v1907_v36  ;;  %v3624_v36 = vld [vmem:[%s6186_s1 + $0x788] sm:$0xf]  ;;  %v4095_v16 = vld [vmem:[%s6186_s1 + $0x854] sm:$0xf0] }
  0xbe   :  { %2296 = vmatpush.bf16.msrb.mxu3 %v3337_v43  ;;  %v1889_v43 = vpop.f32.mrf.mxu1 }
  0xbf   :  { %2278 = vmatpush.bf16.msrb.mxu2 %v3193_v62  ;;  %v1890_v58 = vadd.f32 %v1889_v43, %v1870_v38  ;;  %v3785_v62 = vor.u32 %v4111_v42, %v3784_v41  ;;  %v4071_v38 = vld [vmem:[%s6186_s1 + $0x794] sm:$0xf0]  ;;  %v3753_v41 = vor.u32 %v4103_v32, %v3752_v31  ;;  %v3736_v43 = vld [vmem:[%s6186_s1 + $0x868] sm:$0xf] }
  0xc0   :  { %2259 = vmatpush.bf16.msrb.mxu1 %v3065_v12  ;;  %v3512_v12 = vld [vmem:[%s6186_s1 + $0x6a8] sm:$0xf] }
  0xc1   :  { %2240 = vmatpush.bf16.msrb.mxu0 %v2937_v4  ;;  %v2765_v4 = vor.u32 %v3853_v60, %v2762_v61  ;;  %v4067_v61 = vld [vmem:[%s6186_s1 + $0x774] sm:$0xf0]  ;;  %v3704_v32 = vld [vmem:[%s6186_s1 + $0x828] sm:$0xf] }
  0xc2   :  { %2297 = vmatpush.bf16.msrb.mxu3 %v3321_v15  ;;  %v1908_v11 = vpop.f32.mrf.mxu2  ;;  %v4043_v15 = vld [vmem:[%s6186_s1 + $0x6b4] sm:$0xf0] }
  0xc3   :  { %2279 = vmatpush.bf16.msrb.mxu2 %v3177_v28  ;;  %v1909_v18 = vadd.f32 %v1908_v11, %v1890_v58  ;;  %v1927_v19 = vpop.f32.mrf.mxu3  ;;  %v3513_v30 = vor.u32 %v4043_v15, %v3512_v12  ;;  %v3608_v58 = vld [vmem:[%s6186_s1 + $0x768] sm:$0xf]  ;;  %v3481_v12 = vor.u32 %v4035_v52, %v3480_v49 }
  0xc4   :  { %2260 = vmatpush.bf16.msrb.mxu1 %v3049_v34  ;;  %v2749_v34 = vor.u32 %v3849_v22, %v2746_v23  ;;  %v3720_v15 = vld [vmem:[%s6186_s1 + $0x848] sm:$0xf]  ;;  %v4031_v22 = vld [vmem:[%s6186_s1 + $0x654] sm:$0xf0] }
  0xc5   :  { %2241 = vmatpush.bf16.msrb.mxu0 %v2921_v29  ;;  %v1939_v25 = vpop.f32.mrf.mxu0  ;;  %v5560_v27 = vadd.f32 %v1927_v19, %v1909_v18  ;;  %v3769_v29 = vor.u32 %v4107_v10, %v3768_v7  ;;  %v3609_v19 = vor.u32 %v4067_v61, %v3608_v58  ;;  %v3592_v23 = vld [vmem:[%s6186_s1 + $0x748] sm:$0xf]  ;;  %v4023_v61 = vld [vmem:[%s6186_s1 + $0x614] sm:$0xf0] }
  0xc6   :  { %2298 = vmatpush.bf16.msrb.mxu3 %v3305_v35  ;;  %v1958_v26 = vpop.f32.mrf.mxu1  ;;  %v1940_v28 = vadd.f32 %v1939_v25, %v5406_v24  ;;  %v3496_v35 = vld [vmem:[%s6186_s1 + $0x688] sm:$0xf]  ;;  %v4039_v24 = vld [vmem:[%s6186_s1 + $0x694] sm:$0xf0] }
  0xc7   :  { %2348 = vmatpush.bf16.msra.mxu2 %v3801_v39  ;;  %2261 = vmatmul.bf16.vlgmr.msrb.gmra.mxu1 %v4404_v57  ;;  %v3845_v39 = vld [vmem:[%s6186_s1 + $0x8c] sm:$0xf]  ;;  %v3497_v42 = vor.u32 %v4039_v24, %v3496_v35  ;;  %v3448_v24 = vld [vmem:[%s6186_s1 + $0x628] sm:$0xf] }
  0xc8   :  { %2329 = vmatpush.bf16.msra.mxu1 %v3673_v45  ;;  %v1959_v37 = vadd.f32 %v1958_v26, %v1940_v28  ;;  %2242 = vmatmul.bf16.vlgmr.msrb.gmra.mxu0 %v4396_v54  ;;  %v4099_v45 = vld [vmem:[%s6186_s1 + $0x874] sm:$0xf0]  ;;  %v3837_v28 = vld [vmem:[%s6186_s1 + $0x4c] sm:$0xf] }
  0xc9   :  { %2310 = vmatpush.bf16.msra.mxu0 %v3545_v40  ;;  %v2730_v40 = vld [vmem:[%s6186_s1 + $0x98] sm:$0xf0]  ;;  %2280 = vmatmul.bf16.vlgmr.msrb.gmra.mxu2 %v4671_v0  ;;  %v3737_v11 = vor.u32 %v4099_v45, %v3736_v43  ;;  %v4063_v26 = vld [vmem:[%s6186_s1 + $0x754] sm:$0xf0] }
  0xca   :  { %2367 = vmatpush.bf16.msra.mxu3 %v2781_v46  ;;  %v3625_v46 = vor.u32 %v4071_v38, %v3624_v36  ;;  %v2733_v47 = vor.u32 %v3845_v39, %v2730_v40  ;;  %v4027_v36 = vld [vmem:[%s6186_s1 + $0x634] sm:$0xf0] }
  0xcb   :  { %2349 = vmatpush.bf16.msra.mxu2 %v3785_v62  ;;  %2299 = vmatmul.bf16.vlgmr.msrb.gmra.mxu3 %v4673_v1  ;;  %v3841_v62 = vld [vmem:[%s6186_s1 + $0x6c] sm:$0xf]  ;;  %v4059_v40 = vld [vmem:[%s6186_s1 + $0x734] sm:$0xf0]  ;;  %v3449_v58 = vor.u32 %v4027_v36, %v3448_v24 }
  0xcc   :  { %2330 = vmatpush.bf16.msra.mxu1 %v3657_v3  ;;  %v1977_v59 = vpop.f32.mrf.mxu2 }
  0xcd   :  { %2311 = vmatpush.bf16.msra.mxu0 %v3529_v63  ;;  %v2714_v63 = vld [vmem:[%s6186_s1 + $0x78] sm:$0xf0]  ;;  %v1978_v3 = vadd.f32 %v1977_v59, %v1959_v37  ;;  %v3576_v37 = vld [vmem:[%s6186_s1 + $0x728] sm:$0xf]  ;;  %v4087_v59 = vld [vmem:[%s6186_s1 + $0x814] sm:$0xf0] }
  0xce   :  { %2368 = vmatpush.bf16.msra.mxu3 %v2765_v4  ;;  %v1996_v60 = vpop.f32.mrf.mxu3  ;;  %v1941_v4 = vpop.f32.mrf.mxu0  ;;  %v2717_v20 = vor.u32 %v3841_v62, %v2714_v63 }
  0xcf   :  { %2350 = vmatpush.bf16.msra.mxu2 %v3769_v29  ;;  %v1960_v7 = vpop.f32.mrf.mxu1  ;;  %v1942_v10 = vadd.f32 %v1941_v4, %v5459_v2  ;;  %v5622_v18 = vadd.f32 %v1996_v60, %v1978_v3  ;;  %v3464_v2 = vld [vmem:[%s6186_s1 + $0x648] sm:$0xf]  ;;  %v2698_v29 = vld [vmem:[%s6186_s1 + $0x58] sm:$0xf0]  ;;  %v4055_v4 = vld [vmem:[%s6186_s1 + $0x714] sm:$0xf0] }
  0xd0   :  { %2331 = vmatpush.bf16.msra.mxu1 %v3641_v33  ;;  %v3465_v31 = vor.u32 %v4031_v22, %v3464_v2  ;;  %v4091_v33 = vld [vmem:[%s6186_s1 + $0x834] sm:$0xf0]  ;;  %v2701_v35 = vor.u32 %v3837_v28, %v2698_v29  ;;  %v3432_v60 = vld [vmem:[%s6186_s1 + $0x608] sm:$0xf] }
  0xd1   :  { %2312 = vmatpush.bf16.msra.mxu0 %v3513_v30  ;;  %v1961_v25 = vadd.f32 %v1960_v7, %v1942_v10  ;;  %v3721_v30 = vor.u32 %v4095_v16, %v3720_v15  ;;  %v3705_v52 = vor.u32 %v4091_v33, %v3704_v32  ;;  %v3560_v3 = vld [vmem:[%s6186_s1 + $0x708] sm:$0xf]  ;;  %v3829_v7 = vld [vmem:[%s6186_s1 + $0xc] sm:$0xf]  ;;  %v3162_v15 = vld [vmem:[%s6186_s1 + $0x3f8] sm:$0xf0]  ;;  %v3433_v22 = vor.u32 %v4023_v61, %v3432_v60 }
  0xd2   :  { %2369 = vmatpush.bf16.msra.mxu3 %v2749_v34  ;;  %v3593_v34 = vor.u32 %v4063_v26, %v3592_v23  ;;  %v3889_v16 = vld [vmem:[%s6186_s1 + $0x1ec] sm:$0xf]  ;;  %v3034_v23 = vld [vmem:[%s6186_s1 + $0x2f8] sm:$0xf0]  ;;  %v3561_v28 = vor.u32 %v4055_v4, %v3560_v3 }
  0xd3   :  { %2351 = vmatpush.bf16.msra.mxu2 %v3753_v41  ;;  %v3833_v41 = vld [vmem:[%s6186_s1 + $0x2c] sm:$0xf]  ;;  %v3290_v26 = vld [vmem:[%s6186_s1 + $0x4f8] sm:$0xf0] }
  0xd4   :  { %2332 = vmatpush.bf16.msra.mxu1 %v3625_v46  ;;  %v1979_v38 = vpop.f32.mrf.mxu2  ;;  %v3945_v61 = vld [vmem:[%s6186_s1 + $0x3ac] sm:$0xf]  ;;  %v2874_v3 = vld [vmem:[%s6186_s1 + $0x1b8] sm:$0xf0] }
  0xd5   :  { %2313 = vmatpush.bf16.msra.mxu0 %v3497_v42  ;;  %v2682_v42 = vld [vmem:[%s6186_s1 + $0x38] sm:$0xf0]  ;;  %v1980_v43 = vadd.f32 %v1979_v38, %v1961_v25  ;;  %v3985_v25 = vld [vmem:[%s6186_s1 + $0x4ec] sm:$0xf] }
  0xd6   :  { %2370 = vmatpush.bf16.msra.mxu3 %v2733_v47  ;;  %v1998_v39 = vpop.f32.mrf.mxu3  ;;  %v1944_v45 = vpop.f32.mrf.mxu0  ;;  %v3688_v47 = vld [vmem:[%s6186_s1 + $0x808] sm:$0xf]  ;;  %v2685_v63 = vor.u32 %v3833_v41, %v2682_v42  ;;  %v2890_v41 = vld [vmem:[%s6186_s1 + $0x1d8] sm:$0xf0]  ;;  %v3917_v42 = vld [vmem:[%s6186_s1 + $0x2cc] sm:$0xf] }
  0xd7   :  { %2352 = vmatpush.bf16.msra.mxu2 %v3737_v11  ;;  %v1963_v46 = vpop.f32.mrf.mxu1  ;;  %v1945_v49 = vadd.f32 %v1944_v45, %v5525_v55  ;;  %v5679_v62 = vadd.f32 %v1998_v39, %v1980_v43  ;;  %v3577_v55 = vor.u32 %v4059_v40, %v3576_v37  ;;  %2266 = vmatmul.bf16.gmra.mxu1 %v4536_v56  ;;  %v2666_v11 = vld [vmem:[%s6186_s1 + $0x18] sm:$0xf0]  ;;  %v3885_v40 = vld [vmem:[%s6186_s1 + $0x1cc] sm:$0xf] }
  0xd8   :  { %2333 = vmatpush.bf16.msra.mxu1 %v3609_v19  ;;  %2247 = vmatmul.bf16.gmra.mxu0 %v4528_v51  ;;  %v2906_v19 = vld [vmem:[%s6186_s1 + $0x1f8] sm:$0xf0]  ;;  %v3689_v2 = vor.u32 %v4087_v59, %v3688_v47  ;;  %v2669_v29 = vor.u32 %v3829_v7, %v2666_v11  ;;  %v3293_v39 = vor.u32 %v3985_v25, %v3290_v26  ;;  %v3913_v4 = vld [vmem:[%s6186_s1 + $0x2ac] sm:$0xf] }
  0xd9   :  { %2314 = vmatpush.bf16.msra.mxu0 %v3481_v12  ;;  %v1964_v10 = vadd.f32 %v1963_v46, %v1945_v49  ;;  %v3953_v12 = vld [vmem:[%s6186_s1 + $0x3ec] sm:$0xf]  ;;  %2285 = vmatmul.bf16.gmra.mxu2 %v4803_v8  ;;  %v2909_v33 = vor.u32 %v3889_v16, %v2906_v19  ;;  %v3018_v45 = vld [vmem:[%s6186_s1 + $0x2d8] sm:$0xf0] }
  0xda   :  { %2371 = vmatpush.bf16.msra.mxu3 %v2717_v20  ;;  %v3921_v20 = vld [vmem:[%s6186_s1 + $0x2ec] sm:$0xf]  ;;  %v3165_v32 = vor.u32 %v3953_v12, %v3162_v15  ;;  %v3274_v47 = vld [vmem:[%s6186_s1 + $0x4d8] sm:$0xf0]  ;;  %v3021_v59 = vor.u32 %v3917_v42, %v3018_v45 }
  0xdb   :  { %2353 = vmatpush.bf16.msra.mxu2 %v3721_v30  ;;  %2304 = vmatmul.bf16.gmra.mxu3 %v4805_v9  ;;  %v3037_v38 = vor.u32 %v3921_v20, %v3034_v23  ;;  %v3981_v46 = vld [vmem:[%s6186_s1 + $0x4cc] sm:$0xf]  ;;  %v3002_v11 = vld [vmem:[%s6186_s1 + $0x2b8] sm:$0xf0] }
  0xdc   :  { %2334 = vmatpush.bf16.msra.mxu1 %v3593_v34  ;;  %v1982_v30 = vpop.f32.mrf.mxu2  ;;  %v3949_v34 = vld [vmem:[%s6186_s1 + $0x3cc] sm:$0xf]  ;;  %v3277_v60 = vor.u32 %v3981_v46, %v3274_v47  ;;  %v3258_v15 = vld [vmem:[%s6186_s1 + $0x4b8] sm:$0xf0] }
  0xdd   :  { %2315 = vmatpush.bf16.msra.mxu0 %v3465_v31  ;;  %v1983_v24 = vadd.f32 %v1982_v30, %v1964_v10  ;;  %v3977_v12 = vld [vmem:[%s6186_s1 + $0x4ac] sm:$0xf]  ;;  %v3114_v26 = vld [vmem:[%s6186_s1 + $0x398] sm:$0xf0] }
  0xde   :  { %2372 = vmatpush.bf16.msra.mxu3 %v2701_v35  ;;  %v2001_v31 = vpop.f32.mrf.mxu3  ;;  %v3146_v35 = vld [vmem:[%s6186_s1 + $0x3d8] sm:$0xf0]  ;;  %v1946_v36 = vpop.f32.mrf.mxu0  ;;  %v3941_v25 = vld [vmem:[%s6186_s1 + $0x38c] sm:$0xf]  ;;  %v3261_v30 = vor.u32 %v3977_v12, %v3258_v15 }
  0xdf   :  { %2354 = vmatpush.bf16.msra.mxu2 %v3705_v52  ;;  %v1965_v37 = vpop.f32.mrf.mxu1  ;;  %v1947_v43 = vadd.f32 %v1946_v36, %v5560_v27  ;;  %v5746_v49 = vadd.f32 %v2001_v31, %v1983_v24  ;;  %v3149_v27 = vor.u32 %v3949_v34, %v3146_v35  ;;  %v3877_v31 = vld [vmem:[%s6186_s1 + $0x18c] sm:$0xf]  ;;  %v3242_v35 = vld [vmem:[%s6186_s1 + $0x498] sm:$0xf0]  ;;  %v3117_v24 = vor.u32 %v3941_v25, %v3114_v26 }
  0xe0   :  { %2335 = vmatpush.bf16.msra.mxu1 %v3577_v55  ;;  %v3130_v55 = vld [vmem:[%s6186_s1 + $0x3b8] sm:$0xf0]  ;;  %v3973_v34 = vld [vmem:[%s6186_s1 + $0x48c] sm:$0xf] }
  0xe1   :  { %2316 = vmatpush.bf16.msra.mxu0 %v3449_v58  ;;  %v1966_v52 = vadd.f32 %v1965_v37, %v1947_v43  ;;  %v2893_v58 = vor.u32 %v3885_v40, %v2890_v41  ;;  %v3937_v37 = vld [vmem:[%s6186_s1 + $0x36c] sm:$0xf]  ;;  %v3245_v40 = vor.u32 %v3973_v34, %v3242_v35  ;;  %v2842_v41 = vld [vmem:[%s6186_s1 + $0x178] sm:$0xf0] }
  0xe2   :  { %2373 = vmatpush.bf16.msra.mxu3 %v2685_v63  ;;  %v3881_v63 = vld [vmem:[%s6186_s1 + $0x1ac] sm:$0xf]  ;;  %v2970_v46 = vld [vmem:[%s6186_s1 + $0x278] sm:$0xf0] }
  0xe3   :  { %2355 = vmatpush.bf16.msra.mxu2 %v3689_v2  ;;  %v2877_v23 = vor.u32 %v3881_v63, %v2874_v3  ;;  %v3905_v42 = vld [vmem:[%s6186_s1 + $0x26c] sm:$0xf]  ;;  %v3082_v3 = vld [vmem:[%s6186_s1 + $0x358] sm:$0xf0] }
  0xe4   :  { %2336 = vmatpush.bf16.msra.mxu1 %v3561_v28  ;;  %v1984_v7 = vpop.f32.mrf.mxu2  ;;  %v3969_v47 = vld [vmem:[%s6186_s1 + $0x46c] sm:$0xf]  ;;  %v2954_v15 = vld [vmem:[%s6186_s1 + $0x258] sm:$0xf0] }
  0xe5   :  { %2317 = vmatpush.bf16.msra.mxu0 %v3433_v22  ;;  %v1985_v16 = vadd.f32 %v1984_v7, %v1966_v52  ;;  %v3133_v22 = vor.u32 %v3945_v61, %v3130_v55  ;;  %v3226_v52 = vld [vmem:[%s6186_s1 + $0x478] sm:$0xf0]  ;;  %v3933_v63 = vld [vmem:[%s6186_s1 + $0x34c] sm:$0xf]  ;;  %v2973_v7 = vor.u32 %v3905_v42, %v2970_v46 }
  0xe6   :  { %2374 = vmatpush.bf16.msra.mxu3 %v2669_v29  ;;  %v2003_v10 = vpop.f32.mrf.mxu3  ;;  %v2015_v19 = vpop.f32.mrf.mxu0  ;;  %v3005_v29 = vor.u32 %v3913_v4, %v3002_v11  ;;  %v2826_v11 = vld [vmem:[%s6186_s1 + $0x158] sm:$0xf0]  ;;  %v3901_v12 = vld [vmem:[%s6186_s1 + $0x24c] sm:$0xf] }
  0xe7   :  { %2424 = vmatpush.bf16.msrb.mxu2 %v3165_v32  ;;  %v2034_v20 = vpop.f32.mrf.mxu1  ;;  %v5773_v2 = vadd.f32 %v2015_v19, %v5622_v18  ;;  %v5781_v28 = vadd.f32 %v2003_v10, %v1985_v16  ;;  %v2858_v18 = vld [vmem:[%s6186_s1 + $0x198] sm:$0xf0]  ;;  %v3909_v32 = vld [vmem:[%s6186_s1 + $0x28c] sm:$0xf]  ;;  %2337 = vmatmul.bf16.vlgmr.msra.gmra.mxu1 %v4686_v6  ;;  %v3229_v10 = vor.u32 %v3969_v47, %v3226_v52 }
  0xe8   :  { %2405 = vmatpush.bf16.msrb.mxu1 %v3037_v38  ;;  %2318 = vmatmul.bf16.vlgmr.msra.gmra.mxu0 %v4684_v5  ;;  %v2861_v36 = vor.u32 %v3877_v31, %v2858_v18  ;;  %v3098_v38 = vld [vmem:[%s6186_s1 + $0x378] sm:$0xf0]  ;;  %v3965_v16 = vld [vmem:[%s6186_s1 + $0x44c] sm:$0xf]  ;;  %v2957_v26 = vor.u32 %v3901_v12, %v2954_v15 }
  0xe9   :  { %2386 = vmatpush.bf16.msrb.mxu0 %v2909_v33  ;;  %v2986_v33 = vld [vmem:[%s6186_s1 + $0x298] sm:$0xf0]  ;;  %2356 = vmatmul.bf16.vlgmr.msra.gmra.mxu2 %v4923_v17  ;;  %v3101_v61 = vor.u32 %v3937_v37, %v3098_v38  ;;  %v3897_v18 = vld [vmem:[%s6186_s1 + $0x22c] sm:$0xf] }
  0xea   :  { %2443 = vmatpush.bf16.msrb.mxu3 %v3293_v39  ;;  %v2989_v39 = vor.u32 %v3909_v32, %v2986_v33  ;;  %v3210_v19 = vld [vmem:[%s6186_s1 + $0x458] sm:$0xf0]  ;;  %v3961_v35 = vld [vmem:[%s6186_s1 + $0x42c] sm:$0xf] }
  0xeb   :  { %2425 = vmatpush.bf16.msrb.mxu2 %v3149_v27  ;;  %2375 = vmatmul.bf16.vlgmr.msra.gmra.mxu3 %v4383_v48  ;;  %v3873_v48 = vld [vmem:[%s6186_s1 + $0x16c] sm:$0xf]  ;;  %v3066_v25 = vld [vmem:[%s6186_s1 + $0x338] sm:$0xf0] }
  0xec   :  { %2406 = vmatpush.bf16.msrb.mxu1 %v3021_v59  ;;  %v2053_v43 = vpop.f32.mrf.mxu2  ;;  %v2845_v55 = vor.u32 %v3873_v48, %v2842_v41  ;;  %v2810_v31 = vld [vmem:[%s6186_s1 + $0x138] sm:$0xf0]  ;;  %v3893_v52 = vld [vmem:[%s6186_s1 + $0x20c] sm:$0xf] }
  0xed   :  { %2387 = vmatpush.bf16.msrb.mxu0 %v2893_v58  ;;  %v2054_v27 = vadd.f32 %v2053_v43, %v2034_v20  ;;  %v3085_v20 = vor.u32 %v3933_v63, %v3082_v3  ;;  %v2938_v34 = vld [vmem:[%s6186_s1 + $0x238] sm:$0xf0]  ;;  %v3861_v43 = vld [vmem:[%s6186_s1 + $0x10c] sm:$0xf] }
  0xee   :  { %2444 = vmatpush.bf16.msrb.mxu3 %v3277_v60  ;;  %v2072_v45 = vpop.f32.mrf.mxu3  ;;  %v2017_v58 = vpop.f32.mrf.mxu0  ;;  %v3050_v42 = vld [vmem:[%s6186_s1 + $0x318] sm:$0xf0]  ;;  %v4017_v63 = vld [vmem:[%s6186_s1 + $0x5ec] sm:$0xf] }
  0xef   :  { %2426 = vmatpush.bf16.msrb.mxu2 %v3133_v22  ;;  %v2036_v59 = vpop.f32.mrf.mxu1  ;;  %v5830_v60 = vadd.f32 %v2017_v58, %v5679_v62  ;;  %v5838_v4 = vadd.f32 %v2072_v45, %v2054_v27  ;;  %v3869_v62 = vld [vmem:[%s6186_s1 + $0x14c] sm:$0xf]  ;;  %v2794_v45 = vld [vmem:[%s6186_s1 + $0x118] sm:$0xf0] }
  0xf0   :  { %2407 = vmatpush.bf16.msrb.mxu1 %v3005_v29  ;;  %v2829_v22 = vor.u32 %v3869_v62, %v2826_v11  ;;  %v3213_v29 = vor.u32 %v3965_v16, %v3210_v19  ;;  %v2922_v27 = vld [vmem:[%s6186_s1 + $0x218] sm:$0xf0]  ;;  %v3957_v58 = vld [vmem:[%s6186_s1 + $0x40c] sm:$0xf]  ;;  %v2797_v62 = vor.u32 %v3861_v43, %v2794_v45 }
  0xf1   :  { %2388 = vmatpush.bf16.msrb.mxu0 %v2877_v23  ;;  %v3929_v23 = vld [vmem:[%s6186_s1 + $0x32c] sm:$0xf]  ;;  %v3418_v3 = vld [vmem:[%s6186_s1 + $0x5f8] sm:$0xf0]  ;;  %v2925_v15 = vor.u32 %v3893_v52, %v2922_v27 }
  0xf2   :  { %2445 = vmatpush.bf16.msrb.mxu3 %v3261_v30  ;;  %v3865_v30 = vld [vmem:[%s6186_s1 + $0x12c] sm:$0xf]  ;;  %v3069_v48 = vor.u32 %v3929_v23, %v3066_v25  ;;  %v3802_v12 = vld [vmem:[%s6186_s1 + $0x8f8] sm:$0xf0]  ;;  %v3421_v23 = vor.u32 %v4017_v63, %v3418_v3 }
  0xf3   :  { %2427 = vmatpush.bf16.msrb.mxu2 %v3117_v24  ;;  %v3194_v24 = vld [vmem:[%s6186_s1 + $0x438] sm:$0xf0]  ;;  %v2813_v41 = vor.u32 %v3865_v30, %v2810_v31  ;;  %v4113_v11 = vld [vmem:[%s6186_s1 + $0x8ec] sm:$0xf] }
  0xf4   :  { %2408 = vmatpush.bf16.msrb.mxu1 %v2989_v39  ;;  %v2055_v32 = vpop.f32.mrf.mxu2  ;;  %v3925_v39 = vld [vmem:[%s6186_s1 + $0x30c] sm:$0xf]  ;;  %v3197_v47 = vor.u32 %v3961_v35, %v3194_v24  ;;  %v3642_v45 = vld [vmem:[%s6186_s1 + $0x7b8] sm:$0xf0] }
  0xf5   :  { %2389 = vmatpush.bf16.msrb.mxu0 %v2861_v36  ;;  %v2056_v36 = vadd.f32 %v2055_v32, %v2036_v59  ;;  %v3178_v59 = vld [vmem:[%s6186_s1 + $0x418] sm:$0xf0]  ;;  %v4077_v25 = vld [vmem:[%s6186_s1 + $0x7cc] sm:$0xf]  ;;  %v3805_v32 = vor.u32 %v4113_v11, %v3802_v12 }
  0xf6   :  { %2446 = vmatpush.bf16.msrb.mxu3 %v3245_v40  ;;  %v2074_v33 = vpop.f32.mrf.mxu3  ;;  %v2020_v37 = vpop.f32.mrf.mxu0  ;;  %v3181_v16 = vor.u32 %v3957_v58, %v3178_v59  ;;  %v4045_v35 = vld [vmem:[%s6186_s1 + $0x6cc] sm:$0xf]  ;;  %v3514_v59 = vld [vmem:[%s6186_s1 + $0x6b8] sm:$0xf0] }
  0xf7   :  { %2428 = vmatpush.bf16.msrb.mxu2 %v3101_v61  ;;  %v2039_v38 = vpop.f32.mrf.mxu1  ;;  %v5886_v40 = vadd.f32 %v2020_v37, %v5746_v49  ;;  %v5897_v46 = vadd.f32 %v2074_v33, %v2056_v36  ;;  %v2941_v49 = vor.u32 %v3897_v18, %v2938_v34  ;;  %2342 = vmatmul.bf16.gmra.mxu1 %v4818_v14  ;;  %v4081_v61 = vld [vmem:[%s6186_s1 + $0x7ec] sm:$0xf]  ;;  %v3402_v34 = vld [vmem:[%s6186_s1 + $0x5d8] sm:$0xf0] }
  0xf8   :  { %2409 = vmatpush.bf16.msrb.mxu1 %v2973_v7  ;;  %2323 = vmatmul.bf16.gmra.mxu0 %v4816_v13  ;;  %v4049_v7 = vld [vmem:[%s6186_s1 + $0x6ec] sm:$0xf]  ;;  %v3530_v36 = vld [vmem:[%s6186_s1 + $0x6d8] sm:$0xf0] }
  0xf9   :  { %2390 = vmatpush.bf16.msrb.mxu0 %v2845_v55  ;;  %v3674_v55 = vld [vmem:[%s6186_s1 + $0x7f8] sm:$0xf0]  ;;  %2361 = vmatmul.bf16.gmra.mxu2 %v5031_v21  ;;  %v4013_v33 = vld [vmem:[%s6186_s1 + $0x5cc] sm:$0xf] }
  0xfa   :  { %2447 = vmatpush.bf16.msrb.mxu3 %v3229_v10  ;;  %v3053_v10 = vor.u32 %v3925_v39, %v3050_v42  ;;  %v4109_v37 = vld [vmem:[%s6186_s1 + $0x8cc] sm:$0xf]  ;;  %v3626_v12 = vld [vmem:[%s6186_s1 + $0x798] sm:$0xf0] }
  0xfb   :  { %2429 = vmatpush.bf16.msrb.mxu2 %v3085_v20  ;;  %2380 = vmatmul.bf16.gmra.mxu3 %v4515_v44  ;;  %v3546_v44 = vld [vmem:[%s6186_s1 + $0x6f8] sm:$0xf0]  ;;  %v4073_v43 = vld [vmem:[%s6186_s1 + $0x7ac] sm:$0xf] }
  0xfc   :  { %2410 = vmatpush.bf16.msrb.mxu1 %v2957_v26  ;;  %v2058_v19 = vpop.f32.mrf.mxu2  ;;  %v3658_v26 = vld [vmem:[%s6186_s1 + $0x7d8] sm:$0xf0]  ;;  %v3549_v18 = vor.u32 %v4049_v7, %v3546_v44  ;;  %v4041_v52 = vld [vmem:[%s6186_s1 + $0x6ac] sm:$0xf] }
  0xfd   :  { %2391 = vmatpush.bf16.msrb.mxu0 %v2829_v22  ;;  %v3677_v22 = vor.u32 %v4081_v61, %v3674_v55  ;;  %v4105_v61 = vld [vmem:[%s6186_s1 + $0x8ac] sm:$0xf]  ;;  %v3770_v55 = vld [vmem:[%s6186_s1 + $0x8b8] sm:$0xf0] }
  0xfe   :  { %2448 = vmatpush.bf16.msrb.mxu3 %v3213_v29  ;;  %v2077_v20 = vpop.f32.mrf.mxu3  ;;  %v2059_v29 = vadd.f32 %v2058_v19, %v2039_v38  ;;  %v2022_v30 = vpop.f32.mrf.mxu0  ;;  %v3786_v38 = vld [vmem:[%s6186_s1 + $0x8d8] sm:$0xf0]  ;;  %v4069_v11 = vld [vmem:[%s6186_s1 + $0x78c] sm:$0xf]  ;;  %v3773_v19 = vor.u32 %v4105_v61, %v3770_v55 }
  0xff   :  { %2430 = vmatpush.bf16.msrb.mxu2 %v3069_v48  ;;  %v2041_v31 = vpop.f32.mrf.mxu1  ;;  %v5955_v24 = vadd.f32 %v2022_v30, %v5781_v28  ;;  %v3661_v28 = vor.u32 %v4077_v25, %v3658_v26  ;;  %v3405_v48 = vor.u32 %v4013_v33, %v3402_v34  ;;  %v3789_v42 = vor.u32 %v4109_v37, %v3786_v38  ;;  %v3498_v25 = vld [vmem:[%s6186_s1 + $0x698] sm:$0xf0]  ;;  %v4101_v26 = vld [vmem:[%s6186_s1 + $0x88c] sm:$0xf] }
 0x100   :  { %2411 = vmatpush.bf16.msrb.mxu1 %v2941_v49  ;;  %v5966_v39 = vadd.f32 %v2077_v20, %v2059_v29  ;;  %v4009_v49 = vld [vmem:[%s6186_s1 + $0x5ac] sm:$0xf]  ;;  %v3754_v29 = vld [vmem:[%s6186_s1 + $0x898] sm:$0xf0] }
 0x101   :  { %2392 = vmatpush.bf16.msrb.mxu0 %v2813_v41  ;;  %v3533_v41 = vor.u32 %v4045_v35, %v3530_v36  ;;  %v4005_v20 = vld [vmem:[%s6186_s1 + $0x58c] sm:$0xf]  ;;  %v3482_v36 = vld [vmem:[%s6186_s1 + $0x678] sm:$0xf0] }
 0x102   :  { %2449 = vmatpush.bf16.msrb.mxu3 %v3197_v47  ;;  %v3386_v47 = vld [vmem:[%s6186_s1 + $0x5b8] sm:$0xf0]  ;;  %v4065_v30 = vld [vmem:[%s6186_s1 + $0x76c] sm:$0xf] }
 0x103   :  { %2431 = vmatpush.bf16.msrb.mxu2 %v3053_v10  ;;  %v3389_v44 = vor.u32 %v4009_v49, %v3386_v47  ;;  %v4033_v33 = vld [vmem:[%s6186_s1 + $0x66c] sm:$0xf]  ;;  %v3738_v38 = vld [vmem:[%s6186_s1 + $0x878] sm:$0xf0] }
 0x104   :  { %2412 = vmatpush.bf16.msrb.mxu1 %v2925_v15  ;;  %v2060_v27 = vpop.f32.mrf.mxu2  ;;  %v4097_v37 = vld [vmem:[%s6186_s1 + $0x86c] sm:$0xf]  ;;  %v3594_v47 = vld [vmem:[%s6186_s1 + $0x758] sm:$0xf0] }
 0x105   :  { %2393 = vmatpush.bf16.msrb.mxu0 %v2797_v62  ;;  %v2061_v63 = vadd.f32 %v2060_v27, %v2041_v31  ;;  %v3645_v62 = vor.u32 %v4073_v43, %v3642_v45  ;;  %v3610_v31 = vld [vmem:[%s6186_s1 + $0x778] sm:$0xf0]  ;;  %v4061_v49 = vld [vmem:[%s6186_s1 + $0x74c] sm:$0xf]  ;;  %v3485_v27 = vor.u32 %v4033_v33, %v3482_v36 }
 0x106   :  { %2450 = vmatpush.bf16.msrb.mxu3 %v3181_v16  ;;  %v2079_v58 = vpop.f32.mrf.mxu3  ;;  %v2091_v3 = vpop.f32.mrf.mxu0  ;;  %v3517_v16 = vor.u32 %v4041_v52, %v3514_v59  ;;  %v3613_v43 = vor.u32 %v4065_v30, %v3610_v31  ;;  %v3338_v59 = vld [vmem:[%s6186_s1 + $0x558] sm:$0xf0]  ;;  %v4029_v61 = vld [vmem:[%s6186_s1 + $0x64c] sm:$0xf] }
 0x107   :  { %2500 = vmatpush.bf16.msra.mxu2 %v3677_v22  ;;  %v2110_v7 = vpop.f32.mrf.mxu1  ;;  %v2092_v10 = vadd.f32 %v2091_v3, %v5838_v4  ;;  %v5999_v15 = vadd.f32 %v2079_v58, %v2061_v63  ;;  %v3370_v4 = vld [vmem:[%s6186_s1 + $0x598] sm:$0xf0]  ;;  %v4037_v22 = vld [vmem:[%s6186_s1 + $0x68c] sm:$0xf]  ;;  %2413 = vmatmul.bf16.vlgmr.msrb.gmra.mxu1 %v4396_v54  ;;  %v3741_v58 = vor.u32 %v4097_v37, %v3738_v38 }
 0x108   :  { %2481 = vmatpush.bf16.msra.mxu1 %v3549_v18  ;;  %2394 = vmatmul.bf16.vlgmr.msrb.gmra.mxu0 %v4394_v53  ;;  %v3629_v53 = vor.u32 %v4069_v11, %v3626_v12  ;;  %v3373_v54 = vor.u32 %v4005_v20, %v3370_v4  ;;  %v3501_v18 = vor.u32 %v4037_v22, %v3498_v25  ;;  %v3466_v63 = vld [vmem:[%s6186_s1 + $0x658] sm:$0xf0]  ;;  %v4093_v3 = vld [vmem:[%s6186_s1 + $0x84c] sm:$0xf] }
 0x109   :  { %2462 = vmatpush.bf16.msra.mxu0 %v3421_v23  ;;  %v2111_v23 = vadd.f32 %v2110_v7, %v2092_v10  ;;  %2432 = vmatmul.bf16.vlgmr.msrb.gmra.mxu2 %v4404_v57  ;;  %v4001_v57 = vld [vmem:[%s6186_s1 + $0x56c] sm:$0xf]  ;;  %v3722_v7 = vld [vmem:[%s6186_s1 + $0x858] sm:$0xf0]  ;;  %v3597_v10 = vor.u32 %v4061_v49, %v3594_v47  ;;  %v3469_v12 = vor.u32 %v4029_v61, %v3466_v63 }
 0x10a   :  { %2519 = vmatpush.bf16.msra.mxu3 %v3805_v32  ;;  %v3757_v32 = vor.u32 %v4101_v26, %v3754_v29  ;;  %v3578_v11 = vld [vmem:[%s6186_s1 + $0x738] sm:$0xf0]  ;;  %v4025_v4 = vld [vmem:[%s6186_s1 + $0x62c] sm:$0xf] }
 0x10b   :  { %2501 = vmatpush.bf16.msra.mxu2 %v3661_v28  ;;  %2451 = vmatmul.bf16.vlgmr.msrb.gmra.mxu3 %v4671_v0  ;;  %v3354_v0 = vld [vmem:[%s6186_s1 + $0x578] sm:$0xf0]  ;;  %v4089_v26 = vld [vmem:[%s6186_s1 + $0x82c] sm:$0xf] }
 0x10c   :  { %2482 = vmatpush.bf16.msra.mxu1 %v3533_v41  ;;  %v2129_v34 = vpop.f32.mrf.mxu2  ;;  %v3357_v45 = vor.u32 %v4001_v57, %v3354_v0  ;;  %v3322_v20 = vld [vmem:[%s6186_s1 + $0x538] sm:$0xf0]  ;;  %v4053_v57 = vld [vmem:[%s6186_s1 + $0x70c] sm:$0xf] }
 0x10d   :  { %2463 = vmatpush.bf16.msra.mxu0 %v3405_v48  ;;  %v2130_v28 = vadd.f32 %v2129_v34, %v2111_v23  ;;  %v3450_v25 = vld [vmem:[%s6186_s1 + $0x638] sm:$0xf0]  ;;  %v4021_v37 = vld [vmem:[%s6186_s1 + $0x60c] sm:$0xf] }
 0x10e   :  { %2520 = vmatpush.bf16.msra.mxu3 %v3789_v42  ;;  %v2148_v35 = vpop.f32.mrf.mxu3  ;;  %v2093_v48 = vpop.f32.mrf.mxu0  ;;  %v3706_v29 = vld [vmem:[%s6186_s1 + $0x838] sm:$0xf0]  ;;  %v3453_v34 = vor.u32 %v4025_v4, %v3450_v25 }
 0x10f   :  { %2502 = vmatpush.bf16.msra.mxu2 %v3645_v62  ;;  %v2112_v41 = vpop.f32.mrf.mxu1  ;;  %v2094_v42 = vadd.f32 %v2093_v48, %v5897_v46  ;;  %v6054_v52 = vadd.f32 %v2148_v35, %v2130_v28  ;;  %v3997_v46 = vld [vmem:[%s6186_s1 + $0x54c] sm:$0xf]  ;;  %v3562_v0 = vld [vmem:[%s6186_s1 + $0x718] sm:$0xf0]  ;;  %v3709_v35 = vor.u32 %v4089_v26, %v3706_v29 }
 0x110   :  { %2483 = vmatpush.bf16.msra.mxu1 %v3517_v16  ;;  %v3341_v62 = vor.u32 %v3997_v46, %v3338_v59  ;;  %v3725_v16 = vor.u32 %v4093_v3, %v3722_v7  ;;  %v3306_v36 = vld [vmem:[%s6186_s1 + $0x518] sm:$0xf0]  ;;  %v4085_v48 = vld [vmem:[%s6186_s1 + $0x80c] sm:$0xf] }
 0x111   :  { %2464 = vmatpush.bf16.msra.mxu0 %v3389_v44  ;;  %v2113_v55 = vadd.f32 %v2112_v41, %v2094_v42  ;;  %v4057_v44 = vld [vmem:[%s6186_s1 + $0x72c] sm:$0xf]  ;;  %v3434_v28 = vld [vmem:[%s6186_s1 + $0x618] sm:$0xf0] }
 0x112   :  { %2521 = vmatpush.bf16.msra.mxu3 %v3773_v19  ;;  %v3993_v19 = vld [vmem:[%s6186_s1 + $0x52c] sm:$0xf]  ;;  %v3690_v41 = vld [vmem:[%s6186_s1 + $0x818] sm:$0xf0]  ;;  %v3437_v42 = vor.u32 %v4021_v37, %v3434_v28 }
 0x113   :  { %2503 = vmatpush.bf16.msra.mxu2 %v3629_v53 }
 0x114   :  { %2484 = vmatpush.bf16.msra.mxu1 %v3501_v18  ;;  %v2131_v22 = vpop.f32.mrf.mxu2  ;;  %v3581_v18 = vor.u32 %v4057_v44, %v3578_v11 }
 0x115   :  { %2465 = vmatpush.bf16.msra.mxu0 %v3373_v54  ;;  %v2132_v53 = vadd.f32 %v2131_v22, %v2113_v55 }
 0x116   :  { %2522 = vmatpush.bf16.msra.mxu3 %v3757_v32  ;;  %v2150_v23 = vpop.f32.mrf.mxu3  ;;  %v2096_v54 = vpop.f32.mrf.mxu0  ;;  %v3325_v32 = vor.u32 %v3993_v19, %v3322_v20 }
 0x117   :  { %2504 = vmatpush.bf16.msra.mxu2 %v3613_v43  ;;  %v2115_v30 = vpop.f32.mrf.mxu1  ;;  %v2097_v31 = vadd.f32 %v2096_v54, %v5966_v39  ;;  %v2151_v33 = vadd.f32 %v2150_v23, %v2132_v53  ;;  %v3989_v39 = vld [vmem:[%s6186_s1 + $0x50c] sm:$0xf]  ;;  %2418 = vmatmul.bf16.gmra.mxu1 %v4528_v51  ;;  %v3693_v43 = vor.u32 %v4085_v48, %v3690_v41 }
 0x118   :  { %2485 = vmatpush.bf16.msra.mxu1 %v3485_v27  ;;  %2399 = vmatmul.bf16.gmra.mxu0 %v4526_v50  ;;  %v3565_v50 = vor.u32 %v4053_v57, %v3562_v0  ;;  %v3309_v51 = vor.u32 %v3989_v39, %v3306_v36 }
 0x119   :  { %2466 = vmatpush.bf16.msra.mxu0 %v3357_v45  ;;  %v2116_v38 = vadd.f32 %v2115_v30, %v2097_v31  ;;  %2437 = vmatmul.bf16.gmra.mxu2 %v4536_v56 }
 0x11a   :  { %2523 = vmatpush.bf16.msra.mxu3 %v3741_v58 }
 0x11b   :  { %2505 = vmatpush.bf16.msra.mxu2 %v3597_v10  ;;  %2456 = vmatmul.bf16.gmra.mxu3 %v4803_v8 }
 0x11c   :  { %2486 = vmatpush.bf16.msra.mxu1 %v3469_v12  ;;  %v2134_v45 = vpop.f32.mrf.mxu2 }
 0x11d   :  { %2467 = vmatpush.bf16.msra.mxu0 %v3341_v62  ;;  %v2135_v47 = vadd.f32 %v2134_v45, %v2116_v38 }
 0x11e   :  { %2524 = vmatpush.bf16.msra.mxu3 %v3725_v16  ;;  %v2153_v49 = vpop.f32.mrf.mxu3  ;;  %v2098_v27 = vpop.f32.mrf.mxu0 }
 0x11f   :  { %2506 = vmatpush.bf16.msra.mxu2 %v3581_v18  ;;  %v2117_v58 = vpop.f32.mrf.mxu1  ;;  %v2099_v46 = vadd.f32 %v2098_v27, %v5999_v15  ;;  %v2154_v56 = vadd.f32 %v2153_v49, %v2135_v47 }
 0x120   :  { %2487 = vmatpush.bf16.msra.mxu1 %v3453_v34 }
 0x121   :  { %2468 = vmatpush.bf16.msra.mxu0 %v3325_v32  ;;  %v2118_v8 = vadd.f32 %v2117_v58, %v2099_v46 }
 0x122   :  { %2525 = vmatpush.bf16.msra.mxu3 %v3709_v35 }
 0x123   :  { %2507 = vmatpush.bf16.msra.mxu2 %v3565_v50 }
 0x124   :  { %2488 = vmatpush.bf16.msra.mxu1 %v3437_v42  ;;  %v2136_v59 = vpop.f32.mrf.mxu2 }
 0x125   :  { %2469 = vmatpush.bf16.msra.mxu0 %v3309_v51  ;;  %v2137_v55 = vadd.f32 %v2136_v59, %v2118_v8 }
 0x126   :  { %2526 = vmatpush.bf16.msra.mxu3 %v3693_v43  ;;  %v2155_v61 = vpop.f32.mrf.mxu3  ;;  %v2167_v63 = vpop.f32.mrf.mxu0 }
 0x127   :  { %v2186_v3 = vpop.f32.mrf.mxu1  ;;  %v2168_v7 = vadd.f32 %v2167_v63, %v6054_v52  ;;  %v2156_v10 = vadd.f32 %v2155_v61, %v2137_v55  ;;  %2489 = vmatmul.bf16.vlgmr.msra.gmra.mxu1 %v4684_v5 }
 0x128   :  { %2470 = vmatmul.bf16.vlgmr.msra.gmra.mxu0 %v4673_v1 }
 0x129   :  { %v6129_v62 = vadd.f32 %v2186_v3, %v2168_v7  ;;  %2508 = vmatmul.bf16.vlgmr.msra.gmra.mxu2 %v4686_v6 }
 0x12b   :  { %2527 = vmatmul.bf16.vlgmr.msra.gmra.mxu3 %v4923_v17  ;;  %v2538_v15 = vmax.f32 %v5773_v2, %v6129_v62 }
 0x12c   :  { %v2205_v44 = vpop.f32.mrf.mxu2 }
 0x12e   :  { %v2224_v11 = vpop.f32.mrf.mxu3  ;;  %v2169_v16 = vpop.f32.mrf.mxu0 }
 0x12f   :  { %v2225_v12 = vadd.f32 %v2224_v11, %v2205_v44  ;;  %v2188_v19 = vpop.f32.mrf.mxu1  ;;  %v2170_v52 = vadd.f32 %v2169_v16, %v2151_v33 }
 0x131   :  { %v6137_v20 = vadd.f32 %v2188_v19, %v2170_v52 }
 0x133   :  { %v2539_v1 = vmax.f32 %v5830_v60, %v6137_v20 }
 0x134   :  { %v2207_v4 = vpop.f32.mrf.mxu2 }
 0x136   :  { %v2226_v5 = vpop.f32.mrf.mxu3  ;;  %v2172_v6 = vpop.f32.mrf.mxu0 }
 0x137   :  { %v2227_v22 = vadd.f32 %v2226_v5, %v2207_v4  ;;  %v2191_v23 = vpop.f32.mrf.mxu1  ;;  %v2173_v17 = vadd.f32 %v2172_v6, %v2154_v56  ;;  %2494 = vmatmul.bf16.gmra.mxu1 %v4816_v13 }
 0x138   :  { %2475 = vmatmul.bf16.gmra.mxu0 %v4805_v9 }
 0x139   :  { %v6141_v25 = vadd.f32 %v2191_v23, %v2173_v17  ;;  %2513 = vmatmul.bf16.gmra.mxu2 %v4818_v14 }
 0x13b   :  { %2532 = vmatmul.bf16.gmra.mxu3 %v5031_v21  ;;  %v2540_v26 = vmax.f32 %v5886_v40, %v6141_v25 }
 0x13c   :  { %v2210_v29 = vpop.f32.mrf.mxu2 }
 0x13e   :  { %v2229_v53 = vpop.f32.mrf.mxu3  ;;  %v2174_v30 = vpop.f32.mrf.mxu0 }
 0x13f   :  { %v2230_v54 = vadd.f32 %v2229_v53, %v2210_v29  ;;  %v2193_v31 = vpop.f32.mrf.mxu1  ;;  %v2175_v18 = vadd.f32 %v2174_v30, %v2156_v10 }
 0x141   :  { %v6149_v32 = vadd.f32 %v2193_v31, %v2175_v18 }
 0x143   :  { %v2541_v9 = vmax.f32 %v5955_v24, %v6149_v32 }
 0x144   :  { %v2212_v57 = vpop.f32.mrf.mxu2 }
 0x146   :  { %v2231_v13 = vpop.f32.mrf.mxu3  ;;  %v2243_v14 = vpop.f32.mrf.mxu0 }
 0x147   :  { %v2232_v0 = vadd.f32 %v2231_v13, %v2212_v57  ;;  %v2262_v33 = vpop.f32.mrf.mxu1  ;;  %v2244_v21 = vadd.f32 %v2243_v14, %v2225_v12 }
 0x149   :  { %v2263_v34 = vadd.f32 %v2262_v33, %v2244_v21 }
 0x14c   :  { %v2281_v35 = vpop.f32.mrf.mxu2 }
 0x14d   :  { %v2282_v36 = vadd.f32 %v2281_v35, %v2263_v34 }
 0x14e   :  { %v2300_v39 = vpop.f32.mrf.mxu3  ;;  %v2245_v37 = vpop.f32.mrf.mxu0 }
 0x14f   :  { %v2264_v38 = vpop.f32.mrf.mxu1  ;;  %v2246_v28 = vadd.f32 %v2245_v37, %v2227_v22  ;;  %v2301_v48 = vadd.f32 %v2300_v39, %v2282_v36 }
 0x151   :  { %v2265_v41 = vadd.f32 %v2264_v38, %v2246_v28 }
 0x154   :  { %v2283_v50 = vpop.f32.mrf.mxu2 }
 0x155   :  { %v2284_v42 = vadd.f32 %v2283_v50, %v2265_v41 }
 0x156   :  { %v2302_v51 = vpop.f32.mrf.mxu3  ;;  %v2248_v43 = vpop.f32.mrf.mxu0 }
 0x157   :  { %v2267_v45 = vpop.f32.mrf.mxu1  ;;  %v2249_v49 = vadd.f32 %v2248_v43, %v2230_v54  ;;  %v2303_v47 = vadd.f32 %v2302_v51, %v2284_v42 }
 0x159   :  { %v2268_v27 = vadd.f32 %v2267_v45, %v2249_v49 }
 0x15c   :  { %v2286_v58 = vpop.f32.mrf.mxu2 }
 0x15d   :  { %v2287_v56 = vadd.f32 %v2286_v58, %v2268_v27 }
 0x15e   :  { %v2305_v46 = vpop.f32.mrf.mxu3  ;;  %v2250_v8 = vpop.f32.mrf.mxu0 }
 0x15f   :  { %v2269_v59 = vpop.f32.mrf.mxu1  ;;  %v2251_v61 = vadd.f32 %v2250_v8, %v2232_v0  ;;  %v2306_v55 = vadd.f32 %v2305_v46, %v2287_v56 }
 0x161   :  { %v2270_v63 = vadd.f32 %v2269_v59, %v2251_v61 }
 0x164   :  { %v2288_v3 = vpop.f32.mrf.mxu2 }
 0x165   :  { %v2289_v10 = vadd.f32 %v2288_v3, %v2270_v63 }
 0x166   :  { %v2307_v7 = vpop.f32.mrf.mxu3  ;;  %v2319_v44 = vpop.f32.mrf.mxu0 }
 0x167   :  { %v2338_v11 = vpop.f32.mrf.mxu1  ;;  %v2320_v12 = vadd.f32 %v2319_v44, %v2301_v48  ;;  %v2308_v16 = vadd.f32 %v2307_v7, %v2289_v10 }
 0x169   :  { %v2339_v19 = vadd.f32 %v2338_v11, %v2320_v12 }
 0x16c   :  { %v2357_v52 = vpop.f32.mrf.mxu2 }
 0x16d   :  { %v6153_v5 = vadd.f32 %v2357_v52, %v2339_v19 }
 0x16e   :  { %v2376_v4 = vpop.f32.mrf.mxu3  ;;  %v2321_v22 = vpop.f32.mrf.mxu0 }
 0x16f   :  { %v2340_v6 = vpop.f32.mrf.mxu1  ;;  %v2322_v23 = vadd.f32 %v2321_v22, %v2303_v47 }
 0x171   :  { %v2341_v17 = vadd.f32 %v2340_v6, %v2322_v23 }
 0x174   :  { %v2359_v29 = vpop.f32.mrf.mxu2 }
 0x175   :  { %v6155_v54 = vadd.f32 %v2359_v29, %v2341_v17 }
 0x176   :  { %v2378_v53 = vpop.f32.mrf.mxu3  ;;  %v2324_v30 = vpop.f32.mrf.mxu0 }
 0x177   :  { %v2343_v31 = vpop.f32.mrf.mxu1  ;;  %v2325_v18 = vadd.f32 %v2324_v30, %v2306_v55 }
 0x179   :  { %v2344_v57 = vadd.f32 %v2343_v31, %v2325_v18 }
 0x17c   :  { %v2362_v13 = vpop.f32.mrf.mxu2 }
 0x17d   :  { %v6157_v14 = vadd.f32 %v2362_v13, %v2344_v57 }
 0x17e   :  { %v2381_v0 = vpop.f32.mrf.mxu3  ;;  %v2326_v33 = vpop.f32.mrf.mxu0 }
 0x17f   :  { %v2345_v21 = vpop.f32.mrf.mxu1  ;;  %v2327_v34 = vadd.f32 %v2326_v33, %v2308_v16 }
 0x181   :  { %v2346_v35 = vadd.f32 %v2345_v21, %v2327_v34 }
 0x184   :  { %v2364_v39 = vpop.f32.mrf.mxu2 }
 0x185   :  { %v6159_v37 = vadd.f32 %v2364_v39, %v2346_v35  ;;  %v4124_v35 = vld [vmem:[%s6188_s2] ss:$0 sm:$0xff] }
 0x186   :  { %v2383_v36 = vpop.f32.mrf.mxu3  ;;  %v2395_v38 = vpop.f32.mrf.mxu0 }
 0x187   :  { %v2414_v28 = vpop.f32.mrf.mxu1  ;;  %v2396_v47 = vadd.f32 %v2395_v38, %v2376_v4 }
 0x189   :  { %v2415_v8 = vadd.f32 %v2414_v28, %v2396_v47 }
 0x18c   :  { %v2433_v48 = vpop.f32.mrf.mxu2 }
 0x18d   :  { %v2434_v59 = vadd.f32 %v2433_v48, %v2415_v8 }
 0x18e   :  { %v2452_v41 = vpop.f32.mrf.mxu3  ;;  %v2397_v50 = vpop.f32.mrf.mxu0 }
 0x18f   :  { %v2416_v51 = vpop.f32.mrf.mxu1  ;;  %v2398_v61 = vadd.f32 %v2397_v50, %v2378_v53  ;;  %v2453_v3 = vadd.f32 %v2452_v41, %v2434_v59 }
 0x191   :  { %v2417_v44 = vadd.f32 %v2416_v51, %v2398_v61 }
 0x194   :  { %v2435_v42 = vpop.f32.mrf.mxu2 }
 0x195   :  { %v2436_v12 = vadd.f32 %v2435_v42, %v2417_v44 }
 0x196   :  { %v2454_v43 = vpop.f32.mrf.mxu3  ;;  %v2400_v45 = vpop.f32.mrf.mxu0 }
 0x197   :  { %v2419_v49 = vpop.f32.mrf.mxu1  ;;  %v2401_v16 = vadd.f32 %v2400_v45, %v2381_v0  ;;  %v2455_v4 = vadd.f32 %v2454_v43, %v2436_v12 }
 0x199   :  { %v2420_v29 = vadd.f32 %v2419_v49, %v2401_v16 }
 0x19c   :  { %v2438_v27 = vpop.f32.mrf.mxu2 }
 0x19d   :  { %v2439_v53 = vadd.f32 %v2438_v27, %v2420_v29 }
 0x19e   :  { %v2457_v58 = vpop.f32.mrf.mxu3  ;;  %v2402_v46 = vpop.f32.mrf.mxu0 }
 0x19f   :  { %v2421_v56 = vpop.f32.mrf.mxu1  ;;  %v2403_v57 = vadd.f32 %v2402_v46, %v2383_v36  ;;  %v2458_v34 = vadd.f32 %v2457_v58, %v2439_v53  ;;  %v4125_v46 = vmov 0.0  }
 0x1a1   :  { %v2422_v28 = vadd.f32 %v2421_v56, %v2403_v57 }
 0x1a4   :  { %v2440_v55 = vpop.f32.mrf.mxu2 }
 0x1a6   :  { %v2459_v63 = vpop.f32.mrf.mxu3  ;;  %v2471_v7 = vpop.f32.mrf.mxu0 }
 0x1a7   :  { %v2490_v10 = vpop.f32.mrf.mxu1  ;;  %v2472_v11 = vadd.f32 %v2471_v7, %v2453_v3 }
 0x1a9   :  { %v2491_v19 = vadd.f32 %v2490_v10, %v2472_v11 }
 0x1ac   :  { %v2509_v52 = vpop.f32.mrf.mxu2 }
 0x1ad   :  { %v2510_v6 = vadd.f32 %v2509_v52, %v2491_v19 }
 0x1ae   :  { %v2528_v22 = vpop.f32.mrf.mxu3  ;;  %v2473_v23 = vpop.f32.mrf.mxu0 }
 0x1af   :  { %v2492_v17 = vpop.f32.mrf.mxu1  ;;  %v2529_v30 = vadd.f32 %v2528_v22, %v2510_v6  ;;  %v2474_v31 = vadd.f32 %v2473_v23, %v2455_v4 }
 0x1b1   :  { %v2542_v18 = vmax.f32 %v6153_v5, %v2529_v30  ;;  %v2493_v33 = vadd.f32 %v2492_v17, %v2474_v31  ;;  %v2441_v5 = vadd.f32 %v2440_v55, %v2422_v28 }
 0x1b3   :  { %v2546_v13 = vmax.f32 %v2538_v15, %v2542_v18  ;;  %v2460_v43 = vadd.f32 %v2459_v63, %v2441_v5 }
 0x1b4   :  { %v2511_v0 = vpop.f32.mrf.mxu2 }
 0x1b5   :  { %v2512_v39 = vadd.f32 %v2511_v0, %v2493_v33  ;;  %v2554_v36 = vadd.f32 %v4124_v35, %v2546_v13 }
 0x1b6   :  { %v2530_v21 = vpop.f32.mrf.mxu3  ;;  %v2476_v38 = vpop.f32.mrf.mxu0 }
 0x1b7   :  { %v2531_v48 = vadd.f32 %v2530_v21, %v2512_v39  ;;  %v2477_v41 = vadd.f32 %v2476_v38, %v2458_v34  ;;  %v2495_v50 = vpop.f32.mrf.mxu1  ;;  %vm2558_vm0 = vcmp.gt.f32.partialorder %v2554_v36, 1.5986854 }
 0x1b8   :  { %v3806_v56 = vsel %vm2558_vm0, 1.0, %v4125_v46 }
 0x1b9   :  { %v2543_v51 = vmax.f32 %v6155_v54, %v2531_v48  ;;  %v2496_v62 = vadd.f32 %v2495_v50, %v2477_v41 }
 0x1bb   :  { %v2547_v2 = vmax.f32 %v2539_v1, %v2543_v51 }
 0x1bc   :  { %v2514_v15 = vpop.f32.mrf.mxu2 }
 0x1bd   :  { %v2555_v45 = vadd.f32 %v4124_v35, %v2547_v2  ;;  %v2515_v49 = vadd.f32 %v2514_v15, %v2496_v62 }
 0x1be   :  { %v2533_v42 = vpop.f32.mrf.mxu3  ;;  %v2478_v47 = vpop.f32.mrf.mxu0 }
 0x1bf   :  { %vm2559_vm1 = vcmp.gt.f32.partialorder %v2555_v45, 1.5986854  ;;  %v2534_v27 = vadd.f32 %v2533_v42, %v2515_v49  ;;  %v2479_v58 = vadd.f32 %v2478_v47, %v2460_v43  ;;  %v2497_v61 = vpop.f32.mrf.mxu1 }
 0x1c0   :  { %v3807_v8 = vsel %vm2559_vm1, 1.0, %v4125_v46 }
 0x1c1   :  { %v4117_v59 = vpack.c.bf16 %v3807_v8, %v3806_v56  ;;  %v2544_v54 = vmax.f32 %v6157_v14, %v2534_v27  ;;  %v2498_v20 = vadd.f32 %v2497_v61, %v2479_v58 }
 0x1c3   :  { %4118 = vst [vmem:[%s6189_s3] sm:$0xff] %v4117_v59   ;;  %v2548_v60 = vmax.f32 %v2540_v26, %v2544_v54 }
 0x1c4   :  { %v2516_v1 = vpop.f32.mrf.mxu2 }
 0x1c5   :  { %v2517_v55 = vadd.f32 %v2516_v1, %v2498_v20  ;;  %v2556_v7 = vadd.f32 %v4124_v35, %v2548_v60 }
 0x1c6   :  { %v2535_v63 = vpop.f32.mrf.mxu3 }
 0x1c7   :  { %v2536_v3 = vadd.f32 %v2535_v63, %v2517_v55  ;;  %vm2560_vm2 = vcmp.gt.f32.partialorder %v2556_v7, 1.5986854 }
 0x1c8   :  { %v3808_v11 = vsel %vm2560_vm2, 1.0, %v4125_v46 }
 0x1c9   :  { %v2545_v10 = vmax.f32 %v6159_v37, %v2536_v3 }
 0x1cb   :  { %v2549_v14 = vmax.f32 %v2541_v9, %v2545_v10 }
 0x1cd   :  { %v2557_v44 = vadd.f32 %v4124_v35, %v2549_v14 }
 0x1cf   :  { %vm2561_vm3 = vcmp.gt.f32.partialorder %v2557_v44, 1.5986854 }
 0x1d0   :  { %v3809_v12 = vsel %vm2561_vm3, 1.0, %v4125_v46 }
 0x1d1   :  { %v4120_v16 = vpack.c.bf16 %v3809_v12, %v3808_v11 }
 0x1d3   :  { %4122 = vst [vmem:[%s6189_s3 + $0x8] sm:$0xff] %v4120_v16  }

</bundles_post_ra>
